<compile_context>
chip_gen: v5e
topology: v5e:2x2
jax: 0.10.0
libtpu: 0.0.40
codegen_flags: <defaults>
</compile_context>

<pallas_src>
import jax
import jax.numpy as jnp
import numpy as np
from jax.experimental import pallas as pl
from jax.experimental.pallas import tpu as pltpu

EPS = 1e-5      # nn.BatchNorm2d default eps
LANES = 128


def _round_up(x, m):
    return (x + m - 1) // m * m


# --------------------------------- kernel -----------------------------------

def _make_kernel(n, h, w, c, cp):
    nhw = n * h * w
    inv_nhw = 1.0 / nhw

    def conv3x3(src_ref, w_ref):
        """3x3 conv as 9 accumulating MXU dots (bf16 x bf16 -> f32 acc).
        No materialized im2col, no lane concats."""
        acc = jnp.zeros((nhw, cp), jnp.float32)
        for kh in range(3):
            for kw in range(3):
                tap = src_ref[:, kh:kh + h, kw:kw + w, :]         # (n,h,w,cp)
                tap = tap.reshape(nhw, cp).astype(jnp.bfloat16)   # in-vreg cast
                acc += jnp.dot(tap, w_ref[3 * kh + kw],           # (cp,cp) bf16
                               preferred_element_type=jnp.float32)
        return acc

    def bn(acc, g_ref, b_ref):
        """Training-mode BatchNorm2d folded into per-channel scale/bias.
        Single pass: sum & sum-of-squares; biased variance, clamped >= 0."""
        s = jnp.sum(acc, axis=0, keepdims=True)
        ss = jnp.sum(acc * acc, axis=0, keepdims=True)
        mean = s * inv_nhw
        var = jnp.maximum(ss * inv_nhw - mean * mean, 0.0)
        scale = g_ref[...] * jax.lax.rsqrt(var + EPS)             # rsqrt -> EUP
        bias = b_ref[...] - mean * scale
        return acc * scale + bias

    def kernel(x_ref, w1_ref, g1_ref, b1_ref, w2_ref, g2_ref, b2_ref,
               o_ref, xpad_s, h1pad_s):
        # -- channel-pad the spatially pre-padded input into a zeroed slab ---
        #    (aligned, lane-masked store; avoids 16x HBM DMA inflation at C=8)
        xpad_s[...] = jnp.zeros_like(xpad_s)
        xpad_s[:, :, :, 0:c] = x_ref[...]

        # -- conv1 -> bn1 -> relu --------------------------------------------
        a1 = conv3x3(xpad_s, w1_ref)
        h1 = jnp.maximum(bn(a1, g1_ref, b1_ref), 0.0)

        # -- write h1 with a 1-px halo into a zeroed scratch (no concats) ----
        h1pad_s[...] = jnp.zeros_like(h1pad_s)
        h1pad_s[:, 1:1 + h, 1:1 + w, :] = h1.reshape(n, h, w, cp)

        # -- conv2 -> bn2 -> +identity residual -> relu -----------------------
        a2 = conv3x3(h1pad_s, w2_ref)
        y = bn(a2, g2_ref, b2_ref)                     # padded channels == 0
        # lane-dense full store first, then add the exact f32 residual on the
        # real channels (second store is a small masked-lane store).
        o_ref[...] = jnp.maximum(y, 0.0).astype(o_ref.dtype)
        res = x_ref[:, 1:1 + h, 1:1 + w, :].reshape(nhw, c)
        o_ref[:, 0:c] = jnp.maximum(y[:, 0:c] + res, 0.0).astype(o_ref.dtype)

    return kernel


# --------------------------------- wrapper ----------------------------------

def resblock_forward(x_nchw, w1, g1, b1, w2, g2, b2):
    """x_nchw: (N, C, H, W); conv weights in HWIO (3,3,C,C).
    stride=1, downsample=None -> identity residual (Cin == Cout == C)."""
    n, c, h, w = x_nchw.shape
    cp = _round_up(c, LANES)
    nhw = n * h * w

    x_nhwc = jnp.transpose(x_nchw, (0, 2, 3, 1))
    # spatial pad only (cheap); channel padding happens inside the kernel
    xsp = jnp.pad(x_nhwc, ((0, 0), (1, 1), (1, 1), (0, 0)))

    def prep_w(wk):            # (3,3,C,C) HWIO -> (9, Cp, Cp) bf16
        wk = jnp.pad(wk, ((0, 0), (0, 0), (0, cp - c), (0, cp - c)))
        return wk.reshape(9, cp, cp).astype(jnp.bfloat16)

    def prep_v(v):             # (C,) -> (1, Cp) f32
        return jnp.pad(v, (0, cp - c)).reshape(1, cp).astype(jnp.float32)

    vmem = pl.BlockSpec(memory_space=pltpu.MemorySpace.VMEM)
    flops = 2 * (2 * nhw * 9 * cp * cp)                # two 3x3 conv GEMMs
    bytes_accessed = (xsp.size * 4                     # compact padded input
                      + 2 * 9 * cp * cp * 2            # bf16 weights
                      + 4 * cp * 4                     # gamma/beta
                      + nhw * cp * 4)                  # lane-dense output

    out = pl.pallas_call(
        _make_kernel(n, h, w, c, cp),
        out_shape=jax.ShapeDtypeStruct((nhw, cp), x_nchw.dtype),
        in_specs=[vmem] * 7,
        out_specs=vmem,
        scratch_shapes=[
            pltpu.VMEM((n, h + 2, w + 2, cp), jnp.float32),   # padded input
            pltpu.VMEM((n, h + 2, w + 2, cp), jnp.float32),   # padded h1
        ],
        compiler_params=pltpu.CompilerParams(
            vmem_limit_bytes=48 * 1024 * 1024),
        cost_estimate=pl.CostEstimate(
            flops=flops, transcendentals=2 * cp,
            bytes_accessed=bytes_accessed),
    )(xsp, prep_w(w1), prep_v(g1), prep_v(b1), prep_w(w2), prep_v(g2),
      prep_v(b2))

    out = out.reshape(n, h, w, cp)[..., :c]            # drop padded channels
    return jnp.transpose(out, (0, 3, 1, 2))            # back to NCHW


# --------------------------- pure-JAX reference ------------------------------

def resblock_reference(x_nchw, w1, g1, b1, w2, g2, b2):
    def conv(x, wk):
        return jax.lax.conv_general_dilated(
            x, wk, window_strides=(1, 1), padding=((1, 1), (1, 1)),
            dimension_numbers=("NCHW", "HWIO", "NCHW"),
            precision=jax.lax.Precision.HIGHEST)

    def bn(x, g, b):
        mean = jnp.mean(x, axis=(0, 2, 3), keepdims=True)
        var = jnp.mean((x - mean) ** 2, axis=(0, 2, 3), keepdims=True)
        xn = (x - mean) * jax.lax.rsqrt(var + EPS)
        return xn * g.reshape(1, -1, 1, 1) + b.reshape(1, -1, 1, 1)

    hmid = jax.nn.relu(bn(conv(x_nchw, w1), g1, b1))
    return jax.nn.relu(bn(conv(hmid, w2), g2, b2) + x_nchw)


# ----------------------------------- main ------------------------------------

if __name__ == "__main__":
    # ResBlock(inplanes=8, planes=8, stride=1, downsample=None)
    N, C, H, W = 2, 8, 16, 16

    key = jax.random.PRNGKey(0)
    kx, kw1, kw2, kg1, kb1, kg2, kb2 = jax.random.split(key, 7)
    x = jax.random.normal(kx, (N, C, H, W), jnp.float32)

    # conv weights in HWIO, bias=False; BN affine params (non-trivial).
    w1 = jax.random.normal(kw1, (3, 3, C, C), jnp.float32) * 0.1
    w2 = jax.random.normal(kw2, (3, 3, C, C), jnp.float32) * 0.1
    g1 = 1.0 + 0.1 * jax.random.normal(kg1, (C,), jnp.float32)
    b1 = 0.1 * jax.random.normal(kb1, (C,), jnp.float32)
    g2 = 1.0 + 0.1 * jax.random.normal(kg2, (C,), jnp.float32)
    b2 = 0.1 * jax.random.normal(kb2, (C,), jnp.float32)

    out = jax.block_until_ready(resblock_forward(x, w1, g1, b1, w2, g2, b2))
    ref = jax.block_until_ready(resblock_reference(x, w1, g1, b1, w2, g2, b2))

    assert out.shape == (N, C, H, W)
    # bf16 MXU operands (f32 accumulation) set the achievable tolerance here;
    # the f32-HIGHEST reference differs by O(1e-2) absolute after two BN stages.
    np.testing.assert_allclose(np.asarray(out), np.asarray(ref),
                               rtol=3e-2, atol=3e-2)
    print("KERNEL_OK")
</pallas_src>

<mosaic_0001>
module attributes {stable_mosaic.version = 11 : i64} {
  func.func @kernel(%arg0: memref<2x18x18x8xf32, #tpu.memory_space<vmem>>, %arg1: memref<9x128x128xbf16, #tpu.memory_space<vmem>>, %arg2: memref<1x128xf32, #tpu.memory_space<vmem>>, %arg3: memref<1x128xf32, #tpu.memory_space<vmem>>, %arg4: memref<9x128x128xbf16, #tpu.memory_space<vmem>>, %arg5: memref<1x128xf32, #tpu.memory_space<vmem>>, %arg6: memref<1x128xf32, #tpu.memory_space<vmem>>, %arg7: memref<512x128xf32, #tpu.memory_space<vmem>>, %arg8: memref<2x18x18x128xf32, #tpu.memory_space<vmem>>, %arg9: memref<2x18x18x128xf32, #tpu.memory_space<vmem>>) attributes {dimension_semantics = [], scalar_prefetch = 0 : i64, scratch_operands = 2 : i64, tpu.core_type = #tpu.core_type<tc>} {
    %cst = arith.constant 0.000000e+00 : f32
    %0 = vector.broadcast %cst : f32 to vector<2x18x18x128xf32>
    %c0 = arith.constant 0 : index
    %c0_0 = arith.constant 0 : index
    %c0_1 = arith.constant 0 : index
    %c0_2 = arith.constant 0 : index
    %1 = vector.load %arg8[%c0, %c0_0, %c0_1, %c0_2] : memref<2x18x18x128xf32, #tpu.memory_space<vmem>>, vector<2x18x18x128xf32>
    tpu.vector_store %arg8[%c0, %c0_0, %c0_1, %c0_2], %0 {strides = array<i32>} : memref<2x18x18x128xf32, #tpu.memory_space<vmem>>, vector<2x18x18x128xf32>,
    %c0_3 = arith.constant 0 : index
    %c0_4 = arith.constant 0 : index
    %c0_5 = arith.constant 0 : index
    %c0_6 = arith.constant 0 : index
    %2 = vector.load %arg0[%c0_3, %c0_4, %c0_5, %c0_6] : memref<2x18x18x8xf32, #tpu.memory_space<vmem>>, vector<2x18x18x8xf32>
    %c0_7 = arith.constant 0 : index
    %c0_8 = arith.constant 0 : index
    %c0_9 = arith.constant 0 : index
    %c0_10 = arith.constant 0 : index
    %3 = vector.load %arg8[%c0_7, %c0_8, %c0_9, %c0_10] : memref<2x18x18x128xf32, #tpu.memory_space<vmem>>, vector<2x18x18x8xf32>
    tpu.vector_store %arg8[%c0_7, %c0_8, %c0_9, %c0_10], %2 {strides = array<i32>} : memref<2x18x18x128xf32, #tpu.memory_space<vmem>>, vector<2x18x18x8xf32>,
    %cst_11 = arith.constant 0.000000e+00 : f32
    %4 = vector.broadcast %cst_11 : f32 to vector<512x128xf32>
    %c0_12 = arith.constant 0 : index
    %c0_13 = arith.constant 0 : index
    %c0_14 = arith.constant 0 : index
    %c0_15 = arith.constant 0 : index
    %5 = vector.load %arg8[%c0_12, %c0_13, %c0_14, %c0_15] : memref<2x18x18x128xf32, #tpu.memory_space<vmem>>, vector<2x16x16x128xf32>
    %6 = vector.shape_cast %5 : vector<2x16x16x128xf32> to vector<512x128xf32>
    %7 = arith.truncf %6 : vector<512x128xf32> to vector<512x128xbf16>
    %c0_16 = arith.constant 0 : index
    %c0_17 = arith.constant 0 : index
    %c0_18 = arith.constant 0 : index
    %8 = vector.load %arg1[%c0_16, %c0_17, %c0_18] : memref<9x128x128xbf16, #tpu.memory_space<vmem>>, vector<1x128x128xbf16>
    %9 = vector.shape_cast %8 : vector<1x128x128xbf16> to vector<128x128xbf16>
    %cst_19 = arith.constant dense<0.000000e+00> : vector<512x128xf32>
    %10 = tpu.matmul %7, %9, %cst_19 {dimension_numbers = #tpu.dot_dimension_numbers<[1], [0], [0], [1], [0, 0, 1, 1], [], []>} : vector<512x128xbf16>, vector<128x128xbf16>, vector<512x128xf32> -> vector<512x128xf32>
    %11 = arith.addf %4, %10 : vector<512x128xf32>
    %c0_20 = arith.constant 0 : index
    %c0_21 = arith.constant 0 : index
    %c1 = arith.constant 1 : index
    %c0_22 = arith.constant 0 : index
    %12 = vector.load %arg8[%c0_20, %c0_21, %c1, %c0_22] : memref<2x18x18x128xf32, #tpu.memory_space<vmem>>, vector<2x16x16x128xf32>
    %13 = vector.shape_cast %12 : vector<2x16x16x128xf32> to vector<512x128xf32>
    %14 = arith.truncf %13 : vector<512x128xf32> to vector<512x128xbf16>
    %c1_23 = arith.constant 1 : index
    %c0_24 = arith.constant 0 : index
    %c0_25 = arith.constant 0 : index
    %15 = vector.load %arg1[%c1_23, %c0_24, %c0_25] : memref<9x128x128xbf16, #tpu.memory_space<vmem>>, vector<1x128x128xbf16>
    %16 = vector.shape_cast %15 : vector<1x128x128xbf16> to vector<128x128xbf16>
    %cst_26 = arith.constant dense<0.000000e+00> : vector<512x128xf32>
    %17 = tpu.matmul %14, %16, %cst_26 {dimension_numbers = #tpu.dot_dimension_numbers<[1], [0], [0], [1], [0, 0, 1, 1], [], []>} : vector<512x128xbf16>, vector<128x128xbf16>, vector<512x128xf32> -> vector<512x128xf32>
    %18 = arith.addf %11, %17 : vector<512x128xf32>
    %c0_27 = arith.constant 0 : index
    %c0_28 = arith.constant 0 : index
    %c2 = arith.constant 2 : index
    %c0_29 = arith.constant 0 : index
    %19 = vector.load %arg8[%c0_27, %c0_28, %c2, %c0_29] : memref<2x18x18x128xf32, #tpu.memory_space<vmem>>, vector<2x16x16x128xf32>
    %20 = vector.shape_cast %19 : vector<2x16x16x128xf32> to vector<512x128xf32>
    %21 = arith.truncf %20 : vector<512x128xf32> to vector<512x128xbf16>
    %c2_30 = arith.constant 2 : index
    %c0_31 = arith.constant 0 : index
    %c0_32 = arith.constant 0 : index
    %22 = vector.load %arg1[%c2_30, %c0_31, %c0_32] : memref<9x128x128xbf16, #tpu.memory_space<vmem>>, vector<1x128x128xbf16>
    %23 = vector.shape_cast %22 : vector<1x128x128xbf16> to vector<128x128xbf16>
    %cst_33 = arith.constant dense<0.000000e+00> : vector<512x128xf32>
    %24 = tpu.matmul %21, %23, %cst_33 {dimension_numbers = #tpu.dot_dimension_numbers<[1], [0], [0], [1], [0, 0, 1, 1], [], []>} : vector<512x128xbf16>, vector<128x128xbf16>, vector<512x128xf32> -> vector<512x128xf32>
    %25 = arith.addf %18, %24 : vector<512x128xf32>
    %c0_34 = arith.constant 0 : index
    %c1_35 = arith.constant 1 : index
    %c0_36 = arith.constant 0 : index
    %c0_37 = arith.constant 0 : index
    %26 = vector.load %arg8[%c0_34, %c1_35, %c0_36, %c0_37] : memref<2x18x18x128xf32, #tpu.memory_space<vmem>>, vector<2x16x16x128xf32>
    %27 = vector.shape_cast %26 : vector<2x16x16x128xf32> to vector<512x128xf32>
    %28 = arith.truncf %27 : vector<512x128xf32> to vector<512x128xbf16>
    %c3 = arith.constant 3 : index
    %c0_38 = arith.constant 0 : index
    %c0_39 = arith.constant 0 : index
    %29 = vector.load %arg1[%c3, %c0_38, %c0_39] : memref<9x128x128xbf16, #tpu.memory_space<vmem>>, vector<1x128x128xbf16>
    %30 = vector.shape_cast %29 : vector<1x128x128xbf16> to vector<128x128xbf16>
    %cst_40 = arith.constant dense<0.000000e+00> : vector<512x128xf32>
    %31 = tpu.matmul %28, %30, %cst_40 {dimension_numbers = #tpu.dot_dimension_numbers<[1], [0], [0], [1], [0, 0, 1, 1], [], []>} : vector<512x128xbf16>, vector<128x128xbf16>, vector<512x128xf32> -> vector<512x128xf32>
    %32 = arith.addf %25, %31 : vector<512x128xf32>
    %c0_41 = arith.constant 0 : index
    %c1_42 = arith.constant 1 : index
    %c1_43 = arith.constant 1 : index
    %c0_44 = arith.constant 0 : index
    %33 = vector.load %arg8[%c0_41, %c1_42, %c1_43, %c0_44] : memref<2x18x18x128xf32, #tpu.memory_space<vmem>>, vector<2x16x16x128xf32>
    %34 = vector.shape_cast %33 : vector<2x16x16x128xf32> to vector<512x128xf32>
    %35 = arith.truncf %34 : vector<512x128xf32> to vector<512x128xbf16>
    %c4 = arith.constant 4 : index
    %c0_45 = arith.constant 0 : index
    %c0_46 = arith.constant 0 : index
    %36 = vector.load %arg1[%c4, %c0_45, %c0_46] : memref<9x128x128xbf16, #tpu.memory_space<vmem>>, vector<1x128x128xbf16>
    %37 = vector.shape_cast %36 : vector<1x128x128xbf16> to vector<128x128xbf16>
    %cst_47 = arith.constant dense<0.000000e+00> : vector<512x128xf32>
    %38 = tpu.matmul %35, %37, %cst_47 {dimension_numbers = #tpu.dot_dimension_numbers<[1], [0], [0], [1], [0, 0, 1, 1], [], []>} : vector<512x128xbf16>, vector<128x128xbf16>, vector<512x128xf32> -> vector<512x128xf32>
    %39 = arith.addf %32, %38 : vector<512x128xf32>
    %c0_48 = arith.constant 0 : index
    %c1_49 = arith.constant 1 : index
    %c2_50 = arith.constant 2 : index
    %c0_51 = arith.constant 0 : index
    %40 = vector.load %arg8[%c0_48, %c1_49, %c2_50, %c0_51] : memref<2x18x18x128xf32, #tpu.memory_space<vmem>>, vector<2x16x16x128xf32>
    %41 = vector.shape_cast %40 : vector<2x16x16x128xf32> to vector<512x128xf32>
    %42 = arith.truncf %41 : vector<512x128xf32> to vector<512x128xbf16>
    %c5 = arith.constant 5 : index
    %c0_52 = arith.constant 0 : index
    %c0_53 = arith.constant 0 : index
    %43 = vector.load %arg1[%c5, %c0_52, %c0_53] : memref<9x128x128xbf16, #tpu.memory_space<vmem>>, vector<1x128x128xbf16>
    %44 = vector.shape_cast %43 : vector<1x128x128xbf16> to vector<128x128xbf16>
    %cst_54 = arith.constant dense<0.000000e+00> : vector<512x128xf32>
    %45 = tpu.matmul %42, %44, %cst_54 {dimension_numbers = #tpu.dot_dimension_numbers<[1], [0], [0], [1], [0, 0, 1, 1], [], []>} : vector<512x128xbf16>, vector<128x128xbf16>, vector<512x128xf32> -> vector<512x128xf32>
    %46 = arith.addf %39, %45 : vector<512x128xf32>
    %c0_55 = arith.constant 0 : index
    %c2_56 = arith.constant 2 : index
    %c0_57 = arith.constant 0 : index
    %c0_58 = arith.constant 0 : index
    %47 = vector.load %arg8[%c0_55, %c2_56, %c0_57, %c0_58] : memref<2x18x18x128xf32, #tpu.memory_space<vmem>>, vector<2x16x16x128xf32>
    %48 = vector.shape_cast %47 : vector<2x16x16x128xf32> to vector<512x128xf32>
    %49 = arith.truncf %48 : vector<512x128xf32> to vector<512x128xbf16>
    %c6 = arith.constant 6 : index
    %c0_59 = arith.constant 0 : index
    %c0_60 = arith.constant 0 : index
    %50 = vector.load %arg1[%c6, %c0_59, %c0_60] : memref<9x128x128xbf16, #tpu.memory_space<vmem>>, vector<1x128x128xbf16>
    %51 = vector.shape_cast %50 : vector<1x128x128xbf16> to vector<128x128xbf16>
    %cst_61 = arith.constant dense<0.000000e+00> : vector<512x128xf32>
    %52 = tpu.matmul %49, %51, %cst_61 {dimension_numbers = #tpu.dot_dimension_numbers<[1], [0], [0], [1], [0, 0, 1, 1], [], []>} : vector<512x128xbf16>, vector<128x128xbf16>, vector<512x128xf32> -> vector<512x128xf32>
    %53 = arith.addf %46, %52 : vector<512x128xf32>
    %c0_62 = arith.constant 0 : index
    %c2_63 = arith.constant 2 : index
    %c1_64 = arith.constant 1 : index
    %c0_65 = arith.constant 0 : index
    %54 = vector.load %arg8[%c0_62, %c2_63, %c1_64, %c0_65] : memref<2x18x18x128xf32, #tpu.memory_space<vmem>>, vector<2x16x16x128xf32>
    %55 = vector.shape_cast %54 : vector<2x16x16x128xf32> to vector<512x128xf32>
    %56 = arith.truncf %55 : vector<512x128xf32> to vector<512x128xbf16>
    %c7 = arith.constant 7 : index
    %c0_66 = arith.constant 0 : index
    %c0_67 = arith.constant 0 : index
    %57 = vector.load %arg1[%c7, %c0_66, %c0_67] : memref<9x128x128xbf16, #tpu.memory_space<vmem>>, vector<1x128x128xbf16>
    %58 = vector.shape_cast %57 : vector<1x128x128xbf16> to vector<128x128xbf16>
    %cst_68 = arith.constant dense<0.000000e+00> : vector<512x128xf32>
    %59 = tpu.matmul %56, %58, %cst_68 {dimension_numbers = #tpu.dot_dimension_numbers<[1], [0], [0], [1], [0, 0, 1, 1], [], []>} : vector<512x128xbf16>, vector<128x128xbf16>, vector<512x128xf32> -> vector<512x128xf32>
    %60 = arith.addf %53, %59 : vector<512x128xf32>
    %c0_69 = arith.constant 0 : index
    %c2_70 = arith.constant 2 : index
    %c2_71 = arith.constant 2 : index
    %c0_72 = arith.constant 0 : index
    %61 = vector.load %arg8[%c0_69, %c2_70, %c2_71, %c0_72] : memref<2x18x18x128xf32, #tpu.memory_space<vmem>>, vector<2x16x16x128xf32>
    %62 = vector.shape_cast %61 : vector<2x16x16x128xf32> to vector<512x128xf32>
    %63 = arith.truncf %62 : vector<512x128xf32> to vector<512x128xbf16>
    %c8 = arith.constant 8 : index
    %c0_73 = arith.constant 0 : index
    %c0_74 = arith.constant 0 : index
    %64 = vector.load %arg1[%c8, %c0_73, %c0_74] : memref<9x128x128xbf16, #tpu.memory_space<vmem>>, vector<1x128x128xbf16>
    %65 = vector.shape_cast %64 : vector<1x128x128xbf16> to vector<128x128xbf16>
    %cst_75 = arith.constant dense<0.000000e+00> : vector<512x128xf32>
    %66 = tpu.matmul %63, %65, %cst_75 {dimension_numbers = #tpu.dot_dimension_numbers<[1], [0], [0], [1], [0, 0, 1, 1], [], []>} : vector<512x128xbf16>, vector<128x128xbf16>, vector<512x128xf32> -> vector<512x128xf32>
    %67 = arith.addf %60, %66 : vector<512x128xf32>
    %cst_76 = arith.constant dense<0.000000e+00> : vector<128xf32>
    %68 = vector.multi_reduction <add>, %67, %cst_76 [0] : vector<512x128xf32> to vector<128xf32>
    %69 = vector.shape_cast %68 : vector<128xf32> to vector<1x128xf32>
    %70 = arith.mulf %67, %67 : vector<512x128xf32>
    %cst_77 = arith.constant dense<0.000000e+00> : vector<128xf32>
    %71 = vector.multi_reduction <add>, %70, %cst_77 [0] : vector<512x128xf32> to vector<128xf32>
    %72 = vector.shape_cast %71 : vector<128xf32> to vector<1x128xf32>
    %cst_78 = arith.constant 0.001953125 : f32
    %73 = vector.broadcast %cst_78 : f32 to vector<1x128xf32>
    %74 = arith.mulf %69, %73 : vector<1x128xf32>
    %cst_79 = arith.constant 0.001953125 : f32
    %75 = vector.broadcast %cst_79 : f32 to vector<1x128xf32>
    %76 = arith.mulf %72, %75 : vector<1x128xf32>
    %77 = arith.mulf %74, %74 : vector<1x128xf32>
    %78 = arith.subf %76, %77 : vector<1x128xf32>
    %cst_80 = arith.constant 0.000000e+00 : f32
    %79 = vector.broadcast %cst_80 : f32 to vector<1x128xf32>
    %80 = arith.maximumf %78, %79 : vector<1x128xf32>
    %c0_81 = arith.constant 0 : index
    %c0_82 = arith.constant 0 : index
    %81 = vector.load %arg2[%c0_81, %c0_82] : memref<1x128xf32, #tpu.memory_space<vmem>>, vector<1x128xf32>
    %cst_83 = arith.constant 9.99999974E-6 : f32
    %82 = vector.broadcast %cst_83 : f32 to vector<1x128xf32>
    %83 = arith.addf %80, %82 : vector<1x128xf32>
    %84 = math.rsqrt %83 : vector<1x128xf32>
    %85 = arith.mulf %81, %84 : vector<1x128xf32>
    %c0_84 = arith.constant 0 : index
    %c0_85 = arith.constant 0 : index
    %86 = vector.load %arg3[%c0_84, %c0_85] : memref<1x128xf32, #tpu.memory_space<vmem>>, vector<1x128xf32>
    %87 = arith.mulf %74, %85 : vector<1x128xf32>
    %88 = arith.subf %86, %87 : vector<1x128xf32>
    %89 = vector.broadcast %85 : vector<1x128xf32> to vector<512x128xf32>
    %90 = arith.mulf %67, %89 : vector<512x128xf32>
    %91 = vector.broadcast %88 : vector<1x128xf32> to vector<512x128xf32>
    %92 = arith.addf %90, %91 : vector<512x128xf32>
    %cst_86 = arith.constant 0.000000e+00 : f32
    %93 = vector.broadcast %cst_86 : f32 to vector<512x128xf32>
    %94 = arith.maximumf %92, %93 : vector<512x128xf32>
    %cst_87 = arith.constant 0.000000e+00 : f32
    %95 = vector.broadcast %cst_87 : f32 to vector<2x18x18x128xf32>
    %c0_88 = arith.constant 0 : index
    %c0_89 = arith.constant 0 : index
    %c0_90 = arith.constant 0 : index
    %c0_91 = arith.constant 0 : index
    %96 = vector.load %arg9[%c0_88, %c0_89, %c0_90, %c0_91] : memref<2x18x18x128xf32, #tpu.memory_space<vmem>>, vector<2x18x18x128xf32>
    tpu.vector_store %arg9[%c0_88, %c0_89, %c0_90, %c0_91], %95 {strides = array<i32>} : memref<2x18x18x128xf32, #tpu.memory_space<vmem>>, vector<2x18x18x128xf32>,
    %97 = vector.shape_cast %94 : vector<512x128xf32> to vector<2x16x16x128xf32>
    %c0_92 = arith.constant 0 : index
    %c1_93 = arith.constant 1 : index
    %c1_94 = arith.constant 1 : index
    %c0_95 = arith.constant 0 : index
    %98 = vector.load %arg9[%c0_92, %c1_93, %c1_94, %c0_95] : memref<2x18x18x128xf32, #tpu.memory_space<vmem>>, vector<2x16x16x128xf32>
    tpu.vector_store %arg9[%c0_92, %c1_93, %c1_94, %c0_95], %97 {strides = array<i32>} : memref<2x18x18x128xf32, #tpu.memory_space<vmem>>, vector<2x16x16x128xf32>,
    %cst_96 = arith.constant 0.000000e+00 : f32
    %99 = vector.broadcast %cst_96 : f32 to vector<512x128xf32>
    %c0_97 = arith.constant 0 : index
    %c0_98 = arith.constant 0 : index
    %c0_99 = arith.constant 0 : index
    %c0_100 = arith.constant 0 : index
    %100 = vector.load %arg9[%c0_97, %c0_98, %c0_99, %c0_100] : memref<2x18x18x128xf32, #tpu.memory_space<vmem>>, vector<2x16x16x128xf32>
    %101 = vector.shape_cast %100 : vector<2x16x16x128xf32> to vector<512x128xf32>
    %102 = arith.truncf %101 : vector<512x128xf32> to vector<512x128xbf16>
    %c0_101 = arith.constant 0 : index
    %c0_102 = arith.constant 0 : index
    %c0_103 = arith.constant 0 : index
    %103 = vector.load %arg4[%c0_101, %c0_102, %c0_103] : memref<9x128x128xbf16, #tpu.memory_space<vmem>>, vector<1x128x128xbf16>
    %104 = vector.shape_cast %103 : vector<1x128x128xbf16> to vector<128x128xbf16>
    %cst_104 = arith.constant dense<0.000000e+00> : vector<512x128xf32>
    %105 = tpu.matmul %102, %104, %cst_104 {dimension_numbers = #tpu.dot_dimension_numbers<[1], [0], [0], [1], [0, 0, 1, 1], [], []>} : vector<512x128xbf16>, vector<128x128xbf16>, vector<512x128xf32> -> vector<512x128xf32>
    %106 = arith.addf %99, %105 : vector<512x128xf32>
    %c0_105 = arith.constant 0 : index
    %c0_106 = arith.constant 0 : index
    %c1_107 = arith.constant 1 : index
    %c0_108 = arith.constant 0 : index
    %107 = vector.load %arg9[%c0_105, %c0_106, %c1_107, %c0_108] : memref<2x18x18x128xf32, #tpu.memory_space<vmem>>, vector<2x16x16x128xf32>
    %108 = vector.shape_cast %107 : vector<2x16x16x128xf32> to vector<512x128xf32>
    %109 = arith.truncf %108 : vector<512x128xf32> to vector<512x128xbf16>
    %c1_109 = arith.constant 1 : index
    %c0_110 = arith.constant 0 : index
    %c0_111 = arith.constant 0 : index
    %110 = vector.load %arg4[%c1_109, %c0_110, %c0_111] : memref<9x128x128xbf16, #tpu.memory_space<vmem>>, vector<1x128x128xbf16>
    %111 = vector.shape_cast %110 : vector<1x128x128xbf16> to vector<128x128xbf16>
    %cst_112 = arith.constant dense<0.000000e+00> : vector<512x128xf32>
    %112 = tpu.matmul %109, %111, %cst_112 {dimension_numbers = #tpu.dot_dimension_numbers<[1], [0], [0], [1], [0, 0, 1, 1], [], []>} : vector<512x128xbf16>, vector<128x128xbf16>, vector<512x128xf32> -> vector<512x128xf32>
    %113 = arith.addf %106, %112 : vector<512x128xf32>
    %c0_113 = arith.constant 0 : index
    %c0_114 = arith.constant 0 : index
    %c2_115 = arith.constant 2 : index
    %c0_116 = arith.constant 0 : index
    %114 = vector.load %arg9[%c0_113, %c0_114, %c2_115, %c0_116] : memref<2x18x18x128xf32, #tpu.memory_space<vmem>>, vector<2x16x16x128xf32>
    %115 = vector.shape_cast %114 : vector<2x16x16x128xf32> to vector<512x128xf32>
    %116 = arith.truncf %115 : vector<512x128xf32> to vector<512x128xbf16>
    %c2_117 = arith.constant 2 : index
    %c0_118 = arith.constant 0 : index
    %c0_119 = arith.constant 0 : index
    %117 = vector.load %arg4[%c2_117, %c0_118, %c0_119] : memref<9x128x128xbf16, #tpu.memory_space<vmem>>, vector<1x128x128xbf16>
    %118 = vector.shape_cast %117 : vector<1x128x128xbf16> to vector<128x128xbf16>
    %cst_120 = arith.constant dense<0.000000e+00> : vector<512x128xf32>
    %119 = tpu.matmul %116, %118, %cst_120 {dimension_numbers = #tpu.dot_dimension_numbers<[1], [0], [0], [1], [0, 0, 1, 1], [], []>} : vector<512x128xbf16>, vector<128x128xbf16>, vector<512x128xf32> -> vector<512x128xf32>
    %120 = arith.addf %113, %119 : vector<512x128xf32>
    %c0_121 = arith.constant 0 : index
    %c1_122 = arith.constant 1 : index
    %c0_123 = arith.constant 0 : index
    %c0_124 = arith.constant 0 : index
    %121 = vector.load %arg9[%c0_121, %c1_122, %c0_123, %c0_124] : memref<2x18x18x128xf32, #tpu.memory_space<vmem>>, vector<2x16x16x128xf32>
    %122 = vector.shape_cast %121 : vector<2x16x16x128xf32> to vector<512x128xf32>
    %123 = arith.truncf %122 : vector<512x128xf32> to vector<512x128xbf16>
    %c3_125 = arith.constant 3 : index
    %c0_126 = arith.constant 0 : index
    %c0_127 = arith.constant 0 : index
    %124 = vector.load %arg4[%c3_125, %c0_126, %c0_127] : memref<9x128x128xbf16, #tpu.memory_space<vmem>>, vector<1x128x128xbf16>
    %125 = vector.shape_cast %124 : vector<1x128x128xbf16> to vector<128x128xbf16>
    %cst_128 = arith.constant dense<0.000000e+00> : vector<512x128xf32>
    %126 = tpu.matmul %123, %125, %cst_128 {dimension_numbers = #tpu.dot_dimension_numbers<[1], [0], [0], [1], [0, 0, 1, 1], [], []>} : vector<512x128xbf16>, vector<128x128xbf16>, vector<512x128xf32> -> vector<512x128xf32>
    %127 = arith.addf %120, %126 : vector<512x128xf32>
    %c0_129 = arith.constant 0 : index
    %c1_130 = arith.constant 1 : index
    %c1_131 = arith.constant 1 : index
    %c0_132 = arith.constant 0 : index
    %128 = vector.load %arg9[%c0_129, %c1_130, %c1_131, %c0_132] : memref<2x18x18x128xf32, #tpu.memory_space<vmem>>, vector<2x16x16x128xf32>
    %129 = vector.shape_cast %128 : vector<2x16x16x128xf32> to vector<512x128xf32>
    %130 = arith.truncf %129 : vector<512x128xf32> to vector<512x128xbf16>
    %c4_133 = arith.constant 4 : index
    %c0_134 = arith.constant 0 : index
    %c0_135 = arith.constant 0 : index
    %131 = vector.load %arg4[%c4_133, %c0_134, %c0_135] : memref<9x128x128xbf16, #tpu.memory_space<vmem>>, vector<1x128x128xbf16>
    %132 = vector.shape_cast %131 : vector<1x128x128xbf16> to vector<128x128xbf16>
    %cst_136 = arith.constant dense<0.000000e+00> : vector<512x128xf32>
    %133 = tpu.matmul %130, %132, %cst_136 {dimension_numbers = #tpu.dot_dimension_numbers<[1], [0], [0], [1], [0, 0, 1, 1], [], []>} : vector<512x128xbf16>, vector<128x128xbf16>, vector<512x128xf32> -> vector<512x128xf32>
    %134 = arith.addf %127, %133 : vector<512x128xf32>
    %c0_137 = arith.constant 0 : index
    %c1_138 = arith.constant 1 : index
    %c2_139 = arith.constant 2 : index
    %c0_140 = arith.constant 0 : index
    %135 = vector.load %arg9[%c0_137, %c1_138, %c2_139, %c0_140] : memref<2x18x18x128xf32, #tpu.memory_space<vmem>>, vector<2x16x16x128xf32>
    %136 = vector.shape_cast %135 : vector<2x16x16x128xf32> to vector<512x128xf32>
    %137 = arith.truncf %136 : vector<512x128xf32> to vector<512x128xbf16>
    %c5_141 = arith.constant 5 : index
    %c0_142 = arith.constant 0 : index
    %c0_143 = arith.constant 0 : index
    %138 = vector.load %arg4[%c5_141, %c0_142, %c0_143] : memref<9x128x128xbf16, #tpu.memory_space<vmem>>, vector<1x128x128xbf16>
    %139 = vector.shape_cast %138 : vector<1x128x128xbf16> to vector<128x128xbf16>
    %cst_144 = arith.constant dense<0.000000e+00> : vector<512x128xf32>
    %140 = tpu.matmul %137, %139, %cst_144 {dimension_numbers = #tpu.dot_dimension_numbers<[1], [0], [0], [1], [0, 0, 1, 1], [], []>} : vector<512x128xbf16>, vector<128x128xbf16>, vector<512x128xf32> -> vector<512x128xf32>
    %141 = arith.addf %134, %140 : vector<512x128xf32>
    %c0_145 = arith.constant 0 : index
    %c2_146 = arith.constant 2 : index
    %c0_147 = arith.constant 0 : index
    %c0_148 = arith.constant 0 : index
    %142 = vector.load %arg9[%c0_145, %c2_146, %c0_147, %c0_148] : memref<2x18x18x128xf32, #tpu.memory_space<vmem>>, vector<2x16x16x128xf32>
    %143 = vector.shape_cast %142 : vector<2x16x16x128xf32> to vector<512x128xf32>
    %144 = arith.truncf %143 : vector<512x128xf32> to vector<512x128xbf16>
    %c6_149 = arith.constant 6 : index
    %c0_150 = arith.constant 0 : index
    %c0_151 = arith.constant 0 : index
    %145 = vector.load %arg4[%c6_149, %c0_150, %c0_151] : memref<9x128x128xbf16, #tpu.memory_space<vmem>>, vector<1x128x128xbf16>
    %146 = vector.shape_cast %145 : vector<1x128x128xbf16> to vector<128x128xbf16>
    %cst_152 = arith.constant dense<0.000000e+00> : vector<512x128xf32>
    %147 = tpu.matmul %144, %146, %cst_152 {dimension_numbers = #tpu.dot_dimension_numbers<[1], [0], [0], [1], [0, 0, 1, 1], [], []>} : vector<512x128xbf16>, vector<128x128xbf16>, vector<512x128xf32> -> vector<512x128xf32>
    %148 = arith.addf %141, %147 : vector<512x128xf32>
    %c0_153 = arith.constant 0 : index
    %c2_154 = arith.constant 2 : index
    %c1_155 = arith.constant 1 : index
    %c0_156 = arith.constant 0 : index
    %149 = vector.load %arg9[%c0_153, %c2_154, %c1_155, %c0_156] : memref<2x18x18x128xf32, #tpu.memory_space<vmem>>, vector<2x16x16x128xf32>
    %150 = vector.shape_cast %149 : vector<2x16x16x128xf32> to vector<512x128xf32>
    %151 = arith.truncf %150 : vector<512x128xf32> to vector<512x128xbf16>
    %c7_157 = arith.constant 7 : index
    %c0_158 = arith.constant 0 : index
    %c0_159 = arith.constant 0 : index
    %152 = vector.load %arg4[%c7_157, %c0_158, %c0_159] : memref<9x128x128xbf16, #tpu.memory_space<vmem>>, vector<1x128x128xbf16>
    %153 = vector.shape_cast %152 : vector<1x128x128xbf16> to vector<128x128xbf16>
    %cst_160 = arith.constant dense<0.000000e+00> : vector<512x128xf32>
    %154 = tpu.matmul %151, %153, %cst_160 {dimension_numbers = #tpu.dot_dimension_numbers<[1], [0], [0], [1], [0, 0, 1, 1], [], []>} : vector<512x128xbf16>, vector<128x128xbf16>, vector<512x128xf32> -> vector<512x128xf32>
    %155 = arith.addf %148, %154 : vector<512x128xf32>
    %c0_161 = arith.constant 0 : index
    %c2_162 = arith.constant 2 : index
    %c2_163 = arith.constant 2 : index
    %c0_164 = arith.constant 0 : index
    %156 = vector.load %arg9[%c0_161, %c2_162, %c2_163, %c0_164] : memref<2x18x18x128xf32, #tpu.memory_space<vmem>>, vector<2x16x16x128xf32>
    %157 = vector.shape_cast %156 : vector<2x16x16x128xf32> to vector<512x128xf32>
    %158 = arith.truncf %157 : vector<512x128xf32> to vector<512x128xbf16>
    %c8_165 = arith.constant 8 : index
    %c0_166 = arith.constant 0 : index
    %c0_167 = arith.constant 0 : index
    %159 = vector.load %arg4[%c8_165, %c0_166, %c0_167] : memref<9x128x128xbf16, #tpu.memory_space<vmem>>, vector<1x128x128xbf16>
    %160 = vector.shape_cast %159 : vector<1x128x128xbf16> to vector<128x128xbf16>
    %cst_168 = arith.constant dense<0.000000e+00> : vector<512x128xf32>
    %161 = tpu.matmul %158, %160, %cst_168 {dimension_numbers = #tpu.dot_dimension_numbers<[1], [0], [0], [1], [0, 0, 1, 1], [], []>} : vector<512x128xbf16>, vector<128x128xbf16>, vector<512x128xf32> -> vector<512x128xf32>
    %162 = arith.addf %155, %161 : vector<512x128xf32>
    %cst_169 = arith.constant dense<0.000000e+00> : vector<128xf32>
    %163 = vector.multi_reduction <add>, %162, %cst_169 [0] : vector<512x128xf32> to vector<128xf32>
    %164 = vector.shape_cast %163 : vector<128xf32> to vector<1x128xf32>
    %165 = arith.mulf %162, %162 : vector<512x128xf32>
    %cst_170 = arith.constant dense<0.000000e+00> : vector<128xf32>
    %166 = vector.multi_reduction <add>, %165, %cst_170 [0] : vector<512x128xf32> to vector<128xf32>
    %167 = vector.shape_cast %166 : vector<128xf32> to vector<1x128xf32>
    %cst_171 = arith.constant 0.001953125 : f32
    %168 = vector.broadcast %cst_171 : f32 to vector<1x128xf32>
    %169 = arith.mulf %164, %168 : vector<1x128xf32>
    %cst_172 = arith.constant 0.001953125 : f32
    %170 = vector.broadcast %cst_172 : f32 to vector<1x128xf32>
    %171 = arith.mulf %167, %170 : vector<1x128xf32>
    %172 = arith.mulf %169, %169 : vector<1x128xf32>
    %173 = arith.subf %171, %172 : vector<1x128xf32>
    %cst_173 = arith.constant 0.000000e+00 : f32
    %174 = vector.broadcast %cst_173 : f32 to vector<1x128xf32>
    %175 = arith.maximumf %173, %174 : vector<1x128xf32>
    %c0_174 = arith.constant 0 : index
    %c0_175 = arith.constant 0 : index
    %176 = vector.load %arg5[%c0_174, %c0_175] : memref<1x128xf32, #tpu.memory_space<vmem>>, vector<1x128xf32>
    %cst_176 = arith.constant 9.99999974E-6 : f32
    %177 = vector.broadcast %cst_176 : f32 to vector<1x128xf32>
    %178 = arith.addf %175, %177 : vector<1x128xf32>
    %179 = math.rsqrt %178 : vector<1x128xf32>
    %180 = arith.mulf %176, %179 : vector<1x128xf32>
    %c0_177 = arith.constant 0 : index
    %c0_178 = arith.constant 0 : index
    %181 = vector.load %arg6[%c0_177, %c0_178] : memref<1x128xf32, #tpu.memory_space<vmem>>, vector<1x128xf32>
    %182 = arith.mulf %169, %180 : vector<1x128xf32>
    %183 = arith.subf %181, %182 : vector<1x128xf32>
    %184 = vector.broadcast %180 : vector<1x128xf32> to vector<512x128xf32>
    %185 = arith.mulf %162, %184 : vector<512x128xf32>
    %186 = vector.broadcast %183 : vector<1x128xf32> to vector<512x128xf32>
    %187 = arith.addf %185, %186 : vector<512x128xf32>
    %cst_179 = arith.constant 0.000000e+00 : f32
    %188 = vector.broadcast %cst_179 : f32 to vector<512x128xf32>
    %189 = arith.maximumf %187, %188 : vector<512x128xf32>
    %c0_180 = arith.constant 0 : index
    %c0_181 = arith.constant 0 : index
    %190 = vector.load %arg7[%c0_180, %c0_181] : memref<512x128xf32, #tpu.memory_space<vmem>>, vector<512x128xf32>
    tpu.vector_store %arg7[%c0_180, %c0_181], %189 {strides = array<i32>} : memref<512x128xf32, #tpu.memory_space<vmem>>, vector<512x128xf32>,
    %c0_182 = arith.constant 0 : index
    %c1_183 = arith.constant 1 : index
    %c1_184 = arith.constant 1 : index
    %c0_185 = arith.constant 0 : index
    %191 = vector.load %arg0[%c0_182, %c1_183, %c1_184, %c0_185] : memref<2x18x18x8xf32, #tpu.memory_space<vmem>>, vector<2x16x16x8xf32>
    %192 = vector.shape_cast %191 : vector<2x16x16x8xf32> to vector<512x8xf32>
    %193 = vector.extract_strided_slice %187 {offsets = [0, 0], sizes = [512, 8], strides = [1, 1]} : vector<512x128xf32> to vector<512x8xf32>
    %194 = arith.addf %193, %192 : vector<512x8xf32>
    %cst_186 = arith.constant 0.000000e+00 : f32
    %195 = vector.broadcast %cst_186 : f32 to vector<512x8xf32>
    %196 = arith.maximumf %194, %195 : vector<512x8xf32>
    %c0_187 = arith.constant 0 : index
    %c0_188 = arith.constant 0 : index
    %197 = vector.load %arg7[%c0_187, %c0_188] : memref<512x128xf32, #tpu.memory_space<vmem>>, vector<512x8xf32>
    tpu.vector_store %arg7[%c0_187, %c0_188], %196 {strides = array<i32>} : memref<512x128xf32, #tpu.memory_space<vmem>>, vector<512x8xf32>,
    return
  }
}

</mosaic_0001>

<bundles_post_ra>
// kernel: tpu_custom_call.1
= control target key start
LH: loop header
LB: loop body
LE: loop exit
PB: predicated region body
PF: predicated region fallthrough
CT: control target
= control target key end

     0   :  { %12 = vsyncpa [#allocation5], 0  ;;  %s13840_s0 = inlined_call_operand.vmem [shape: f32[2,18,18,8], index: 0, kind: input, shape index: {}]   ;;  %s13841_s1 = inlined_call_operand.vmem [shape: bf16[9,128,128], index: 1, kind: input, shape index: {}]   ;;  %s13842_s2 = inlined_call_operand.hbm [shape: f32[1,128], index: 2, kind: input, shape index: {}]   ;;  %s13843_s3 = inlined_call_operand.hbm [shape: f32[1,128], index: 3, kind: input, shape index: {}]   ;;  %s13844_s4 = inlined_call_operand.vmem [shape: bf16[9,128,128], index: 4, kind: input, shape index: {}]   ;;  %s13845_s5 = inlined_call_operand.hbm [shape: f32[1,128], index: 5, kind: input, shape index: {}]   ;;  %s13846_s6 = inlined_call_operand.hbm [shape: f32[1,128], index: 6, kind: input, shape index: {}]   ;;  %s13847_s7 = inlined_call_operand.hbm [shape: f32[512,128], index: 7, kind: output, shape index: {}]  }
   0x1   :  { %13 = vsyncpa [#allocation8], 0 }
   0x2   :  { %14 = vsyncpa [#allocation11], 0  ;;  %s36_s26 = sshll.u32 %s13843_s3, 4  ;;  %s37_s26 = int_to_ptr.hbm [resolvable:$true] %s36_s26 }
   0x3   :  { %15 = vsyncpa [#allocation6], 0  ;;  %s9800_s27 = smov [#allocation7]   ;;  %s25_s8 = sshll.u32 %s13842_s2, 4  ;;  %s26_s8 = int_to_ptr.hbm [resolvable:$true] %s25_s8 }
   0x4   :  { %s38_s28 = sshll.u32 %s9800_s27, 4  ;;  %s9801_s9 = smov [#allocation4]   ;;  %s39_s28 = int_to_ptr.vmem [resolvable:$true] %s38_s28 }
   0x5   :  { %41 = dma.hbm_to_vmem [thread:$0]  %s37_s26, 16, %s39_s28, [#allocation8]  }
   0x6   :  { %s27_s10 = sshll.u32 %s9801_s9, 4  ;;  %s49_s13 = sshll.u32 %s13845_s5, 4  ;;  %s28_s10 = int_to_ptr.vmem [resolvable:$true] %s27_s10  ;;  %s50_s13 = int_to_ptr.hbm [resolvable:$true] %s49_s13 }
   0x7   :  { %30 = dma.hbm_to_vmem [thread:$0]  %s26_s8, 16, %s28_s10, [#allocation5]  }
   0x8   :  { %s60_s15 = sshll.u32 %s13846_s6, 4  ;;  %s9802_s16 = smov [#allocation9]   ;;  %s61_s15 = int_to_ptr.hbm [resolvable:$true] %s60_s15 }
   0x9   :  { %s51_s17 = sshll.u32 %s9802_s16, 4  ;;  %s9803_s2 = smov [#allocation10]   ;;  %s52_s17 = int_to_ptr.vmem [resolvable:$true] %s51_s17 }
   0xa   :  { %54 = dma.hbm_to_vmem [thread:$0]  %s50_s13, 16, %s52_s17, [#allocation8]  }
   0xb   :  { %s62_s18 = sshll.u32 %s9803_s2, 4  ;;  %s63_s18 = int_to_ptr.vmem [resolvable:$true] %s62_s18 }
   0xc   :  { %65 = dma.hbm_to_vmem [thread:$0]  %s61_s15, 16, %s63_s18, [#allocation11]  }
   0xd   :  { %9792 = dma.done.wait [#allocation5], 16  }
   0xe   :  { %9793 = vsyncadd [#allocation5], 4294967280 }
   0xf   :  { %9794 = dma.done.wait [#allocation8], 32  }
  0x10   :  { %9795 = vsyncadd [#allocation8], 4294967264 }
  0x11   :  { %9796 = dma.done.wait [#allocation11], 16  }
  0x12   :  { %9797 = vsyncadd [#allocation11], 4294967280  ;;  %v9804_v0 = vmov 0.0   ;;  %v9513_v1 = vld [vmem:[%s13841_s1 + $0x78] sm:$0xff]  ;;  %v9512_v3 = vld [vmem:[%s13841_s1 + $0x70] sm:$0xff]  ;;  %vm298_vm0 = vcmask 64512  }
  0x13   :  { %136 = vst [vmem:[#allocation2 + $0x1b0] sm:$0xff] %v9804_v0  ;;  %v9505_v2 = vld [vmem:[%s13841_s1 + $0x38] sm:$0xff]  ;;  %9642 = vmatpush.bf16.msra.mxu2 %v9513_v1  ;;  %v9504_v4 = vld [vmem:[%s13841_s1 + $0x30] sm:$0xff]  ;;  %681 = vmatpush.bf16.msra.mxu0 %v9513_v1  ;;  %vm301_vm1 = vcmask 58368   ;;  %v9511_v7 = vld [vmem:[%s13841_s1 + $0x68] sm:$0xff]  ;;  %s8587_s2 = sshll.u32 %s13847_s7, 4  ;;  %s8588_s2 = int_to_ptr.hbm [resolvable:$true] %s8587_s2 }
  0x14   :  { %137 = vst [vmem:[#allocation2 + $0x1b8] sm:$0xff] %v9804_v0  ;;  %9650 = vmatpush.bf16.msra.mxu3 %v9505_v2  ;;  %898 = vmatpush.bf16.msra.mxu1 %v9505_v2  ;;  %v244_v5 = vld [vmem:[%s13840_s0 + $0x1b0] sm:$0xff]  ;;  %v245_v6 = vld [vmem:[%s13840_s0 + $0x1b8] sm:$0xff]  ;;  %v9503_v8 = vld [vmem:[%s13841_s1 + $0x28] sm:$0xff]  ;;  %s9806_s18 = smov 128   ;;  %s9807_s5 = smov 8  }
  0x15   :  { %138 = vst [vmem:[#allocation2 + $0x1c0] sm:$0x3] %v9804_v0  ;;  %v246_v9 = vld [vmem:[%s13840_s0 + $0x1c0] sm:$0x3]  ;;  %v9509_v12 = vld [vmem:[%s13841_s1 + $0x58] sm:$0xff]  ;;  %v9508_v14 = vld [vmem:[%s13841_s1 + $0x50] sm:$0xff] }
  0x16   :  { %82 = vst [vmem:[#allocation2] sm:$0xff] %v9804_v0  ;;  %v9510_v10 = vld [vmem:[%s13841_s1 + $0x60] sm:$0xff]  ;;  %v9501_v13 = vld [vmem:[%s13841_s1 + $0x18] sm:$0xff]  ;;  %v9500_v15 = vld [vmem:[%s13841_s1 + $0x10] sm:$0xff] }
  0x17   :  { %83 = vst [vmem:[#allocation2 + $0x8] sm:$0xff] %v9804_v0  ;;  %9643 = vmatpush.bf16.msra.mxu2 %v9512_v3  ;;  %682 = vmatpush.bf16.msra.mxu0 %v9512_v3  ;;  %v9502_v11 = vld [vmem:[%s13841_s1 + $0x20] sm:$0xff]  ;;  %v9507_v16 = vld [vmem:[%s13841_s1 + $0x48] sm:$0xff]  ;;  %v9521_v26 = vld [vmem:[%s13841_s1 + $0xb8] sm:$0xff] }
  0x18   :  { %84 = vst [vmem:[#allocation2 + $0x10] sm:$0x3] %v9804_v0  ;;  %9651 = vmatpush.bf16.msra.mxu3 %v9504_v4  ;;  %899 = vmatpush.bf16.msra.mxu1 %v9504_v4  ;;  %v9499_v17 = vld [vmem:[%s13841_s1 + $0x8] sm:$0xff]  ;;  %v9506_v18 = vld [vmem:[%s13841_s1 + $0x40] sm:$0xff]  ;;  %v9529_v27 = vld [vmem:[%s13841_s1 + $0xf8] sm:$0xff] }
  0x19   :  { %85 = vst [vmem:[#allocation2 + $0x18] sm:$0xff] %v9804_v0  ;;  %v9498_v19 = vld [vmem:[%s13841_s1] sm:$0xff]  ;;  %v9537_v28 = vld [vmem:[%s13841_s1 + $0x138] sm:$0xff]  ;;  %v191_v30 = vld [vmem:[%s13840_s0 + $0x8] sm:$0xff] }
  0x1a   :  { %86 = vst [vmem:[#allocation2 + $0x20] sm:$0xff] %v9804_v0  ;;  %v190_v29 = vld [vmem:[%s13840_s0] sm:$0xff]  ;;  %v192_v31 = vld [vmem:[%s13840_s0 + $0x10] sm:$0x3]  ;;  %v247_v33 = vld [vmem:[%s13840_s0 + $0x1c8] sm:$0xff] }
  0x1b   :  { %87 = vst [vmem:[#allocation2 + $0x28] sm:$0x3] %v9804_v0  ;;  %9644 = vmatpush.bf16.msra.mxu2 %v9511_v7  ;;  %683 = vmatpush.bf16.msra.mxu0 %v9511_v7  ;;  %v9520_v32 = vld [vmem:[%s13841_s1 + $0xb0] sm:$0xff]  ;;  %v249_v35 = vld [vmem:[%s13840_s0 + $0x1d8] sm:$0x3]  ;;  %v194_v37 = vld [vmem:[%s13840_s0 + $0x20] sm:$0xff] }
  0x1c   :  { %88 = vst [vmem:[#allocation2 + $0x30] sm:$0xff] %v9804_v0  ;;  %9652 = vmatpush.bf16.msra.mxu3 %v9503_v8  ;;  %900 = vmatpush.bf16.msra.mxu1 %v9503_v8  ;;  %v248_v34 = vld [vmem:[%s13840_s0 + $0x1d0] sm:$0xff]  ;;  %v193_v36 = vld [vmem:[%s13840_s0 + $0x18] sm:$0xff]  ;;  %v195_v38 = vld [vmem:[%s13840_s0 + $0x28] sm:$0x3] }
  0x1d   :  { %89 = vst [vmem:[#allocation2 + $0x38] sm:$0xff] %v9804_v0  ;;  %v250_v39 = vld [vmem:[%s13840_s0 + $0x1e0] sm:$0xff]  ;;  %v251_v41 = vld [vmem:[%s13840_s0 + $0x1e8] sm:$0xff]  ;;  %v252_v44 = vld [vmem:[%s13840_s0 + $0x1f0] sm:$0x3] }
  0x1e   :  { %90 = vst [vmem:[#allocation2 + $0x40] sm:$0x3] %v9804_v0  ;;  %v196_v47 = vld [vmem:[%s13840_s0 + $0x30] sm:$0xff]  ;;  %v197_v50 = vld [vmem:[%s13840_s0 + $0x38] sm:$0xff]  ;;  %v198_v53 = vld [vmem:[%s13840_s0 + $0x40] sm:$0x3] }
  0x1f   :  { %354 = vst.msk [vmem:[#allocation2 + $0x1b0] sm:$0xff] %vm298_vm0, %v244_v5  ;;  %9645 = vmatpush.bf16.msra.mxu2 %v9510_v10  ;;  %684 = vmatpush.bf16.msra.mxu0 %v9510_v10  ;;  %v9528_v56 = vld [vmem:[%s13841_s1 + $0xf0] sm:$0xff]  ;;  %v253_v59 = vld [vmem:[%s13840_s0 + $0x1f8] sm:$0xff]  ;;  %v254_v60 = vld [vmem:[%s13840_s0 + $0x200] sm:$0xff] }
  0x20   :  { %355 = vst.msk [vmem:[#allocation2 + $0x1b8] sm:$0xff] %vm298_vm0, %v245_v6  ;;  %9653 = vmatpush.bf16.msra.mxu3 %v9502_v11  ;;  %901 = vmatpush.bf16.msra.mxu1 %v9502_v11  ;;  %v9536_v57 = vld [vmem:[%s13841_s1 + $0x130] sm:$0xff]  ;;  %v255_v61 = vld [vmem:[%s13840_s0 + $0x208] sm:$0x3] }
  0x21   :  { %356 = vst.msk [vmem:[#allocation2 + $0x1c0] sm:$0x3] %vm301_vm1, %v246_v9  ;;  %v199_v62 = vld [vmem:[%s13840_s0 + $0x48] sm:$0xff]  ;;  %v200_v63 = vld [vmem:[%s13840_s0 + $0x50] sm:$0xff] }
  0x22   :  { %91 = vst [vmem:[#allocation2 + $0x48] sm:$0xff] %v9804_v0 }
  0x23   :  { %92 = vst [vmem:[#allocation2 + $0x50] sm:$0xff] %v9804_v0  ;;  %9646 = vmatpush.bf16.msra.mxu2 %v9509_v12  ;;  %685 = vmatpush.bf16.msra.mxu0 %v9509_v12 }
  0x24   :  { %93 = vst [vmem:[#allocation2 + $0x58] sm:$0x3] %v9804_v0  ;;  %9654 = vmatpush.bf16.msra.mxu3 %v9501_v13  ;;  %902 = vmatpush.bf16.msra.mxu1 %v9501_v13  ;;  %v256_v13 = vld [vmem:[%s13840_s0 + $0x210] sm:$0xff] }
  0x25   :  { %94 = vst [vmem:[#allocation2 + $0x60] sm:$0xff] %v9804_v0 }
  0x26   :  { %95 = vst [vmem:[#allocation2 + $0x68] sm:$0xff] %v9804_v0  ;;  %v440_v22 = vld [vmem:[#allocation2 + $0x1b0] sm:$0xff] }
  0x27   :  { %96 = vst [vmem:[#allocation2 + $0x70] sm:$0x3] %v9804_v0  ;;  %9647 = vmatpush.bf16.msra.mxu2 %v9508_v14  ;;  %686 = vmatpush.bf16.msra.mxu0 %v9508_v14  ;;  %v552_v20 = vld [vmem:[#allocation2 + $0x1b1] sm:$0xff] }
  0x28   :  { %97 = vst [vmem:[#allocation2 + $0x78] sm:$0xff] %v9804_v0  ;;  %9655 = vmatpush.bf16.msra.mxu3 %v9500_v15  ;;  %903 = vmatpush.bf16.msra.mxu1 %v9500_v15  ;;  %v553_v21 = vld [vmem:[#allocation2 + $0x1b9] sm:$0xff] }
  0x29   :  { %98 = vst [vmem:[#allocation2 + $0x80] sm:$0xff] %v9804_v0  ;;  %v441_v23 = vld [vmem:[#allocation2 + $0x1b8] sm:$0xff]  ;;  %v600_v24 = vpack.c.bf16 %v553_v21, %v552_v20  ;;  %v258_v15 = vld [vmem:[%s13840_s0 + $0x220] sm:$0x3] }
  0x2a   :  { %99 = vst [vmem:[#allocation2 + $0x88] sm:$0x3] %v9804_v0  ;;  %v488_v25 = vpack.c.bf16 %v441_v23, %v440_v22  ;;  %v257_v14 = vld [vmem:[%s13840_s0 + $0x218] sm:$0xff] }
  0x2b   :  { %100 = vst [vmem:[#allocation2 + $0x90] sm:$0xff] %v9804_v0  ;;  %9648 = vmatpush.bf16.msra.mxu2 %v9507_v16  ;;  %687 = vmatpush.bf16.msra.mxu0 %v9507_v16  ;;  %v9519_v16 = vld [vmem:[%s13841_s1 + $0xa8] sm:$0xff] }
  0x2c   :  { %101 = vst [vmem:[#allocation2 + $0x98] sm:$0xff] %v9804_v0  ;;  %9656 = vmatpush.bf16.msra.mxu3 %v9499_v17  ;;  %904 = vmatpush.bf16.msra.mxu1 %v9499_v17  ;;  %v202_v17 = vld [vmem:[%s13840_s0 + $0x60] sm:$0xff] }
  0x2d   :  { %102 = vst [vmem:[#allocation2 + $0xa0] sm:$0x3] %v9804_v0 }
  0x2e   :  { %103 = vst [vmem:[#allocation2 + $0xa8] sm:$0xff] %v9804_v0 }
  0x2f   :  { %104 = vst [vmem:[#allocation2 + $0xb0] sm:$0xff] %v9804_v0  ;;  %9649 = vmatpush.bf16.msra.mxu2 %v9506_v18  ;;  %688 = vmatpush.bf16.msra.mxu0 %v9506_v18  ;;  %v203_v18 = vld [vmem:[%s13840_s0 + $0x68] sm:$0xff] }
  0x30   :  { %105 = vst [vmem:[#allocation2 + $0xb8] sm:$0x3] %v9804_v0  ;;  %9657 = vmatpush.bf16.msra.mxu3 %v9498_v19  ;;  %905 = vmatpush.bf16.msra.mxu1 %v9498_v19  ;;  %v204_v19 = vld [vmem:[%s13840_s0 + $0x70] sm:$0x3] }
  0x31   :  { %106 = vst [vmem:[#allocation2 + $0xc0] sm:$0xff] %v9804_v0 }
  0x32   :  { %107 = vst [vmem:[#allocation2 + $0xc8] sm:$0xff] %v9804_v0  ;;  %769 = vmatmul.bf16.vlgmr.msra.gmra.mxu2 %v600_v24 }
  0x33   :  { %108 = vst [vmem:[#allocation2 + $0xd0] sm:$0x3] %v9804_v0  ;;  %986 = vmatmul.bf16.vlgmr.msra.gmra.mxu3 %v488_v25  ;;  %1228 = vmatpush.bf16.msrb.mxu2 %v9521_v26 }
  0x34   :  { %109 = vst [vmem:[#allocation2 + $0xd8] sm:$0xff] %v9804_v0  ;;  %1623 = vmatpush.bf16.msrb.mxu3 %v9529_v27  ;;  %2017 = vmatpush.bf16.msrb.mxu0 %v9537_v28 }
  0x35   :  { %110 = vst [vmem:[#allocation2 + $0xe0] sm:$0xff] %v9804_v0 }
  0x36   :  { %111 = vst [vmem:[#allocation2 + $0xe8] sm:$0x3] %v9804_v0 }
  0x37   :  { %112 = vst [vmem:[#allocation2 + $0xf0] sm:$0xff] %v9804_v0  ;;  %1229 = vmatpush.bf16.msrb.mxu2 %v9520_v32  ;;  %v9527_v32 = vld [vmem:[%s13841_s1 + $0xe8] sm:$0xff] }
  0x38   :  { %113 = vst [vmem:[#allocation2 + $0xf8] sm:$0xff] %v9804_v0  ;;  %2018 = vmatpush.bf16.msrb.mxu0 %v9536_v57  ;;  %1624 = vmatpush.bf16.msrb.mxu3 %v9528_v56  ;;  %v208_v56 = vld [vmem:[%s13840_s0 + $0x90] sm:$0xff]  ;;  %v209_v57 = vld [vmem:[%s13840_s0 + $0x98] sm:$0xff] }
  0x39   :  { %114 = vst [vmem:[#allocation2 + $0x100] sm:$0x3] %v9804_v0 }
  0x3a   :  { %115 = vst [vmem:[#allocation2 + $0x108] sm:$0xff] %v9804_v0 }
  0x3b   :  { %116 = vst [vmem:[#allocation2 + $0x110] sm:$0xff] %v9804_v0  ;;  %1230 = vmatpush.bf16.msrb.mxu2 %v9519_v16 }
  0x3c   :  { %117 = vst [vmem:[#allocation2 + $0x118] sm:$0x3] %v9804_v0  ;;  %1625 = vmatpush.bf16.msrb.mxu3 %v9527_v32  ;;  %v216_v32 = vld [vmem:[%s13840_s0 + $0xd0] sm:$0x3] }
  0x3d   :  { %118 = vst [vmem:[#allocation2 + $0x120] sm:$0xff] %v9804_v0 }
  0x3e   :  { %119 = vst [vmem:[#allocation2 + $0x128] sm:$0xff] %v9804_v0 }
  0x3f   :  { %120 = vst [vmem:[#allocation2 + $0x130] sm:$0x3] %v9804_v0 }
  0x40   :  { %121 = vst [vmem:[#allocation2 + $0x138] sm:$0xff] %v9804_v0 }
  0x41   :  { %122 = vst [vmem:[#allocation2 + $0x140] sm:$0xff] %v9804_v0 }
  0x42   :  { %123 = vst [vmem:[#allocation2 + $0x148] sm:$0x3] %v9804_v0 }
  0x43   :  { %124 = vst [vmem:[#allocation2 + $0x150] sm:$0xff] %v9804_v0 }
  0x44   :  { %125 = vst [vmem:[#allocation2 + $0x158] sm:$0xff] %v9804_v0 }
  0x45   :  { %126 = vst [vmem:[#allocation2 + $0x160] sm:$0x3] %v9804_v0 }
  0x46   :  { %127 = vst [vmem:[#allocation2 + $0x168] sm:$0xff] %v9804_v0 }
  0x47   :  { %128 = vst [vmem:[#allocation2 + $0x170] sm:$0xff] %v9804_v0 }
  0x48   :  { %129 = vst [vmem:[#allocation2 + $0x178] sm:$0x3] %v9804_v0 }
  0x49   :  { %130 = vst [vmem:[#allocation2 + $0x180] sm:$0xff] %v9804_v0 }
  0x4a   :  { %131 = vst [vmem:[#allocation2 + $0x188] sm:$0xff] %v9804_v0 }
  0x4b   :  { %132 = vst [vmem:[#allocation2 + $0x190] sm:$0x3] %v9804_v0 }
  0x4c   :  { %133 = vst [vmem:[#allocation2 + $0x198] sm:$0xff] %v9804_v0 }
  0x4d   :  { %134 = vst [vmem:[#allocation2 + $0x1a0] sm:$0xff] %v9804_v0 }
  0x4e   :  { %135 = vst [vmem:[#allocation2 + $0x1a8] sm:$0x3] %v9804_v0 }
  0x4f   :  { %139 = vst [vmem:[#allocation2 + $0x1c8] sm:$0xff] %v9804_v0 }
  0x50   :  { %140 = vst [vmem:[#allocation2 + $0x1d0] sm:$0xff] %v9804_v0 }
  0x51   :  { %141 = vst [vmem:[#allocation2 + $0x1d8] sm:$0x3] %v9804_v0 }
  0x52   :  { %142 = vst [vmem:[#allocation2 + $0x1e0] sm:$0xff] %v9804_v0 }
  0x53   :  { %143 = vst [vmem:[#allocation2 + $0x1e8] sm:$0xff] %v9804_v0 }
  0x54   :  { %144 = vst [vmem:[#allocation2 + $0x1f0] sm:$0x3] %v9804_v0 }
  0x55   :  { %145 = vst [vmem:[#allocation2 + $0x1f8] sm:$0xff] %v9804_v0 }
  0x56   :  { %146 = vst [vmem:[#allocation2 + $0x200] sm:$0xff] %v9804_v0 }
  0x57   :  { %147 = vst [vmem:[#allocation2 + $0x208] sm:$0x3] %v9804_v0 }
  0x58   :  { %148 = vst [vmem:[#allocation2 + $0x210] sm:$0xff] %v9804_v0 }
  0x59   :  { %149 = vst [vmem:[#allocation2 + $0x218] sm:$0xff] %v9804_v0 }
  0x5a   :  { %150 = vst [vmem:[#allocation2 + $0x220] sm:$0x3] %v9804_v0 }
  0x5b   :  { %151 = vst [vmem:[#allocation2 + $0x228] sm:$0xff] %v9804_v0 }
  0x5c   :  { %152 = vst [vmem:[#allocation2 + $0x230] sm:$0xff] %v9804_v0 }
  0x5d   :  { %153 = vst [vmem:[#allocation2 + $0x238] sm:$0x3] %v9804_v0 }
  0x5e   :  { %154 = vst [vmem:[#allocation2 + $0x240] sm:$0xff] %v9804_v0 }
  0x5f   :  { %155 = vst [vmem:[#allocation2 + $0x248] sm:$0xff] %v9804_v0 }
  0x60   :  { %156 = vst [vmem:[#allocation2 + $0x250] sm:$0x3] %v9804_v0 }
  0x61   :  { %157 = vst [vmem:[#allocation2 + $0x258] sm:$0xff] %v9804_v0 }
  0x62   :  { %158 = vst [vmem:[#allocation2 + $0x260] sm:$0xff] %v9804_v0 }
  0x63   :  { %159 = vst [vmem:[#allocation2 + $0x268] sm:$0x3] %v9804_v0 }
  0x64   :  { %160 = vst [vmem:[#allocation2 + $0x270] sm:$0xff] %v9804_v0 }
  0x65   :  { %161 = vst [vmem:[#allocation2 + $0x278] sm:$0xff] %v9804_v0 }
  0x66   :  { %162 = vst [vmem:[#allocation2 + $0x280] sm:$0x3] %v9804_v0 }
  0x67   :  { %163 = vst [vmem:[#allocation2 + $0x288] sm:$0xff] %v9804_v0 }
  0x68   :  { %164 = vst [vmem:[#allocation2 + $0x290] sm:$0xff] %v9804_v0 }
  0x69   :  { %165 = vst [vmem:[#allocation2 + $0x298] sm:$0x3] %v9804_v0 }
  0x6a   :  { %166 = vst [vmem:[#allocation2 + $0x2a0] sm:$0xff] %v9804_v0 }
  0x6b   :  { %167 = vst [vmem:[#allocation2 + $0x2a8] sm:$0xff] %v9804_v0 }
  0x6c   :  { %168 = vst [vmem:[#allocation2 + $0x2b0] sm:$0x3] %v9804_v0 }
  0x6d   :  { %169 = vst [vmem:[#allocation2 + $0x2b8] sm:$0xff] %v9804_v0 }
  0x6e   :  { %170 = vst [vmem:[#allocation2 + $0x2c0] sm:$0xff] %v9804_v0 }
  0x6f   :  { %171 = vst [vmem:[#allocation2 + $0x2c8] sm:$0x3] %v9804_v0 }
  0x70   :  { %172 = vst [vmem:[#allocation2 + $0x2d0] sm:$0xff] %v9804_v0 }
  0x71   :  { %173 = vst [vmem:[#allocation2 + $0x2d8] sm:$0xff] %v9804_v0 }
  0x72   :  { %174 = vst [vmem:[#allocation2 + $0x2e0] sm:$0x3] %v9804_v0 }
  0x73   :  { %175 = vst [vmem:[#allocation2 + $0x2e8] sm:$0xff] %v9804_v0 }
  0x74   :  { %176 = vst [vmem:[#allocation2 + $0x2f0] sm:$0xff] %v9804_v0 }
  0x75   :  { %177 = vst [vmem:[#allocation2 + $0x2f8] sm:$0x3] %v9804_v0 }
  0x76   :  { %178 = vst [vmem:[#allocation2 + $0x300] sm:$0xff] %v9804_v0 }
  0x77   :  { %179 = vst [vmem:[#allocation2 + $0x308] sm:$0xff] %v9804_v0 }
  0x78   :  { %180 = vst [vmem:[#allocation2 + $0x310] sm:$0x3] %v9804_v0 }
  0x79   :  { %181 = vst [vmem:[#allocation2 + $0x318] sm:$0xff] %v9804_v0 }
  0x7a   :  { %182 = vst [vmem:[#allocation2 + $0x320] sm:$0xff] %v9804_v0 }
  0x7b   :  { %183 = vst [vmem:[#allocation2 + $0x328] sm:$0x3] %v9804_v0 }
  0x7c   :  { %184 = vst [vmem:[#allocation2 + $0x330] sm:$0xff] %v9804_v0 }
  0x7d   :  { %185 = vst [vmem:[#allocation2 + $0x338] sm:$0xff] %v9804_v0 }
  0x7e   :  { %186 = vst [vmem:[#allocation2 + $0x340] sm:$0x3] %v9804_v0 }
  0x7f   :  { %187 = vst [vmem:[#allocation2 + $0x348] sm:$0xff] %v9804_v0 }
  0x80   :  { %188 = vst [vmem:[#allocation2 + $0x350] sm:$0xff] %v9804_v0 }
  0x81   :  { %189 = vst [vmem:[#allocation2 + $0x358] sm:$0x3] %v9804_v0 }
  0x82   :  { %4248 = vst [vmem:[#allocation3] sm:$0xff] %v9804_v0 }
  0x83   :  { %4249 = vst [vmem:[#allocation3 + $0x8] sm:$0xff] %v9804_v0 }
  0x84   :  { %4250 = vst [vmem:[#allocation3 + $0x10] sm:$0x3] %v9804_v0 }
  0x85   :  { %4251 = vst [vmem:[#allocation3 + $0x18] sm:$0xff] %v9804_v0 }
  0x86   :  { %4252 = vst [vmem:[#allocation3 + $0x20] sm:$0xff] %v9804_v0 }
  0x87   :  { %4253 = vst [vmem:[#allocation3 + $0x28] sm:$0x3] %v9804_v0 }
  0x88   :  { %4254 = vst [vmem:[#allocation3 + $0x30] sm:$0xff] %v9804_v0 }
  0x89   :  { %4255 = vst [vmem:[#allocation3 + $0x38] sm:$0xff] %v9804_v0 }
  0x8a   :  { %4256 = vst [vmem:[#allocation3 + $0x40] sm:$0x3] %v9804_v0 }
  0x8b   :  { %4257 = vst [vmem:[#allocation3 + $0x48] sm:$0xff] %v9804_v0 }
  0x8c   :  { %4258 = vst [vmem:[#allocation3 + $0x50] sm:$0xff] %v9804_v0 }
  0x8d   :  { %4259 = vst [vmem:[#allocation3 + $0x58] sm:$0x3] %v9804_v0 }
  0x8e   :  { %4260 = vst [vmem:[#allocation3 + $0x60] sm:$0xff] %v9804_v0 }
  0x8f   :  { %4261 = vst [vmem:[#allocation3 + $0x68] sm:$0xff] %v9804_v0 }
  0x90   :  { %4262 = vst [vmem:[#allocation3 + $0x70] sm:$0x3] %v9804_v0 }
  0x91   :  { %4263 = vst [vmem:[#allocation3 + $0x78] sm:$0xff] %v9804_v0 }
  0x92   :  { %4264 = vst [vmem:[#allocation3 + $0x80] sm:$0xff] %v9804_v0 }
  0x93   :  { %4265 = vst [vmem:[#allocation3 + $0x88] sm:$0x3] %v9804_v0 }
  0x94   :  { %4266 = vst [vmem:[#allocation3 + $0x90] sm:$0xff] %v9804_v0 }
  0x95   :  { %4267 = vst [vmem:[#allocation3 + $0x98] sm:$0xff] %v9804_v0 }
  0x96   :  { %4268 = vst [vmem:[#allocation3 + $0xa0] sm:$0x3] %v9804_v0 }
  0x97   :  { %4269 = vst [vmem:[#allocation3 + $0xa8] sm:$0xff] %v9804_v0 }
  0x98   :  { %4270 = vst [vmem:[#allocation3 + $0xb0] sm:$0xff] %v9804_v0 }
  0x99   :  { %4271 = vst [vmem:[#allocation3 + $0xb8] sm:$0x3] %v9804_v0 }
  0x9a   :  { %4272 = vst [vmem:[#allocation3 + $0xc0] sm:$0xff] %v9804_v0 }
  0x9b   :  { %4273 = vst [vmem:[#allocation3 + $0xc8] sm:$0xff] %v9804_v0 }
  0x9c   :  { %4274 = vst [vmem:[#allocation3 + $0xd0] sm:$0x3] %v9804_v0 }
  0x9d   :  { %4275 = vst [vmem:[#allocation3 + $0xd8] sm:$0xff] %v9804_v0 }
  0x9e   :  { %4276 = vst [vmem:[#allocation3 + $0xe0] sm:$0xff] %v9804_v0 }
  0x9f   :  { %4277 = vst [vmem:[#allocation3 + $0xe8] sm:$0x3] %v9804_v0 }
  0xa0   :  { %4278 = vst [vmem:[#allocation3 + $0xf0] sm:$0xff] %v9804_v0 }
  0xa1   :  { %4279 = vst [vmem:[#allocation3 + $0xf8] sm:$0xff] %v9804_v0 }
  0xa2   :  { %4280 = vst [vmem:[#allocation3 + $0x100] sm:$0x3] %v9804_v0 }
  0xa3   :  { %4281 = vst [vmem:[#allocation3 + $0x108] sm:$0xff] %v9804_v0 }
  0xa4   :  { %4282 = vst [vmem:[#allocation3 + $0x110] sm:$0xff] %v9804_v0 }
  0xa5   :  { %4283 = vst [vmem:[#allocation3 + $0x118] sm:$0x3] %v9804_v0 }
  0xa6   :  { %4284 = vst [vmem:[#allocation3 + $0x120] sm:$0xff] %v9804_v0 }
  0xa7   :  { %4285 = vst [vmem:[#allocation3 + $0x128] sm:$0xff] %v9804_v0 }
  0xa8   :  { %4286 = vst [vmem:[#allocation3 + $0x130] sm:$0x3] %v9804_v0 }
  0xa9   :  { %4287 = vst [vmem:[#allocation3 + $0x138] sm:$0xff] %v9804_v0 }
  0xaa   :  { %4288 = vst [vmem:[#allocation3 + $0x140] sm:$0xff] %v9804_v0 }
  0xab   :  { %4289 = vst [vmem:[#allocation3 + $0x148] sm:$0x3] %v9804_v0 }
  0xac   :  { %4290 = vst [vmem:[#allocation3 + $0x150] sm:$0xff] %v9804_v0 }
  0xad   :  { %4291 = vst [vmem:[#allocation3 + $0x158] sm:$0xff] %v9804_v0 }
  0xae   :  { %4292 = vst [vmem:[#allocation3 + $0x160] sm:$0x3] %v9804_v0 }
  0xaf   :  { %4293 = vst [vmem:[#allocation3 + $0x168] sm:$0xff] %v9804_v0 }
  0xb0   :  { %4294 = vst [vmem:[#allocation3 + $0x170] sm:$0xff] %v9804_v0 }
  0xb1   :  { %4295 = vst [vmem:[#allocation3 + $0x178] sm:$0x3] %v9804_v0 }
  0xb2   :  { %4296 = vst [vmem:[#allocation3 + $0x180] sm:$0xff] %v9804_v0 }
  0xb3   :  { %4297 = vst [vmem:[#allocation3 + $0x188] sm:$0xff] %v9804_v0 }
  0xb4   :  { %4298 = vst [vmem:[#allocation3 + $0x190] sm:$0x3] %v9804_v0 }
  0xb5   :  { %4299 = vst [vmem:[#allocation3 + $0x198] sm:$0xff] %v9804_v0 }
  0xb6   :  { %4300 = vst [vmem:[#allocation3 + $0x1a0] sm:$0xff] %v9804_v0 }
  0xb7   :  { %4301 = vst [vmem:[#allocation3 + $0x1a8] sm:$0x3] %v9804_v0 }
  0xb8   :  { %4302 = vst [vmem:[#allocation3 + $0x1b0] sm:$0xff] %v9804_v0 }
  0xb9   :  { %4303 = vst [vmem:[#allocation3 + $0x1b8] sm:$0xff] %v9804_v0 }
  0xba   :  { %4304 = vst [vmem:[#allocation3 + $0x1c0] sm:$0x3] %v9804_v0 }
  0xbb   :  { %4305 = vst [vmem:[#allocation3 + $0x1c8] sm:$0xff] %v9804_v0 }
  0xbc   :  { %4306 = vst [vmem:[#allocation3 + $0x1d0] sm:$0xff] %v9804_v0 }
  0xbd   :  { %4307 = vst [vmem:[#allocation3 + $0x1d8] sm:$0x3] %v9804_v0 }
  0xbe   :  { %4308 = vst [vmem:[#allocation3 + $0x1e0] sm:$0xff] %v9804_v0 }
  0xbf   :  { %4309 = vst [vmem:[#allocation3 + $0x1e8] sm:$0xff] %v9804_v0 }
  0xc0   :  { %4310 = vst [vmem:[#allocation3 + $0x1f0] sm:$0x3] %v9804_v0 }
  0xc1   :  { %4311 = vst [vmem:[#allocation3 + $0x1f8] sm:$0xff] %v9804_v0 }
  0xc2   :  { %4312 = vst [vmem:[#allocation3 + $0x200] sm:$0xff] %v9804_v0 }
  0xc3   :  { %4313 = vst [vmem:[#allocation3 + $0x208] sm:$0x3] %v9804_v0 }
  0xc4   :  { %4314 = vst [vmem:[#allocation3 + $0x210] sm:$0xff] %v9804_v0 }
  0xc5   :  { %4315 = vst [vmem:[#allocation3 + $0x218] sm:$0xff] %v9804_v0 }
  0xc6   :  { %4316 = vst [vmem:[#allocation3 + $0x220] sm:$0x3] %v9804_v0 }
  0xc7   :  { %4317 = vst [vmem:[#allocation3 + $0x228] sm:$0xff] %v9804_v0 }
  0xc8   :  { %4318 = vst [vmem:[#allocation3 + $0x230] sm:$0xff] %v9804_v0 }
  0xc9   :  { %4319 = vst [vmem:[#allocation3 + $0x238] sm:$0x3] %v9804_v0 }
  0xca   :  { %4320 = vst [vmem:[#allocation3 + $0x240] sm:$0xff] %v9804_v0 }
  0xcb   :  { %4321 = vst [vmem:[#allocation3 + $0x248] sm:$0xff] %v9804_v0 }
  0xcc   :  { %4322 = vst [vmem:[#allocation3 + $0x250] sm:$0x3] %v9804_v0 }
  0xcd   :  { %4323 = vst [vmem:[#allocation3 + $0x258] sm:$0xff] %v9804_v0 }
  0xce   :  { %4324 = vst [vmem:[#allocation3 + $0x260] sm:$0xff] %v9804_v0 }
  0xcf   :  { %4325 = vst [vmem:[#allocation3 + $0x268] sm:$0x3] %v9804_v0 }
  0xd0   :  { %4326 = vst [vmem:[#allocation3 + $0x270] sm:$0xff] %v9804_v0 }
  0xd1   :  { %4327 = vst [vmem:[#allocation3 + $0x278] sm:$0xff] %v9804_v0 }
  0xd2   :  { %4328 = vst [vmem:[#allocation3 + $0x280] sm:$0x3] %v9804_v0 }
  0xd3   :  { %4329 = vst [vmem:[#allocation3 + $0x288] sm:$0xff] %v9804_v0 }
  0xd4   :  { %4330 = vst [vmem:[#allocation3 + $0x290] sm:$0xff] %v9804_v0 }
  0xd5   :  { %4331 = vst [vmem:[#allocation3 + $0x298] sm:$0x3] %v9804_v0 }
  0xd6   :  { %4332 = vst [vmem:[#allocation3 + $0x2a0] sm:$0xff] %v9804_v0 }
  0xd7   :  { %4333 = vst [vmem:[#allocation3 + $0x2a8] sm:$0xff] %v9804_v0 }
  0xd8   :  { %4334 = vst [vmem:[#allocation3 + $0x2b0] sm:$0x3] %v9804_v0 }
  0xd9   :  { %4335 = vst [vmem:[#allocation3 + $0x2b8] sm:$0xff] %v9804_v0 }
  0xda   :  { %4336 = vst [vmem:[#allocation3 + $0x2c0] sm:$0xff] %v9804_v0 }
  0xdb   :  { %4337 = vst [vmem:[#allocation3 + $0x2c8] sm:$0x3] %v9804_v0 }
  0xdc   :  { %4338 = vst [vmem:[#allocation3 + $0x2d0] sm:$0xff] %v9804_v0 }
  0xdd   :  { %4339 = vst [vmem:[#allocation3 + $0x2d8] sm:$0xff] %v9804_v0 }
  0xde   :  { %4340 = vst [vmem:[#allocation3 + $0x2e0] sm:$0x3] %v9804_v0 }
  0xdf   :  { %4341 = vst [vmem:[#allocation3 + $0x2e8] sm:$0xff] %v9804_v0 }
  0xe0   :  { %4342 = vst [vmem:[#allocation3 + $0x2f0] sm:$0xff] %v9804_v0 }
  0xe1   :  { %4343 = vst [vmem:[#allocation3 + $0x2f8] sm:$0x3] %v9804_v0 }
  0xe2   :  { %4344 = vst [vmem:[#allocation3 + $0x300] sm:$0xff] %v9804_v0 }
  0xe3   :  { %4345 = vst [vmem:[#allocation3 + $0x308] sm:$0xff] %v9804_v0 }
  0xe4   :  { %4346 = vst [vmem:[#allocation3 + $0x310] sm:$0x3] %v9804_v0 }
  0xe5   :  { %4347 = vst [vmem:[#allocation3 + $0x318] sm:$0xff] %v9804_v0 }
  0xe6   :  { %4348 = vst [vmem:[#allocation3 + $0x320] sm:$0xff] %v9804_v0 }
  0xe7   :  { %4349 = vst [vmem:[#allocation3 + $0x328] sm:$0x3] %v9804_v0 }
  0xe8   :  { %4350 = vst [vmem:[#allocation3 + $0x330] sm:$0xff] %v9804_v0 }
  0xe9   :  { %4351 = vst [vmem:[#allocation3 + $0x338] sm:$0xff] %v9804_v0 }
  0xea   :  { %4352 = vst [vmem:[#allocation3 + $0x340] sm:$0x3] %v9804_v0 }
  0xeb   :  { %4353 = vst [vmem:[#allocation3 + $0x348] sm:$0xff] %v9804_v0 }
  0xec   :  { %4354 = vst [vmem:[#allocation3 + $0x350] sm:$0xff] %v9804_v0 }
  0xed   :  { %4355 = vst [vmem:[#allocation3 + $0x358] sm:$0x3] %v9804_v0  ;;  %v201_v0 = vld [vmem:[%s13840_s0 + $0x58] sm:$0x3] }
  0xee   :  { %299 = vst.msk [vmem:[#allocation2] sm:$0xff] %vm298_vm0, %v190_v29 }
  0xef   :  { %300 = vst.msk [vmem:[#allocation2 + $0x8] sm:$0xff] %vm298_vm0, %v191_v30 }
  0xf0   :  { %302 = vst.msk [vmem:[#allocation2 + $0x10] sm:$0x3] %vm301_vm1, %v192_v31 }
  0xf1   :  { %357 = vst.msk [vmem:[#allocation2 + $0x1c8] sm:$0xff] %vm298_vm0, %v247_v33  ;;  %v9535_v33 = vld [vmem:[%s13841_s1 + $0x128] sm:$0xff] }
  0xf2   :  { %358 = vst.msk [vmem:[#allocation2 + $0x1d0] sm:$0xff] %vm298_vm0, %v248_v34  ;;  %v259_v34 = vld [vmem:[%s13840_s0 + $0x228] sm:$0xff]  ;;  %2019 = vmatpush.bf16.msrb.mxu0 %v9535_v33 }
  0xf3   :  { %359 = vst.msk [vmem:[#allocation2 + $0x1d8] sm:$0x3] %vm301_vm1, %v249_v35  ;;  %v260_v35 = vld [vmem:[%s13840_s0 + $0x230] sm:$0xff] }
  0xf4   :  { %303 = vst.msk [vmem:[#allocation2 + $0x18] sm:$0xff] %vm298_vm0, %v193_v36  ;;  %v261_v36 = vld [vmem:[%s13840_s0 + $0x238] sm:$0x3] }
  0xf5   :  { %v408_v40 = vld [vmem:[#allocation2] sm:$0xff]  ;;  %304 = vst.msk [vmem:[#allocation2 + $0x20] sm:$0xff] %vm298_vm0, %v194_v37  ;;  %v205_v37 = vld [vmem:[%s13840_s0 + $0x78] sm:$0xff] }
  0xf6   :  { %v520_v42 = vld [vmem:[#allocation2 + $0x1] sm:$0xff]  ;;  %305 = vst.msk [vmem:[#allocation2 + $0x28] sm:$0x3] %vm301_vm1, %v195_v38 }
  0xf7   :  { %v409_v43 = vld [vmem:[#allocation2 + $0x8] sm:$0xff]  ;;  %360 = vst.msk [vmem:[#allocation2 + $0x1e0] sm:$0xff] %vm298_vm0, %v250_v39  ;;  %v206_v38 = vld [vmem:[%s13840_s0 + $0x80] sm:$0xff] }
  0xf8   :  { %v521_v45 = vld [vmem:[#allocation2 + $0x9] sm:$0xff]  ;;  %v472_v46 = vpack.c.bf16 %v409_v43, %v408_v40  ;;  %361 = vst.msk [vmem:[#allocation2 + $0x1e8] sm:$0xff] %vm298_vm0, %v251_v41 }
  0xf9   :  { %v584_v48 = vpack.c.bf16 %v521_v45, %v520_v42  ;;  %v442_v49 = vld [vmem:[#allocation2 + $0x1c8] sm:$0xff]  ;;  %v443_v52 = vld [vmem:[#allocation2 + $0x1d0] sm:$0xff]  ;;  %362 = vst.msk [vmem:[#allocation2 + $0x1f0] sm:$0x3] %vm301_vm1, %v252_v44 }
  0xfa   :  { %906 = vmatmul.bf16.vlgmr.msra.gmra.mxu1 %v472_v46  ;;  %v554_v51 = vld [vmem:[#allocation2 + $0x1c9] sm:$0xff]  ;;  %v555_v54 = vld [vmem:[#allocation2 + $0x1d1] sm:$0xff]  ;;  %v489_v55 = vpack.c.bf16 %v443_v52, %v442_v49  ;;  %306 = vst.msk [vmem:[#allocation2 + $0x30] sm:$0xff] %vm298_vm0, %v196_v47  ;;  %v262_v52 = vld [vmem:[%s13840_s0 + $0x240] sm:$0xff] }
  0xfb   :  { %689 = vmatmul.bf16.vlgmr.msra.gmra.mxu0 %v584_v48  ;;  %v601_v58 = vpack.c.bf16 %v555_v54, %v554_v51  ;;  %307 = vst.msk [vmem:[#allocation2 + $0x38] sm:$0xff] %vm298_vm0, %v197_v50  ;;  %v410_v1 = vld [vmem:[#allocation2 + $0x18] sm:$0xff]  ;;  %v207_v39 = vld [vmem:[%s13840_s0 + $0x88] sm:$0x3]  ;;  %v264_v54 = vld [vmem:[%s13840_s0 + $0x250] sm:$0x3] }
  0xfc   :  { %991 = vmatmul.bf16.gmra.mxu3 %v489_v55  ;;  %308 = vst.msk [vmem:[#allocation2 + $0x40] sm:$0x3] %vm301_vm1, %v198_v53  ;;  %v411_v2 = vld [vmem:[#allocation2 + $0x20] sm:$0xff]  ;;  %v263_v53 = vld [vmem:[%s13840_s0 + $0x248] sm:$0xff] }
  0xfd   :  { %774 = vmatmul.bf16.gmra.mxu2 %v601_v58  ;;  %363 = vst.msk [vmem:[#allocation2 + $0x1f8] sm:$0xff] %vm298_vm0, %v253_v59  ;;  %v522_v3 = vld [vmem:[#allocation2 + $0x19] sm:$0xff]  ;;  %v523_v4 = vld [vmem:[#allocation2 + $0x21] sm:$0xff]  ;;  %v473_v5 = vpack.c.bf16 %v411_v2, %v410_v1 }
  0xfe   :  { %364 = vst.msk [vmem:[#allocation2 + $0x200] sm:$0xff] %vm298_vm0, %v254_v60  ;;  %v444_v6 = vld [vmem:[#allocation2 + $0x1e0] sm:$0xff]  ;;  %v585_v8 = vpack.c.bf16 %v523_v4, %v522_v3 }
  0xff   :  { %365 = vst.msk [vmem:[#allocation2 + $0x208] sm:$0x3] %vm301_vm1, %v255_v61  ;;  %v445_v7 = vld [vmem:[#allocation2 + $0x1e8] sm:$0xff]  ;;  %v9518_v55 = vld [vmem:[%s13841_s1 + $0xa0] sm:$0xff] }
 0x100   :  { %309 = vst.msk [vmem:[#allocation2 + $0x48] sm:$0xff] %vm298_vm0, %v199_v62  ;;  %v556_v9 = vld [vmem:[#allocation2 + $0x1e1] sm:$0xff]  ;;  %v557_v10 = vld [vmem:[#allocation2 + $0x1e9] sm:$0xff]  ;;  %v490_v11 = vpack.c.bf16 %v445_v7, %v444_v6  ;;  %1231 = vmatpush.bf16.msrb.mxu2 %v9518_v55  ;;  %v9533_v55 = vld [vmem:[%s13841_s1 + $0x118] sm:$0xff] }
 0x101   :  { %310 = vst.msk [vmem:[#allocation2 + $0x50] sm:$0xff] %vm298_vm0, %v200_v63  ;;  %v602_v12 = vpack.c.bf16 %v557_v10, %v556_v9  ;;  %v412_v20 = vld [vmem:[#allocation2 + $0x30] sm:$0xff]  ;;  %v210_v58 = vld [vmem:[%s13840_s0 + $0xa0] sm:$0x3]  ;;  %v265_v9 = vld [vmem:[%s13840_s0 + $0x258] sm:$0xff] }
 0x102   :  { %311 = vst.msk [vmem:[#allocation2 + $0x58] sm:$0x3] %vm301_vm1, %v201_v0  ;;  %v413_v21 = vld [vmem:[#allocation2 + $0x38] sm:$0xff]  ;;  %v9526_v7 = vld [vmem:[%s13841_s1 + $0xe0] sm:$0xff] }
 0x103   :  { %366 = vst.msk [vmem:[#allocation2 + $0x210] sm:$0xff] %vm298_vm0, %v256_v13  ;;  %v524_v22 = vld [vmem:[#allocation2 + $0x31] sm:$0xff]  ;;  %v525_v23 = vld [vmem:[#allocation2 + $0x39] sm:$0xff]  ;;  %v474_v24 = vpack.c.bf16 %v413_v21, %v412_v20  ;;  %1626 = vmatpush.bf16.msrb.mxu3 %v9526_v7 }
 0x104   :  { %367 = vst.msk [vmem:[#allocation2 + $0x218] sm:$0xff] %vm298_vm0, %v257_v14  ;;  %v446_v25 = vld [vmem:[#allocation2 + $0x1f8] sm:$0xff]  ;;  %v586_v27 = vpack.c.bf16 %v525_v23, %v524_v22  ;;  %v266_v10 = vld [vmem:[%s13840_s0 + $0x260] sm:$0xff]  ;;  %v212_v13 = vld [vmem:[%s13840_s0 + $0xb0] sm:$0xff] }
 0x105   :  { %368 = vst.msk [vmem:[#allocation2 + $0x220] sm:$0x3] %vm301_vm1, %v258_v15  ;;  %v447_v26 = vld [vmem:[#allocation2 + $0x200] sm:$0xff]  ;;  %v213_v14 = vld [vmem:[%s13840_s0 + $0xb8] sm:$0x3] }
 0x106   :  { %312 = vst.msk [vmem:[#allocation2 + $0x60] sm:$0xff] %vm298_vm0, %v202_v17  ;;  %v558_v28 = vld [vmem:[#allocation2 + $0x1f9] sm:$0xff]  ;;  %v559_v29 = vld [vmem:[#allocation2 + $0x201] sm:$0xff]  ;;  %v491_v30 = vpack.c.bf16 %v447_v26, %v446_v25  ;;  %v276_v7 = vld [vmem:[%s13840_s0 + $0x2b0] sm:$0x3] }
 0x107   :  { %313 = vst.msk [vmem:[#allocation2 + $0x68] sm:$0xff] %vm298_vm0, %v203_v18  ;;  %v603_v31 = vpack.c.bf16 %v559_v29, %v558_v28  ;;  %v414_v40 = vld [vmem:[#allocation2 + $0x48] sm:$0xff]  ;;  %v269_v28 = vld [vmem:[%s13840_s0 + $0x278] sm:$0xff]  ;;  %v270_v29 = vld [vmem:[%s13840_s0 + $0x280] sm:$0x3] }
 0x108   :  { %314 = vst.msk [vmem:[#allocation2 + $0x70] sm:$0x3] %vm301_vm1, %v204_v19  ;;  %v415_v41 = vld [vmem:[#allocation2 + $0x50] sm:$0xff] }
 0x109   :  { %369 = vst.msk [vmem:[#allocation2 + $0x228] sm:$0xff] %vm298_vm0, %v259_v34  ;;  %v526_v42 = vld [vmem:[#allocation2 + $0x49] sm:$0xff]  ;;  %v527_v43 = vld [vmem:[#allocation2 + $0x51] sm:$0xff]  ;;  %v475_v44 = vpack.c.bf16 %v415_v41, %v414_v40 }
 0x10a   :  { %911 = vmatmul.bf16.gmra.mxu1 %v473_v5  ;;  %370 = vst.msk [vmem:[#allocation2 + $0x230] sm:$0xff] %vm298_vm0, %v260_v35  ;;  %v448_v45 = vld [vmem:[#allocation2 + $0x210] sm:$0xff]  ;;  %v587_v47 = vpack.c.bf16 %v527_v43, %v526_v42 }
 0x10b   :  { %694 = vmatmul.bf16.gmra.mxu0 %v585_v8  ;;  %371 = vst.msk [vmem:[#allocation2 + $0x238] sm:$0x3] %vm301_vm1, %v261_v36  ;;  %v449_v46 = vld [vmem:[#allocation2 + $0x218] sm:$0xff]  ;;  %v9534_v8 = vld [vmem:[%s13841_s1 + $0x120] sm:$0xff] }
 0x10c   :  { %996 = vmatmul.bf16.gmra.mxu3 %v490_v11  ;;  %315 = vst.msk [vmem:[#allocation2 + $0x78] sm:$0xff] %vm298_vm0, %v205_v37  ;;  %v560_v48 = vld [vmem:[#allocation2 + $0x211] sm:$0xff]  ;;  %v561_v49 = vld [vmem:[#allocation2 + $0x219] sm:$0xff]  ;;  %v492_v50 = vpack.c.bf16 %v449_v46, %v448_v45  ;;  %v267_v11 = vld [vmem:[%s13840_s0 + $0x268] sm:$0x3]  ;;  %2020 = vmatpush.bf16.msrb.mxu0 %v9534_v8 }
 0x10d   :  { %779 = vmatmul.bf16.gmra.mxu2 %v602_v12  ;;  %316 = vst.msk [vmem:[#allocation2 + $0x80] sm:$0xff] %vm298_vm0, %v206_v38  ;;  %v604_v51 = vpack.c.bf16 %v561_v49, %v560_v48  ;;  %v416_v59 = vld [vmem:[#allocation2 + $0x60] sm:$0xff]  ;;  %v211_v12 = vld [vmem:[%s13840_s0 + $0xa8] sm:$0xff]  ;;  %v9525_v46 = vld [vmem:[%s13841_s1 + $0xd8] sm:$0xff]  ;;  %v987_v48 = vpop.f32.mrf.mxu3 }
 0x10e   :  { %317 = vst.msk [vmem:[#allocation2 + $0x88] sm:$0x3] %vm301_vm1, %v207_v39  ;;  %v417_v60 = vld [vmem:[#allocation2 + $0x68] sm:$0xff]  ;;  %1627 = vmatpush.bf16.msrb.mxu3 %v9525_v46  ;;  %v220_v8 = vld [vmem:[%s13840_s0 + $0xf0] sm:$0xff] }
 0x10f   :  { %372 = vst.msk [vmem:[#allocation2 + $0x240] sm:$0xff] %vm298_vm0, %v262_v52  ;;  %v528_v61 = vld [vmem:[#allocation2 + $0x61] sm:$0xff]  ;;  %v529_v62 = vld [vmem:[#allocation2 + $0x69] sm:$0xff]  ;;  %v476_v63 = vpack.c.bf16 %v417_v60, %v416_v59  ;;  %v273_v52 = vld [vmem:[%s13840_s0 + $0x298] sm:$0x3] }
 0x110   :  { %373 = vst.msk [vmem:[#allocation2 + $0x248] sm:$0xff] %vm298_vm0, %v263_v53  ;;  %v450_v0 = vld [vmem:[#allocation2 + $0x228] sm:$0xff]  ;;  %v588_v2 = vpack.c.bf16 %v529_v62, %v528_v61  ;;  %v217_v53 = vld [vmem:[%s13840_s0 + $0xd8] sm:$0xff]  ;;  %2021 = vmatpush.bf16.msrb.mxu0 %v9533_v55 }
 0x111   :  { %374 = vst.msk [vmem:[#allocation2 + $0x250] sm:$0x3] %vm301_vm1, %v264_v54  ;;  %v451_v1 = vld [vmem:[#allocation2 + $0x230] sm:$0xff]  ;;  %v218_v54 = vld [vmem:[%s13840_s0 + $0xe0] sm:$0xff] }
 0x112   :  { %318 = vst.msk [vmem:[#allocation2 + $0x90] sm:$0xff] %vm298_vm0, %v208_v56  ;;  %v562_v3 = vld [vmem:[#allocation2 + $0x229] sm:$0xff]  ;;  %v563_v4 = vld [vmem:[#allocation2 + $0x231] sm:$0xff]  ;;  %v493_v5 = vpack.c.bf16 %v451_v1, %v450_v0 }
 0x113   :  { %319 = vst.msk [vmem:[#allocation2 + $0x98] sm:$0xff] %vm298_vm0, %v209_v57  ;;  %v605_v6 = vpack.c.bf16 %v563_v4, %v562_v3  ;;  %v418_v15 = vld [vmem:[#allocation2 + $0x78] sm:$0xff]  ;;  %v219_v56 = vld [vmem:[%s13840_s0 + $0xe8] sm:$0x3] }
 0x114   :  { %320 = vst.msk [vmem:[#allocation2 + $0xa0] sm:$0x3] %vm301_vm1, %v210_v58  ;;  %v419_v16 = vld [vmem:[#allocation2 + $0x80] sm:$0xff] }
 0x115   :  { %375 = vst.msk [vmem:[#allocation2 + $0x258] sm:$0xff] %vm298_vm0, %v265_v9  ;;  %v530_v17 = vld [vmem:[#allocation2 + $0x79] sm:$0xff]  ;;  %v531_v18 = vld [vmem:[#allocation2 + $0x81] sm:$0xff]  ;;  %v477_v19 = vpack.c.bf16 %v419_v16, %v418_v15  ;;  %v10435_v16 = vpop.f32.mrf.mxu3 }
 0x116   :  { %376 = vst.msk [vmem:[#allocation2 + $0x260] sm:$0xff] %vm298_vm0, %v266_v10  ;;  %v452_v20 = vld [vmem:[#allocation2 + $0x240] sm:$0xff]  ;;  %v589_v22 = vpack.c.bf16 %v531_v18, %v530_v17  ;;  %v221_v9 = vld [vmem:[%s13840_s0 + $0xf8] sm:$0xff] }
 0x117   :  { %377 = vst.msk [vmem:[#allocation2 + $0x268] sm:$0x3] %vm301_vm1, %v267_v11  ;;  %v453_v21 = vld [vmem:[#allocation2 + $0x248] sm:$0xff]  ;;  %v222_v10 = vld [vmem:[%s13840_s0 + $0x100] sm:$0x3] }
 0x118   :  { %321 = vst.msk [vmem:[#allocation2 + $0xa8] sm:$0xff] %vm298_vm0, %v211_v12  ;;  %v564_v23 = vld [vmem:[#allocation2 + $0x241] sm:$0xff]  ;;  %v494_v25 = vpack.c.bf16 %v453_v21, %v452_v20 }
 0x119   :  { %322 = vst.msk [vmem:[#allocation2 + $0xb0] sm:$0xff] %vm298_vm0, %v212_v13  ;;  %v420_v33 = vld [vmem:[#allocation2 + $0x90] sm:$0xff] }
 0x11a   :  { %916 = vmatmul.bf16.gmra.mxu1 %v474_v24  ;;  %323 = vst.msk [vmem:[#allocation2 + $0xb8] sm:$0x3] %vm301_vm1, %v213_v14  ;;  %v565_v24 = vld [vmem:[#allocation2 + $0x249] sm:$0xff]  ;;  %v421_v34 = vld [vmem:[#allocation2 + $0x98] sm:$0xff] }
 0x11b   :  { %699 = vmatmul.bf16.gmra.mxu0 %v586_v27  ;;  %v606_v26 = vpack.c.bf16 %v565_v24, %v564_v23  ;;  %v268_v27 = vld [vmem:[%s13840_s0 + $0x270] sm:$0xff]  ;;  %379 = vst.msk [vmem:[#allocation2 + $0x278] sm:$0xff] %vm298_vm0, %v269_v28  ;;  %v533_v36 = vld [vmem:[#allocation2 + $0x99] sm:$0xff]  ;;  %v478_v37 = vpack.c.bf16 %v421_v34, %v420_v33 }
 0x11c   :  { %1001 = vmatmul.bf16.gmra.mxu3 %v491_v30  ;;  %378 = vst.msk [vmem:[#allocation2 + $0x270] sm:$0xff] %vm298_vm0, %v268_v27  ;;  %v214_v30 = vld [vmem:[%s13840_s0 + $0xc0] sm:$0xff]  ;;  %v532_v35 = vld [vmem:[#allocation2 + $0x91] sm:$0xff] }
 0x11d   :  { %784 = vmatmul.bf16.gmra.mxu2 %v603_v31  ;;  %v215_v31 = vld [vmem:[%s13840_s0 + $0xc8] sm:$0xff]  ;;  %380 = vst.msk [vmem:[#allocation2 + $0x280] sm:$0x3] %vm301_vm1, %v270_v29  ;;  %v454_v38 = vld [vmem:[#allocation2 + $0x258] sm:$0xff]  ;;  %v455_v39 = vld [vmem:[#allocation2 + $0x260] sm:$0xff]  ;;  %v590_v40 = vpack.c.bf16 %v533_v36, %v532_v35 }
 0x11e   :  { %324 = vst.msk [vmem:[#allocation2 + $0xc0] sm:$0xff] %vm298_vm0, %v214_v30  ;;  %v566_v41 = vld [vmem:[#allocation2 + $0x259] sm:$0xff]  ;;  %v567_v42 = vld [vmem:[#allocation2 + $0x261] sm:$0xff]  ;;  %v495_v43 = vpack.c.bf16 %v455_v39, %v454_v38  ;;  %v9516_v27 = vld [vmem:[%s13841_s1 + $0x90] sm:$0xff] }
 0x11f   :  { %325 = vst.msk [vmem:[#allocation2 + $0xc8] sm:$0xff] %vm298_vm0, %v215_v31  ;;  %v607_v45 = vpack.c.bf16 %v567_v42, %v566_v41  ;;  %v422_v57 = vld [vmem:[#allocation2 + $0xa8] sm:$0xff]  ;;  %v9524_v29 = vld [vmem:[%s13841_s1 + $0xd0] sm:$0xff]  ;;  %v277_v30 = vld [vmem:[%s13840_s0 + $0x2b8] sm:$0xff] }
 0x120   :  { %326 = vst.msk [vmem:[#allocation2 + $0xd0] sm:$0x3] %vm301_vm1, %v216_v32  ;;  %v423_v58 = vld [vmem:[#allocation2 + $0xb0] sm:$0xff]  ;;  %1628 = vmatpush.bf16.msrb.mxu3 %v9524_v29  ;;  %v278_v31 = vld [vmem:[%s13840_s0 + $0x2c0] sm:$0xff]  ;;  %v279_v32 = vld [vmem:[%s13840_s0 + $0x2c8] sm:$0x3] }
 0x121   :  { %383 = vst.msk [vmem:[#allocation2 + $0x298] sm:$0x3] %vm301_vm1, %v273_v52  ;;  %v534_v59 = vld [vmem:[#allocation2 + $0xa9] sm:$0xff]  ;;  %v535_v60 = vld [vmem:[#allocation2 + $0xb1] sm:$0xff]  ;;  %v479_v61 = vpack.c.bf16 %v423_v58, %v422_v57 }
 0x122   :  { %327 = vst.msk [vmem:[#allocation2 + $0xd8] sm:$0xff] %vm298_vm0, %v217_v53  ;;  %v591_v0 = vpack.c.bf16 %v535_v60, %v534_v59  ;;  %v223_v36 = vld [vmem:[%s13840_s0 + $0x108] sm:$0xff]  ;;  %v225_v41 = vld [vmem:[%s13840_s0 + $0x118] sm:$0x3] }
 0x123   :  { %328 = vst.msk [vmem:[#allocation2 + $0xe0] sm:$0xff] %vm298_vm0, %v218_v54  ;;  %v456_v62 = vld [vmem:[#allocation2 + $0x270] sm:$0xff]  ;;  %v9515_v29 = vld [vmem:[%s13841_s1 + $0x88] sm:$0xff] }
 0x124   :  { %329 = vst.msk [vmem:[#allocation2 + $0xe8] sm:$0x3] %vm301_vm1, %v219_v56  ;;  %v568_v1 = vld [vmem:[#allocation2 + $0x271] sm:$0xff] }
 0x125   :  { %386 = vst.msk [vmem:[#allocation2 + $0x2b0] sm:$0x3] %vm301_vm1, %v276_v7  ;;  %v424_v11 = vld [vmem:[#allocation2 + $0xc0] sm:$0xff] }
 0x126   :  { %330 = vst.msk [vmem:[#allocation2 + $0xf0] sm:$0xff] %vm298_vm0, %v220_v8  ;;  %v425_v12 = vld [vmem:[#allocation2 + $0xc8] sm:$0xff]  ;;  %v228_v8 = vld [vmem:[%s13840_s0 + $0x130] sm:$0x3] }
 0x127   :  { %331 = vst.msk [vmem:[#allocation2 + $0xf8] sm:$0xff] %vm298_vm0, %v221_v9  ;;  %v536_v13 = vld [vmem:[#allocation2 + $0xc1] sm:$0xff]  ;;  %v537_v14 = vld [vmem:[#allocation2 + $0xc9] sm:$0xff]  ;;  %v480_v15 = vpack.c.bf16 %v425_v12, %v424_v11 }
 0x128   :  { %332 = vst.msk [vmem:[#allocation2 + $0x100] sm:$0x3] %vm301_vm1, %v222_v10  ;;  %v592_v20 = vpack.c.bf16 %v537_v14, %v536_v13 }
 0x129   :  { %387 = vst.msk [vmem:[#allocation2 + $0x2b8] sm:$0xff] %vm298_vm0, %v277_v30 }
 0x12a   :  { %921 = vmatmul.bf16.gmra.mxu1 %v475_v44  ;;  %v9517_v44 = vld [vmem:[%s13841_s1 + $0x98] sm:$0xff]  ;;  %388 = vst.msk [vmem:[#allocation2 + $0x2c0] sm:$0xff] %vm298_vm0, %v278_v31 }
 0x12b   :  { %704 = vmatmul.bf16.gmra.mxu0 %v587_v47  ;;  %1232 = vmatpush.bf16.msrb.mxu2 %v9517_v44  ;;  %v770_v47 = vpop.f32.mrf.mxu2  ;;  %389 = vst.msk [vmem:[#allocation2 + $0x2c8] sm:$0x3] %vm301_vm1, %v279_v32  ;;  %v427_v44 = vld [vmem:[#allocation2 + $0xe0] sm:$0xff]  ;;  %v9523_v32 = vld [vmem:[%s13841_s1 + $0xc8] sm:$0xff] }
 0x12c   :  { %1006 = vmatmul.bf16.gmra.mxu3 %v492_v50  ;;  %v10382_v49 = vadd.f32 %v987_v48, %v770_v47  ;;  %v271_v50 = vld [vmem:[%s13840_s0 + $0x288] sm:$0xff]  ;;  %333 = vst.msk [vmem:[#allocation2 + $0x108] sm:$0xff] %vm298_vm0, %v223_v36 }
 0x12d   :  { %789 = vmatmul.bf16.gmra.mxu2 %v604_v51  ;;  %v272_v51 = vld [vmem:[%s13840_s0 + $0x290] sm:$0xff]  ;;  %381 = vst.msk [vmem:[#allocation2 + $0x288] sm:$0xff] %vm298_vm0, %v271_v50  ;;  %v539_v46 = vld [vmem:[#allocation2 + $0xe1] sm:$0xff]  ;;  %1629 = vmatpush.bf16.msrb.mxu3 %v9523_v32 }
 0x12e   :  { %382 = vst.msk [vmem:[#allocation2 + $0x290] sm:$0xff] %vm298_vm0, %v272_v51  ;;  %v428_v10 = vld [vmem:[#allocation2 + $0xf0] sm:$0xff]  ;;  %v429_v11 = vld [vmem:[#allocation2 + $0xf8] sm:$0xff] }
 0x12f   :  { %1233 = vmatpush.bf16.msrb.mxu2 %v9516_v27  ;;  %335 = vst.msk [vmem:[#allocation2 + $0x118] sm:$0x3] %vm301_vm1, %v225_v41  ;;  %v540_v12 = vld [vmem:[#allocation2 + $0xf1] sm:$0xff]  ;;  %v541_v13 = vld [vmem:[#allocation2 + $0xf9] sm:$0xff]  ;;  %v482_v14 = vpack.c.bf16 %v429_v11, %v428_v10 }
 0x130   :  { %338 = vst.msk [vmem:[#allocation2 + $0x130] sm:$0x3] %vm301_vm1, %v228_v8  ;;  %v230_v41 = vld [vmem:[%s13840_s0 + $0x140] sm:$0xff]  ;;  %v288_v8 = vld [vmem:[%s13840_s0 + $0x310] sm:$0x3] }
 0x131   :  { %340 = vst.msk [vmem:[#allocation2 + $0x140] sm:$0xff] %vm298_vm0, %v230_v41  ;;  %v9514_v41 = vld [vmem:[%s13841_s1 + $0x80] sm:$0xff] }
 0x132   :  { %398 = vst.msk [vmem:[#allocation2 + $0x310] sm:$0x3] %vm301_vm1, %v288_v8 }
 0x133   :  { %v10437_v21 = vpop.f32.mrf.mxu2  ;;  %1234 = vmatpush.bf16.msrb.mxu2 %v9515_v29 }
 0x134   :  { %v458_v17 = vld [vmem:[#allocation2 + $0x288] sm:$0xff] }
 0x135   :  { %v459_v18 = vld [vmem:[#allocation2 + $0x290] sm:$0xff] }
 0x136   :  { %v571_v23 = vld [vmem:[#allocation2 + $0x291] sm:$0xff] }
 0x137   :  { %1235 = vmatpush.bf16.msrb.mxu2 %v9514_v41 }
 0x13a   :  { %926 = vmatmul.bf16.gmra.mxu1 %v476_v63  ;;  %v457_v63 = vld [vmem:[#allocation2 + $0x278] sm:$0xff] }
 0x13b   :  { %709 = vmatmul.bf16.gmra.mxu0 %v588_v2  ;;  %v569_v2 = vld [vmem:[#allocation2 + $0x279] sm:$0xff]  ;;  %v496_v3 = vpack.c.bf16 %v457_v63, %v456_v62  ;;  %v280_v62 = vld [vmem:[%s13840_s0 + $0x2d0] sm:$0xff] }
 0x13c   :  { %1011 = vmatmul.bf16.gmra.mxu3 %v493_v5  ;;  %v608_v4 = vpack.c.bf16 %v569_v2, %v568_v1  ;;  %v274_v5 = vld [vmem:[%s13840_s0 + $0x2a0] sm:$0xff]  ;;  %v281_v63 = vld [vmem:[%s13840_s0 + $0x2d8] sm:$0xff]  ;;  %390 = vst.msk [vmem:[#allocation2 + $0x2d0] sm:$0xff] %vm298_vm0, %v280_v62 }
 0x13d   :  { %794 = vmatmul.bf16.gmra.mxu2 %v605_v6  ;;  %v275_v6 = vld [vmem:[%s13840_s0 + $0x2a8] sm:$0xff]  ;;  %384 = vst.msk [vmem:[#allocation2 + $0x2a0] sm:$0xff] %vm298_vm0, %v274_v5 }
 0x13e   :  { %385 = vst.msk [vmem:[#allocation2 + $0x2a8] sm:$0xff] %vm298_vm0, %v275_v6  ;;  %v227_v5 = vld [vmem:[%s13840_s0 + $0x128] sm:$0xff] }
 0x13f   :  { %391 = vst.msk [vmem:[#allocation2 + $0x2d8] sm:$0xff] %vm298_vm0, %v281_v63 }
 0x140   :  { %337 = vst.msk [vmem:[#allocation2 + $0x128] sm:$0xff] %vm298_vm0, %v227_v5  ;;  %v286_v5 = vld [vmem:[%s13840_s0 + $0x300] sm:$0xff] }
 0x141   :  { %396 = vst.msk [vmem:[#allocation2 + $0x300] sm:$0xff] %vm298_vm0, %v286_v5 }
 0x144   :  { %v460_v48 = vld [vmem:[#allocation2 + $0x2a0] sm:$0xff] }
 0x145   :  { %v461_v50 = vld [vmem:[#allocation2 + $0x2a8] sm:$0xff] }
 0x146   :  { %v572_v53 = vld [vmem:[#allocation2 + $0x2a1] sm:$0xff]  ;;  %v573_v54 = vld [vmem:[#allocation2 + $0x2a9] sm:$0xff]  ;;  %v498_v59 = vpack.c.bf16 %v461_v50, %v460_v48 }
 0x147   :  { %v430_v48 = vld [vmem:[#allocation2 + $0x108] sm:$0xff] }
 0x14a   :  { %931 = vmatmul.bf16.gmra.mxu1 %v477_v19 }
 0x14b   :  { %714 = vmatmul.bf16.gmra.mxu0 %v589_v22  ;;  %v570_v22 = vld [vmem:[#allocation2 + $0x289] sm:$0xff] }
 0x14c   :  { %1016 = vmatmul.bf16.gmra.mxu3 %v494_v25  ;;  %v609_v28 = vpack.c.bf16 %v571_v23, %v570_v22  ;;  %v575_v22 = vld [vmem:[#allocation2 + $0x2c1] sm:$0xff] }
 0x14d   :  { %799 = vmatmul.bf16.gmra.mxu2 %v606_v26  ;;  %v497_v26 = vpack.c.bf16 %v459_v18, %v458_v17  ;;  %v463_v17 = vld [vmem:[#allocation2 + $0x2c0] sm:$0xff] }
 0x15a   :  { %936 = vmatmul.bf16.gmra.mxu1 %v478_v37  ;;  %v224_v37 = vld [vmem:[%s13840_s0 + $0x110] sm:$0xff] }
 0x15b   :  { %719 = vmatmul.bf16.gmra.mxu0 %v590_v40  ;;  %v9532_v40 = vld [vmem:[%s13841_s1 + $0x110] sm:$0xff]  ;;  %334 = vst.msk [vmem:[#allocation2 + $0x110] sm:$0xff] %vm298_vm0, %v224_v37 }
 0x15c   :  { %1021 = vmatmul.bf16.gmra.mxu3 %v495_v43  ;;  %v426_v43 = vld [vmem:[#allocation2 + $0xd8] sm:$0xff]  ;;  %2022 = vmatpush.bf16.msrb.mxu0 %v9532_v40 }
 0x15d   :  { %804 = vmatmul.bf16.gmra.mxu2 %v607_v45  ;;  %v538_v45 = vld [vmem:[#allocation2 + $0xd9] sm:$0xff]  ;;  %v481_v47 = vpack.c.bf16 %v427_v44, %v426_v43 }
 0x15e   :  { %v593_v52 = vpack.c.bf16 %v539_v46, %v538_v45  ;;  %v229_v40 = vld [vmem:[%s13840_s0 + $0x138] sm:$0xff]  ;;  %v9531_v45 = vld [vmem:[%s13841_s1 + $0x108] sm:$0xff] }
 0x15f   :  { %v231_v46 = vld [vmem:[%s13840_s0 + $0x148] sm:$0x3]  ;;  %339 = vst.msk [vmem:[#allocation2 + $0x138] sm:$0xff] %vm298_vm0, %v229_v40 }
 0x160   :  { %2023 = vmatpush.bf16.msrb.mxu0 %v9531_v45  ;;  %341 = vst.msk [vmem:[#allocation2 + $0x148] sm:$0x3] %vm301_vm1, %v231_v46  ;;  %v9522_v46 = vld [vmem:[%s13841_s1 + $0xc0] sm:$0xff] }
 0x161   :  { %1630 = vmatpush.bf16.msrb.mxu3 %v9522_v46  ;;  %v9541_v46 = vld [vmem:[%s13841_s1 + $0x158] sm:$0xff] }
 0x162   :  { %v431_v50 = vld [vmem:[#allocation2 + $0x110] sm:$0xff] }
 0x166   :  { %v546_v5 = vld [vmem:[#allocation2 + $0x139] sm:$0xff] }
 0x16a   :  { %941 = vmatmul.bf16.gmra.mxu1 %v479_v61  ;;  %v610_v61 = vpack.c.bf16 %v573_v54, %v572_v53  ;;  %v483_v53 = vpack.c.bf16 %v431_v50, %v430_v48  ;;  %v464_v54 = vld [vmem:[#allocation2 + $0x2d0] sm:$0xff]  ;;  %v289_v48 = vld [vmem:[%s13840_s0 + $0x318] sm:$0xff]  ;;  %v290_v50 = vld [vmem:[%s13840_s0 + $0x320] sm:$0xff] }
 0x16b   :  { %724 = vmatmul.bf16.gmra.mxu0 %v591_v0  ;;  %v282_v0 = vld [vmem:[%s13840_s0 + $0x2e0] sm:$0x3]  ;;  %399 = vst.msk [vmem:[#allocation2 + $0x318] sm:$0xff] %vm298_vm0, %v289_v48 }
 0x16c   :  { %1026 = vmatmul.bf16.gmra.mxu3 %v496_v3  ;;  %392 = vst.msk [vmem:[#allocation2 + $0x2e0] sm:$0x3] %vm301_vm1, %v282_v0 }
 0x16d   :  { %809 = vmatmul.bf16.gmra.mxu2 %v608_v4  ;;  %v226_v4 = vld [vmem:[%s13840_s0 + $0x120] sm:$0xff]  ;;  %400 = vst.msk [vmem:[#allocation2 + $0x320] sm:$0xff] %vm298_vm0, %v290_v50 }
 0x16e   :  { %336 = vst.msk [vmem:[#allocation2 + $0x120] sm:$0xff] %vm298_vm0, %v226_v4 }
 0x177   :  { %v907_v19 = vpop.f32.mrf.mxu1 }
 0x178   :  { %v690_v24 = vpop.f32.mrf.mxu0 }
 0x179   :  { %v10439_v25 = vadd.f32 %v907_v19, %v690_v24  ;;  %v594_v19 = vpack.c.bf16 %v541_v13, %v540_v12  ;;  %v232_v13 = vld [vmem:[%s13840_s0 + $0x150] sm:$0xff] }
 0x17a   :  { %946 = vmatmul.bf16.gmra.mxu1 %v480_v15  ;;  %v462_v15 = vld [vmem:[#allocation2 + $0x2b8] sm:$0xff]  ;;  %342 = vst.msk [vmem:[#allocation2 + $0x150] sm:$0xff] %vm298_vm0, %v232_v13 }
 0x17b   :  { %729 = vmatmul.bf16.gmra.mxu0 %v592_v20  ;;  %v574_v20 = vld [vmem:[#allocation2 + $0x2b9] sm:$0xff] }
 0x17c   :  { %1031 = vmatmul.bf16.gmra.mxu3 %v497_v26  ;;  %v611_v31 = vpack.c.bf16 %v575_v22, %v574_v20  ;;  %v432_v20 = vld [vmem:[#allocation2 + $0x120] sm:$0xff]  ;;  %v433_v22 = vld [vmem:[#allocation2 + $0x128] sm:$0xff] }
 0x17d   :  { %814 = vmatmul.bf16.gmra.mxu2 %v609_v28  ;;  %v499_v28 = vpack.c.bf16 %v463_v17, %v462_v15 }
 0x17f   :  { %v909_v33 = vpop.f32.mrf.mxu1  ;;  %v992_v35 = vpop.f32.mrf.mxu3 }
 0x180   :  { %v692_v34 = vpop.f32.mrf.mxu0  ;;  %v775_v39 = vpop.f32.mrf.mxu2 }
 0x181   :  { %v10464_v38 = vadd.f32 %v909_v33, %v692_v34  ;;  %v10473_v42 = vadd.f32 %v992_v35, %v775_v39  ;;  %v283_v33 = vld [vmem:[%s13840_s0 + $0x2e8] sm:$0xff]  ;;  %v284_v34 = vld [vmem:[%s13840_s0 + $0x2f0] sm:$0xff]  ;;  %v285_v35 = vld [vmem:[%s13840_s0 + $0x2f8] sm:$0x3] }
 0x182   :  { %393 = vst.msk [vmem:[#allocation2 + $0x2e8] sm:$0xff] %vm298_vm0, %v283_v33  ;;  %v436_v41 = vld [vmem:[#allocation2 + $0x150] sm:$0xff] }
 0x183   :  { %394 = vst.msk [vmem:[#allocation2 + $0x2f0] sm:$0xff] %vm298_vm0, %v284_v34 }
 0x184   :  { %395 = vst.msk [vmem:[#allocation2 + $0x2f8] sm:$0x3] %vm301_vm1, %v285_v35 }
 0x187   :  { %v912_v51 = vpop.f32.mrf.mxu1  ;;  %v994_v56 = vpop.f32.mrf.mxu3 }
 0x188   :  { %v695_v55 = vpop.f32.mrf.mxu0  ;;  %v777_v58 = vpop.f32.mrf.mxu2 }
 0x189   :  { %v10478_v57 = vadd.f32 %v912_v51, %v695_v55  ;;  %v10480_v60 = vadd.f32 %v994_v56, %v777_v58  ;;  %v542_v51 = vld [vmem:[#allocation2 + $0x109] sm:$0xff]  ;;  %v465_v55 = vld [vmem:[#allocation2 + $0x2d8] sm:$0xff] }
 0x18a   :  { %951 = vmatmul.bf16.gmra.mxu1 %v481_v47  ;;  %v467_v29 = vld [vmem:[#allocation2 + $0x2f0] sm:$0xff] }
 0x18b   :  { %734 = vmatmul.bf16.gmra.mxu0 %v593_v52  ;;  %v543_v52 = vld [vmem:[#allocation2 + $0x111] sm:$0xff]  ;;  %v578_v33 = vld [vmem:[#allocation2 + $0x2e9] sm:$0xff] }
 0x18c   :  { %1036 = vmatmul.bf16.gmra.mxu3 %v498_v59  ;;  %v595_v58 = vpack.c.bf16 %v543_v52, %v542_v51  ;;  %v576_v59 = vld [vmem:[#allocation2 + $0x2d1] sm:$0xff]  ;;  %v291_v51 = vld [vmem:[%s13840_s0 + $0x328] sm:$0x3] }
 0x18d   :  { %819 = vmatmul.bf16.gmra.mxu2 %v610_v61  ;;  %v577_v61 = vld [vmem:[#allocation2 + $0x2d9] sm:$0xff]  ;;  %v579_v34 = vld [vmem:[#allocation2 + $0x2f1] sm:$0xff]  ;;  %401 = vst.msk [vmem:[#allocation2 + $0x328] sm:$0x3] %vm301_vm1, %v291_v51 }
 0x18e   :  { %v612_v4 = vpack.c.bf16 %v577_v61, %v576_v59  ;;  %v613_v45 = vpack.c.bf16 %v579_v34, %v578_v33  ;;  %v9530_v61 = vld [vmem:[%s13841_s1 + $0x100] sm:$0xff] }
 0x18f   :  { %v914_v1 = vpop.f32.mrf.mxu1  ;;  %v997_v3 = vpop.f32.mrf.mxu3  ;;  %2024 = vmatpush.bf16.msrb.mxu0 %v9530_v61 }
 0x190   :  { %v697_v2 = vpop.f32.mrf.mxu0  ;;  %v780_v7 = vpop.f32.mrf.mxu2 }
 0x191   :  { %v10499_v6 = vadd.f32 %v914_v1, %v697_v2  ;;  %v10505_v9 = vadd.f32 %v997_v3, %v780_v7  ;;  %v500_v2 = vpack.c.bf16 %v465_v55, %v464_v54  ;;  %v287_v7 = vld [vmem:[%s13840_s0 + $0x308] sm:$0xff] }
 0x192   :  { %397 = vst.msk [vmem:[#allocation2 + $0x308] sm:$0xff] %vm298_vm0, %v287_v7  ;;  %v235_v55 = vld [vmem:[%s13840_s0 + $0x168] sm:$0xff] }
 0x193   :  { %345 = vst.msk [vmem:[#allocation2 + $0x168] sm:$0xff] %vm298_vm0, %v235_v55  ;;  %v547_v7 = vld [vmem:[#allocation2 + $0x141] sm:$0xff] }
 0x194   :  { %v597_v13 = vpack.c.bf16 %v547_v7, %v546_v5  ;;  %v9553_v7 = vld [vmem:[%s13841_s1 + $0x1b8] sm:$0xff] }
 0x195   :  { %2806 = vmatpush.bf16.msra.mxu2 %v9553_v7  ;;  %v2250_v7 = vld [vmem:[#allocation2 + $0x1a] sm:$0xff] }
 0x197   :  { %v917_v18 = vpop.f32.mrf.mxu1  ;;  %v999_v24 = vpop.f32.mrf.mxu3 }
 0x198   :  { %v700_v23 = vpop.f32.mrf.mxu0  ;;  %v782_v27 = vpop.f32.mrf.mxu2 }
 0x199   :  { %v10510_v26 = vadd.f32 %v917_v18, %v700_v23  ;;  %v10515_v30 = vadd.f32 %v999_v24, %v782_v27  ;;  %v234_v18 = vld [vmem:[%s13840_s0 + $0x160] sm:$0x3]  ;;  %v545_v24 = vld [vmem:[#allocation2 + $0x129] sm:$0xff]  ;;  %v484_v27 = vpack.c.bf16 %v433_v22, %v432_v20 }
 0x19a   :  { %956 = vmatmul.bf16.gmra.mxu1 %v482_v14  ;;  %v233_v14 = vld [vmem:[%s13840_s0 + $0x158] sm:$0xff]  ;;  %v544_v23 = vld [vmem:[#allocation2 + $0x121] sm:$0xff]  ;;  %344 = vst.msk [vmem:[#allocation2 + $0x160] sm:$0x3] %vm301_vm1, %v234_v18  ;;  %v9544_v22 = vld [vmem:[%s13841_s1 + $0x170] sm:$0xff] }
 0x19b   :  { %739 = vmatmul.bf16.gmra.mxu0 %v594_v19  ;;  %343 = vst.msk [vmem:[#allocation2 + $0x158] sm:$0xff] %vm298_vm0, %v233_v14  ;;  %v596_v32 = vpack.c.bf16 %v545_v24, %v544_v23  ;;  %v580_v14 = vld [vmem:[#allocation2 + $0x301] sm:$0xff] }
 0x19c   :  { %1041 = vmatmul.bf16.gmra.mxu3 %v499_v28  ;;  %v466_v28 = vld [vmem:[#allocation2 + $0x2e8] sm:$0xff] }
 0x19d   :  { %824 = vmatmul.bf16.gmra.mxu2 %v611_v31  ;;  %v501_v40 = vpack.c.bf16 %v467_v29, %v466_v28 }
 0x19f   :  { %v919_v36 = vpop.f32.mrf.mxu1  ;;  %v1002_v39 = vpop.f32.mrf.mxu3 }
 0x1a0   :  { %v702_v37 = vpop.f32.mrf.mxu0  ;;  %v785_v44 = vpop.f32.mrf.mxu2 }
 0x1a1   :  { %v10537_v43 = vadd.f32 %v919_v36, %v702_v37  ;;  %v10546_v47 = vadd.f32 %v1002_v39, %v785_v44 }
 0x1a2   :  { %v548_v48 = vld [vmem:[#allocation2 + $0x151] sm:$0xff]  ;;  %v549_v50 = vld [vmem:[#allocation2 + $0x159] sm:$0xff] }
 0x1a3   :  { %v598_v55 = vpack.c.bf16 %v549_v50, %v548_v48  ;;  %v1068_v48 = vld [vmem:[#allocation2 + $0xa] sm:$0xff] }
 0x1a7   :  { %v922_v56 = vpop.f32.mrf.mxu1  ;;  %v1004_v63 = vpop.f32.mrf.mxu3 }
 0x1a8   :  { %v705_v62 = vpop.f32.mrf.mxu0  ;;  %v787_v1 = vpop.f32.mrf.mxu2 }
 0x1a9   :  { %v10551_v0 = vadd.f32 %v922_v56, %v705_v62  ;;  %v10553_v3 = vadd.f32 %v1004_v63, %v787_v1  ;;  %v236_v56 = vld [vmem:[%s13840_s0 + $0x170] sm:$0xff]  ;;  %v9545_v62 = vld [vmem:[%s13841_s1 + $0x178] sm:$0xff] }
 0x1aa   :  { %961 = vmatmul.bf16.gmra.mxu1 %v483_v53  ;;  %v237_v63 = vld [vmem:[%s13840_s0 + $0x178] sm:$0x3]  ;;  %346 = vst.msk [vmem:[#allocation2 + $0x170] sm:$0xff] %vm298_vm0, %v236_v56 }
 0x1ab   :  { %744 = vmatmul.bf16.gmra.mxu0 %v595_v58  ;;  %2411 = vmatpush.bf16.msrb.mxu1 %v9545_v62  ;;  %347 = vst.msk [vmem:[#allocation2 + $0x178] sm:$0x3] %vm301_vm1, %v237_v63  ;;  %v582_v56 = vld [vmem:[#allocation2 + $0x319] sm:$0xff]  ;;  %v9540_v63 = vld [vmem:[%s13841_s1 + $0x150] sm:$0xff] }
 0x1ac   :  { %1046 = vmatmul.bf16.gmra.mxu3 %v500_v2  ;;  %v434_v2 = vld [vmem:[#allocation2 + $0x138] sm:$0xff] }
 0x1ad   :  { %829 = vmatmul.bf16.gmra.mxu2 %v612_v4  ;;  %v435_v4 = vld [vmem:[#allocation2 + $0x140] sm:$0xff] }
 0x1ae   :  { %v485_v8 = vpack.c.bf16 %v435_v4, %v434_v2 }
 0x1af   :  { %v924_v10 = vpop.f32.mrf.mxu1  ;;  %v1007_v12 = vpop.f32.mrf.mxu3  ;;  %2412 = vmatpush.bf16.msrb.mxu1 %v9544_v22 }
 0x1b0   :  { %v707_v11 = vpop.f32.mrf.mxu0  ;;  %v790_v17 = vpop.f32.mrf.mxu2 }
 0x1b1   :  { %v10572_v15 = vadd.f32 %v924_v10, %v707_v11  ;;  %v10578_v19 = vadd.f32 %v1007_v12, %v790_v17  ;;  %v468_v10 = vld [vmem:[#allocation2 + $0x300] sm:$0xff]  ;;  %v469_v11 = vld [vmem:[#allocation2 + $0x308] sm:$0xff] }
 0x1b2   :  { %v581_v17 = vld [vmem:[#allocation2 + $0x309] sm:$0xff] }
 0x1b3   :  { %v614_v29 = vpack.c.bf16 %v581_v17, %v580_v14 }
 0x1b7   :  { %v927_v31 = vpop.f32.mrf.mxu1  ;;  %v1009_v36 = vpop.f32.mrf.mxu3 }
 0x1b8   :  { %v710_v35 = vpop.f32.mrf.mxu0  ;;  %v792_v39 = vpop.f32.mrf.mxu2 }
 0x1b9   :  { %v10583_v37 = vadd.f32 %v927_v31, %v710_v35  ;;  %v10588_v44 = vadd.f32 %v1009_v36, %v792_v39  ;;  %v9543_v31 = vld [vmem:[%s13841_s1 + $0x168] sm:$0xff]  ;;  %v9542_v35 = vld [vmem:[%s13841_s1 + $0x160] sm:$0xff] }
 0x1ba   :  { %966 = vmatmul.bf16.gmra.mxu1 %v484_v27  ;;  %v502_v27 = vpack.c.bf16 %v469_v11, %v468_v10  ;;  %v9561_v11 = vld [vmem:[%s13841_s1 + $0x1f8] sm:$0xff] }
 0x1bb   :  { %749 = vmatmul.bf16.gmra.mxu0 %v596_v32  ;;  %2413 = vmatpush.bf16.msrb.mxu1 %v9543_v31  ;;  %v439_v31 = vld [vmem:[#allocation2 + $0x170] sm:$0xff] }
 0x1bc   :  { %1051 = vmatmul.bf16.gmra.mxu3 %v501_v40 }
 0x1bd   :  { %834 = vmatmul.bf16.gmra.mxu2 %v613_v45  ;;  %v437_v45 = vld [vmem:[#allocation2 + $0x158] sm:$0xff]  ;;  %3200 = vmatpush.bf16.msra.mxu3 %v9561_v11 }
 0x1be   :  { %v486_v51 = vpack.c.bf16 %v437_v45, %v436_v41  ;;  %v1856_v11 = vld [vmem:[#allocation2 + $0x19] sm:$0xff] }
 0x1bf   :  { %v929_v52 = vpop.f32.mrf.mxu1  ;;  %v1012_v54 = vpop.f32.mrf.mxu3  ;;  %2414 = vmatpush.bf16.msrb.mxu1 %v9542_v35  ;;  %v1462_v35 = vld [vmem:[#allocation2 + $0x18] sm:$0xff] }
 0x1c0   :  { %v712_v53 = vpop.f32.mrf.mxu0  ;;  %v795_v59 = vpop.f32.mrf.mxu2 }
 0x1c1   :  { %v10610_v58 = vadd.f32 %v929_v52, %v712_v53  ;;  %v10622_v1 = vadd.f32 %v1012_v54, %v795_v59  ;;  %v470_v52 = vld [vmem:[#allocation2 + $0x318] sm:$0xff]  ;;  %v471_v53 = vld [vmem:[#allocation2 + $0x320] sm:$0xff] }
 0x1c2   :  { %v583_v59 = vld [vmem:[#allocation2 + $0x321] sm:$0xff]  ;;  %v503_v5 = vpack.c.bf16 %v471_v53, %v470_v52 }
 0x1c3   :  { %13961 = vst [vmem:[#allocation17_spill] sm:$0xff] %v10622_v1  ;;  %2415 = vmatpush.bf16.msrb.mxu1 %v9541_v46  ;;  %v615_v10 = vpack.c.bf16 %v583_v59, %v582_v56  ;;  %v1067_v46 = vld [vmem:[#allocation2 + $0x2] sm:$0xff] }
 0x1c4   :  { %v1131_v56 = vpack.c.bf16 %v1068_v48, %v1067_v46 }
 0x1c7   :  { %v932_v12 = vpop.f32.mrf.mxu1  ;;  %v1014_v20 = vpop.f32.mrf.mxu3  ;;  %2416 = vmatpush.bf16.msrb.mxu1 %v9540_v63 }
 0x1c8   :  { %v715_v18 = vpop.f32.mrf.mxu0  ;;  %v797_v24 = vpop.f32.mrf.mxu2 }
 0x1c9   :  { %v10630_v23 = vadd.f32 %v932_v12, %v715_v18  ;;  %v10632_v28 = vadd.f32 %v1014_v20, %v797_v24  ;;  %v9539_v12 = vld [vmem:[%s13841_s1 + $0x148] sm:$0xff]  ;;  %v9538_v18 = vld [vmem:[%s13841_s1 + $0x140] sm:$0xff]  ;;  %v9569_v24 = vld [vmem:[%s13841_s1 + $0x238] sm:$0xff] }
 0x1ca   :  { %971 = vmatmul.bf16.gmra.mxu1 %v485_v8  ;;  %3594 = vmatpush.bf16.msra.mxu0 %v9569_v24 }
 0x1cb   :  { %13962 = vst [vmem:[#allocation18_spill] sm:$0xff] %v10632_v28  ;;  %754 = vmatmul.bf16.gmra.mxu0 %v597_v13  ;;  %2417 = vmatpush.bf16.msrb.mxu1 %v9539_v12  ;;  %v1857_v12 = vld [vmem:[#allocation2 + $0x21] sm:$0xff] }
 0x1cc   :  { %1056 = vmatmul.bf16.gmra.mxu3 %v502_v27 }
 0x1cd   :  { %839 = vmatmul.bf16.gmra.mxu2 %v614_v29  ;;  %v438_v29 = vld [vmem:[#allocation2 + $0x168] sm:$0xff] }
 0x1cf   :  { %v934_v32 = vpop.f32.mrf.mxu1  ;;  %v1017_v34 = vpop.f32.mrf.mxu3  ;;  %2418 = vmatpush.bf16.msrb.mxu1 %v9538_v18 }
 0x1d0   :  { %v717_v33 = vpop.f32.mrf.mxu0  ;;  %v800_v39 = vpop.f32.mrf.mxu2 }
 0x1d1   :  { %v10640_v36 = vadd.f32 %v934_v32, %v717_v33  ;;  %v10642_v40 = vadd.f32 %v1017_v34, %v800_v39  ;;  %v550_v32 = vld [vmem:[#allocation2 + $0x169] sm:$0xff]  ;;  %v551_v33 = vld [vmem:[#allocation2 + $0x171] sm:$0xff]  ;;  %v10673_v34 = vpack.c.bf16 %v439_v31, %v438_v29  ;;  %v1463_v39 = vld [vmem:[#allocation2 + $0x20] sm:$0xff] }
 0x1d2   :  { %v599_v45 = vpack.c.bf16 %v551_v33, %v550_v32 }
 0x1d3   :  { %13963 = vst [vmem:[#allocation19_spill] sm:$0xff] %v10642_v40 }
 0x1d7   :  { %v937_v54 = vpop.f32.mrf.mxu1  ;;  %v1019_v62 = vpop.f32.mrf.mxu3 }
 0x1d8   :  { %v720_v61 = vpop.f32.mrf.mxu0  ;;  %v802_v4 = vpop.f32.mrf.mxu2 }
 0x1d9   :  { %v10650_v2 = vadd.f32 %v937_v54, %v720_v61  ;;  %v10655_v8 = vadd.f32 %v1019_v62, %v802_v4  ;;  %v1526_v54 = vpack.c.bf16 %v1463_v39, %v1462_v35 }
 0x1da   :  { %976 = vmatmul.bf16.gmra.mxu1 %v486_v51 }
 0x1db   :  { %13964 = vst [vmem:[#allocation20_spill] sm:$0xff] %v10655_v8  ;;  %759 = vmatmul.bf16.gmra.mxu0 %v598_v55 }
 0x1dc   :  { %1061 = vmatmul.bf16.gmra.mxu3 %v503_v5 }
 0x1dd   :  { %844 = vmatmul.bf16.gmra.mxu2 %v615_v10  ;;  %v2251_v10 = vld [vmem:[#allocation2 + $0x22] sm:$0xff] }
 0x1df   :  { %v939_v13 = vpop.f32.mrf.mxu1  ;;  %v1022_v17 = vpop.f32.mrf.mxu3 }
 0x1e0   :  { %v722_v14 = vpop.f32.mrf.mxu0  ;;  %v805_v22 = vpop.f32.mrf.mxu2 }
 0x1e1   :  { %v10666_v20 = vadd.f32 %v939_v13, %v722_v14  ;;  %v10671_v27 = vadd.f32 %v1022_v17, %v805_v22  ;;  %v2314_v13 = vpack.c.bf16 %v2251_v10, %v2250_v7  ;;  %v1464_v14 = vld [vmem:[#allocation2 + $0x30] sm:$0xff]  ;;  %v1465_v17 = vld [vmem:[#allocation2 + $0x38] sm:$0xff]  ;;  %v1920_v22 = vpack.c.bf16 %v1857_v12, %v1856_v11 }
 0x1e2   :  { %v1527_v33 = vpack.c.bf16 %v1465_v17, %v1464_v14 }
 0x1e3   :  { %13965 = vst [vmem:[#allocation21_spill] sm:$0xff] %v10671_v27 }
 0x1e7   :  { %v942_v41 = vpop.f32.mrf.mxu1  ;;  %v1024_v51 = vpop.f32.mrf.mxu3 }
 0x1e8   :  { %v725_v50 = vpop.f32.mrf.mxu0  ;;  %v807_v53 = vpop.f32.mrf.mxu2 }
 0x1e9   :  { %v10675_v52 = vadd.f32 %v942_v41, %v725_v50  ;;  %v10678_v55 = vadd.f32 %v1024_v51, %v807_v53  ;;  %v2252_v51 = vld [vmem:[#allocation2 + $0x32] sm:$0xff]  ;;  %v2253_v53 = vld [vmem:[#allocation2 + $0x3a] sm:$0xff] }
 0x1ea   :  { %981 = vmatmul.bf16.gmra.mxu1 %v10673_v34 }
 0x1eb   :  { %13966 = vst [vmem:[#allocation22_spill] sm:$0xff] %v10678_v55  ;;  %764 = vmatmul.bf16.gmra.mxu0 %v599_v45 }
 0x1ec   :  { %1631 = vmatmul.bf16.vlgmr.msrb.gmra.mxu3 %v1526_v54  ;;  %v1858_v54 = vld [vmem:[#allocation2 + $0x31] sm:$0xff] }
 0x1ed   :  { %1236 = vmatmul.bf16.vlgmr.msrb.gmra.mxu2 %v1131_v56  ;;  %v1859_v56 = vld [vmem:[#allocation2 + $0x39] sm:$0xff] }
 0x1ee   :  { %v1921_v7 = vpack.c.bf16 %v1859_v56, %v1858_v54  ;;  %v1469_v54 = vld [vmem:[#allocation2 + $0x68] sm:$0xff] }
 0x1ef   :  { %v944_v59 = vpop.f32.mrf.mxu1  ;;  %v1027_v62 = vpop.f32.mrf.mxu3 }
 0x1f0   :  { %v727_v61 = vpop.f32.mrf.mxu0  ;;  %v810_v4 = vpop.f32.mrf.mxu2 }
 0x1f1   :  { %v10680_v63 = vadd.f32 %v944_v59, %v727_v61  ;;  %v10682_v5 = vadd.f32 %v1027_v62, %v810_v4  ;;  %v2315_v59 = vpack.c.bf16 %v2253_v53, %v2252_v51  ;;  %v1466_v61 = vld [vmem:[#allocation2 + $0x48] sm:$0xff]  ;;  %v1467_v62 = vld [vmem:[#allocation2 + $0x50] sm:$0xff]  ;;  %v1468_v53 = vld [vmem:[#allocation2 + $0x60] sm:$0xff] }
 0x1f2   :  { %v1528_v14 = vpack.c.bf16 %v1467_v62, %v1466_v61 }
 0x1f3   :  { %13967 = vst [vmem:[#allocation23_spill] sm:$0xff] %v10682_v5 }
 0x1f7   :  { %v947_v18 = vpop.f32.mrf.mxu1  ;;  %v1029_v29 = vpop.f32.mrf.mxu3 }
 0x1f8   :  { %v730_v24 = vpop.f32.mrf.mxu0  ;;  %v812_v32 = vpop.f32.mrf.mxu2 }
 0x1f9   :  { %v10684_v31 = vadd.f32 %v947_v18, %v730_v24  ;;  %v10686_v35 = vadd.f32 %v1029_v29, %v812_v32 }
 0x1fa   :  { %2419 = vmatmul.bf16.vlgmr.msrb.gmra.mxu1 %v2314_v13 }
 0x1fb   :  { %13968 = vst [vmem:[#allocation24_spill] sm:$0xff] %v10686_v35  ;;  %2025 = vmatmul.bf16.vlgmr.msrb.gmra.mxu0 %v1920_v22 }
 0x1fc   :  { %1636 = vmatmul.bf16.gmra.mxu3 %v1527_v33 }
 0x1fd   :  { %1241 = vmatmul.bf16.gmra.mxu2 %v2314_v13 }
 0x1ff   :  { %v949_v39 = vpop.f32.mrf.mxu1  ;;  %v1032_v45 = vpop.f32.mrf.mxu3 }
 0x200   :  { %v732_v41 = vpop.f32.mrf.mxu0  ;;  %v815_v48 = vpop.f32.mrf.mxu2 }
 0x201   :  { %v10688_v46 = vadd.f32 %v949_v39, %v732_v41  ;;  %v10690_v50 = vadd.f32 %v1032_v45, %v815_v48  ;;  %v2254_v39 = vld [vmem:[#allocation2 + $0x4a] sm:$0xff]  ;;  %v2255_v41 = vld [vmem:[#allocation2 + $0x52] sm:$0xff] }
 0x202   :  { %v1860_v45 = vld [vmem:[#allocation2 + $0x49] sm:$0xff]  ;;  %v1861_v48 = vld [vmem:[#allocation2 + $0x51] sm:$0xff]  ;;  %v2316_v51 = vpack.c.bf16 %v2255_v41, %v2254_v39 }
 0x203   :  { %13969 = vst [vmem:[#allocation25_spill] sm:$0xff] %v10690_v50  ;;  %v1922_v61 = vpack.c.bf16 %v1861_v48, %v1860_v45  ;;  %v9568_v41 = vld [vmem:[%s13841_s1 + $0x230] sm:$0xff]  ;;  %v2256_v48 = vld [vmem:[#allocation2 + $0x62] sm:$0xff] }
 0x204   :  { %3595 = vmatpush.bf16.msra.mxu0 %v9568_v41 }
 0x207   :  { %v952_v4 = vpop.f32.mrf.mxu1  ;;  %v1034_v11 = vpop.f32.mrf.mxu3 }
 0x208   :  { %v735_v10 = vpop.f32.mrf.mxu0  ;;  %v817_v13 = vpop.f32.mrf.mxu2 }
 0x209   :  { %v10692_v12 = vadd.f32 %v952_v4, %v735_v10  ;;  %v10694_v17 = vadd.f32 %v1034_v11, %v817_v13  ;;  %v1529_v10 = vpack.c.bf16 %v1469_v54, %v1468_v53  ;;  %v9552_v11 = vld [vmem:[%s13841_s1 + $0x1b0] sm:$0xff]  ;;  %v1862_v54 = vld [vmem:[#allocation2 + $0x61] sm:$0xff] }
 0x20a   :  { %2424 = vmatmul.bf16.gmra.mxu1 %v2315_v59  ;;  %2807 = vmatpush.bf16.msra.mxu2 %v9552_v11  ;;  %v2257_v53 = vld [vmem:[#allocation2 + $0x6a] sm:$0xff] }
 0x20b   :  { %13970 = vst [vmem:[#allocation26_spill] sm:$0xff] %v10694_v17  ;;  %2030 = vmatmul.bf16.gmra.mxu0 %v1921_v7 }
 0x20c   :  { %1641 = vmatmul.bf16.gmra.mxu3 %v1528_v14  ;;  %v9560_v14 = vld [vmem:[%s13841_s1 + $0x1f0] sm:$0xff] }
 0x20d   :  { %1246 = vmatmul.bf16.gmra.mxu2 %v2315_v59  ;;  %3201 = vmatpush.bf16.msra.mxu3 %v9560_v14 }
 0x20f   :  { %v954_v18 = vpop.f32.mrf.mxu1  ;;  %v1037_v24 = vpop.f32.mrf.mxu3 }
 0x210   :  { %v737_v22 = vpop.f32.mrf.mxu0  ;;  %v820_v32 = vpop.f32.mrf.mxu2 }
 0x211   :  { %v10696_v29 = vadd.f32 %v954_v18, %v737_v22  ;;  %v10698_v33 = vadd.f32 %v1037_v24, %v820_v32 }
 0x213   :  { %13971 = vst [vmem:[#allocation27_spill] sm:$0xff] %v10698_v33 }
 0x217   :  { %v957_v56 = vpop.f32.mrf.mxu1  ;;  %v1039_v4 = vpop.f32.mrf.mxu3 }
 0x218   :  { %v740_v62 = vpop.f32.mrf.mxu0  ;;  %v822_v7 = vpop.f32.mrf.mxu2 }
 0x219   :  { %v10700_v59 = vadd.f32 %v957_v56, %v740_v62  ;;  %v10705_v13 = vadd.f32 %v1039_v4, %v822_v7  ;;  %v1863_v56 = vld [vmem:[#allocation2 + $0x69] sm:$0xff]  ;;  %v1471_v62 = vld [vmem:[#allocation2 + $0x80] sm:$0xff] }
 0x21a   :  { %2429 = vmatmul.bf16.gmra.mxu1 %v2316_v51  ;;  %v1923_v7 = vpack.c.bf16 %v1863_v56, %v1862_v54  ;;  %v2258_v54 = vld [vmem:[#allocation2 + $0x7a] sm:$0xff]  ;;  %v2259_v56 = vld [vmem:[#allocation2 + $0x82] sm:$0xff] }
 0x21b   :  { %13972 = vst [vmem:[#allocation28_spill] sm:$0xff] %v10705_v13  ;;  %2035 = vmatmul.bf16.gmra.mxu0 %v1922_v61  ;;  %v2317_v61 = vpack.c.bf16 %v2257_v53, %v2256_v48  ;;  %v2318_v33 = vpack.c.bf16 %v2259_v56, %v2258_v54 }
 0x21c   :  { %1646 = vmatmul.bf16.gmra.mxu3 %v1529_v10 }
 0x21d   :  { %1251 = vmatmul.bf16.gmra.mxu2 %v2316_v51  ;;  %v1470_v51 = vld [vmem:[#allocation2 + $0x78] sm:$0xff] }
 0x21f   :  { %v959_v18 = vpop.f32.mrf.mxu1  ;;  %v1042_v24 = vpop.f32.mrf.mxu3 }
 0x220   :  { %v742_v22 = vpop.f32.mrf.mxu0  ;;  %v825_v39 = vpop.f32.mrf.mxu2 }
 0x221   :  { %v10710_v32 = vadd.f32 %v959_v18, %v742_v22  ;;  %v10715_v45 = vadd.f32 %v1042_v24, %v825_v39  ;;  %v1530_v22 = vpack.c.bf16 %v1471_v62, %v1470_v51  ;;  %v1472_v51 = vld [vmem:[#allocation2 + $0x90] sm:$0xff]  ;;  %v1473_v62 = vld [vmem:[#allocation2 + $0x98] sm:$0xff] }
 0x222   :  { %v1531_v17 = vpack.c.bf16 %v1473_v62, %v1472_v51  ;;  %v1474_v51 = vld [vmem:[#allocation2 + $0xa8] sm:$0xff] }
 0x223   :  { %13973 = vst [vmem:[#allocation29_spill] sm:$0xff] %v10715_v45 }
 0x227   :  { %v962_v4 = vpop.f32.mrf.mxu1  ;;  %v1044_v11 = vpop.f32.mrf.mxu3 }
 0x228   :  { %v745_v10 = vpop.f32.mrf.mxu0  ;;  %v827_v18 = vpop.f32.mrf.mxu2 }
 0x229   :  { %v10717_v14 = vadd.f32 %v962_v4, %v745_v10  ;;  %v10719_v13 = vadd.f32 %v1044_v11, %v827_v18  ;;  %v1864_v4 = vld [vmem:[#allocation2 + $0x79] sm:$0xff]  ;;  %v1865_v10 = vld [vmem:[#allocation2 + $0x81] sm:$0xff] }
 0x22a   :  { %2434 = vmatmul.bf16.gmra.mxu1 %v2317_v61  ;;  %v1924_v18 = vpack.c.bf16 %v1865_v10, %v1864_v4  ;;  %v2260_v4 = vld [vmem:[#allocation2 + $0x92] sm:$0xff]  ;;  %v2261_v10 = vld [vmem:[#allocation2 + $0x9a] sm:$0xff] }
 0x22b   :  { %13974 = vst [vmem:[#allocation30_spill] sm:$0xff] %v10719_v13  ;;  %2040 = vmatmul.bf16.gmra.mxu0 %v1923_v7  ;;  %v2319_v50 = vpack.c.bf16 %v2261_v10, %v2260_v4 }
 0x22c   :  { %1651 = vmatmul.bf16.gmra.mxu3 %v1530_v22 }
 0x22d   :  { %1256 = vmatmul.bf16.gmra.mxu2 %v2317_v61 }
 0x22f   :  { %v964_v24 = vpop.f32.mrf.mxu1  ;;  %v1047_v41 = vpop.f32.mrf.mxu3 }
 0x230   :  { %v747_v39 = vpop.f32.mrf.mxu0  ;;  %v830_v53 = vpop.f32.mrf.mxu2 }
 0x231   :  { %v10721_v48 = vadd.f32 %v964_v24, %v747_v39  ;;  %v10723_v45 = vadd.f32 %v1047_v41, %v830_v53 }
 0x233   :  { %13975 = vst [vmem:[#allocation31_spill] sm:$0xff] %v10723_v45 }
 0x237   :  { %v967_v11 = vpop.f32.mrf.mxu1  ;;  %v1049_v22 = vpop.f32.mrf.mxu3 }
 0x238   :  { %v750_v7 = vpop.f32.mrf.mxu0  ;;  %v832_v13 = vpop.f32.mrf.mxu2 }
 0x239   :  { %v10725_v61 = vadd.f32 %v967_v11, %v750_v7  ;;  %v10727_v24 = vadd.f32 %v1049_v22, %v832_v13  ;;  %v1866_v11 = vld [vmem:[#allocation2 + $0x91] sm:$0xff]  ;;  %v1867_v7 = vld [vmem:[#allocation2 + $0x99] sm:$0xff] }
 0x23a   :  { %2439 = vmatmul.bf16.gmra.mxu1 %v2318_v33  ;;  %v1475_v13 = vld [vmem:[#allocation2 + $0xb0] sm:$0xff]  ;;  %v1925_v22 = vpack.c.bf16 %v1867_v7, %v1866_v11 }
 0x23b   :  { %13976 = vst [vmem:[#allocation32_spill] sm:$0xff] %v10727_v24  ;;  %2045 = vmatmul.bf16.gmra.mxu0 %v1924_v18  ;;  %v1532_v35 = vpack.c.bf16 %v1475_v13, %v1474_v51  ;;  %v2262_v11 = vld [vmem:[#allocation2 + $0xaa] sm:$0xff]  ;;  %v2263_v7 = vld [vmem:[#allocation2 + $0xb2] sm:$0xff]  ;;  %v1476_v51 = vld [vmem:[#allocation2 + $0xc0] sm:$0xff] }
 0x23c   :  { %1656 = vmatmul.bf16.gmra.mxu3 %v1531_v17  ;;  %v2320_v5 = vpack.c.bf16 %v2263_v7, %v2262_v11  ;;  %v9559_v11 = vld [vmem:[%s13841_s1 + $0x1e8] sm:$0xff] }
 0x23d   :  { %1261 = vmatmul.bf16.gmra.mxu2 %v2318_v33  ;;  %3202 = vmatpush.bf16.msra.mxu3 %v9559_v11  ;;  %v1479_v11 = vld [vmem:[#allocation2 + $0xe0] sm:$0xff] }
 0x23f   :  { %v969_v39 = vpop.f32.mrf.mxu1  ;;  %v1052_v53 = vpop.f32.mrf.mxu3 }
 0x240   :  { %v752_v41 = vpop.f32.mrf.mxu0  ;;  %v835_v56 = vpop.f32.mrf.mxu2 }
 0x241   :  { %v10729_v54 = vadd.f32 %v969_v39, %v752_v41  ;;  %v10731_v45 = vadd.f32 %v1052_v53, %v835_v56 }
 0x243   :  { %13977 = vst [vmem:[#allocation33_spill] sm:$0xff] %v10731_v45 }
 0x247   :  { %v972_v62 = vpop.f32.mrf.mxu1  ;;  %v1054_v17 = vpop.f32.mrf.mxu3 }
 0x248   :  { %v755_v18 = vpop.f32.mrf.mxu0  ;;  %v837_v24 = vpop.f32.mrf.mxu2 }
 0x249   :  { %v10733_v33 = vadd.f32 %v972_v62, %v755_v18  ;;  %v10735_v39 = vadd.f32 %v1054_v17, %v837_v24  ;;  %v1868_v62 = vld [vmem:[#allocation2 + $0xa9] sm:$0xff]  ;;  %v1869_v18 = vld [vmem:[#allocation2 + $0xb1] sm:$0xff] }
 0x24a   :  { %2444 = vmatmul.bf16.gmra.mxu1 %v2319_v50  ;;  %v1477_v24 = vld [vmem:[#allocation2 + $0xc8] sm:$0xff]  ;;  %v1926_v17 = vpack.c.bf16 %v1869_v18, %v1868_v62 }
 0x24b   :  { %13978 = vst [vmem:[#allocation34_spill] sm:$0xff] %v10735_v39  ;;  %2050 = vmatmul.bf16.gmra.mxu0 %v1925_v22 }
 0x24c   :  { %1661 = vmatmul.bf16.gmra.mxu3 %v1532_v35 }
 0x24d   :  { %1266 = vmatmul.bf16.gmra.mxu2 %v2319_v50  ;;  %v9551_v50 = vld [vmem:[%s13841_s1 + $0x1a8] sm:$0xff] }
 0x24e   :  { %2808 = vmatpush.bf16.msra.mxu2 %v9551_v50  ;;  %v1870_v50 = vld [vmem:[#allocation2 + $0xc1] sm:$0xff] }
 0x24f   :  { %v974_v41 = vpop.f32.mrf.mxu1  ;;  %v1057_v56 = vpop.f32.mrf.mxu3 }
 0x250   :  { %v757_v53 = vpop.f32.mrf.mxu0  ;;  %v840_v10 = vpop.f32.mrf.mxu2 }
 0x251   :  { %v10737_v4 = vadd.f32 %v974_v41, %v757_v53  ;;  %v10739_v45 = vadd.f32 %v1057_v56, %v840_v10  ;;  %v1533_v56 = vpack.c.bf16 %v1477_v24, %v1476_v51 }
 0x253   :  { %13979 = vst [vmem:[#allocation35_spill] sm:$0xff] %v10739_v45 }
 0x257   :  { %v977_v13 = vpop.f32.mrf.mxu1  ;;  %v1059_v35 = vpop.f32.mrf.mxu3 }
 0x258   :  { %v760_v22 = vpop.f32.mrf.mxu0  ;;  %v842_v53 = vpop.f32.mrf.mxu2 }
 0x259   :  { %v10744_v41 = vadd.f32 %v977_v13, %v760_v22  ;;  %v10746_v10 = vadd.f32 %v1059_v35, %v842_v53  ;;  %v9567_v13 = vld [vmem:[%s13841_s1 + $0x228] sm:$0xff] }
 0x25a   :  { %2449 = vmatmul.bf16.gmra.mxu1 %v2320_v5  ;;  %3596 = vmatpush.bf16.msra.mxu0 %v9567_v13  ;;  %v2265_v35 = vld [vmem:[#allocation2 + $0xca] sm:$0xff] }
 0x25b   :  { %13980 = vst [vmem:[#allocation36_spill] sm:$0xff] %v10746_v10  ;;  %2055 = vmatmul.bf16.gmra.mxu0 %v1926_v17  ;;  %v2264_v17 = vld [vmem:[#allocation2 + $0xc2] sm:$0xff] }
 0x25c   :  { %1666 = vmatmul.bf16.gmra.mxu3 %v1533_v56  ;;  %v1871_v53 = vld [vmem:[#allocation2 + $0xc9] sm:$0xff]  ;;  %v2321_v56 = vpack.c.bf16 %v2265_v35, %v2264_v17 }
 0x25d   :  { %1271 = vmatmul.bf16.gmra.mxu2 %v2320_v5  ;;  %v1478_v5 = vld [vmem:[#allocation2 + $0xd8] sm:$0xff]  ;;  %v1927_v45 = vpack.c.bf16 %v1871_v53, %v1870_v50 }
 0x25e   :  { %v2266_v53 = vld [vmem:[#allocation2 + $0xda] sm:$0xff] }
 0x25f   :  { %v979_v7 = vpop.f32.mrf.mxu1  ;;  %v1062_v18 = vpop.f32.mrf.mxu3 }
 0x260   :  { %v762_v62 = vpop.f32.mrf.mxu0  ;;  %v845_v24 = vpop.f32.mrf.mxu2 }
 0x261   :  { %v10754_v51 = vadd.f32 %v979_v7, %v762_v62  ;;  %v10756_v22 = vadd.f32 %v1062_v18, %v845_v24  ;;  %v1534_v7 = vpack.c.bf16 %v1479_v11, %v1478_v5 }
 0x263   :  { %13981 = vst [vmem:[#allocation37_spill] sm:$0xff] %v10756_v22  ;;  %v2267_v22 = vld [vmem:[#allocation2 + $0xe2] sm:$0xff] }
 0x264   :  { %v2322_v5 = vpack.c.bf16 %v2267_v22, %v2266_v53 }
 0x267   :  { %v982_v10 = vpop.f32.mrf.mxu1  ;;  %v1064_v55 = vpop.f32.mrf.mxu3 }
 0x268   :  { %v765_v39 = vpop.f32.mrf.mxu0  ;;  %v847_v8 = vpop.f32.mrf.mxu2 }
 0x269   :  { %v10758_v27 = vadd.f32 %v982_v10, %v765_v39  ;;  %v10760_v62 = vadd.f32 %v1064_v55, %v847_v8  ;;  %v1872_v39 = vld [vmem:[#allocation2 + $0xd9] sm:$0xff]  ;;  %v1873_v10 = vld [vmem:[#allocation2 + $0xe1] sm:$0xff]  ;;  %v1480_v8 = vld [vmem:[#allocation2 + $0xf0] sm:$0xff] }
 0x26a   :  { %2454 = vmatmul.bf16.gmra.mxu1 %v2321_v56  ;;  %v1481_v55 = vld [vmem:[#allocation2 + $0xf8] sm:$0xff]  ;;  %v1928_v11 = vpack.c.bf16 %v1873_v10, %v1872_v39 }
 0x26b   :  { %13982 = vst [vmem:[#allocation38_spill] sm:$0xff] %v10760_v62  ;;  %2060 = vmatmul.bf16.gmra.mxu0 %v1927_v45  ;;  %v1535_v1 = vpack.c.bf16 %v1481_v55, %v1480_v8  ;;  %v2269_v8 = vld [vmem:[#allocation2 + $0xfa] sm:$0xff]  ;;  %v1874_v55 = vld [vmem:[#allocation2 + $0xf1] sm:$0xff] }
 0x26c   :  { %1671 = vmatmul.bf16.gmra.mxu3 %v1534_v7 }
 0x26d   :  { %1276 = vmatmul.bf16.gmra.mxu2 %v2321_v56 }
 0x26f   :  { %v984_v18 = vpop.f32.mrf.mxu1  ;;  %v1632_v24 = vpop.f32.mrf.mxu3 }
 0x270   :  { %v767_v13 = vpop.f32.mrf.mxu0  ;;  %v1237_v35 = vpop.f32.mrf.mxu2 }
 0x271   :  { %v10762_v17 = vadd.f32 %v984_v18, %v767_v13  ;;  %v1397_v50 = vadd.f32 %v1237_v35, %v10439_v25 }
 0x273   :  { %v1792_v40 = vadd.f32 %v1632_v24, %v1397_v50 }
 0x277   :  { %v2420_v45 = vpop.f32.mrf.mxu1  ;;  %v1634_v56 = vpop.f32.mrf.mxu3 }
 0x278   :  { %v2026_v7 = vpop.f32.mrf.mxu0  ;;  %v1239_v28 = vpop.f32.mrf.mxu2 }
 0x279   :  { %v2186_v62 = vadd.f32 %v2026_v7, %v1792_v40  ;;  %v1398_v18 = vadd.f32 %v1239_v28, %v10464_v38  ;;  %v2268_v40 = vld [vmem:[#allocation2 + $0xf2] sm:$0xff] }
 0x27a   :  { %2459 = vmatmul.bf16.gmra.mxu1 %v2322_v5  ;;  %v1875_v38 = vld [vmem:[#allocation2 + $0xf9] sm:$0xff] }
 0x27b   :  { %2065 = vmatmul.bf16.gmra.mxu0 %v1928_v11  ;;  %v10766_v25 = vadd.f32 %v2420_v45, %v2186_v62  ;;  %v1793_v13 = vadd.f32 %v1634_v56, %v1398_v18  ;;  %v2323_v11 = vpack.c.bf16 %v2269_v8, %v2268_v40  ;;  %v1482_v62 = vld [vmem:[#allocation2 + $0x108] sm:$0xff]  ;;  %v1483_v45 = vld [vmem:[#allocation2 + $0x110] sm:$0xff]  ;;  %v1929_v7 = vpack.c.bf16 %v1875_v38, %v1874_v55 }
 0x27c   :  { %1676 = vmatmul.bf16.gmra.mxu3 %v1535_v1  ;;  %v2270_v38 = vld [vmem:[#allocation2 + $0x10a] sm:$0xff] }
 0x27d   :  { %13983 = vst [vmem:[#allocation39_spill] sm:$0xff] %v10766_v25  ;;  %1281 = vmatmul.bf16.gmra.mxu2 %v2322_v5 }
 0x27f   :  { %v2422_v24 = vpop.f32.mrf.mxu1  ;;  %v1637_v35 = vpop.f32.mrf.mxu3 }
 0x280   :  { %v2028_v22 = vpop.f32.mrf.mxu0  ;;  %v1242_v53 = vpop.f32.mrf.mxu2 }
 0x281   :  { %v2187_v50 = vadd.f32 %v2028_v22, %v1793_v13  ;;  %v1399_v39 = vadd.f32 %v1242_v53, %v10478_v57  ;;  %v1536_v13 = vpack.c.bf16 %v1483_v45, %v1482_v62  ;;  %v1876_v62 = vld [vmem:[#allocation2 + $0x109] sm:$0xff] }
 0x283   :  { %v10769_v10 = vadd.f32 %v2422_v24, %v2187_v50  ;;  %v1794_v28 = vadd.f32 %v1637_v35, %v1399_v39 }
 0x287   :  { %v2425_v1 = vpop.f32.mrf.mxu1  ;;  %v1639_v56 = vpop.f32.mrf.mxu3 }
 0x288   :  { %v2031_v5 = vpop.f32.mrf.mxu0  ;;  %v1244_v25 = vpop.f32.mrf.mxu2 }
 0x289   :  { %v2188_v18 = vadd.f32 %v2031_v5, %v1794_v28  ;;  %v1400_v22 = vadd.f32 %v1244_v25, %v10499_v6  ;;  %v2271_v28 = vld [vmem:[#allocation2 + $0x112] sm:$0xff] }
 0x28a   :  { %2464 = vmatmul.bf16.gmra.mxu1 %v2323_v11  ;;  %v1877_v6 = vld [vmem:[#allocation2 + $0x111] sm:$0xff]  ;;  %v2324_v45 = vpack.c.bf16 %v2271_v28, %v2270_v38 }
 0x28b   :  { %2070 = vmatmul.bf16.gmra.mxu0 %v1929_v7  ;;  %v10772_v57 = vadd.f32 %v2425_v1, %v2188_v18  ;;  %v1795_v24 = vadd.f32 %v1639_v56, %v1400_v22  ;;  %v1484_v7 = vld [vmem:[#allocation2 + $0x120] sm:$0xff]  ;;  %v1485_v1 = vld [vmem:[#allocation2 + $0x128] sm:$0xff]  ;;  %v1930_v5 = vpack.c.bf16 %v1877_v6, %v1876_v62 }
 0x28c   :  { %1681 = vmatmul.bf16.gmra.mxu3 %v1536_v13  ;;  %v9550_v13 = vld [vmem:[%s13841_s1 + $0x1a0] sm:$0xff] }
 0x28d   :  { %1286 = vmatmul.bf16.gmra.mxu2 %v2323_v11 }
 0x28e   :  { %2809 = vmatpush.bf16.msra.mxu2 %v9550_v13  ;;  %v1487_v13 = vld [vmem:[#allocation2 + $0x140] sm:$0xff] }
 0x28f   :  { %v2427_v35 = vpop.f32.mrf.mxu1  ;;  %v1642_v53 = vpop.f32.mrf.mxu3 }
 0x290   :  { %v2033_v50 = vpop.f32.mrf.mxu0  ;;  %v1247_v40 = vpop.f32.mrf.mxu2 }
 0x291   :  { %v2189_v39 = vadd.f32 %v2033_v50, %v1795_v24  ;;  %v1401_v8 = vadd.f32 %v1247_v40, %v10510_v26  ;;  %v1537_v24 = vpack.c.bf16 %v1485_v1, %v1484_v7  ;;  %v2272_v7 = vld [vmem:[#allocation2 + $0x122] sm:$0xff]  ;;  %v2273_v1 = vld [vmem:[#allocation2 + $0x12a] sm:$0xff] }
 0x293   :  { %v10775_v55 = vadd.f32 %v2427_v35, %v2189_v39  ;;  %v1796_v25 = vadd.f32 %v1642_v53, %v1401_v8  ;;  %v9558_v53 = vld [vmem:[%s13841_s1 + $0x1e0] sm:$0xff] }
 0x294   :  { %3203 = vmatpush.bf16.msra.mxu3 %v9558_v53 }
 0x297   :  { %v2430_v56 = vpop.f32.mrf.mxu1  ;;  %v1644_v18 = vpop.f32.mrf.mxu3 }
 0x298   :  { %v2036_v11 = vpop.f32.mrf.mxu0  ;;  %v1249_v26 = vpop.f32.mrf.mxu2 }
 0x299   :  { %v2190_v22 = vadd.f32 %v2036_v11, %v1796_v25  ;;  %v1402_v35 = vadd.f32 %v1249_v26, %v10537_v43  ;;  %v9566_v43 = vld [vmem:[%s13841_s1 + $0x220] sm:$0xff]  ;;  %v2325_v11 = vpack.c.bf16 %v2273_v1, %v2272_v7 }
 0x29a   :  { %2469 = vmatmul.bf16.gmra.mxu1 %v2324_v45  ;;  %3597 = vmatpush.bf16.msra.mxu0 %v9566_v43 }
 0x29b   :  { %2075 = vmatmul.bf16.gmra.mxu0 %v1930_v5  ;;  %v10781_v50 = vadd.f32 %v2430_v56, %v2190_v22  ;;  %v1797_v39 = vadd.f32 %v1644_v18, %v1402_v35  ;;  %v1878_v5 = vld [vmem:[#allocation2 + $0x121] sm:$0xff]  ;;  %v1879_v56 = vld [vmem:[#allocation2 + $0x129] sm:$0xff]  ;;  %v1486_v18 = vld [vmem:[#allocation2 + $0x138] sm:$0xff] }
 0x29c   :  { %1686 = vmatmul.bf16.gmra.mxu3 %v1537_v24  ;;  %v1931_v22 = vpack.c.bf16 %v1879_v56, %v1878_v5  ;;  %v2274_v56 = vld [vmem:[#allocation2 + $0x13a] sm:$0xff] }
 0x29d   :  { %1291 = vmatmul.bf16.gmra.mxu2 %v2324_v45 }
 0x29f   :  { %v2432_v40 = vpop.f32.mrf.mxu1  ;;  %v1647_v38 = vpop.f32.mrf.mxu3 }
 0x2a0   :  { %v2038_v8 = vpop.f32.mrf.mxu0  ;;  %v1252_v62 = vpop.f32.mrf.mxu2 }
 0x2a1   :  { %v2191_v28 = vadd.f32 %v2038_v8, %v1797_v39  ;;  %v1403_v6 = vadd.f32 %v1252_v62, %v10551_v0  ;;  %v1538_v8 = vpack.c.bf16 %v1487_v13, %v1486_v18  ;;  %v1880_v18 = vld [vmem:[#allocation2 + $0x139] sm:$0xff] }
 0x2a3   :  { %v10790_v25 = vadd.f32 %v2432_v40, %v2191_v28  ;;  %v1798_v45 = vadd.f32 %v1647_v38, %v1403_v6 }
 0x2a7   :  { %v2435_v26 = vpop.f32.mrf.mxu1  ;;  %v1649_v35 = vpop.f32.mrf.mxu3 }
 0x2a8   :  { %v2041_v24 = vpop.f32.mrf.mxu0  ;;  %v1254_v39 = vpop.f32.mrf.mxu2 }
 0x2a9   :  { %v2192_v53 = vadd.f32 %v2041_v24, %v1798_v45  ;;  %v1404_v0 = vadd.f32 %v1254_v39, %v10572_v15  ;;  %v2275_v45 = vld [vmem:[#allocation2 + $0x142] sm:$0xff]  ;;  %v1489_v24 = vld [vmem:[#allocation2 + $0x158] sm:$0xff] }
 0x2aa   :  { %2474 = vmatmul.bf16.gmra.mxu1 %v2325_v11  ;;  %v1881_v15 = vld [vmem:[#allocation2 + $0x141] sm:$0xff] }
 0x2ab   :  { %2080 = vmatmul.bf16.gmra.mxu0 %v1931_v22  ;;  %v10793_v40 = vadd.f32 %v2435_v26, %v2192_v53  ;;  %v1799_v43 = vadd.f32 %v1649_v35, %v1404_v0  ;;  %v2326_v22 = vpack.c.bf16 %v2275_v45, %v2274_v56  ;;  %v1488_v26 = vld [vmem:[#allocation2 + $0x150] sm:$0xff]  ;;  %v1932_v35 = vpack.c.bf16 %v1881_v15, %v1880_v18 }
 0x2ac   :  { %1691 = vmatmul.bf16.gmra.mxu3 %v1538_v8  ;;  %v240_v56 = vld [vmem:[%s13840_s0 + $0x190] sm:$0x3] }
 0x2ad   :  { %1296 = vmatmul.bf16.gmra.mxu2 %v2325_v11  ;;  %350 = vst.msk [vmem:[#allocation2 + $0x190] sm:$0x3] %vm301_vm1, %v240_v56 }
 0x2af   :  { %v2437_v38 = vpop.f32.mrf.mxu1  ;;  %v1652_v62 = vpop.f32.mrf.mxu3 }
 0x2b0   :  { %v2043_v28 = vpop.f32.mrf.mxu0  ;;  %v1257_v7 = vpop.f32.mrf.mxu2 }
 0x2b1   :  { %v2193_v6 = vadd.f32 %v2043_v28, %v1799_v43  ;;  %v1405_v1 = vadd.f32 %v1257_v7, %v10583_v37  ;;  %v1539_v43 = vpack.c.bf16 %v1489_v24, %v1488_v26  ;;  %v2277_v26 = vld [vmem:[#allocation2 + $0x15a] sm:$0xff]  ;;  %v1882_v24 = vld [vmem:[#allocation2 + $0x151] sm:$0xff] }
 0x2b3   :  { %v10796_v5 = vadd.f32 %v2437_v38, %v2193_v6  ;;  %v1800_v13 = vadd.f32 %v1652_v62, %v1405_v1  ;;  %v238_v62 = vld [vmem:[%s13840_s0 + $0x180] sm:$0xff]  ;;  %v239_v6 = vld [vmem:[%s13840_s0 + $0x188] sm:$0xff] }
 0x2b4   :  { %348 = vst.msk [vmem:[#allocation2 + $0x180] sm:$0xff] %vm298_vm0, %v238_v62 }
 0x2b5   :  { %349 = vst.msk [vmem:[#allocation2 + $0x188] sm:$0xff] %vm298_vm0, %v239_v6 }
 0x2b7   :  { %v2440_v53 = vpop.f32.mrf.mxu1  ;;  %v1654_v39 = vpop.f32.mrf.mxu3 }
 0x2b8   :  { %v2046_v11 = vpop.f32.mrf.mxu0  ;;  %v1259_v0 = vpop.f32.mrf.mxu2 }
 0x2b9   :  { %v2194_v8 = vadd.f32 %v2046_v11, %v1800_v13  ;;  %v1406_v28 = vadd.f32 %v1259_v0, %v10610_v58 }
 0x2ba   :  { %2479 = vmatmul.bf16.gmra.mxu1 %v2326_v22 }
 0x2bb   :  { %2085 = vmatmul.bf16.gmra.mxu0 %v1932_v35  ;;  %v10799_v37 = vadd.f32 %v2440_v53, %v2194_v8  ;;  %v1801_v38 = vadd.f32 %v1654_v39, %v1406_v28  ;;  %v1883_v35 = vld [vmem:[#allocation2 + $0x159] sm:$0xff] }
 0x2bc   :  { %1696 = vmatmul.bf16.gmra.mxu3 %v1539_v43  ;;  %v1933_v39 = vpack.c.bf16 %v1883_v35, %v1882_v24  ;;  %v1885_v24 = vld [vmem:[#allocation2 + $0x171] sm:$0xff] }
 0x2bd   :  { %1301 = vmatmul.bf16.gmra.mxu2 %v2326_v22  ;;  %v2276_v22 = vld [vmem:[#allocation2 + $0x152] sm:$0xff] }
 0x2be   :  { %v2327_v11 = vpack.c.bf16 %v2277_v26, %v2276_v22  ;;  %v2278_v22 = vld [vmem:[#allocation2 + $0x16a] sm:$0xff]  ;;  %v2279_v26 = vld [vmem:[#allocation2 + $0x172] sm:$0xff] }
 0x2bf   :  { %v2442_v7 = vpop.f32.mrf.mxu1  ;;  %v1657_v58 = vpop.f32.mrf.mxu3 }
 0x2c0   :  { %v2048_v1 = vpop.f32.mrf.mxu0  ;;  %v1262_v18 = vpop.f32.mrf.mxu2 }
 0x2c1   :  { %v2195_v45 = vadd.f32 %v2048_v1, %v1801_v38  ;;  %v1407_v15 = vadd.f32 %v1262_v18, %v10630_v23 }
 0x2c3   :  { %v10814_v13 = vadd.f32 %v2442_v7, %v2195_v45  ;;  %v1802_v53 = vadd.f32 %v1657_v58, %v1407_v15 }
 0x2c7   :  { %v2445_v8 = vpop.f32.mrf.mxu1  ;;  %v1659_v43 = vpop.f32.mrf.mxu3 }
 0x2c8   :  { %v2051_v0 = vpop.f32.mrf.mxu0  ;;  %v1264_v62 = vpop.f32.mrf.mxu2 }
 0x2c9   :  { %v2196_v28 = vadd.f32 %v2051_v0, %v1802_v53  ;;  %v1408_v38 = vadd.f32 %v1264_v62, %v10640_v36  ;;  %v1884_v36 = vld [vmem:[#allocation2 + $0x169] sm:$0xff]  ;;  %v2328_v53 = vpack.c.bf16 %v2279_v26, %v2278_v22 }
 0x2ca   :  { %2484 = vmatmul.bf16.gmra.mxu1 %v2327_v11  ;;  %v1934_v0 = vpack.c.bf16 %v1885_v24, %v1884_v36 }
 0x2cb   :  { %2090 = vmatmul.bf16.gmra.mxu0 %v1933_v39  ;;  %v10817_v6 = vadd.f32 %v2445_v8, %v2196_v28  ;;  %v1803_v23 = vadd.f32 %v1659_v43, %v1408_v38  ;;  %v1492_v39 = vld [vmem:[#allocation2 + $0x180] sm:$0xff]  ;;  %v1493_v8 = vld [vmem:[#allocation2 + $0x188] sm:$0xff]  ;;  %v9549_v28 = vld [vmem:[%s13841_s1 + $0x198] sm:$0xff] }
 0x2cc   :  { %1701 = vmatmul.bf16.gmra.mxu3 %v10673_v34  ;;  %v1541_v38 = vpack.c.bf16 %v1493_v8, %v1492_v39  ;;  %2810 = vmatpush.bf16.msra.mxu2 %v9549_v28  ;;  %v2281_v39 = vld [vmem:[#allocation2 + $0x18a] sm:$0xff]  ;;  %v1886_v8 = vld [vmem:[#allocation2 + $0x181] sm:$0xff] }
 0x2cd   :  { %1306 = vmatmul.bf16.gmra.mxu2 %v2327_v11 }
 0x2cf   :  { %v2447_v7 = vpop.f32.mrf.mxu1  ;;  %v1662_v58 = vpop.f32.mrf.mxu3 }
 0x2d0   :  { %v2053_v1 = vpop.f32.mrf.mxu0  ;;  %v1267_v45 = vpop.f32.mrf.mxu2 }
 0x2d1   :  { %v2197_v56 = vadd.f32 %v2053_v1, %v1803_v23  ;;  %v1409_v18 = vadd.f32 %v1267_v45, %v10650_v2  ;;  %v9557_v1 = vld [vmem:[%s13841_s1 + $0x1d8] sm:$0xff] }
 0x2d2   :  { %3204 = vmatpush.bf16.msra.mxu3 %v9557_v1 }
 0x2d3   :  { %v10821_v15 = vadd.f32 %v2447_v7, %v2197_v56  ;;  %v1804_v35 = vadd.f32 %v1662_v58, %v1409_v18 }
 0x2d7   :  { %v2450_v34 = vpop.f32.mrf.mxu1  ;;  %v1664_v43 = vpop.f32.mrf.mxu3 }
 0x2d8   :  { %v2056_v11 = vpop.f32.mrf.mxu0  ;;  %v1269_v2 = vpop.f32.mrf.mxu2 }
 0x2d9   :  { %v2198_v62 = vadd.f32 %v2056_v11, %v1804_v35  ;;  %v1410_v23 = vadd.f32 %v1269_v2, %v10666_v20  ;;  %v9565_v20 = vld [vmem:[%s13841_s1 + $0x218] sm:$0xff]  ;;  %v2280_v35 = vld [vmem:[#allocation2 + $0x182] sm:$0xff] }
 0x2da   :  { %2489 = vmatmul.bf16.gmra.mxu1 %v2328_v53  ;;  %3598 = vmatpush.bf16.msra.mxu0 %v9565_v20  ;;  %v1494_v11 = vld [vmem:[#allocation2 + $0x1c8] sm:$0xff]  ;;  %v1099_v2 = vld [vmem:[#allocation2 + $0x1b2] sm:$0xff] }
 0x2db   :  { %2095 = vmatmul.bf16.gmra.mxu0 %v1934_v0  ;;  %v10827_v7 = vadd.f32 %v2450_v34, %v2198_v62  ;;  %v1805_v58 = vadd.f32 %v1664_v43, %v1410_v23  ;;  %v1887_v0 = vld [vmem:[#allocation2 + $0x189] sm:$0xff]  ;;  %v2329_v34 = vpack.c.bf16 %v2281_v39, %v2280_v35 }
 0x2dc   :  { %1706 = vmatmul.bf16.gmra.mxu3 %v1541_v38  ;;  %v1495_v43 = vld [vmem:[#allocation2 + $0x1d0] sm:$0xff]  ;;  %v1935_v28 = vpack.c.bf16 %v1887_v0, %v1886_v8  ;;  %v1100_v38 = vld [vmem:[#allocation2 + $0x1ba] sm:$0xff] }
 0x2dd   :  { %1311 = vmatmul.bf16.gmra.mxu2 %v2328_v53  ;;  %v1147_v20 = vpack.c.bf16 %v1100_v38, %v1099_v2  ;;  %v1497_v38 = vld [vmem:[#allocation2 + $0x1e8] sm:$0xff] }
 0x2df   :  { %v2452_v56 = vpop.f32.mrf.mxu1  ;;  %v1667_v18 = vpop.f32.mrf.mxu3 }
 0x2e0   :  { %v2058_v45 = vpop.f32.mrf.mxu0  ;;  %v1272_v26 = vpop.f32.mrf.mxu2 }
 0x2e1   :  { %v2199_v22 = vadd.f32 %v2058_v45, %v1805_v58  ;;  %v1411_v36 = vadd.f32 %v1272_v26, %v10675_v52  ;;  %v1542_v52 = vpack.c.bf16 %v1495_v43, %v1494_v11  ;;  %v2282_v11 = vld [vmem:[#allocation2 + $0x1ca] sm:$0xff]  ;;  %v2283_v43 = vld [vmem:[#allocation2 + $0x1d2] sm:$0xff] }
 0x2e3   :  { %v10836_v24 = vadd.f32 %v2452_v56, %v2199_v22  ;;  %v1806_v53 = vadd.f32 %v1667_v18, %v1411_v36 }
 0x2e7   :  { %v2455_v62 = vpop.f32.mrf.mxu1  ;;  %v1669_v1 = vpop.f32.mrf.mxu3 }
 0x2e8   :  { %v2061_v23 = vpop.f32.mrf.mxu0  ;;  %v1274_v45 = vpop.f32.mrf.mxu2 }
 0x2e9   :  { %v2200_v58 = vadd.f32 %v2061_v23, %v1806_v53  ;;  %v1412_v56 = vadd.f32 %v1274_v45, %v10680_v63  ;;  %v1888_v63 = vld [vmem:[#allocation2 + $0x1c9] sm:$0xff] }
 0x2ea   :  { %2494 = vmatmul.bf16.gmra.mxu1 %v2329_v34  ;;  %v1889_v34 = vld [vmem:[#allocation2 + $0x1d1] sm:$0xff] }
 0x2eb   :  { %2100 = vmatmul.bf16.gmra.mxu0 %v1935_v28  ;;  %v10839_v22 = vadd.f32 %v2455_v62, %v2200_v58  ;;  %v1807_v18 = vadd.f32 %v1669_v1, %v1412_v56  ;;  %v2330_v28 = vpack.c.bf16 %v2283_v43, %v2282_v11  ;;  %v1496_v62 = vld [vmem:[#allocation2 + $0x1e0] sm:$0xff]  ;;  %v1936_v23 = vpack.c.bf16 %v1889_v34, %v1888_v63  ;;  %v2285_v34 = vld [vmem:[#allocation2 + $0x1ea] sm:$0xff] }
 0x2ec   :  { %1711 = vmatmul.bf16.gmra.mxu3 %v1542_v52  ;;  %v2284_v63 = vld [vmem:[#allocation2 + $0x1e2] sm:$0xff] }
 0x2ed   :  { %1316 = vmatmul.bf16.gmra.mxu2 %v1147_v20  ;;  %v1543_v20 = vpack.c.bf16 %v1497_v38, %v1496_v62  ;;  %v2331_v38 = vpack.c.bf16 %v2285_v34, %v2284_v63 }
 0x2ef   :  { %v2457_v26 = vpop.f32.mrf.mxu1  ;;  %v1672_v35 = vpop.f32.mrf.mxu3 }
 0x2f0   :  { %v2063_v36 = vpop.f32.mrf.mxu0  ;;  %v1277_v8 = vpop.f32.mrf.mxu2 }
 0x2f1   :  { %v2201_v39 = vadd.f32 %v2063_v36, %v1807_v18  ;;  %v1413_v0 = vadd.f32 %v1277_v8, %v10684_v31 }
 0x2f3   :  { %v10842_v53 = vadd.f32 %v2457_v26, %v2201_v39  ;;  %v1808_v2 = vadd.f32 %v1672_v35, %v1413_v0 }
 0x2f7   :  { %v2460_v1 = vpop.f32.mrf.mxu1  ;;  %v1674_v45 = vpop.f32.mrf.mxu3 }
 0x2f8   :  { %v2066_v58 = vpop.f32.mrf.mxu0  ;;  %v1279_v56 = vpop.f32.mrf.mxu2 }
 0x2f9   :  { %v2202_v52 = vadd.f32 %v2066_v58, %v1808_v2  ;;  %v1414_v18 = vadd.f32 %v1279_v56, %v10688_v46  ;;  %v1890_v2 = vld [vmem:[#allocation2 + $0x1e1] sm:$0xff]  ;;  %v1891_v46 = vld [vmem:[#allocation2 + $0x1e9] sm:$0xff] }
 0x2fa   :  { %2499 = vmatmul.bf16.gmra.mxu1 %v2330_v28  ;;  %v1937_v58 = vpack.c.bf16 %v1891_v46, %v1890_v2  ;;  %v2286_v2 = vld [vmem:[#allocation2 + $0x1fa] sm:$0xff]  ;;  %v2287_v46 = vld [vmem:[#allocation2 + $0x202] sm:$0xff] }
 0x2fb   :  { %2105 = vmatmul.bf16.gmra.mxu0 %v1936_v23  ;;  %v10845_v31 = vadd.f32 %v2460_v1, %v2202_v52  ;;  %v1809_v26 = vadd.f32 %v1674_v45, %v1414_v18  ;;  %v1498_v23 = vld [vmem:[#allocation2 + $0x1f8] sm:$0xff]  ;;  %v1499_v1 = vld [vmem:[#allocation2 + $0x200] sm:$0xff] }
 0x2fc   :  { %1716 = vmatmul.bf16.gmra.mxu3 %v1543_v20  ;;  %v1544_v18 = vpack.c.bf16 %v1499_v1, %v1498_v23  ;;  %v2332_v1 = vpack.c.bf16 %v2287_v46, %v2286_v2 }
 0x2fd   :  { %1321 = vmatmul.bf16.gmra.mxu2 %v2330_v28 }
 0x2ff   :  { %v2462_v36 = vpop.f32.mrf.mxu1  ;;  %v1677_v39 = vpop.f32.mrf.mxu3 }
 0x300   :  { %v2068_v35 = vpop.f32.mrf.mxu0  ;;  %v1282_v0 = vpop.f32.mrf.mxu2 }
 0x301   :  { %v2203_v8 = vadd.f32 %v2068_v35, %v1809_v26  ;;  %v1415_v11 = vadd.f32 %v1282_v0, %v10692_v12 }
 0x303   :  { %v10848_v43 = vadd.f32 %v2462_v36, %v2203_v8  ;;  %v1810_v62 = vadd.f32 %v1677_v39, %v1415_v11 }
 0x307   :  { %v2465_v45 = vpop.f32.mrf.mxu1  ;;  %v1679_v52 = vpop.f32.mrf.mxu3 }
 0x308   :  { %v2071_v28 = vpop.f32.mrf.mxu0  ;;  %v1284_v20 = vpop.f32.mrf.mxu2 }
 0x309   :  { %v2204_v56 = vadd.f32 %v2071_v28, %v1810_v62  ;;  %v1416_v26 = vadd.f32 %v1284_v20, %v10696_v29  ;;  %v1892_v62 = vld [vmem:[#allocation2 + $0x1f9] sm:$0xff]  ;;  %v1893_v29 = vld [vmem:[#allocation2 + $0x201] sm:$0xff]  ;;  %v9548_v20 = vld [vmem:[%s13841_s1 + $0x190] sm:$0xff] }
 0x30a   :  { %2504 = vmatmul.bf16.gmra.mxu1 %v2331_v38  ;;  %v1938_v28 = vpack.c.bf16 %v1893_v29, %v1892_v62  ;;  %2811 = vmatpush.bf16.msra.mxu2 %v9548_v20 }
 0x30b   :  { %2110 = vmatmul.bf16.gmra.mxu0 %v1937_v58  ;;  %v10851_v12 = vadd.f32 %v2465_v45, %v2204_v56  ;;  %v1811_v36 = vadd.f32 %v1679_v52, %v1416_v26  ;;  %v1500_v58 = vld [vmem:[#allocation2 + $0x210] sm:$0xff]  ;;  %v1501_v45 = vld [vmem:[#allocation2 + $0x218] sm:$0xff] }
 0x30c   :  { %1721 = vmatmul.bf16.gmra.mxu3 %v1544_v18  ;;  %v1545_v26 = vpack.c.bf16 %v1501_v45, %v1500_v58  ;;  %v2289_v58 = vld [vmem:[#allocation2 + $0x21a] sm:$0xff]  ;;  %v1894_v45 = vld [vmem:[#allocation2 + $0x211] sm:$0xff] }
 0x30d   :  { %1326 = vmatmul.bf16.gmra.mxu2 %v2331_v38 }
 0x30f   :  { %v2467_v35 = vpop.f32.mrf.mxu1  ;;  %v1682_v8 = vpop.f32.mrf.mxu3 }
 0x310   :  { %v2073_v39 = vpop.f32.mrf.mxu0  ;;  %v1287_v11 = vpop.f32.mrf.mxu2 }
 0x311   :  { %v2205_v0 = vadd.f32 %v2073_v39, %v1811_v36  ;;  %v1417_v63 = vadd.f32 %v1287_v11, %v10700_v59  ;;  %v9556_v39 = vld [vmem:[%s13841_s1 + $0x1d0] sm:$0xff] }
 0x312   :  { %3205 = vmatpush.bf16.msra.mxu3 %v9556_v39 }
 0x313   :  { %v10854_v34 = vadd.f32 %v2467_v35, %v2205_v0  ;;  %v1812_v23 = vadd.f32 %v1682_v8, %v1417_v63 }
 0x317   :  { %v2470_v52 = vpop.f32.mrf.mxu1  ;;  %v1684_v56 = vpop.f32.mrf.mxu3 }
 0x318   :  { %v2076_v38 = vpop.f32.mrf.mxu0  ;;  %v1289_v59 = vpop.f32.mrf.mxu2 }
 0x319   :  { %v2206_v18 = vadd.f32 %v2076_v38, %v1812_v23  ;;  %v1418_v36 = vadd.f32 %v1289_v59, %v10710_v32  ;;  %v9564_v32 = vld [vmem:[%s13841_s1 + $0x210] sm:$0xff]  ;;  %v1502_v38 = vld [vmem:[#allocation2 + $0x228] sm:$0xff] }
 0x31a   :  { %2509 = vmatmul.bf16.gmra.mxu1 %v2332_v1  ;;  %3599 = vmatpush.bf16.msra.mxu0 %v9564_v32  ;;  %v2288_v23 = vld [vmem:[#allocation2 + $0x212] sm:$0xff] }
 0x31b   :  { %2115 = vmatmul.bf16.gmra.mxu0 %v1938_v28  ;;  %v10860_v35 = vadd.f32 %v2470_v52, %v2206_v18  ;;  %v1813_v8 = vadd.f32 %v1684_v56, %v1418_v36  ;;  %v1895_v28 = vld [vmem:[#allocation2 + $0x219] sm:$0xff]  ;;  %v2333_v52 = vpack.c.bf16 %v2289_v58, %v2288_v23  ;;  %v1503_v56 = vld [vmem:[#allocation2 + $0x230] sm:$0xff] }
 0x31c   :  { %1726 = vmatmul.bf16.gmra.mxu3 %v1545_v26  ;;  %v1939_v20 = vpack.c.bf16 %v1895_v28, %v1894_v45  ;;  %v2290_v45 = vld [vmem:[#allocation2 + $0x22a] sm:$0xff]  ;;  %v2291_v28 = vld [vmem:[#allocation2 + $0x232] sm:$0xff] }
 0x31d   :  { %1331 = vmatmul.bf16.gmra.mxu2 %v2332_v1 }
 0x31f   :  { %v2472_v0 = vpop.f32.mrf.mxu1  ;;  %v1687_v63 = vpop.f32.mrf.mxu3 }
 0x320   :  { %v2078_v11 = vpop.f32.mrf.mxu0  ;;  %v1292_v46 = vpop.f32.mrf.mxu2 }
 0x321   :  { %v2207_v2 = vadd.f32 %v2078_v11, %v1813_v8  ;;  %v1419_v62 = vadd.f32 %v1292_v46, %v10717_v14  ;;  %v1546_v8 = vpack.c.bf16 %v1503_v56, %v1502_v38  ;;  %v2334_v56 = vpack.c.bf16 %v2291_v28, %v2290_v45 }
 0x323   :  { %v10869_v29 = vadd.f32 %v2472_v0, %v2207_v2  ;;  %v1814_v1 = vadd.f32 %v1687_v63, %v1419_v62 }
 0x327   :  { %v2475_v18 = vpop.f32.mrf.mxu1  ;;  %v1689_v26 = vpop.f32.mrf.mxu3 }
 0x328   :  { %v2081_v59 = vpop.f32.mrf.mxu0  ;;  %v1294_v39 = vpop.f32.mrf.mxu2 }
 0x329   :  { %v2208_v36 = vadd.f32 %v2081_v59, %v1814_v1  ;;  %v1420_v14 = vadd.f32 %v1294_v39, %v10721_v48  ;;  %v1896_v1 = vld [vmem:[#allocation2 + $0x229] sm:$0xff]  ;;  %v1897_v48 = vld [vmem:[#allocation2 + $0x231] sm:$0xff] }
 0x32a   :  { %2514 = vmatmul.bf16.gmra.mxu1 %v2333_v52  ;;  %v1940_v59 = vpack.c.bf16 %v1897_v48, %v1896_v1  ;;  %v2292_v1 = vld [vmem:[#allocation2 + $0x242] sm:$0xff]  ;;  %v2293_v48 = vld [vmem:[#allocation2 + $0x24a] sm:$0xff] }
 0x32b   :  { %2120 = vmatmul.bf16.gmra.mxu0 %v1939_v20  ;;  %v10872_v0 = vadd.f32 %v2475_v18, %v2208_v36  ;;  %v1815_v11 = vadd.f32 %v1689_v26, %v1420_v14  ;;  %v1504_v20 = vld [vmem:[#allocation2 + $0x240] sm:$0xff]  ;;  %v1505_v18 = vld [vmem:[#allocation2 + $0x248] sm:$0xff] }
 0x32c   :  { %1731 = vmatmul.bf16.gmra.mxu3 %v1546_v8  ;;  %v1547_v14 = vpack.c.bf16 %v1505_v18, %v1504_v20  ;;  %v2335_v18 = vpack.c.bf16 %v2293_v48, %v2292_v1 }
 0x32d   :  { %1336 = vmatmul.bf16.gmra.mxu2 %v2333_v52 }
 0x32f   :  { %v2477_v63 = vpop.f32.mrf.mxu1  ;;  %v1692_v2 = vpop.f32.mrf.mxu3 }
 0x330   :  { %v2083_v32 = vpop.f32.mrf.mxu0  ;;  %v1297_v62 = vpop.f32.mrf.mxu2 }
 0x331   :  { %v2209_v46 = vadd.f32 %v2083_v32, %v1815_v11  ;;  %v1421_v23 = vadd.f32 %v1297_v62, %v10725_v61 }
 0x333   :  { %v10875_v58 = vadd.f32 %v2477_v63, %v2209_v46  ;;  %v1816_v38 = vadd.f32 %v1692_v2, %v1421_v23 }
 0x337   :  { %v2480_v26 = vpop.f32.mrf.mxu1  ;;  %v1694_v36 = vpop.f32.mrf.mxu3 }
 0x338   :  { %v2086_v52 = vpop.f32.mrf.mxu0  ;;  %v1299_v8 = vpop.f32.mrf.mxu2 }
 0x339   :  { %v2210_v39 = vadd.f32 %v2086_v52, %v1816_v38  ;;  %v1422_v11 = vadd.f32 %v1299_v8, %v10729_v54  ;;  %v1898_v38 = vld [vmem:[#allocation2 + $0x241] sm:$0xff]  ;;  %v1899_v54 = vld [vmem:[#allocation2 + $0x249] sm:$0xff] }
 0x33a   :  { %2519 = vmatmul.bf16.gmra.mxu1 %v2334_v56  ;;  %v1941_v52 = vpack.c.bf16 %v1899_v54, %v1898_v38  ;;  %v2294_v38 = vld [vmem:[#allocation2 + $0x25a] sm:$0xff]  ;;  %v2295_v54 = vld [vmem:[#allocation2 + $0x262] sm:$0xff] }
 0x33b   :  { %2125 = vmatmul.bf16.gmra.mxu0 %v1940_v59  ;;  %v10878_v61 = vadd.f32 %v2480_v26, %v2210_v39  ;;  %v1817_v63 = vadd.f32 %v1694_v36, %v1422_v11  ;;  %v1506_v59 = vld [vmem:[#allocation2 + $0x258] sm:$0xff]  ;;  %v1507_v26 = vld [vmem:[#allocation2 + $0x260] sm:$0xff] }
 0x33c   :  { %1736 = vmatmul.bf16.gmra.mxu3 %v1547_v14  ;;  %v1548_v11 = vpack.c.bf16 %v1507_v26, %v1506_v59  ;;  %v2336_v26 = vpack.c.bf16 %v2295_v54, %v2294_v38 }
 0x33d   :  { %1341 = vmatmul.bf16.gmra.mxu2 %v2334_v56 }
 0x33f   :  { %v2482_v32 = vpop.f32.mrf.mxu1  ;;  %v1697_v46 = vpop.f32.mrf.mxu3 }
 0x340   :  { %v2088_v2 = vpop.f32.mrf.mxu0  ;;  %v1302_v23 = vpop.f32.mrf.mxu2 }
 0x341   :  { %v2211_v62 = vadd.f32 %v2088_v2, %v1817_v63  ;;  %v1423_v45 = vadd.f32 %v1302_v23, %v10733_v33 }
 0x343   :  { %v10881_v28 = vadd.f32 %v2482_v32, %v2211_v62  ;;  %v1818_v20 = vadd.f32 %v1697_v46, %v1423_v45 }
 0x347   :  { %v2485_v36 = vpop.f32.mrf.mxu1  ;;  %v1699_v39 = vpop.f32.mrf.mxu3 }
 0x348   :  { %v2091_v56 = vpop.f32.mrf.mxu0  ;;  %v1304_v14 = vpop.f32.mrf.mxu2 }
 0x349   :  { %v2212_v8 = vadd.f32 %v2091_v56, %v1818_v20  ;;  %v1424_v63 = vadd.f32 %v1304_v14, %v10737_v4  ;;  %v1900_v20 = vld [vmem:[#allocation2 + $0x259] sm:$0xff]  ;;  %v1901_v4 = vld [vmem:[#allocation2 + $0x261] sm:$0xff] }
 0x34a   :  { %2524 = vmatmul.bf16.gmra.mxu1 %v2335_v18  ;;  %v1942_v56 = vpack.c.bf16 %v1901_v4, %v1900_v20  ;;  %v9547_v14 = vld [vmem:[%s13841_s1 + $0x188] sm:$0xff] }
 0x34b   :  { %2130 = vmatmul.bf16.gmra.mxu0 %v1941_v52  ;;  %v10884_v33 = vadd.f32 %v2485_v36, %v2212_v8  ;;  %v1819_v32 = vadd.f32 %v1699_v39, %v1424_v63  ;;  %v1508_v52 = vld [vmem:[#allocation2 + $0x270] sm:$0xff]  ;;  %v1509_v36 = vld [vmem:[#allocation2 + $0x278] sm:$0xff]  ;;  %2812 = vmatpush.bf16.msra.mxu2 %v9547_v14 }
 0x34c   :  { %1741 = vmatmul.bf16.gmra.mxu3 %v1548_v11  ;;  %v1549_v63 = vpack.c.bf16 %v1509_v36, %v1508_v52  ;;  %v2297_v52 = vld [vmem:[#allocation2 + $0x27a] sm:$0xff]  ;;  %v1902_v36 = vld [vmem:[#allocation2 + $0x271] sm:$0xff] }
 0x34d   :  { %1346 = vmatmul.bf16.gmra.mxu2 %v2335_v18 }
 0x34f   :  { %v2487_v2 = vpop.f32.mrf.mxu1  ;;  %v1702_v62 = vpop.f32.mrf.mxu3 }
 0x350   :  { %v2093_v46 = vpop.f32.mrf.mxu0  ;;  %v1307_v45 = vpop.f32.mrf.mxu2 }
 0x351   :  { %v2213_v23 = vadd.f32 %v2093_v46, %v1819_v32  ;;  %v1425_v1 = vadd.f32 %v1307_v45, %v10744_v41  ;;  %v9555_v46 = vld [vmem:[%s13841_s1 + $0x1c8] sm:$0xff] }
 0x352   :  { %3206 = vmatpush.bf16.msra.mxu3 %v9555_v46 }
 0x353   :  { %v10887_v48 = vadd.f32 %v2487_v2, %v2213_v23  ;;  %v1820_v59 = vadd.f32 %v1702_v62, %v1425_v1 }
 0x357   :  { %v2490_v39 = vpop.f32.mrf.mxu1  ;;  %v1704_v8 = vpop.f32.mrf.mxu3 }
 0x358   :  { %v2096_v18 = vpop.f32.mrf.mxu0  ;;  %v1309_v41 = vpop.f32.mrf.mxu2 }
 0x359   :  { %v2214_v11 = vadd.f32 %v2096_v18, %v1820_v59  ;;  %v1426_v32 = vadd.f32 %v1309_v41, %v10754_v51  ;;  %v9563_v51 = vld [vmem:[%s13841_s1 + $0x208] sm:$0xff]  ;;  %v2296_v59 = vld [vmem:[#allocation2 + $0x272] sm:$0xff] }
 0x35a   :  { %2529 = vmatmul.bf16.gmra.mxu1 %v2336_v26  ;;  %3600 = vmatpush.bf16.msra.mxu0 %v9563_v51  ;;  %v1510_v18 = vld [vmem:[#allocation2 + $0x288] sm:$0xff] }
 0x35b   :  { %2135 = vmatmul.bf16.gmra.mxu0 %v1942_v56  ;;  %v10893_v2 = vadd.f32 %v2490_v39, %v2214_v11  ;;  %v1821_v62 = vadd.f32 %v1704_v8, %v1426_v32  ;;  %v1903_v56 = vld [vmem:[#allocation2 + $0x279] sm:$0xff]  ;;  %v2337_v39 = vpack.c.bf16 %v2297_v52, %v2296_v59  ;;  %v1511_v8 = vld [vmem:[#allocation2 + $0x290] sm:$0xff] }
 0x35c   :  { %1746 = vmatmul.bf16.gmra.mxu3 %v1549_v63  ;;  %v1943_v14 = vpack.c.bf16 %v1903_v56, %v1902_v36  ;;  %v2298_v36 = vld [vmem:[#allocation2 + $0x28a] sm:$0xff]  ;;  %v2299_v56 = vld [vmem:[#allocation2 + $0x292] sm:$0xff] }
 0x35d   :  { %1351 = vmatmul.bf16.gmra.mxu2 %v2336_v26 }
 0x35f   :  { %v2492_v23 = vpop.f32.mrf.mxu1  ;;  %v1707_v1 = vpop.f32.mrf.mxu3 }
 0x360   :  { %v2098_v45 = vpop.f32.mrf.mxu0  ;;  %v1312_v54 = vpop.f32.mrf.mxu2 }
 0x361   :  { %v2215_v38 = vadd.f32 %v2098_v45, %v1821_v62  ;;  %v1427_v20 = vadd.f32 %v1312_v54, %v10758_v27  ;;  %v1550_v62 = vpack.c.bf16 %v1511_v8, %v1510_v18  ;;  %v2338_v8 = vpack.c.bf16 %v2299_v56, %v2298_v36  ;;  %v2300_v56 = vld [vmem:[#allocation2 + $0x2a2] sm:$0xff] }
 0x363   :  { %v10902_v4 = vadd.f32 %v2492_v23, %v2215_v38  ;;  %v1822_v26 = vadd.f32 %v1707_v1, %v1427_v20 }
 0x367   :  { %v2495_v11 = vpop.f32.mrf.mxu1  ;;  %v1709_v63 = vpop.f32.mrf.mxu3 }
 0x368   :  { %v2101_v41 = vpop.f32.mrf.mxu0  ;;  %v1314_v46 = vpop.f32.mrf.mxu2 }
 0x369   :  { %v2216_v32 = vadd.f32 %v2101_v41, %v1822_v26  ;;  %v1428_v27 = vadd.f32 %v1314_v46, %v10762_v17  ;;  %v1904_v26 = vld [vmem:[#allocation2 + $0x289] sm:$0xff]  ;;  %v1905_v17 = vld [vmem:[#allocation2 + $0x291] sm:$0xff] }
 0x36a   :  { %2534 = vmatmul.bf16.gmra.mxu1 %v2337_v39  ;;  %v1944_v41 = vpack.c.bf16 %v1905_v17, %v1904_v26  ;;  %v2301_v26 = vld [vmem:[#allocation2 + $0x2aa] sm:$0xff]  ;;  %v1906_v17 = vld [vmem:[#allocation2 + $0x2a1] sm:$0xff] }
 0x36b   :  { %2140 = vmatmul.bf16.gmra.mxu0 %v1943_v14  ;;  %v10905_v23 = vadd.f32 %v2495_v11, %v2216_v32  ;;  %v1823_v45 = vadd.f32 %v1709_v63, %v1428_v27  ;;  %v1512_v14 = vld [vmem:[#allocation2 + $0x2a0] sm:$0xff]  ;;  %v1513_v11 = vld [vmem:[#allocation2 + $0x2a8] sm:$0xff] }
 0x36c   :  { %1751 = vmatmul.bf16.gmra.mxu3 %v1550_v62 }
 0x36d   :  { %1356 = vmatmul.bf16.gmra.mxu2 %v2337_v39  ;;  %v990_v39 = vadd.f32 %v10435_v16, %v10437_v21 }
 0x36f   :  { %v2497_v1 = vpop.f32.mrf.mxu1  ;;  %v1712_v38 = vpop.f32.mrf.mxu3 }
 0x370   :  { %v2103_v51 = vpop.f32.mrf.mxu0  ;;  %v1317_v20 = vpop.f32.mrf.mxu2 }
 0x371   :  { %v2217_v54 = vadd.f32 %v2103_v51, %v1823_v45  ;;  %v1429_v59 = vadd.f32 %v1317_v20, %v10382_v49  ;;  %v1551_v49 = vpack.c.bf16 %v1513_v11, %v1512_v14  ;;  %v2339_v11 = vpack.c.bf16 %v2301_v26, %v2300_v56  ;;  %v2302_v26 = vld [vmem:[#allocation2 + $0x2ba] sm:$0xff] }
 0x373   :  { %v10908_v52 = vadd.f32 %v2497_v1, %v2217_v54  ;;  %v1824_v18 = vadd.f32 %v1712_v38, %v1429_v59 }
 0x377   :  { %v2500_v63 = vpop.f32.mrf.mxu1  ;;  %v1714_v46 = vpop.f32.mrf.mxu3 }
 0x378   :  { %v2106_v32 = vpop.f32.mrf.mxu0  ;;  %v1319_v27 = vpop.f32.mrf.mxu2 }
 0x379   :  { %v2218_v62 = vadd.f32 %v2106_v32, %v1824_v18  ;;  %v1430_v45 = vadd.f32 %v1319_v27, %v990_v39  ;;  %v1907_v18 = vld [vmem:[#allocation2 + $0x2a9] sm:$0xff] }
 0x37a   :  { %2539 = vmatmul.bf16.gmra.mxu1 %v2338_v8  ;;  %v1945_v39 = vpack.c.bf16 %v1907_v18, %v1906_v17  ;;  %v2303_v17 = vld [vmem:[#allocation2 + $0x2c2] sm:$0xff]  ;;  %v1908_v18 = vld [vmem:[#allocation2 + $0x2b9] sm:$0xff] }
 0x37b   :  { %2145 = vmatmul.bf16.gmra.mxu0 %v1944_v41  ;;  %v10912_v1 = vadd.f32 %v2500_v63, %v2218_v62  ;;  %v1825_v51 = vadd.f32 %v1714_v46, %v1430_v45  ;;  %v1514_v41 = vld [vmem:[#allocation2 + $0x2b8] sm:$0xff]  ;;  %v1515_v63 = vld [vmem:[#allocation2 + $0x2c0] sm:$0xff] }
 0x37c   :  { %1756 = vmatmul.bf16.gmra.mxu3 %v1551_v49  ;;  %v1552_v49 = vpack.c.bf16 %v1515_v63, %v1514_v41  ;;  %v2340_v41 = vpack.c.bf16 %v2303_v17, %v2302_v26  ;;  %v1516_v63 = vld [vmem:[#allocation2 + $0x2d0] sm:$0xff] }
 0x37d   :  { %1361 = vmatmul.bf16.gmra.mxu2 %v2338_v8 }
 0x37f   :  { %v2502_v38 = vpop.f32.mrf.mxu1  ;;  %v1717_v20 = vpop.f32.mrf.mxu3 }
 0x380   :  { %v2108_v54 = vpop.f32.mrf.mxu0  ;;  %v1322_v36 = vpop.f32.mrf.mxu2 }
 0x381   :  { %v2219_v59 = vadd.f32 %v2108_v54, %v1825_v51  ;;  %v1431_v16 = vadd.f32 %v1322_v36, %v10473_v42 }
 0x383   :  { %v10915_v21 = vadd.f32 %v2502_v38, %v2219_v59  ;;  %v1826_v14 = vadd.f32 %v1717_v20, %v1431_v16 }
 0x387   :  { %v2505_v32 = vpop.f32.mrf.mxu1  ;;  %v1719_v46 = vpop.f32.mrf.mxu3 }
 0x388   :  { %v2111_v8 = vpop.f32.mrf.mxu0  ;;  %v1324_v27 = vpop.f32.mrf.mxu2 }
 0x389   :  { %v2220_v62 = vadd.f32 %v2111_v8, %v1826_v14  ;;  %v1432_v45 = vadd.f32 %v1324_v27, %v10480_v60  ;;  %v1909_v60 = vld [vmem:[#allocation2 + $0x2c1] sm:$0xff] }
 0x38a   :  { %2544 = vmatmul.bf16.gmra.mxu1 %v2339_v11 }
 0x38b   :  { %2150 = vmatmul.bf16.gmra.mxu0 %v1945_v39  ;;  %v10918_v42 = vadd.f32 %v2505_v32, %v2220_v62  ;;  %v1827_v51 = vadd.f32 %v1719_v46, %v1432_v45  ;;  %v1517_v39 = vld [vmem:[#allocation2 + $0x2d8] sm:$0xff]  ;;  %v1946_v32 = vpack.c.bf16 %v1909_v60, %v1908_v18  ;;  %v9546_v62 = vld [vmem:[%s13841_s1 + $0x180] sm:$0xff] }
 0x38c   :  { %1761 = vmatmul.bf16.gmra.mxu3 %v1552_v49  ;;  %v1553_v49 = vpack.c.bf16 %v1517_v39, %v1516_v63  ;;  %2813 = vmatpush.bf16.msra.mxu2 %v9546_v62  ;;  %v2304_v60 = vld [vmem:[#allocation2 + $0x2d2] sm:$0xff] }
 0x38d   :  { %1366 = vmatmul.bf16.gmra.mxu2 %v2339_v11  ;;  %v1910_v63 = vld [vmem:[#allocation2 + $0x2d1] sm:$0xff]  ;;  %v1911_v39 = vld [vmem:[#allocation2 + $0x2d9] sm:$0xff] }
 0x38f   :  { %v2507_v38 = vpop.f32.mrf.mxu1  ;;  %v1722_v20 = vpop.f32.mrf.mxu3 }
 0x390   :  { %v2113_v54 = vpop.f32.mrf.mxu0  ;;  %v1327_v36 = vpop.f32.mrf.mxu2 }
 0x391   :  { %v2221_v59 = vadd.f32 %v2113_v54, %v1827_v51  ;;  %v1433_v16 = vadd.f32 %v1327_v36, %v10505_v9 }
 0x393   :  { %v10921_v56 = vadd.f32 %v2507_v38, %v2221_v59  ;;  %v1828_v14 = vadd.f32 %v1722_v20, %v1433_v16  ;;  %v9554_v38 = vld [vmem:[%s13841_s1 + $0x1c0] sm:$0xff] }
 0x394   :  { %3207 = vmatpush.bf16.msra.mxu3 %v9554_v38 }
 0x397   :  { %v2510_v8 = vpop.f32.mrf.mxu1  ;;  %v1724_v46 = vpop.f32.mrf.mxu3 }
 0x398   :  { %v2116_v11 = vpop.f32.mrf.mxu0  ;;  %v1329_v9 = vpop.f32.mrf.mxu2 }
 0x399   :  { %v2222_v27 = vadd.f32 %v2116_v11, %v1828_v14  ;;  %v1434_v45 = vadd.f32 %v1329_v9, %v10515_v30  ;;  %v9562_v30 = vld [vmem:[%s13841_s1 + $0x200] sm:$0xff]  ;;  %v1519_v11 = vld [vmem:[#allocation2 + $0x2f0] sm:$0xff] }
 0x39a   :  { %2549 = vmatmul.bf16.gmra.mxu1 %v2340_v41  ;;  %3601 = vmatpush.bf16.msra.mxu0 %v9562_v30  ;;  %v2305_v14 = vld [vmem:[#allocation2 + $0x2da] sm:$0xff] }
 0x39b   :  { %2155 = vmatmul.bf16.gmra.mxu0 %v1946_v32  ;;  %v10927_v51 = vadd.f32 %v2510_v8, %v2222_v27  ;;  %v1829_v54 = vadd.f32 %v1724_v46, %v1434_v45  ;;  %v2341_v32 = vpack.c.bf16 %v2305_v14, %v2304_v60  ;;  %v1518_v8 = vld [vmem:[#allocation2 + $0x2e8] sm:$0xff]  ;;  %v1947_v46 = vpack.c.bf16 %v1911_v39, %v1910_v63  ;;  %v2307_v63 = vld [vmem:[#allocation2 + $0x2f2] sm:$0xff] }
 0x39c   :  { %1766 = vmatmul.bf16.gmra.mxu3 %v1553_v49  ;;  %v1554_v38 = vpack.c.bf16 %v1519_v11, %v1518_v8  ;;  %v2306_v14 = vld [vmem:[#allocation2 + $0x2ea] sm:$0xff]  ;;  %v1520_v11 = vld [vmem:[#allocation2 + $0x300] sm:$0xff] }
 0x39d   :  { %1371 = vmatmul.bf16.gmra.mxu2 %v2340_v41  ;;  %v1912_v39 = vld [vmem:[#allocation2 + $0x2e9] sm:$0xff]  ;;  %v2342_v8 = vpack.c.bf16 %v2307_v63, %v2306_v14 }
 0x39e   :  { %v13986_v63 = vld [vmem:[#allocation17_spill] sm:$0xff] }
 0x39f   :  { %v2512_v20 = vpop.f32.mrf.mxu1  ;;  %v1727_v36 = vpop.f32.mrf.mxu3 }
 0x3a0   :  { %v2118_v59 = vpop.f32.mrf.mxu0  ;;  %v1332_v26 = vpop.f32.mrf.mxu2 }
 0x3a1   :  { %v2223_v16 = vadd.f32 %v2118_v59, %v1829_v54  ;;  %v1435_v17 = vadd.f32 %v1332_v26, %v10546_v47 }
 0x3a3   :  { %v10936_v18 = vadd.f32 %v2512_v20, %v2223_v16  ;;  %v1830_v41 = vadd.f32 %v1727_v36, %v1435_v17 }
 0x3a7   :  { %v2515_v62 = vpop.f32.mrf.mxu1  ;;  %v1729_v9 = vpop.f32.mrf.mxu3 }
 0x3a8   :  { %v2121_v27 = vpop.f32.mrf.mxu0  ;;  %v1334_v45 = vpop.f32.mrf.mxu2 }
 0x3a9   :  { %v2224_v49 = vadd.f32 %v2121_v27, %v1830_v41  ;;  %v1436_v47 = vadd.f32 %v1334_v45, %v10553_v3  ;;  %v1913_v3 = vld [vmem:[#allocation2 + $0x2f1] sm:$0xff] }
 0x3aa   :  { %2554 = vmatmul.bf16.gmra.mxu1 %v2341_v32 }
 0x3ab   :  { %2160 = vmatmul.bf16.gmra.mxu0 %v1947_v46  ;;  %v10939_v54 = vadd.f32 %v2515_v62, %v2224_v49  ;;  %v1831_v20 = vadd.f32 %v1729_v9, %v1436_v47  ;;  %v1521_v46 = vld [vmem:[#allocation2 + $0x308] sm:$0xff]  ;;  %v1948_v62 = vpack.c.bf16 %v1913_v3, %v1912_v39 }
 0x3ac   :  { %1771 = vmatmul.bf16.gmra.mxu3 %v1554_v38  ;;  %v1555_v38 = vpack.c.bf16 %v1521_v46, %v1520_v11  ;;  %v2308_v3 = vld [vmem:[#allocation2 + $0x302] sm:$0xff] }
 0x3ad   :  { %1376 = vmatmul.bf16.gmra.mxu2 %v2341_v32  ;;  %v1915_v11 = vld [vmem:[#allocation2 + $0x309] sm:$0xff] }
 0x3af   :  { %v2517_v59 = vpop.f32.mrf.mxu1  ;;  %v1732_v30 = vpop.f32.mrf.mxu3 }
 0x3b0   :  { %v2123_v36 = vpop.f32.mrf.mxu0  ;;  %v1337_v26 = vpop.f32.mrf.mxu2 }
 0x3b1   :  { %v2225_v16 = vadd.f32 %v2123_v36, %v1831_v20  ;;  %v1437_v17 = vadd.f32 %v1337_v26, %v10578_v19  ;;  %v293_v36 = vld [vmem:[%s13840_s0 + $0x338] sm:$0xff]  ;;  %v294_v26 = vld [vmem:[%s13840_s0 + $0x340] sm:$0x3] }
 0x3b2   :  { %403 = vst.msk [vmem:[#allocation2 + $0x338] sm:$0xff] %vm298_vm0, %v293_v36  ;;  %v13987_v36 = vld [vmem:[#allocation18_spill] sm:$0xff] }
 0x3b3   :  { %v10942_v60 = vadd.f32 %v2517_v59, %v2225_v16  ;;  %v1832_v41 = vadd.f32 %v1732_v30, %v1437_v17  ;;  %v292_v59 = vld [vmem:[%s13840_s0 + $0x330] sm:$0xff]  ;;  %404 = vst.msk [vmem:[#allocation2 + $0x340] sm:$0x3] %vm301_vm1, %v294_v26 }
 0x3b4   :  { %402 = vst.msk [vmem:[#allocation2 + $0x330] sm:$0xff] %vm298_vm0, %v292_v59 }
 0x3b7   :  { %v2520_v27 = vpop.f32.mrf.mxu1  ;;  %v1734_v9 = vpop.f32.mrf.mxu3 }
 0x3b8   :  { %v2126_v32 = vpop.f32.mrf.mxu0  ;;  %v1339_v45 = vpop.f32.mrf.mxu2 }
 0x3b9   :  { %v2226_v49 = vadd.f32 %v2126_v32, %v1832_v41  ;;  %v1438_v47 = vadd.f32 %v1339_v45, %v10588_v44  ;;  %v2309_v41 = vld [vmem:[#allocation2 + $0x30a] sm:$0xff]  ;;  %v1523_v32 = vld [vmem:[#allocation2 + $0x320] sm:$0xff] }
 0x3ba   :  { %2559 = vmatmul.bf16.gmra.mxu1 %v2342_v8 }
 0x3bb   :  { %2165 = vmatmul.bf16.gmra.mxu0 %v1948_v62  ;;  %v10945_v19 = vadd.f32 %v2520_v27, %v2226_v49  ;;  %v1833_v20 = vadd.f32 %v1734_v9, %v1438_v47  ;;  %v2343_v62 = vpack.c.bf16 %v2309_v41, %v2308_v3  ;;  %v1522_v27 = vld [vmem:[#allocation2 + $0x318] sm:$0xff] }
 0x3bc   :  { %1776 = vmatmul.bf16.gmra.mxu3 %v1555_v38  ;;  %v1556_v59 = vpack.c.bf16 %v1523_v32, %v1522_v27  ;;  %v2311_v27 = vld [vmem:[#allocation2 + $0x322] sm:$0xff]  ;;  %v1916_v32 = vld [vmem:[#allocation2 + $0x319] sm:$0xff] }
 0x3bd   :  { %1381 = vmatmul.bf16.gmra.mxu2 %v2342_v8  ;;  %v1914_v8 = vld [vmem:[#allocation2 + $0x301] sm:$0xff] }
 0x3be   :  { %v1949_v9 = vpack.c.bf16 %v1915_v11, %v1914_v8  ;;  %v13991_v8 = vld [vmem:[#allocation19_spill] sm:$0xff] }
 0x3bf   :  { %v10953_v30 = vpop.f32.mrf.mxu1  ;;  %v1737_v16 = vpop.f32.mrf.mxu3 }
 0x3c0   :  { %13984 = vst [vmem:[#allocation40_spill] sm:$0xff] %v10953_v30  ;;  %v2128_v44 = vpop.f32.mrf.mxu0  ;;  %v1342_v14 = vpop.f32.mrf.mxu2 }
 0x3c1   :  { %v10960_v17 = vadd.f32 %v2128_v44, %v1833_v20  ;;  %v1439_v39 = vadd.f32 %v1342_v14, %v13986_v63 }
 0x3c3   :  { %13985 = vst [vmem:[#allocation41_spill] sm:$0xff] %v10960_v17  ;;  %v1834_v46 = vadd.f32 %v1737_v16, %v1439_v39 }
 0x3c7   :  { %v2525_v49 = vpop.f32.mrf.mxu1  ;;  %v1739_v38 = vpop.f32.mrf.mxu3 }
 0x3c8   :  { %v2131_v45 = vpop.f32.mrf.mxu0  ;;  %v1344_v20 = vpop.f32.mrf.mxu2 }
 0x3c9   :  { %v2228_v47 = vadd.f32 %v2131_v45, %v1834_v46  ;;  %v1440_v44 = vadd.f32 %v1344_v20, %v13987_v36  ;;  %v2310_v46 = vld [vmem:[#allocation2 + $0x31a] sm:$0xff] }
 0x3ca   :  { %2564 = vmatmul.bf16.gmra.mxu1 %v2343_v62  ;;  %v1917_v45 = vld [vmem:[#allocation2 + $0x321] sm:$0xff] }
 0x3cb   :  { %2170 = vmatmul.bf16.gmra.mxu0 %v1949_v9  ;;  %v10965_v26 = vadd.f32 %v2525_v49, %v2228_v47  ;;  %v1835_v14 = vadd.f32 %v1739_v38, %v1440_v44  ;;  %v2344_v9 = vpack.c.bf16 %v2311_v27, %v2310_v46  ;;  %v1524_v49 = vld [vmem:[#allocation2 + $0x330] sm:$0xff]  ;;  %v1525_v47 = vld [vmem:[#allocation2 + $0x338] sm:$0xff]  ;;  %v1950_v38 = vpack.c.bf16 %v1917_v45, %v1916_v32  ;;  %v13996_v45 = vld [vmem:[#allocation21_spill] sm:$0xff] }
 0x3cc   :  { %1781 = vmatmul.bf16.gmra.mxu3 %v1556_v59  ;;  %v1557_v30 = vpack.c.bf16 %v1525_v47, %v1524_v49  ;;  %v2313_v49 = vld [vmem:[#allocation2 + $0x33a] sm:$0xff]  ;;  %v1918_v47 = vld [vmem:[#allocation2 + $0x331] sm:$0xff] }
 0x3cd   :  { %13988 = vst [vmem:[#allocation17_spill] sm:$0xff] %v10965_v26  ;;  %1386 = vmatmul.bf16.gmra.mxu2 %v2343_v62  ;;  %v3439_v26 = vld [vmem:[#allocation2 + $0x7a] sm:$0xff] }
 0x3cf   :  { %v10967_v16 = vpop.f32.mrf.mxu1  ;;  %v1742_v39 = vpop.f32.mrf.mxu3 }
 0x3d0   :  { %13989 = vst [vmem:[#allocation18_spill] sm:$0xff] %v10967_v16  ;;  %v2133_v63 = vpop.f32.mrf.mxu0  ;;  %v1347_v41 = vpop.f32.mrf.mxu2 }
 0x3d1   :  { %v10969_v3 = vadd.f32 %v2133_v63, %v1835_v14  ;;  %v1441_v11 = vadd.f32 %v1347_v41, %v13991_v8  ;;  %v13992_v14 = vld [vmem:[#allocation20_spill] sm:$0xff] }
 0x3d3   :  { %13990 = vst [vmem:[#allocation42_spill] sm:$0xff] %v10969_v3  ;;  %v1836_v20 = vadd.f32 %v1742_v39, %v1441_v11 }
 0x3d7   :  { %v2530_v59 = vpop.f32.mrf.mxu1  ;;  %v1744_v36 = vpop.f32.mrf.mxu3 }
 0x3d8   :  { %v2136_v62 = vpop.f32.mrf.mxu0  ;;  %v1349_v16 = vpop.f32.mrf.mxu2 }
 0x3d9   :  { %v2230_v44 = vadd.f32 %v2136_v62, %v1836_v20  ;;  %v1442_v63 = vadd.f32 %v1349_v16, %v13992_v14  ;;  %v2312_v62 = vld [vmem:[#allocation2 + $0x332] sm:$0xff] }
 0x3da   :  { %2569 = vmatmul.bf16.gmra.mxu1 %v2344_v9  ;;  %v1919_v16 = vld [vmem:[#allocation2 + $0x339] sm:$0xff] }
 0x3db   :  { %2175 = vmatmul.bf16.gmra.mxu0 %v1950_v38  ;;  %v10973_v41 = vadd.f32 %v2530_v59, %v2230_v44  ;;  %v1837_v8 = vadd.f32 %v1744_v36, %v1442_v63  ;;  %v2345_v38 = vpack.c.bf16 %v2313_v49, %v2312_v62  ;;  %v3039_v59 = vld [vmem:[#allocation2 + $0x31] sm:$0xff]  ;;  %v3040_v44 = vld [vmem:[#allocation2 + $0x39] sm:$0xff]  ;;  %v1951_v36 = vpack.c.bf16 %v1919_v16, %v1918_v47 }
 0x3dc   :  { %1786 = vmatmul.bf16.gmra.mxu3 %v1557_v30  ;;  %v2646_v63 = vld [vmem:[#allocation2 + $0x38] sm:$0xff] }
 0x3dd   :  { %13993 = vst [vmem:[#allocation19_spill] sm:$0xff] %v10973_v41  ;;  %1391 = vmatmul.bf16.gmra.mxu2 %v2344_v9  ;;  %v2645_v9 = vld [vmem:[#allocation2 + $0x30] sm:$0xff] }
 0x3df   :  { %v10975_v39 = vpop.f32.mrf.mxu1  ;;  %v1747_v46 = vpop.f32.mrf.mxu3 }
 0x3e0   :  { %13994 = vst [vmem:[#allocation20_spill] sm:$0xff] %v10975_v39  ;;  %v2138_v11 = vpop.f32.mrf.mxu0  ;;  %v1352_v32 = vpop.f32.mrf.mxu2 }
 0x3e1   :  { %v10977_v27 = vadd.f32 %v2138_v11, %v1837_v8  ;;  %v1443_v20 = vadd.f32 %v1352_v32, %v13996_v45  ;;  %v3103_v11 = vpack.c.bf16 %v3040_v44, %v3039_v59  ;;  %v2709_v32 = vpack.c.bf16 %v2646_v63, %v2645_v9  ;;  %v3433_v59 = vld [vmem:[#allocation2 + $0x32] sm:$0xff]  ;;  %v3434_v44 = vld [vmem:[#allocation2 + $0x3a] sm:$0xff] }
 0x3e2   :  { %v3042_v9 = vld [vmem:[#allocation2 + $0x51] sm:$0xff] }
 0x3e3   :  { %13995 = vst [vmem:[#allocation43_spill] sm:$0xff] %v10977_v27  ;;  %v1838_v14 = vadd.f32 %v1747_v46, %v1443_v20  ;;  %v13997_v27 = vld [vmem:[#allocation22_spill] sm:$0xff] }
 0x3e7   :  { %v2535_v30 = vpop.f32.mrf.mxu1  ;;  %v1749_v3 = vpop.f32.mrf.mxu3 }
 0x3e8   :  { %v2141_v39 = vpop.f32.mrf.mxu0  ;;  %v1354_v8 = vpop.f32.mrf.mxu2 }
 0x3e9   :  { %v2232_v17 = vadd.f32 %v2141_v39, %v1838_v14  ;;  %v1444_v41 = vadd.f32 %v1354_v8, %v13997_v27  ;;  %v14001_v39 = vld [vmem:[#allocation23_spill] sm:$0xff] }
 0x3ea   :  { %2574 = vmatmul.bf16.gmra.mxu1 %v2345_v38  ;;  %v3041_v38 = vld [vmem:[#allocation2 + $0x49] sm:$0xff] }
 0x3eb   :  { %2180 = vmatmul.bf16.gmra.mxu0 %v1951_v36  ;;  %v10981_v45 = vadd.f32 %v2535_v30, %v2232_v17  ;;  %v1839_v46 = vadd.f32 %v1749_v3, %v1444_v41  ;;  %v3497_v36 = vpack.c.bf16 %v3434_v44, %v3433_v59  ;;  %v2647_v30 = vld [vmem:[#allocation2 + $0x48] sm:$0xff]  ;;  %v2648_v3 = vld [vmem:[#allocation2 + $0x50] sm:$0xff] }
 0x3ec   :  { %3208 = vmatmul.bf16.vlgmr.msra.gmra.mxu3 %v3103_v11 }
 0x3ed   :  { %13998 = vst [vmem:[#allocation21_spill] sm:$0xff] %v10981_v45  ;;  %2814 = vmatmul.bf16.vlgmr.msra.gmra.mxu2 %v2709_v32  ;;  %v3104_v32 = vpack.c.bf16 %v3042_v9, %v3041_v38  ;;  %v14006_v45 = vld [vmem:[#allocation25_spill] sm:$0xff]  ;;  %v3436_v38 = vld [vmem:[#allocation2 + $0x52] sm:$0xff] }
 0x3ef   :  { %v10983_v20 = vpop.f32.mrf.mxu1  ;;  %v1752_v49 = vpop.f32.mrf.mxu3 }
 0x3f0   :  { %13999 = vst [vmem:[#allocation22_spill] sm:$0xff] %v10983_v20  ;;  %v2143_v62 = vpop.f32.mrf.mxu0  ;;  %v1357_v16 = vpop.f32.mrf.mxu2  ;;  %v14002_v20 = vld [vmem:[#allocation24_spill] sm:$0xff] }
 0x3f1   :  { %v10985_v47 = vadd.f32 %v2143_v62, %v1839_v46  ;;  %v1445_v14 = vadd.f32 %v1357_v16, %v14001_v39  ;;  %v2710_v62 = vpack.c.bf16 %v2648_v3, %v2647_v30  ;;  %v3044_v30 = vld [vmem:[#allocation2 + $0x69] sm:$0xff]  ;;  %v2649_v3 = vld [vmem:[#allocation2 + $0x60] sm:$0xff] }
 0x3f3   :  { %14000 = vst [vmem:[#allocation44_spill] sm:$0xff] %v10985_v47  ;;  %v1840_v27 = vadd.f32 %v1752_v49, %v1445_v14 }
 0x3f7   :  { %v2540_v17 = vpop.f32.mrf.mxu1  ;;  %v1754_v63 = vpop.f32.mrf.mxu3 }
 0x3f8   :  { %v2146_v41 = vpop.f32.mrf.mxu0  ;;  %v1359_v11 = vpop.f32.mrf.mxu2 }
 0x3f9   :  { %v2234_v8 = vadd.f32 %v2146_v41, %v1840_v27  ;;  %v1446_v46 = vadd.f32 %v1359_v11, %v14002_v20  ;;  %v3435_v41 = vld [vmem:[#allocation2 + $0x4a] sm:$0xff]  ;;  %v3043_v20 = vld [vmem:[#allocation2 + $0x61] sm:$0xff] }
 0x3fb   :  { %3602 = vmatmul.bf16.vlgmr.msra.gmra.mxu0 %v3497_v36  ;;  %v10989_v47 = vadd.f32 %v2540_v17, %v2234_v8  ;;  %v1841_v16 = vadd.f32 %v1754_v63, %v1446_v46  ;;  %v3498_v36 = vpack.c.bf16 %v3436_v38, %v3435_v41  ;;  %v2650_v63 = vld [vmem:[#allocation2 + $0x68] sm:$0xff] }
 0x3fc   :  { %3213 = vmatmul.bf16.gmra.mxu3 %v3104_v32 }
 0x3fd   :  { %14003 = vst [vmem:[#allocation23_spill] sm:$0xff] %v10989_v47  ;;  %2819 = vmatmul.bf16.gmra.mxu2 %v2710_v62  ;;  %v3105_v62 = vpack.c.bf16 %v3044_v30, %v3043_v20  ;;  %v14011_v47 = vld [vmem:[#allocation27_spill] sm:$0xff]  ;;  %v3438_v20 = vld [vmem:[#allocation2 + $0x6a] sm:$0xff] }
 0x3ff   :  { %v10991_v49 = vpop.f32.mrf.mxu1  ;;  %v1757_v14 = vpop.f32.mrf.mxu3 }
 0x400   :  { %14004 = vst [vmem:[#allocation24_spill] sm:$0xff] %v10991_v49  ;;  %v2148_v39 = vpop.f32.mrf.mxu0  ;;  %v1362_v44 = vpop.f32.mrf.mxu2  ;;  %v14007_v49 = vld [vmem:[#allocation26_spill] sm:$0xff] }
 0x401   :  { %v10993_v59 = vadd.f32 %v2148_v39, %v1841_v16  ;;  %v1447_v27 = vadd.f32 %v1362_v44, %v14006_v45  ;;  %v2711_v39 = vpack.c.bf16 %v2650_v63, %v2649_v3  ;;  %v3046_v3 = vld [vmem:[#allocation2 + $0x81] sm:$0xff]  ;;  %v2651_v63 = vld [vmem:[#allocation2 + $0x78] sm:$0xff] }
 0x403   :  { %14005 = vst [vmem:[#allocation45_spill] sm:$0xff] %v10993_v59  ;;  %v1842_v9 = vadd.f32 %v1757_v14, %v1447_v27 }
 0x407   :  { %v2545_v17 = vpop.f32.mrf.mxu1  ;;  %v1759_v11 = vpop.f32.mrf.mxu3 }
 0x408   :  { %v2151_v8 = vpop.f32.mrf.mxu0  ;;  %v1364_v46 = vpop.f32.mrf.mxu2 }
 0x409   :  { %v2236_v32 = vadd.f32 %v2151_v8, %v1842_v9  ;;  %v1448_v16 = vadd.f32 %v1364_v46, %v14007_v49  ;;  %v3437_v8 = vld [vmem:[#allocation2 + $0x62] sm:$0xff]  ;;  %v3045_v49 = vld [vmem:[#allocation2 + $0x79] sm:$0xff] }
 0x40b   :  { %3607 = vmatmul.bf16.gmra.mxu0 %v3498_v36  ;;  %v10997_v59 = vadd.f32 %v2545_v17, %v2236_v32  ;;  %v1843_v45 = vadd.f32 %v1759_v11, %v1448_v16  ;;  %v3499_v36 = vpack.c.bf16 %v3438_v20, %v3437_v8  ;;  %v2652_v11 = vld [vmem:[#allocation2 + $0x80] sm:$0xff]  ;;  %v14014_v20 = vld [vmem:[#allocation29_spill] sm:$0xff] }
 0x40c   :  { %3218 = vmatmul.bf16.gmra.mxu3 %v3105_v62 }
 0x40d   :  { %14008 = vst [vmem:[#allocation25_spill] sm:$0xff] %v10997_v59  ;;  %2824 = vmatmul.bf16.gmra.mxu2 %v2711_v39  ;;  %v3106_v39 = vpack.c.bf16 %v3046_v3, %v3045_v49  ;;  %v3047_v49 = vld [vmem:[#allocation2 + $0x91] sm:$0xff]  ;;  %v3048_v3 = vld [vmem:[#allocation2 + $0x99] sm:$0xff] }
 0x40f   :  { %v10999_v14 = vpop.f32.mrf.mxu1  ;;  %v1762_v27 = vpop.f32.mrf.mxu3 }
 0x410   :  { %14009 = vst [vmem:[#allocation26_spill] sm:$0xff] %v10999_v14  ;;  %v2153_v44 = vpop.f32.mrf.mxu0  ;;  %v1367_v38 = vpop.f32.mrf.mxu2  ;;  %v14012_v14 = vld [vmem:[#allocation28_spill] sm:$0xff] }
 0x411   :  { %v11001_v41 = vadd.f32 %v2153_v44, %v1843_v45  ;;  %v1449_v9 = vadd.f32 %v1367_v38, %v14011_v47  ;;  %v2712_v44 = vpack.c.bf16 %v2652_v11, %v2651_v63  ;;  %v2653_v63 = vld [vmem:[#allocation2 + $0x90] sm:$0xff] }
 0x413   :  { %14010 = vst [vmem:[#allocation46_spill] sm:$0xff] %v11001_v41  ;;  %v1844_v30 = vadd.f32 %v1762_v27, %v1449_v9 }
 0x417   :  { %v2550_v17 = vpop.f32.mrf.mxu1  ;;  %v1764_v46 = vpop.f32.mrf.mxu3 }
 0x418   :  { %v2156_v32 = vpop.f32.mrf.mxu0  ;;  %v1369_v16 = vpop.f32.mrf.mxu2 }
 0x419   :  { %v2238_v62 = vadd.f32 %v2156_v32, %v1844_v30  ;;  %v1450_v45 = vadd.f32 %v1369_v16, %v14012_v14  ;;  %v3440_v30 = vld [vmem:[#allocation2 + $0x82] sm:$0xff]  ;;  %v3107_v16 = vpack.c.bf16 %v3048_v3, %v3047_v49 }
 0x41a   :  { %v3500_v14 = vpack.c.bf16 %v3440_v30, %v3439_v26  ;;  %v3441_v30 = vld [vmem:[#allocation2 + $0x92] sm:$0xff]  ;;  %v2655_v3 = vld [vmem:[#allocation2 + $0xa8] sm:$0xff] }
 0x41b   :  { %3612 = vmatmul.bf16.gmra.mxu0 %v3499_v36  ;;  %v11005_v41 = vadd.f32 %v2550_v17, %v2238_v62  ;;  %v1845_v47 = vadd.f32 %v1764_v46, %v1450_v45  ;;  %v2654_v36 = vld [vmem:[#allocation2 + $0x98] sm:$0xff] }
 0x41c   :  { %3223 = vmatmul.bf16.gmra.mxu3 %v3106_v39  ;;  %v14016_v39 = vld [vmem:[#allocation30_spill] sm:$0xff] }
 0x41d   :  { %2829 = vmatmul.bf16.gmra.mxu2 %v2712_v44  ;;  %v2713_v44 = vpack.c.bf16 %v2654_v36, %v2653_v63 }
 0x41f   :  { %v1767_v38 = vpop.f32.mrf.mxu3 }
 0x420   :  { %v2158_v27 = vpop.f32.mrf.mxu0  ;;  %v1372_v8 = vpop.f32.mrf.mxu2 }
 0x421   :  { %v11007_v9 = vadd.f32 %v2158_v27, %v1845_v47  ;;  %v1451_v59 = vadd.f32 %v1372_v8, %v14014_v20  ;;  %v14018_v8 = vld [vmem:[#allocation31_spill] sm:$0xff] }
 0x423   :  { %14013 = vst [vmem:[#allocation27_spill] sm:$0xff] %v11007_v9  ;;  %v1846_v32 = vadd.f32 %v1767_v38, %v1451_v59  ;;  %v3442_v9 = vld [vmem:[#allocation2 + $0x9a] sm:$0xff] }
 0x424   :  { %v3501_v49 = vpack.c.bf16 %v3442_v9, %v3441_v30  ;;  %v3443_v30 = vld [vmem:[#allocation2 + $0xaa] sm:$0xff] }
 0x427   :  { %v1769_v11 = vpop.f32.mrf.mxu3 }
 0x428   :  { %v2161_v17 = vpop.f32.mrf.mxu0  ;;  %v1374_v62 = vpop.f32.mrf.mxu2 }
 0x429   :  { %v11010_v46 = vadd.f32 %v2161_v17, %v1846_v32  ;;  %v1452_v45 = vadd.f32 %v1374_v62, %v14016_v39  ;;  %v3049_v17 = vld [vmem:[#allocation2 + $0xa9] sm:$0xff]  ;;  %v14020_v39 = vld [vmem:[#allocation32_spill] sm:$0xff] }
 0x42a   :  { %v2656_v62 = vld [vmem:[#allocation2 + $0xb0] sm:$0xff] }
 0x42b   :  { %14015 = vst [vmem:[#allocation28_spill] sm:$0xff] %v11010_v46  ;;  %3617 = vmatmul.bf16.gmra.mxu0 %v3500_v14  ;;  %v1847_v47 = vadd.f32 %v1769_v11, %v1452_v45  ;;  %v3050_v46 = vld [vmem:[#allocation2 + $0xb1] sm:$0xff] }
 0x42c   :  { %3228 = vmatmul.bf16.gmra.mxu3 %v3107_v16  ;;  %v3108_v16 = vpack.c.bf16 %v3050_v46, %v3049_v17  ;;  %v2657_v17 = vld [vmem:[#allocation2 + $0xc0] sm:$0xff] }
 0x42d   :  { %2834 = vmatmul.bf16.gmra.mxu2 %v2713_v44  ;;  %v2714_v44 = vpack.c.bf16 %v2656_v62, %v2655_v3 }
 0x42f   :  { %v1772_v59 = vpop.f32.mrf.mxu3 }
 0x430   :  { %v2163_v27 = vpop.f32.mrf.mxu0  ;;  %v1377_v26 = vpop.f32.mrf.mxu2 }
 0x431   :  { %v11013_v38 = vadd.f32 %v2163_v27, %v1847_v47  ;;  %v1453_v20 = vadd.f32 %v1377_v26, %v14018_v8  ;;  %v14022_v8 = vld [vmem:[#allocation33_spill] sm:$0xff] }
 0x433   :  { %14017 = vst [vmem:[#allocation29_spill] sm:$0xff] %v11013_v38  ;;  %v1848_v32 = vadd.f32 %v1772_v59, %v1453_v20  ;;  %v3444_v38 = vld [vmem:[#allocation2 + $0xb2] sm:$0xff] }
 0x434   :  { %v3502_v46 = vpack.c.bf16 %v3444_v38, %v3443_v30  ;;  %v3445_v30 = vld [vmem:[#allocation2 + $0xc2] sm:$0xff] }
 0x437   :  { %v1774_v14 = vpop.f32.mrf.mxu3 }
 0x438   :  { %v2166_v63 = vpop.f32.mrf.mxu0  ;;  %v1379_v11 = vpop.f32.mrf.mxu2 }
 0x439   :  { %v11016_v36 = vadd.f32 %v2166_v63, %v1848_v32  ;;  %v1454_v45 = vadd.f32 %v1379_v11, %v14020_v39  ;;  %v3051_v63 = vld [vmem:[#allocation2 + $0xc1] sm:$0xff]  ;;  %v14024_v39 = vld [vmem:[#allocation34_spill] sm:$0xff] }
 0x43a   :  { %v2658_v11 = vld [vmem:[#allocation2 + $0xc8] sm:$0xff] }
 0x43b   :  { %14019 = vst [vmem:[#allocation30_spill] sm:$0xff] %v11016_v36  ;;  %3622 = vmatmul.bf16.gmra.mxu0 %v3501_v49  ;;  %v1849_v47 = vadd.f32 %v1774_v14, %v1454_v45  ;;  %v3052_v36 = vld [vmem:[#allocation2 + $0xc9] sm:$0xff] }
 0x43c   :  { %3233 = vmatmul.bf16.gmra.mxu3 %v3108_v16  ;;  %v3109_v16 = vpack.c.bf16 %v3052_v36, %v3051_v63  ;;  %v2659_v63 = vld [vmem:[#allocation2 + $0xd8] sm:$0xff] }
 0x43d   :  { %2839 = vmatmul.bf16.gmra.mxu2 %v2714_v44  ;;  %v2715_v44 = vpack.c.bf16 %v2658_v11, %v2657_v17 }
 0x43f   :  { %v1777_v59 = vpop.f32.mrf.mxu3 }
 0x440   :  { %v2168_v27 = vpop.f32.mrf.mxu0  ;;  %v1382_v9 = vpop.f32.mrf.mxu2 }
 0x441   :  { %v11019_v26 = vadd.f32 %v2168_v27, %v1849_v47  ;;  %v1455_v20 = vadd.f32 %v1382_v9, %v14022_v8  ;;  %v14026_v8 = vld [vmem:[#allocation35_spill] sm:$0xff] }
 0x443   :  { %14021 = vst [vmem:[#allocation31_spill] sm:$0xff] %v11019_v26  ;;  %v1850_v32 = vadd.f32 %v1777_v59, %v1455_v20  ;;  %v3446_v26 = vld [vmem:[#allocation2 + $0xca] sm:$0xff] }
 0x444   :  { %v3503_v36 = vpack.c.bf16 %v3446_v26, %v3445_v30  ;;  %v3447_v30 = vld [vmem:[#allocation2 + $0xda] sm:$0xff] }
 0x447   :  { %v1779_v49 = vpop.f32.mrf.mxu3 }
 0x448   :  { %v2171_v3 = vpop.f32.mrf.mxu0  ;;  %v1384_v14 = vpop.f32.mrf.mxu2 }
 0x449   :  { %v11022_v62 = vadd.f32 %v2171_v3, %v1850_v32  ;;  %v1456_v45 = vadd.f32 %v1384_v14, %v14024_v39  ;;  %v3053_v3 = vld [vmem:[#allocation2 + $0xd9] sm:$0xff] }
 0x44a   :  { %v2660_v14 = vld [vmem:[#allocation2 + $0xe0] sm:$0xff] }
 0x44b   :  { %14023 = vst [vmem:[#allocation32_spill] sm:$0xff] %v11022_v62  ;;  %3627 = vmatmul.bf16.gmra.mxu0 %v3502_v46  ;;  %v1851_v47 = vadd.f32 %v1779_v49, %v1456_v45  ;;  %v3054_v62 = vld [vmem:[#allocation2 + $0xe1] sm:$0xff] }
 0x44c   :  { %3238 = vmatmul.bf16.gmra.mxu3 %v3109_v16  ;;  %v3110_v16 = vpack.c.bf16 %v3054_v62, %v3053_v3  ;;  %v14028_v39 = vld [vmem:[#allocation36_spill] sm:$0xff]  ;;  %v2661_v3 = vld [vmem:[#allocation2 + $0xf0] sm:$0xff] }
 0x44d   :  { %2844 = vmatmul.bf16.gmra.mxu2 %v2715_v44  ;;  %v2716_v44 = vpack.c.bf16 %v2660_v14, %v2659_v63 }
 0x44f   :  { %v1782_v59 = vpop.f32.mrf.mxu3 }
 0x450   :  { %v2173_v27 = vpop.f32.mrf.mxu0  ;;  %v1387_v38 = vpop.f32.mrf.mxu2 }
 0x451   :  { %v11025_v9 = vadd.f32 %v2173_v27, %v1851_v47  ;;  %v1457_v20 = vadd.f32 %v1387_v38, %v14026_v8  ;;  %v14030_v8 = vld [vmem:[#allocation37_spill] sm:$0xff] }
 0x453   :  { %14025 = vst [vmem:[#allocation33_spill] sm:$0xff] %v11025_v9  ;;  %v1852_v32 = vadd.f32 %v1782_v59, %v1457_v20  ;;  %v3448_v9 = vld [vmem:[#allocation2 + $0xe2] sm:$0xff] }
 0x454   :  { %v3504_v62 = vpack.c.bf16 %v3448_v9, %v3447_v30  ;;  %v3449_v30 = vld [vmem:[#allocation2 + $0xf2] sm:$0xff] }
 0x457   :  { %v1784_v46 = vpop.f32.mrf.mxu3 }
 0x458   :  { %v2176_v17 = vpop.f32.mrf.mxu0  ;;  %v1389_v49 = vpop.f32.mrf.mxu2 }
 0x459   :  { %v11028_v11 = vadd.f32 %v2176_v17, %v1852_v32  ;;  %v1458_v45 = vadd.f32 %v1389_v49, %v14028_v39  ;;  %v3055_v17 = vld [vmem:[#allocation2 + $0xf1] sm:$0xff] }
 0x45a   :  { %v2662_v49 = vld [vmem:[#allocation2 + $0xf8] sm:$0xff]  ;;  %v14032_v39 = vld [vmem:[#allocation38_spill] sm:$0xff] }
 0x45b   :  { %14027 = vst [vmem:[#allocation34_spill] sm:$0xff] %v11028_v11  ;;  %3632 = vmatmul.bf16.gmra.mxu0 %v3503_v36  ;;  %v1853_v47 = vadd.f32 %v1784_v46, %v1458_v45  ;;  %v3056_v11 = vld [vmem:[#allocation2 + $0xf9] sm:$0xff] }
 0x45c   :  { %3243 = vmatmul.bf16.gmra.mxu3 %v3110_v16  ;;  %v3111_v16 = vpack.c.bf16 %v3056_v11, %v3055_v17  ;;  %v2663_v17 = vld [vmem:[#allocation2 + $0x108] sm:$0xff] }
 0x45d   :  { %2849 = vmatmul.bf16.gmra.mxu2 %v2716_v44  ;;  %v2717_v44 = vpack.c.bf16 %v2662_v49, %v2661_v3 }
 0x45f   :  { %v1787_v59 = vpop.f32.mrf.mxu3 }
 0x460   :  { %v2178_v27 = vpop.f32.mrf.mxu0  ;;  %v1392_v26 = vpop.f32.mrf.mxu2 }
 0x461   :  { %v11031_v38 = vadd.f32 %v2178_v27, %v1853_v47  ;;  %v1459_v20 = vadd.f32 %v1392_v26, %v14030_v8  ;;  %v14034_v8 = vld [vmem:[#allocation39_spill] sm:$0xff] }
 0x463   :  { %14029 = vst [vmem:[#allocation35_spill] sm:$0xff] %v11031_v38  ;;  %v1854_v32 = vadd.f32 %v1787_v59, %v1459_v20  ;;  %v3450_v38 = vld [vmem:[#allocation2 + $0xfa] sm:$0xff] }
 0x464   :  { %v3505_v11 = vpack.c.bf16 %v3450_v38, %v3449_v30 }
 0x467   :  { %v1789_v36 = vpop.f32.mrf.mxu3 }
 0x468   :  { %v2181_v63 = vpop.f32.mrf.mxu0  ;;  %v1394_v46 = vpop.f32.mrf.mxu2 }
 0x469   :  { %v11034_v14 = vadd.f32 %v2181_v63, %v1854_v32  ;;  %v1460_v45 = vadd.f32 %v1394_v46, %v14032_v39  ;;  %v3057_v63 = vld [vmem:[#allocation2 + $0x109] sm:$0xff] }
 0x46a   :  { %v2664_v46 = vld [vmem:[#allocation2 + $0x110] sm:$0xff] }
 0x46b   :  { %14031 = vst [vmem:[#allocation36_spill] sm:$0xff] %v11034_v14  ;;  %3637 = vmatmul.bf16.gmra.mxu0 %v3504_v62  ;;  %v1855_v47 = vadd.f32 %v1789_v36, %v1460_v45  ;;  %v3058_v14 = vld [vmem:[#allocation2 + $0x111] sm:$0xff]  ;;  %v2718_v45 = vpack.c.bf16 %v2664_v46, %v2663_v17 }
 0x46c   :  { %3248 = vmatmul.bf16.gmra.mxu3 %v3111_v16  ;;  %v3112_v16 = vpack.c.bf16 %v3058_v14, %v3057_v63  ;;  %v2665_v63 = vld [vmem:[#allocation2 + $0x120] sm:$0xff] }
 0x46d   :  { %2854 = vmatmul.bf16.gmra.mxu2 %v2717_v44 }
 0x46f   :  { %v3209_v59 = vpop.f32.mrf.mxu3 }
 0x470   :  { %v2183_v27 = vpop.f32.mrf.mxu0  ;;  %v2815_v9 = vpop.f32.mrf.mxu2 }
 0x471   :  { %v11037_v26 = vadd.f32 %v2183_v27, %v1855_v47  ;;  %v2975_v20 = vadd.f32 %v2815_v9, %v14034_v8  ;;  %v3451_v8 = vld [vmem:[#allocation2 + $0x10a] sm:$0xff] }
 0x473   :  { %14033 = vst [vmem:[#allocation37_spill] sm:$0xff] %v11037_v26  ;;  %v3369_v32 = vadd.f32 %v3209_v59, %v2975_v20  ;;  %v3452_v20 = vld [vmem:[#allocation2 + $0x112] sm:$0xff] }
 0x474   :  { %v3506_v14 = vpack.c.bf16 %v3452_v20, %v3451_v8  ;;  %v3453_v8 = vld [vmem:[#allocation2 + $0x122] sm:$0xff]  ;;  %v3454_v20 = vld [vmem:[#allocation2 + $0x12a] sm:$0xff] }
 0x477   :  { %v3211_v62 = vpop.f32.mrf.mxu3 }
 0x478   :  { %v3603_v3 = vpop.f32.mrf.mxu0  ;;  %v2817_v36 = vpop.f32.mrf.mxu2 }
 0x479   :  { %v11040_v49 = vadd.f32 %v3603_v3, %v3369_v32  ;;  %v2976_v39 = vadd.f32 %v2817_v36, %v10769_v10  ;;  %v3059_v32 = vld [vmem:[#allocation2 + $0x121] sm:$0xff]  ;;  %v3060_v3 = vld [vmem:[#allocation2 + $0x129] sm:$0xff] }
 0x47a   :  { %v2666_v10 = vld [vmem:[#allocation2 + $0x128] sm:$0xff]  ;;  %v3113_v36 = vpack.c.bf16 %v3060_v3, %v3059_v32  ;;  %v3507_v3 = vpack.c.bf16 %v3454_v20, %v3453_v8 }
 0x47b   :  { %14035 = vst [vmem:[#allocation38_spill] sm:$0xff] %v11040_v49  ;;  %3642 = vmatmul.bf16.gmra.mxu0 %v3505_v11  ;;  %v3370_v44 = vadd.f32 %v3211_v62, %v2976_v39  ;;  %v2719_v39 = vpack.c.bf16 %v2666_v10, %v2665_v63  ;;  %v3062_v32 = vld [vmem:[#allocation2 + $0x141] sm:$0xff] }
 0x47c   :  { %3253 = vmatmul.bf16.gmra.mxu3 %v3112_v16  ;;  %v2668_v63 = vld [vmem:[#allocation2 + $0x140] sm:$0xff] }
 0x47d   :  { %2859 = vmatmul.bf16.gmra.mxu2 %v2718_v45  ;;  %v3456_v8 = vld [vmem:[#allocation2 + $0x142] sm:$0xff] }
 0x47f   :  { %v3214_v27 = vpop.f32.mrf.mxu3 }
 0x480   :  { %v3605_v47 = vpop.f32.mrf.mxu0  ;;  %v2820_v38 = vpop.f32.mrf.mxu2 }
 0x481   :  { %v11043_v59 = vadd.f32 %v3605_v47, %v3370_v44  ;;  %v2977_v9 = vadd.f32 %v2820_v38, %v10772_v57  ;;  %v9585_v57 = vld [vmem:[%s13844_s4 + $0x78] sm:$0xff] }
 0x482   :  { %4694 = vmatpush.bf16.msra.mxu1 %v9585_v57 }
 0x483   :  { %14036 = vst [vmem:[#allocation39_spill] sm:$0xff] %v11043_v59  ;;  %v3371_v30 = vadd.f32 %v3214_v27, %v2977_v9 }
 0x487   :  { %v3216_v11 = vpop.f32.mrf.mxu3 }
 0x488   :  { %v3608_v17 = vpop.f32.mrf.mxu0  ;;  %v2822_v62 = vpop.f32.mrf.mxu2 }
 0x489   :  { %v11046_v46 = vadd.f32 %v3608_v17, %v3371_v30  ;;  %v2978_v16 = vadd.f32 %v2822_v62, %v10775_v55  ;;  %v3061_v30 = vld [vmem:[#allocation2 + $0x139] sm:$0xff] }
 0x48b   :  { %14037 = vst [vmem:[#allocation47_spill] sm:$0xff] %v11046_v46  ;;  %3647 = vmatmul.bf16.gmra.mxu0 %v3506_v14  ;;  %v3372_v45 = vadd.f32 %v3216_v11, %v2978_v16  ;;  %v2667_v14 = vld [vmem:[#allocation2 + $0x138] sm:$0xff] }
 0x48c   :  { %3258 = vmatmul.bf16.gmra.mxu3 %v3113_v36  ;;  %v3114_v36 = vpack.c.bf16 %v3062_v32, %v3061_v30  ;;  %v2669_v32 = vld [vmem:[#allocation2 + $0x150] sm:$0xff] }
 0x48d   :  { %2864 = vmatmul.bf16.gmra.mxu2 %v2719_v39  ;;  %v2720_v39 = vpack.c.bf16 %v2668_v63, %v2667_v14 }
 0x48f   :  { %v3219_v47 = vpop.f32.mrf.mxu3 }
 0x490   :  { %v3610_v44 = vpop.f32.mrf.mxu0  ;;  %v2825_v38 = vpop.f32.mrf.mxu2 }
 0x491   :  { %v11052_v27 = vadd.f32 %v3610_v44, %v3372_v45  ;;  %v2979_v9 = vadd.f32 %v2825_v38, %v10781_v50 }
 0x493   :  { %14038 = vst [vmem:[#allocation48_spill] sm:$0xff] %v11052_v27  ;;  %v3373_v55 = vadd.f32 %v3219_v47, %v2979_v9  ;;  %v3455_v9 = vld [vmem:[#allocation2 + $0x13a] sm:$0xff] }
 0x494   :  { %v3508_v30 = vpack.c.bf16 %v3456_v8, %v3455_v9  ;;  %v3458_v9 = vld [vmem:[#allocation2 + $0x15a] sm:$0xff] }
 0x497   :  { %v3221_v17 = vpop.f32.mrf.mxu3 }
 0x498   :  { %v3613_v10 = vpop.f32.mrf.mxu0  ;;  %v2827_v62 = vpop.f32.mrf.mxu2 }
 0x499   :  { %v11055_v11 = vadd.f32 %v3613_v10, %v3373_v55  ;;  %v2980_v16 = vadd.f32 %v2827_v62, %v10790_v25  ;;  %v3063_v55 = vld [vmem:[#allocation2 + $0x151] sm:$0xff]  ;;  %v3064_v10 = vld [vmem:[#allocation2 + $0x159] sm:$0xff] }
 0x49a   :  { %v2670_v25 = vld [vmem:[#allocation2 + $0x158] sm:$0xff]  ;;  %v3115_v62 = vpack.c.bf16 %v3064_v10, %v3063_v55  ;;  %v2671_v10 = vld [vmem:[#allocation2 + $0x168] sm:$0xff] }
 0x49b   :  { %14039 = vst [vmem:[#allocation49_spill] sm:$0xff] %v11055_v11  ;;  %3652 = vmatmul.bf16.gmra.mxu0 %v3507_v3  ;;  %v3374_v57 = vadd.f32 %v3221_v17, %v2980_v16  ;;  %v2721_v16 = vpack.c.bf16 %v2670_v25, %v2669_v32 }
 0x49c   :  { %3263 = vmatmul.bf16.gmra.mxu3 %v3114_v36 }
 0x49d   :  { %2869 = vmatmul.bf16.gmra.mxu2 %v2720_v39 }
 0x49f   :  { %v3224_v45 = vpop.f32.mrf.mxu3 }
 0x4a0   :  { %v3615_v50 = vpop.f32.mrf.mxu0  ;;  %v2830_v47 = vpop.f32.mrf.mxu2 }
 0x4a1   :  { %v11058_v44 = vadd.f32 %v3615_v50, %v3374_v57  ;;  %v2981_v38 = vadd.f32 %v2830_v47, %v10793_v40 }
 0x4a3   :  { %14040 = vst [vmem:[#allocation50_spill] sm:$0xff] %v11058_v44  ;;  %v3375_v20 = vadd.f32 %v3224_v45, %v2981_v38  ;;  %v3457_v38 = vld [vmem:[#allocation2 + $0x152] sm:$0xff] }
 0x4a4   :  { %v3509_v55 = vpack.c.bf16 %v3458_v9, %v3457_v38  ;;  %v3459_v9 = vld [vmem:[#allocation2 + $0x16a] sm:$0xff] }
 0x4a7   :  { %v3226_v3 = vpop.f32.mrf.mxu3 }
 0x4a8   :  { %v3618_v14 = vpop.f32.mrf.mxu0  ;;  %v2832_v17 = vpop.f32.mrf.mxu2 }
 0x4a9   :  { %v11061_v63 = vadd.f32 %v3618_v14, %v3375_v20  ;;  %v2982_v36 = vadd.f32 %v2832_v17, %v10796_v5  ;;  %v3065_v20 = vld [vmem:[#allocation2 + $0x169] sm:$0xff]  ;;  %v3066_v14 = vld [vmem:[#allocation2 + $0x171] sm:$0xff] }
 0x4aa   :  { %v2672_v5 = vld [vmem:[#allocation2 + $0x170] sm:$0xff]  ;;  %v3116_v17 = vpack.c.bf16 %v3066_v14, %v3065_v20  ;;  %v3067_v14 = vld [vmem:[#allocation2 + $0x181] sm:$0xff] }
 0x4ab   :  { %14041 = vst [vmem:[#allocation51_spill] sm:$0xff] %v11061_v63  ;;  %3657 = vmatmul.bf16.gmra.mxu0 %v3508_v30  ;;  %v3376_v39 = vadd.f32 %v3226_v3, %v2982_v36  ;;  %v2722_v36 = vpack.c.bf16 %v2672_v5, %v2671_v10  ;;  %v2673_v5 = vld [vmem:[#allocation2 + $0x180] sm:$0xff] }
 0x4ac   :  { %3268 = vmatmul.bf16.gmra.mxu3 %v3115_v62 }
 0x4ad   :  { %2874 = vmatmul.bf16.gmra.mxu2 %v2721_v16 }
 0x4af   :  { %v3229_v57 = vpop.f32.mrf.mxu3 }
 0x4b0   :  { %v3620_v40 = vpop.f32.mrf.mxu0  ;;  %v2835_v45 = vpop.f32.mrf.mxu2 }
 0x4b1   :  { %v11064_v50 = vadd.f32 %v3620_v40, %v3376_v39  ;;  %v2983_v47 = vadd.f32 %v2835_v45, %v10799_v37  ;;  %v241_v37 = vld [vmem:[%s13840_s0 + $0x198] sm:$0xff]  ;;  %v242_v39 = vld [vmem:[%s13840_s0 + $0x1a0] sm:$0xff]  ;;  %v243_v40 = vld [vmem:[%s13840_s0 + $0x1a8] sm:$0x3] }
 0x4b2   :  { %351 = vst.msk [vmem:[#allocation2 + $0x198] sm:$0xff] %vm298_vm0, %v241_v37 }
 0x4b3   :  { %v3377_v8 = vadd.f32 %v3229_v57, %v2983_v47  ;;  %352 = vst.msk [vmem:[#allocation2 + $0x1a0] sm:$0xff] %vm298_vm0, %v242_v39 }
 0x4b4   :  { %353 = vst.msk [vmem:[#allocation2 + $0x1a8] sm:$0x3] %vm301_vm1, %v243_v40 }
 0x4b7   :  { %v3231_v30 = vpop.f32.mrf.mxu3 }
 0x4b8   :  { %v3623_v32 = vpop.f32.mrf.mxu0  ;;  %v2837_v3 = vpop.f32.mrf.mxu2 }
 0x4b9   :  { %v11067_v25 = vadd.f32 %v3623_v32, %v3377_v8  ;;  %v2984_v62 = vadd.f32 %v2837_v3, %v10814_v13  ;;  %v3460_v8 = vld [vmem:[#allocation2 + $0x172] sm:$0xff]  ;;  %v2674_v32 = vld [vmem:[#allocation2 + $0x188] sm:$0xff] }
 0x4ba   :  { %v3510_v10 = vpack.c.bf16 %v3460_v8, %v3459_v9  ;;  %v2723_v37 = vpack.c.bf16 %v2674_v32, %v2673_v5  ;;  %v3461_v9 = vld [vmem:[#allocation2 + $0x182] sm:$0xff]  ;;  %v3462_v8 = vld [vmem:[#allocation2 + $0x18a] sm:$0xff] }
 0x4bb   :  { %3662 = vmatmul.bf16.gmra.mxu0 %v3509_v55  ;;  %v3378_v16 = vadd.f32 %v3231_v30, %v2984_v62  ;;  %v3068_v55 = vld [vmem:[#allocation2 + $0x189] sm:$0xff]  ;;  %v2676_v5 = vld [vmem:[#allocation2 + $0x1a0] sm:$0xff] }
 0x4bc   :  { %3273 = vmatmul.bf16.gmra.mxu3 %v3116_v17 }
 0x4bd   :  { %2879 = vmatmul.bf16.gmra.mxu2 %v2722_v36  ;;  %v3117_v36 = vpack.c.bf16 %v3068_v55, %v3067_v14  ;;  %v3070_v14 = vld [vmem:[#allocation2 + $0x1a1] sm:$0xff]  ;;  %v3511_v55 = vpack.c.bf16 %v3462_v8, %v3461_v9 }
 0x4be   :  { %v3464_v9 = vld [vmem:[#allocation2 + $0x1a2] sm:$0xff] }
 0x4bf   :  { %v3234_v57 = vpop.f32.mrf.mxu3 }
 0x4c0   :  { %v3625_v13 = vpop.f32.mrf.mxu0  ;;  %v2840_v47 = vpop.f32.mrf.mxu2 }
 0x4c1   :  { %v11081_v45 = vadd.f32 %v3625_v13, %v3378_v16  ;;  %v2985_v38 = vadd.f32 %v2840_v47, %v10817_v6  ;;  %v9584_v6 = vld [vmem:[%s13844_s4 + $0x70] sm:$0xff] }
 0x4c2   :  { %4695 = vmatpush.bf16.msra.mxu1 %v9584_v6 }
 0x4c3   :  { %v3379_v20 = vadd.f32 %v3234_v57, %v2985_v38 }
 0x4c7   :  { %v3236_v3 = vpop.f32.mrf.mxu3 }
 0x4c8   :  { %v3628_v30 = vpop.f32.mrf.mxu0  ;;  %v2842_v62 = vpop.f32.mrf.mxu2 }
 0x4c9   :  { %v11085_v17 = vadd.f32 %v3628_v30, %v3379_v20  ;;  %v2986_v16 = vadd.f32 %v2842_v62, %v10821_v15  ;;  %v3069_v20 = vld [vmem:[#allocation2 + $0x199] sm:$0xff] }
 0x4cb   :  { %14042 = vst [vmem:[#allocation52_spill] sm:$0xff] %v11085_v17  ;;  %3667 = vmatmul.bf16.gmra.mxu0 %v3510_v10  ;;  %v3380_v39 = vadd.f32 %v3236_v3, %v2986_v16  ;;  %v2675_v10 = vld [vmem:[#allocation2 + $0x198] sm:$0xff] }
 0x4cc   :  { %3278 = vmatmul.bf16.gmra.mxu3 %v3117_v36  ;;  %v3118_v36 = vpack.c.bf16 %v3070_v14, %v3069_v20  ;;  %v2677_v14 = vld [vmem:[#allocation2 + $0x1e0] sm:$0xff] }
 0x4cd   :  { %2884 = vmatmul.bf16.gmra.mxu2 %v2723_v37  ;;  %v2724_v37 = vpack.c.bf16 %v2676_v5, %v2675_v10 }
 0x4cf   :  { %v3239_v13 = vpop.f32.mrf.mxu3 }
 0x4d0   :  { %v3630_v40 = vpop.f32.mrf.mxu0  ;;  %v2845_v47 = vpop.f32.mrf.mxu2 }
 0x4d1   :  { %v11091_v57 = vadd.f32 %v3630_v40, %v3380_v39  ;;  %v2987_v38 = vadd.f32 %v2845_v47, %v10827_v7 }
 0x4d3   :  { %14043 = vst [vmem:[#allocation53_spill] sm:$0xff] %v11091_v57  ;;  %v3381_v15 = vadd.f32 %v3239_v13, %v2987_v38  ;;  %v3463_v38 = vld [vmem:[#allocation2 + $0x19a] sm:$0xff] }
 0x4d4   :  { %v3512_v20 = vpack.c.bf16 %v3464_v9, %v3463_v38  ;;  %v3466_v38 = vld [vmem:[#allocation2 + $0x1ea] sm:$0xff] }
 0x4d7   :  { %v3241_v30 = vpop.f32.mrf.mxu3 }
 0x4d8   :  { %v3633_v32 = vpop.f32.mrf.mxu0  ;;  %v2847_v62 = vpop.f32.mrf.mxu2 }
 0x4d9   :  { %v11094_v3 = vadd.f32 %v3633_v32, %v3381_v15  ;;  %v2988_v16 = vadd.f32 %v2847_v62, %v10836_v24  ;;  %v3071_v15 = vld [vmem:[#allocation2 + $0x1e1] sm:$0xff]  ;;  %v3072_v32 = vld [vmem:[#allocation2 + $0x1e9] sm:$0xff] }
 0x4da   :  { %v2678_v24 = vld [vmem:[#allocation2 + $0x1e8] sm:$0xff]  ;;  %v3119_v62 = vpack.c.bf16 %v3072_v32, %v3071_v15  ;;  %v2679_v32 = vld [vmem:[#allocation2 + $0x1f8] sm:$0xff] }
 0x4db   :  { %14044 = vst [vmem:[#allocation54_spill] sm:$0xff] %v11094_v3  ;;  %3672 = vmatmul.bf16.gmra.mxu0 %v3511_v55  ;;  %v3382_v6 = vadd.f32 %v3241_v30, %v2988_v16  ;;  %v2725_v16 = vpack.c.bf16 %v2678_v24, %v2677_v14 }
 0x4dc   :  { %3283 = vmatmul.bf16.gmra.mxu3 %v3118_v36 }
 0x4dd   :  { %2889 = vmatmul.bf16.gmra.mxu2 %v2724_v37 }
 0x4df   :  { %v3244_v39 = vpop.f32.mrf.mxu3 }
 0x4e0   :  { %v3635_v7 = vpop.f32.mrf.mxu0  ;;  %v2850_v13 = vpop.f32.mrf.mxu2 }
 0x4e1   :  { %v11097_v40 = vadd.f32 %v3635_v7, %v3382_v6  ;;  %v2989_v47 = vadd.f32 %v2850_v13, %v10839_v22 }
 0x4e3   :  { %14045 = vst [vmem:[#allocation55_spill] sm:$0xff] %v11097_v40  ;;  %v3383_v8 = vadd.f32 %v3244_v39, %v2989_v47  ;;  %v3465_v47 = vld [vmem:[#allocation2 + $0x1e2] sm:$0xff] }
 0x4e4   :  { %v3513_v15 = vpack.c.bf16 %v3466_v38, %v3465_v47  ;;  %v3468_v47 = vld [vmem:[#allocation2 + $0x202] sm:$0xff] }
 0x4e7   :  { %v3246_v55 = vpop.f32.mrf.mxu3 }
 0x4e8   :  { %v3638_v10 = vpop.f32.mrf.mxu0  ;;  %v2852_v30 = vpop.f32.mrf.mxu2 }
 0x4e9   :  { %v11100_v5 = vadd.f32 %v3638_v10, %v3383_v8  ;;  %v2990_v36 = vadd.f32 %v2852_v30, %v10842_v53  ;;  %v3073_v8 = vld [vmem:[#allocation2 + $0x1f9] sm:$0xff]  ;;  %v3074_v10 = vld [vmem:[#allocation2 + $0x201] sm:$0xff] }
 0x4ea   :  { %v2680_v53 = vld [vmem:[#allocation2 + $0x200] sm:$0xff]  ;;  %v3120_v30 = vpack.c.bf16 %v3074_v10, %v3073_v8  ;;  %v2681_v10 = vld [vmem:[#allocation2 + $0x210] sm:$0xff] }
 0x4eb   :  { %14046 = vst [vmem:[#allocation56_spill] sm:$0xff] %v11100_v5  ;;  %3677 = vmatmul.bf16.gmra.mxu0 %v3512_v20  ;;  %v3384_v37 = vadd.f32 %v3246_v55, %v2990_v36  ;;  %v2726_v36 = vpack.c.bf16 %v2680_v53, %v2679_v32 }
 0x4ec   :  { %3288 = vmatmul.bf16.gmra.mxu3 %v3119_v62 }
 0x4ed   :  { %2894 = vmatmul.bf16.gmra.mxu2 %v2725_v16 }
 0x4ef   :  { %v3249_v6 = vpop.f32.mrf.mxu3 }
 0x4f0   :  { %v3640_v22 = vpop.f32.mrf.mxu0  ;;  %v2855_v39 = vpop.f32.mrf.mxu2 }
 0x4f1   :  { %v11103_v7 = vadd.f32 %v3640_v22, %v3384_v37  ;;  %v2991_v13 = vadd.f32 %v2855_v39, %v10845_v31 }
 0x4f3   :  { %14047 = vst [vmem:[#allocation57_spill] sm:$0xff] %v11103_v7  ;;  %v3385_v9 = vadd.f32 %v3249_v6, %v2991_v13  ;;  %v3467_v13 = vld [vmem:[#allocation2 + $0x1fa] sm:$0xff] }
 0x4f4   :  { %v3514_v8 = vpack.c.bf16 %v3468_v47, %v3467_v13  ;;  %v3469_v13 = vld [vmem:[#allocation2 + $0x212] sm:$0xff]  ;;  %v3470_v47 = vld [vmem:[#allocation2 + $0x21a] sm:$0xff] }
 0x4f7   :  { %v3251_v20 = vpop.f32.mrf.mxu3 }
 0x4f8   :  { %v3643_v14 = vpop.f32.mrf.mxu0  ;;  %v2857_v55 = vpop.f32.mrf.mxu2 }
 0x4f9   :  { %v11106_v24 = vadd.f32 %v3643_v14, %v3385_v9  ;;  %v2992_v62 = vadd.f32 %v2857_v55, %v10848_v43  ;;  %v3075_v9 = vld [vmem:[#allocation2 + $0x211] sm:$0xff]  ;;  %v3076_v14 = vld [vmem:[#allocation2 + $0x219] sm:$0xff] }
 0x4fa   :  { %v2682_v43 = vld [vmem:[#allocation2 + $0x218] sm:$0xff]  ;;  %v3121_v55 = vpack.c.bf16 %v3076_v14, %v3075_v9  ;;  %v3515_v14 = vpack.c.bf16 %v3470_v47, %v3469_v13 }
 0x4fb   :  { %14048 = vst [vmem:[#allocation58_spill] sm:$0xff] %v11106_v24  ;;  %3682 = vmatmul.bf16.gmra.mxu0 %v3513_v15  ;;  %v3386_v16 = vadd.f32 %v3251_v20, %v2992_v62  ;;  %v2727_v62 = vpack.c.bf16 %v2682_v43, %v2681_v10  ;;  %v3078_v9 = vld [vmem:[#allocation2 + $0x231] sm:$0xff] }
 0x4fc   :  { %3293 = vmatmul.bf16.gmra.mxu3 %v3120_v30  ;;  %v2684_v10 = vld [vmem:[#allocation2 + $0x230] sm:$0xff] }
 0x4fd   :  { %2899 = vmatmul.bf16.gmra.mxu2 %v2726_v36  ;;  %v3472_v13 = vld [vmem:[#allocation2 + $0x232] sm:$0xff] }
 0x4ff   :  { %v3254_v37 = vpop.f32.mrf.mxu3 }
 0x500   :  { %v3645_v31 = vpop.f32.mrf.mxu0  ;;  %v2860_v6 = vpop.f32.mrf.mxu2 }
 0x501   :  { %v11109_v22 = vadd.f32 %v3645_v31, %v3386_v16  ;;  %v2993_v39 = vadd.f32 %v2860_v6, %v10851_v12  ;;  %v9583_v12 = vld [vmem:[%s13844_s4 + $0x68] sm:$0xff] }
 0x502   :  { %4696 = vmatpush.bf16.msra.mxu1 %v9583_v12 }
 0x503   :  { %14049 = vst [vmem:[#allocation59_spill] sm:$0xff] %v11109_v22  ;;  %v3387_v38 = vadd.f32 %v3254_v37, %v2993_v39 }
 0x507   :  { %v3256_v15 = vpop.f32.mrf.mxu3 }
 0x508   :  { %v3648_v32 = vpop.f32.mrf.mxu0  ;;  %v2862_v20 = vpop.f32.mrf.mxu2 }
 0x509   :  { %v11112_v53 = vadd.f32 %v3648_v32, %v3387_v38  ;;  %v2994_v30 = vadd.f32 %v2862_v20, %v10854_v34  ;;  %v3077_v38 = vld [vmem:[#allocation2 + $0x229] sm:$0xff] }
 0x50b   :  { %14050 = vst [vmem:[#allocation60_spill] sm:$0xff] %v11112_v53  ;;  %3687 = vmatmul.bf16.gmra.mxu0 %v3514_v8  ;;  %v3388_v36 = vadd.f32 %v3256_v15, %v2994_v30  ;;  %v2683_v8 = vld [vmem:[#allocation2 + $0x228] sm:$0xff] }
 0x50c   :  { %3298 = vmatmul.bf16.gmra.mxu3 %v3121_v55  ;;  %v3122_v55 = vpack.c.bf16 %v3078_v9, %v3077_v38  ;;  %v2685_v9 = vld [vmem:[#allocation2 + $0x240] sm:$0xff] }
 0x50d   :  { %2904 = vmatmul.bf16.gmra.mxu2 %v2727_v62  ;;  %v2728_v62 = vpack.c.bf16 %v2684_v10, %v2683_v8 }
 0x50f   :  { %v3259_v31 = vpop.f32.mrf.mxu3 }
 0x510   :  { %v3650_v16 = vpop.f32.mrf.mxu0  ;;  %v2865_v6 = vpop.f32.mrf.mxu2 }
 0x511   :  { %v11118_v37 = vadd.f32 %v3650_v16, %v3388_v36  ;;  %v2995_v39 = vadd.f32 %v2865_v6, %v10860_v35 }
 0x513   :  { %14051 = vst [vmem:[#allocation61_spill] sm:$0xff] %v11118_v37  ;;  %v3389_v34 = vadd.f32 %v3259_v31, %v2995_v39  ;;  %v3471_v39 = vld [vmem:[#allocation2 + $0x22a] sm:$0xff] }
 0x514   :  { %v3516_v38 = vpack.c.bf16 %v3472_v13, %v3471_v39  ;;  %v3474_v39 = vld [vmem:[#allocation2 + $0x24a] sm:$0xff] }
 0x517   :  { %v3261_v32 = vpop.f32.mrf.mxu3 }
 0x518   :  { %v3653_v43 = vpop.f32.mrf.mxu0  ;;  %v2867_v20 = vpop.f32.mrf.mxu2 }
 0x519   :  { %v11121_v15 = vadd.f32 %v3653_v43, %v3389_v34  ;;  %v2996_v30 = vadd.f32 %v2867_v20, %v10869_v29  ;;  %v3079_v34 = vld [vmem:[#allocation2 + $0x241] sm:$0xff]  ;;  %v3080_v43 = vld [vmem:[#allocation2 + $0x249] sm:$0xff] }
 0x51a   :  { %v2686_v29 = vld [vmem:[#allocation2 + $0x248] sm:$0xff]  ;;  %v3123_v20 = vpack.c.bf16 %v3080_v43, %v3079_v34  ;;  %v2687_v43 = vld [vmem:[#allocation2 + $0x258] sm:$0xff] }
 0x51b   :  { %14052 = vst [vmem:[#allocation62_spill] sm:$0xff] %v11121_v15  ;;  %3692 = vmatmul.bf16.gmra.mxu0 %v3515_v14  ;;  %v3390_v12 = vadd.f32 %v3261_v32, %v2996_v30  ;;  %v2729_v30 = vpack.c.bf16 %v2686_v29, %v2685_v9 }
 0x51c   :  { %3303 = vmatmul.bf16.gmra.mxu3 %v3122_v55 }
 0x51d   :  { %2909 = vmatmul.bf16.gmra.mxu2 %v2728_v62 }
 0x51f   :  { %v3264_v36 = vpop.f32.mrf.mxu3 }
 0x520   :  { %v3655_v35 = vpop.f32.mrf.mxu0  ;;  %v2870_v31 = vpop.f32.mrf.mxu2 }
 0x521   :  { %v11124_v16 = vadd.f32 %v3655_v35, %v3390_v12  ;;  %v2997_v6 = vadd.f32 %v2870_v31, %v10872_v0 }
 0x523   :  { %14053 = vst [vmem:[#allocation63_spill] sm:$0xff] %v11124_v16  ;;  %v3391_v47 = vadd.f32 %v3264_v36, %v2997_v6  ;;  %v3473_v6 = vld [vmem:[#allocation2 + $0x242] sm:$0xff] }
 0x524   :  { %v3517_v34 = vpack.c.bf16 %v3474_v39, %v3473_v6  ;;  %v3476_v6 = vld [vmem:[#allocation2 + $0x262] sm:$0xff] }
 0x527   :  { %v3266_v14 = vpop.f32.mrf.mxu3 }
 0x528   :  { %v3658_v8 = vpop.f32.mrf.mxu0  ;;  %v2872_v32 = vpop.f32.mrf.mxu2 }
 0x529   :  { %v11127_v10 = vadd.f32 %v3658_v8, %v3391_v47  ;;  %v2998_v55 = vadd.f32 %v2872_v32, %v10875_v58  ;;  %v3081_v47 = vld [vmem:[#allocation2 + $0x259] sm:$0xff]  ;;  %v3082_v8 = vld [vmem:[#allocation2 + $0x261] sm:$0xff] }
 0x52a   :  { %v2688_v58 = vld [vmem:[#allocation2 + $0x260] sm:$0xff]  ;;  %v3124_v32 = vpack.c.bf16 %v3082_v8, %v3081_v47  ;;  %v2689_v8 = vld [vmem:[#allocation2 + $0x270] sm:$0xff] }
 0x52b   :  { %14054 = vst [vmem:[#allocation64_spill] sm:$0xff] %v11127_v10  ;;  %3697 = vmatmul.bf16.gmra.mxu0 %v3516_v38  ;;  %v3392_v62 = vadd.f32 %v3266_v14, %v2998_v55  ;;  %v2730_v55 = vpack.c.bf16 %v2688_v58, %v2687_v43 }
 0x52c   :  { %3308 = vmatmul.bf16.gmra.mxu3 %v3123_v20 }
 0x52d   :  { %2914 = vmatmul.bf16.gmra.mxu2 %v2729_v30 }
 0x52f   :  { %v3269_v12 = vpop.f32.mrf.mxu3 }
 0x530   :  { %v3660_v0 = vpop.f32.mrf.mxu0  ;;  %v2875_v36 = vpop.f32.mrf.mxu2 }
 0x531   :  { %v11130_v35 = vadd.f32 %v3660_v0, %v3392_v62  ;;  %v2999_v31 = vadd.f32 %v2875_v36, %v10878_v61 }
 0x533   :  { %14055 = vst [vmem:[#allocation65_spill] sm:$0xff] %v11130_v35  ;;  %v3393_v13 = vadd.f32 %v3269_v12, %v2999_v31  ;;  %v3475_v31 = vld [vmem:[#allocation2 + $0x25a] sm:$0xff] }
 0x534   :  { %v3518_v47 = vpack.c.bf16 %v3476_v6, %v3475_v31  ;;  %v3477_v31 = vld [vmem:[#allocation2 + $0x272] sm:$0xff]  ;;  %v3478_v6 = vld [vmem:[#allocation2 + $0x27a] sm:$0xff] }
 0x537   :  { %v3271_v38 = vpop.f32.mrf.mxu3 }
 0x538   :  { %v3663_v9 = vpop.f32.mrf.mxu0  ;;  %v2877_v14 = vpop.f32.mrf.mxu2 }
 0x539   :  { %v11133_v29 = vadd.f32 %v3663_v9, %v3393_v13  ;;  %v3000_v20 = vadd.f32 %v2877_v14, %v10881_v28  ;;  %v3083_v13 = vld [vmem:[#allocation2 + $0x271] sm:$0xff]  ;;  %v3084_v9 = vld [vmem:[#allocation2 + $0x279] sm:$0xff] }
 0x53a   :  { %v2690_v28 = vld [vmem:[#allocation2 + $0x278] sm:$0xff]  ;;  %v3125_v14 = vpack.c.bf16 %v3084_v9, %v3083_v13  ;;  %v3519_v9 = vpack.c.bf16 %v3478_v6, %v3477_v31 }
 0x53b   :  { %14056 = vst [vmem:[#allocation66_spill] sm:$0xff] %v11133_v29  ;;  %3702 = vmatmul.bf16.gmra.mxu0 %v3517_v34  ;;  %v3394_v30 = vadd.f32 %v3271_v38, %v3000_v20  ;;  %v2731_v20 = vpack.c.bf16 %v2690_v28, %v2689_v8  ;;  %v3086_v13 = vld [vmem:[#allocation2 + $0x291] sm:$0xff] }
 0x53c   :  { %3313 = vmatmul.bf16.gmra.mxu3 %v3124_v32  ;;  %v2692_v8 = vld [vmem:[#allocation2 + $0x290] sm:$0xff] }
 0x53d   :  { %2919 = vmatmul.bf16.gmra.mxu2 %v2730_v55  ;;  %v3480_v31 = vld [vmem:[#allocation2 + $0x292] sm:$0xff] }
 0x53f   :  { %v3274_v62 = vpop.f32.mrf.mxu3 }
 0x540   :  { %v3665_v61 = vpop.f32.mrf.mxu0  ;;  %v2880_v12 = vpop.f32.mrf.mxu2 }
 0x541   :  { %v11136_v0 = vadd.f32 %v3665_v61, %v3394_v30  ;;  %v3001_v36 = vadd.f32 %v2880_v12, %v10884_v33  ;;  %v9582_v33 = vld [vmem:[%s13844_s4 + $0x60] sm:$0xff] }
 0x542   :  { %4697 = vmatpush.bf16.msra.mxu1 %v9582_v33 }
 0x543   :  { %14057 = vst [vmem:[#allocation67_spill] sm:$0xff] %v11136_v0  ;;  %v3395_v39 = vadd.f32 %v3274_v62, %v3001_v36 }
 0x547   :  { %v3276_v34 = vpop.f32.mrf.mxu3 }
 0x548   :  { %v3668_v43 = vpop.f32.mrf.mxu0  ;;  %v2882_v38 = vpop.f32.mrf.mxu2 }
 0x549   :  { %v11139_v58 = vadd.f32 %v3668_v43, %v3395_v39  ;;  %v3002_v32 = vadd.f32 %v2882_v38, %v10887_v48  ;;  %v3085_v39 = vld [vmem:[#allocation2 + $0x289] sm:$0xff] }
 0x54b   :  { %14058 = vst [vmem:[#allocation68_spill] sm:$0xff] %v11139_v58  ;;  %3707 = vmatmul.bf16.gmra.mxu0 %v3518_v47  ;;  %v3396_v55 = vadd.f32 %v3276_v34, %v3002_v32  ;;  %v2691_v47 = vld [vmem:[#allocation2 + $0x288] sm:$0xff] }
 0x54c   :  { %3318 = vmatmul.bf16.gmra.mxu3 %v3125_v14  ;;  %v3126_v14 = vpack.c.bf16 %v3086_v13, %v3085_v39  ;;  %v2693_v13 = vld [vmem:[#allocation2 + $0x2a0] sm:$0xff] }
 0x54d   :  { %2924 = vmatmul.bf16.gmra.mxu2 %v2731_v20  ;;  %v2732_v20 = vpack.c.bf16 %v2692_v8, %v2691_v47 }
 0x54f   :  { %v3279_v61 = vpop.f32.mrf.mxu3 }
 0x550   :  { %v3670_v30 = vpop.f32.mrf.mxu0  ;;  %v2885_v12 = vpop.f32.mrf.mxu2 }
 0x551   :  { %v11145_v62 = vadd.f32 %v3670_v30, %v3396_v55  ;;  %v3003_v36 = vadd.f32 %v2885_v12, %v10893_v2 }
 0x553   :  { %14059 = vst [vmem:[#allocation69_spill] sm:$0xff] %v11145_v62  ;;  %v3397_v48 = vadd.f32 %v3279_v61, %v3003_v36  ;;  %v3479_v36 = vld [vmem:[#allocation2 + $0x28a] sm:$0xff] }
 0x554   :  { %v3520_v39 = vpack.c.bf16 %v3480_v31, %v3479_v36  ;;  %v3482_v36 = vld [vmem:[#allocation2 + $0x2aa] sm:$0xff] }
 0x557   :  { %v3281_v43 = vpop.f32.mrf.mxu3 }
 0x558   :  { %v3673_v28 = vpop.f32.mrf.mxu0  ;;  %v2887_v38 = vpop.f32.mrf.mxu2 }
 0x559   :  { %v11148_v34 = vadd.f32 %v3673_v28, %v3397_v48  ;;  %v3004_v32 = vadd.f32 %v2887_v38, %v10902_v4  ;;  %v3087_v48 = vld [vmem:[#allocation2 + $0x2a1] sm:$0xff]  ;;  %v3088_v28 = vld [vmem:[#allocation2 + $0x2a9] sm:$0xff] }
 0x55a   :  { %v2694_v4 = vld [vmem:[#allocation2 + $0x2a8] sm:$0xff]  ;;  %v3127_v38 = vpack.c.bf16 %v3088_v28, %v3087_v48  ;;  %v2695_v28 = vld [vmem:[#allocation2 + $0x2b8] sm:$0xff] }
 0x55b   :  { %14060 = vst [vmem:[#allocation70_spill] sm:$0xff] %v11148_v34  ;;  %3712 = vmatmul.bf16.gmra.mxu0 %v3519_v9  ;;  %v3398_v33 = vadd.f32 %v3281_v43, %v3004_v32  ;;  %v2733_v32 = vpack.c.bf16 %v2694_v4, %v2693_v13 }
 0x55c   :  { %3323 = vmatmul.bf16.gmra.mxu3 %v3126_v14 }
 0x55d   :  { %2929 = vmatmul.bf16.gmra.mxu2 %v2732_v20 }
 0x55f   :  { %v3284_v55 = vpop.f32.mrf.mxu3 }
 0x560   :  { %v3675_v2 = vpop.f32.mrf.mxu0  ;;  %v2890_v61 = vpop.f32.mrf.mxu2 }
 0x561   :  { %v11151_v30 = vadd.f32 %v3675_v2, %v3398_v33  ;;  %v3005_v12 = vadd.f32 %v2890_v61, %v10905_v23 }
 0x563   :  { %14061 = vst [vmem:[#allocation71_spill] sm:$0xff] %v11151_v30  ;;  %v3399_v6 = vadd.f32 %v3284_v55, %v3005_v12  ;;  %v3481_v12 = vld [vmem:[#allocation2 + $0x2a2] sm:$0xff] }
 0x564   :  { %v3521_v48 = vpack.c.bf16 %v3482_v36, %v3481_v12  ;;  %v3484_v12 = vld [vmem:[#allocation2 + $0x2c2] sm:$0xff] }
 0x567   :  { %v3286_v9 = vpop.f32.mrf.mxu3 }
 0x568   :  { %v3678_v47 = vpop.f32.mrf.mxu0  ;;  %v2892_v43 = vpop.f32.mrf.mxu2 }
 0x569   :  { %v11154_v8 = vadd.f32 %v3678_v47, %v3399_v6  ;;  %v3006_v14 = vadd.f32 %v2892_v43, %v10908_v52  ;;  %v3089_v6 = vld [vmem:[#allocation2 + $0x2b9] sm:$0xff]  ;;  %v3090_v47 = vld [vmem:[#allocation2 + $0x2c1] sm:$0xff] }
 0x56a   :  { %v2696_v52 = vld [vmem:[#allocation2 + $0x2c0] sm:$0xff]  ;;  %v3128_v43 = vpack.c.bf16 %v3090_v47, %v3089_v6  ;;  %v2697_v47 = vld [vmem:[#allocation2 + $0x2d0] sm:$0xff] }
 0x56b   :  { %14062 = vst [vmem:[#allocation72_spill] sm:$0xff] %v11154_v8  ;;  %3717 = vmatmul.bf16.gmra.mxu0 %v3520_v39  ;;  %v3400_v20 = vadd.f32 %v3286_v9, %v3006_v14  ;;  %v2734_v14 = vpack.c.bf16 %v2696_v52, %v2695_v28 }
 0x56c   :  { %3328 = vmatmul.bf16.gmra.mxu3 %v3127_v38 }
 0x56d   :  { %2934 = vmatmul.bf16.gmra.mxu2 %v2733_v32 }
 0x56f   :  { %v3289_v33 = vpop.f32.mrf.mxu3 }
 0x570   :  { %v3680_v23 = vpop.f32.mrf.mxu0  ;;  %v2895_v55 = vpop.f32.mrf.mxu2 }
 0x571   :  { %v11157_v2 = vadd.f32 %v3680_v23, %v3400_v20  ;;  %v3007_v61 = vadd.f32 %v2895_v55, %v10912_v1 }
 0x573   :  { %14063 = vst [vmem:[#allocation73_spill] sm:$0xff] %v11157_v2  ;;  %v3401_v31 = vadd.f32 %v3289_v33, %v3007_v61  ;;  %v3483_v61 = vld [vmem:[#allocation2 + $0x2ba] sm:$0xff] }
 0x574   :  { %v3522_v6 = vpack.c.bf16 %v3484_v12, %v3483_v61  ;;  %v3485_v61 = vld [vmem:[#allocation2 + $0x2d2] sm:$0xff]  ;;  %v3486_v12 = vld [vmem:[#allocation2 + $0x2da] sm:$0xff] }
 0x577   :  { %v3291_v39 = vpop.f32.mrf.mxu3 }
 0x578   :  { %v3683_v13 = vpop.f32.mrf.mxu0  ;;  %v2897_v9 = vpop.f32.mrf.mxu2 }
 0x579   :  { %v11160_v4 = vadd.f32 %v3683_v13, %v3401_v31  ;;  %v3008_v38 = vadd.f32 %v2897_v9, %v10915_v21  ;;  %v3091_v31 = vld [vmem:[#allocation2 + $0x2d1] sm:$0xff]  ;;  %v3092_v13 = vld [vmem:[#allocation2 + $0x2d9] sm:$0xff] }
 0x57a   :  { %v2698_v21 = vld [vmem:[#allocation2 + $0x2d8] sm:$0xff]  ;;  %v3129_v9 = vpack.c.bf16 %v3092_v13, %v3091_v31  ;;  %v3523_v13 = vpack.c.bf16 %v3486_v12, %v3485_v61 }
 0x57b   :  { %14064 = vst [vmem:[#allocation74_spill] sm:$0xff] %v11160_v4  ;;  %3722 = vmatmul.bf16.gmra.mxu0 %v3521_v48  ;;  %v3402_v32 = vadd.f32 %v3291_v39, %v3008_v38  ;;  %v2735_v38 = vpack.c.bf16 %v2698_v21, %v2697_v47  ;;  %v3094_v31 = vld [vmem:[#allocation2 + $0x2f1] sm:$0xff] }
 0x57c   :  { %3333 = vmatmul.bf16.gmra.mxu3 %v3128_v43  ;;  %v2700_v47 = vld [vmem:[#allocation2 + $0x2f0] sm:$0xff] }
 0x57d   :  { %2939 = vmatmul.bf16.gmra.mxu2 %v2734_v14  ;;  %v3488_v61 = vld [vmem:[#allocation2 + $0x2f2] sm:$0xff] }
 0x57f   :  { %v3294_v20 = vpop.f32.mrf.mxu3 }
 0x580   :  { %v3685_v1 = vpop.f32.mrf.mxu0  ;;  %v2900_v33 = vpop.f32.mrf.mxu2 }
 0x581   :  { %v11163_v23 = vadd.f32 %v3685_v1, %v3402_v32  ;;  %v3009_v55 = vadd.f32 %v2900_v33, %v10918_v42  ;;  %v9581_v42 = vld [vmem:[%s13844_s4 + $0x58] sm:$0xff] }
 0x582   :  { %4698 = vmatpush.bf16.msra.mxu1 %v9581_v42 }
 0x583   :  { %14065 = vst [vmem:[#allocation75_spill] sm:$0xff] %v11163_v23  ;;  %v3403_v36 = vadd.f32 %v3294_v20, %v3009_v55 }
 0x587   :  { %v3296_v48 = vpop.f32.mrf.mxu3 }
 0x588   :  { %v3688_v28 = vpop.f32.mrf.mxu0  ;;  %v2902_v39 = vpop.f32.mrf.mxu2 }
 0x589   :  { %v11166_v52 = vadd.f32 %v3688_v28, %v3403_v36  ;;  %v3010_v43 = vadd.f32 %v2902_v39, %v10921_v56  ;;  %v3093_v36 = vld [vmem:[#allocation2 + $0x2e9] sm:$0xff] }
 0x58b   :  { %14066 = vst [vmem:[#allocation76_spill] sm:$0xff] %v11166_v52  ;;  %3727 = vmatmul.bf16.gmra.mxu0 %v3522_v6  ;;  %v3404_v14 = vadd.f32 %v3296_v48, %v3010_v43  ;;  %v2699_v6 = vld [vmem:[#allocation2 + $0x2e8] sm:$0xff] }
 0x58c   :  { %3338 = vmatmul.bf16.gmra.mxu3 %v3129_v9  ;;  %v3130_v9 = vpack.c.bf16 %v3094_v31, %v3093_v36  ;;  %v2701_v31 = vld [vmem:[#allocation2 + $0x300] sm:$0xff] }
 0x58d   :  { %2944 = vmatmul.bf16.gmra.mxu2 %v2735_v38  ;;  %v2736_v38 = vpack.c.bf16 %v2700_v47, %v2699_v6 }
 0x58f   :  { %v3299_v1 = vpop.f32.mrf.mxu3 }
 0x590   :  { %v3690_v32 = vpop.f32.mrf.mxu0  ;;  %v2905_v33 = vpop.f32.mrf.mxu2 }
 0x591   :  { %v11172_v20 = vadd.f32 %v3690_v32, %v3404_v14  ;;  %v3011_v55 = vadd.f32 %v2905_v33, %v10927_v51 }
 0x593   :  { %14067 = vst [vmem:[#allocation77_spill] sm:$0xff] %v11172_v20  ;;  %v3405_v56 = vadd.f32 %v3299_v1, %v3011_v55  ;;  %v3487_v55 = vld [vmem:[#allocation2 + $0x2ea] sm:$0xff] }
 0x594   :  { %v3524_v36 = vpack.c.bf16 %v3488_v61, %v3487_v55  ;;  %v3490_v55 = vld [vmem:[#allocation2 + $0x30a] sm:$0xff] }
 0x597   :  { %v3301_v28 = vpop.f32.mrf.mxu3 }
 0x598   :  { %v3693_v21 = vpop.f32.mrf.mxu0  ;;  %v2907_v39 = vpop.f32.mrf.mxu2 }
 0x599   :  { %v11175_v48 = vadd.f32 %v3693_v21, %v3405_v56  ;;  %v3012_v43 = vadd.f32 %v2907_v39, %v10936_v18  ;;  %v3095_v56 = vld [vmem:[#allocation2 + $0x301] sm:$0xff]  ;;  %v3096_v21 = vld [vmem:[#allocation2 + $0x309] sm:$0xff] }
 0x59a   :  { %v2702_v18 = vld [vmem:[#allocation2 + $0x308] sm:$0xff]  ;;  %v3131_v39 = vpack.c.bf16 %v3096_v21, %v3095_v56  ;;  %v2703_v21 = vld [vmem:[#allocation2 + $0x318] sm:$0xff] }
 0x59b   :  { %14068 = vst [vmem:[#allocation78_spill] sm:$0xff] %v11175_v48  ;;  %3732 = vmatmul.bf16.gmra.mxu0 %v3523_v13  ;;  %v3406_v42 = vadd.f32 %v3301_v28, %v3012_v43  ;;  %v2737_v43 = vpack.c.bf16 %v2702_v18, %v2701_v31 }
 0x59c   :  { %3343 = vmatmul.bf16.gmra.mxu3 %v3130_v9 }
 0x59d   :  { %2949 = vmatmul.bf16.gmra.mxu2 %v2736_v38 }
 0x59f   :  { %v3304_v14 = vpop.f32.mrf.mxu3 }
 0x5a0   :  { %v3695_v51 = vpop.f32.mrf.mxu0  ;;  %v2910_v1 = vpop.f32.mrf.mxu2 }
 0x5a1   :  { %v11178_v32 = vadd.f32 %v3695_v51, %v3406_v42  ;;  %v3013_v33 = vadd.f32 %v2910_v1, %v10939_v54 }
 0x5a3   :  { %14069 = vst [vmem:[#allocation79_spill] sm:$0xff] %v11178_v32  ;;  %v3407_v12 = vadd.f32 %v3304_v14, %v3013_v33  ;;  %v3489_v33 = vld [vmem:[#allocation2 + $0x302] sm:$0xff] }
 0x5a4   :  { %v3525_v56 = vpack.c.bf16 %v3490_v55, %v3489_v33  ;;  %v3491_v33 = vld [vmem:[#allocation2 + $0x31a] sm:$0xff]  ;;  %v3492_v55 = vld [vmem:[#allocation2 + $0x322] sm:$0xff] }
 0x5a7   :  { %v3306_v13 = vpop.f32.mrf.mxu3 }
 0x5a8   :  { %v3698_v6 = vpop.f32.mrf.mxu0  ;;  %v2912_v28 = vpop.f32.mrf.mxu2 }
 0x5a9   :  { %v11181_v47 = vadd.f32 %v3698_v6, %v3407_v12  ;;  %v3014_v9 = vadd.f32 %v2912_v28, %v10942_v60  ;;  %v3097_v12 = vld [vmem:[#allocation2 + $0x319] sm:$0xff]  ;;  %v3098_v6 = vld [vmem:[#allocation2 + $0x321] sm:$0xff] }
 0x5aa   :  { %v2704_v60 = vld [vmem:[#allocation2 + $0x320] sm:$0xff]  ;;  %v3132_v28 = vpack.c.bf16 %v3098_v6, %v3097_v12  ;;  %v3099_v12 = vld [vmem:[#allocation2 + $0x331] sm:$0xff] }
 0x5ab   :  { %14070 = vst [vmem:[#allocation80_spill] sm:$0xff] %v11181_v47  ;;  %3737 = vmatmul.bf16.gmra.mxu0 %v3524_v36  ;;  %v3408_v38 = vadd.f32 %v3306_v13, %v3014_v9  ;;  %v296_v9 = vld [vmem:[%s13840_s0 + $0x350] sm:$0xff]  ;;  %v3100_v6 = vld [vmem:[#allocation2 + $0x339] sm:$0xff] }
 0x5ac   :  { %3348 = vmatmul.bf16.gmra.mxu3 %v3131_v39  ;;  %v2738_v39 = vpack.c.bf16 %v2704_v60, %v2703_v21  ;;  %406 = vst.msk [vmem:[#allocation2 + $0x350] sm:$0xff] %vm298_vm0, %v296_v9  ;;  %v2705_v21 = vld [vmem:[#allocation2 + $0x330] sm:$0xff]  ;;  %v2706_v60 = vld [vmem:[#allocation2 + $0x338] sm:$0xff]  ;;  %v3133_v9 = vpack.c.bf16 %v3100_v6, %v3099_v12 }
 0x5ad   :  { %2954 = vmatmul.bf16.gmra.mxu2 %v2737_v43  ;;  %v297_v43 = vld [vmem:[%s13840_s0 + $0x358] sm:$0x3]  ;;  %v2739_v26 = vpack.c.bf16 %v2706_v60, %v2705_v21 }
 0x5ae   :  { %407 = vst.msk [vmem:[#allocation2 + $0x358] sm:$0x3] %vm301_vm1, %v297_v43  ;;  %v9580_v43 = vld [vmem:[%s13844_s4 + $0x50] sm:$0xff] }
 0x5af   :  { %v3309_v42 = vpop.f32.mrf.mxu3  ;;  %4699 = vmatpush.bf16.msra.mxu1 %v9580_v43 }
 0x5b0   :  { %v3700_v54 = vpop.f32.mrf.mxu0  ;;  %v2915_v14 = vpop.f32.mrf.mxu2 }
 0x5b1   :  { %v11184_v51 = vadd.f32 %v3700_v54, %v3408_v38  ;;  %v3015_v1 = vadd.f32 %v2915_v14, %v10945_v19  ;;  %v295_v19 = vld [vmem:[%s13840_s0 + $0x348] sm:$0xff] }
 0x5b2   :  { %405 = vst.msk [vmem:[#allocation2 + $0x348] sm:$0xff] %vm298_vm0, %v295_v19  ;;  %v14074_v14 = vld [vmem:[#allocation17_spill] sm:$0xff] }
 0x5b3   :  { %14071 = vst [vmem:[#allocation81_spill] sm:$0xff] %v11184_v51  ;;  %v3409_v61 = vadd.f32 %v3309_v42, %v3015_v1  ;;  %v2708_v21 = vld [vmem:[#allocation2 + $0x350] sm:$0xff] }
 0x5b5   :  { %v3102_v12 = vld [vmem:[#allocation2 + $0x351] sm:$0xff] }
 0x5b7   :  { %v11187_v36 = vpop.f32.mrf.mxu3 }
 0x5b8   :  { %v3703_v31 = vpop.f32.mrf.mxu0  ;;  %v11191_v13 = vpop.f32.mrf.mxu2 }
 0x5b9   :  { %v11189_v18 = vadd.f32 %v3703_v31, %v3409_v61 }
 0x5bb   :  { %14072 = vst [vmem:[#allocation82_spill] sm:$0xff] %v11189_v18  ;;  %3742 = vmatmul.bf16.gmra.mxu0 %v3525_v56  ;;  %v3526_v56 = vpack.c.bf16 %v3492_v55, %v3491_v33  ;;  %v3493_v55 = vld [vmem:[#allocation2 + $0x332] sm:$0xff] }
 0x5bc   :  { %3353 = vmatmul.bf16.gmra.mxu3 %v3132_v28 }
 0x5bd   :  { %2959 = vmatmul.bf16.gmra.mxu2 %v2738_v39 }
 0x5bf   :  { %v3314_v54 = vpop.f32.mrf.mxu3 }
 0x5c0   :  { %v11203_v38 = vpop.f32.mrf.mxu0  ;;  %v2920_v42 = vpop.f32.mrf.mxu2 }
 0x5c1   :  { %14073 = vst [vmem:[#allocation83_spill] sm:$0xff] %v11203_v38  ;;  %v3017_v1 = vadd.f32 %v2920_v42, %v14074_v14 }
 0x5c3   :  { %v3411_v61 = vadd.f32 %v3314_v54, %v3017_v1  ;;  %v14078_v1 = vld [vmem:[#allocation19_spill] sm:$0xff] }
 0x5c7   :  { %v11208_v28 = vpop.f32.mrf.mxu3 }
 0x5c8   :  { %v3708_v31 = vpop.f32.mrf.mxu0  ;;  %14075 = vst [vmem:[#allocation17_spill] sm:$0xff] %v11208_v28  ;;  %v11212_v19 = vpop.f32.mrf.mxu2  ;;  %v3496_v28 = vld [vmem:[#allocation2 + $0x352] sm:$0xff] }
 0x5c9   :  { %v11210_v39 = vadd.f32 %v3708_v31, %v3411_v61  ;;  %v3494_v61 = vld [vmem:[#allocation2 + $0x33a] sm:$0xff] }
 0x5ca   :  { %v3527_v6 = vpack.c.bf16 %v3494_v61, %v3493_v55  ;;  %v3495_v61 = vld [vmem:[#allocation2 + $0x34a] sm:$0xff] }
 0x5cb   :  { %14076 = vst [vmem:[#allocation84_spill] sm:$0xff] %v11210_v39  ;;  %3747 = vmatmul.bf16.gmra.mxu0 %v3526_v56  ;;  %v3101_v39 = vld [vmem:[#allocation2 + $0x349] sm:$0xff]  ;;  %v3528_v51 = vpack.c.bf16 %v3496_v28, %v3495_v61  ;;  %v3896_v28 = vmul.f32 %v11040_v49, %v11040_v49  ;;  %v3900_v61 = vmul.f32 %v11055_v11, %v11055_v11 }
 0x5cc   :  { %3358 = vmatmul.bf16.gmra.mxu3 %v3133_v9  ;;  %v2707_v56 = vld [vmem:[#allocation2 + $0x348] sm:$0xff]  ;;  %v3134_v43 = vpack.c.bf16 %v3102_v12, %v3101_v39 }
 0x5cd   :  { %2964 = vmatmul.bf16.gmra.mxu2 %v2739_v26 }
 0x5cf   :  { %v3319_v42 = vpop.f32.mrf.mxu3 }
 0x5d0   :  { %v11217_v54 = vpop.f32.mrf.mxu0  ;;  %v2925_v14 = vpop.f32.mrf.mxu2 }
 0x5d1   :  { %14077 = vst [vmem:[#allocation85_spill] sm:$0xff] %v11217_v54  ;;  %v3019_v33 = vadd.f32 %v2925_v14, %v14078_v1  ;;  %v2740_v54 = vpack.c.bf16 %v2708_v21, %v2707_v56  ;;  %v3897_v56 = vmul.f32 %v11043_v59, %v11043_v59  ;;  %v14083_v21 = vld [vmem:[#allocation23_spill] sm:$0xff] }
 0x5d3   :  { %v3413_v31 = vadd.f32 %v3319_v42, %v3019_v33  ;;  %v14080_v33 = vld [vmem:[#allocation21_spill] sm:$0xff] }
 0x5d7   :  { %v11220_v18 = vpop.f32.mrf.mxu3 }
 0x5d8   :  { %v3713_v60 = vpop.f32.mrf.mxu0  ;;  %14079 = vst [vmem:[#allocation19_spill] sm:$0xff] %v11220_v18  ;;  %v11224_v26 = vpop.f32.mrf.mxu2 }
 0x5d9   :  { %v11222_v9 = vadd.f32 %v3713_v60, %v3413_v31 }
 0x5db   :  { %3752 = vmatmul.bf16.gmra.mxu0 %v3527_v6 }
 0x5dc   :  { %3363 = vmatmul.bf16.gmra.mxu3 %v3134_v43 }
 0x5dd   :  { %2969 = vmatmul.bf16.gmra.mxu2 %v2740_v54 }
 0x5df   :  { %v3324_v42 = vpop.f32.mrf.mxu3 }
 0x5e0   :  { %v11226_v14 = vpop.f32.mrf.mxu0  ;;  %v2930_v1 = vpop.f32.mrf.mxu2 }
 0x5e1   :  { %v3021_v55 = vadd.f32 %v2930_v1, %v14080_v33  ;;  %v3899_v1 = vmul.f32 %v11052_v27, %v11052_v27 }
 0x5e3   :  { %v3415_v38 = vadd.f32 %v3324_v42, %v3021_v55  ;;  %v3898_v42 = vmul.f32 %v11046_v46, %v11046_v46 }
 0x5e7   :  { %v11229_v31 = vpop.f32.mrf.mxu3 }
 0x5e8   :  { %v3718_v18 = vpop.f32.mrf.mxu0  ;;  %v11233_v39 = vpop.f32.mrf.mxu2 }
 0x5e9   :  { %v11231_v60 = vadd.f32 %v3718_v18, %v3415_v38  ;;  %v3827_v38 = vadd.f32 %v11043_v59, %v11040_v49  ;;  %v3907_v49 = vmul.f32 %v11091_v57, %v11091_v57 }
 0x5eb   :  { %14081 = vst [vmem:[#allocation21_spill] sm:$0xff] %v11231_v60  ;;  %3757 = vmatmul.bf16.gmra.mxu0 %v3528_v51  ;;  %v3960_v51 = vadd.f32 %v3897_v56, %v3896_v28  ;;  %v3828_v33 = vadd.f32 %v3827_v38, %v11046_v46  ;;  %v3901_v56 = vmul.f32 %v11058_v44, %v11058_v44 }
 0x5ed   :  { %v3961_v55 = vadd.f32 %v3960_v51, %v3898_v42  ;;  %v3902_v42 = vmul.f32 %v11061_v63, %v11061_v63 }
 0x5ef   :  { %v3329_v54 = vpop.f32.mrf.mxu3 }
 0x5f0   :  { %v11235_v12 = vpop.f32.mrf.mxu0  ;;  %v2935_v6 = vpop.f32.mrf.mxu2 }
 0x5f1   :  { %14082 = vst [vmem:[#allocation86_spill] sm:$0xff] %v11235_v12  ;;  %v3023_v43 = vadd.f32 %v2935_v6, %v14083_v21 }
 0x5f3   :  { %v3417_v18 = vadd.f32 %v3329_v54, %v3023_v43  ;;  %v3829_v54 = vadd.f32 %v3828_v33, %v11052_v27  ;;  %v3962_v43 = vadd.f32 %v3961_v55, %v3899_v1  ;;  %v3904_v1 = vmul.f32 %v11067_v25, %v11067_v25 }
 0x5f5   :  { %v3830_v28 = vadd.f32 %v3829_v54, %v11055_v11  ;;  %v3963_v38 = vadd.f32 %v3962_v43, %v3900_v61  ;;  %v11271_v54 = vpop.f32.mrf.mxu1 }
 0x5f7   :  { %v11251_v21 = vpop.f32.mrf.mxu3  ;;  %v3831_v51 = vadd.f32 %v3830_v28, %v11058_v44  ;;  %v3964_v46 = vadd.f32 %v3963_v38, %v3901_v56  ;;  %v3905_v56 = vmul.f32 %v11081_v45, %v11081_v45  ;;  %v14084_v28 = vld [vmem:[#allocation25_spill] sm:$0xff] }
 0x5f8   :  { %v3723_v6 = vpop.f32.mrf.mxu0  ;;  %v11255_v12 = vpop.f32.mrf.mxu2 }
 0x5f9   :  { %v11253_v60 = vadd.f32 %v3723_v6, %v3417_v18  ;;  %v3903_v18 = vmul.f32 %v11064_v50, %v11064_v50  ;;  %v3832_v6 = vadd.f32 %v3831_v51, %v11061_v63  ;;  %v3965_v59 = vadd.f32 %v3964_v46, %v3902_v42 }
 0x5fa   :  { %v3906_v42 = vmul.f32 %v11085_v17, %v11085_v17 }
 0x5fb   :  { %v3833_v43 = vadd.f32 %v3832_v6, %v11064_v50  ;;  %v3966_v11 = vadd.f32 %v3965_v59, %v3903_v18  ;;  %v3908_v6 = vmul.f32 %v11094_v3, %v11094_v3 }
 0x5fd   :  { %v3834_v51 = vadd.f32 %v3833_v43, %v11067_v25  ;;  %v3967_v46 = vadd.f32 %v3966_v11, %v3904_v1  ;;  %v9579_v11 = vld [vmem:[%s13844_s4 + $0x48] sm:$0xff] }
 0x5fe   :  { %4700 = vmatpush.bf16.msra.mxu1 %v9579_v11 }
 0x5ff   :  { %v3334_v55 = vpop.f32.mrf.mxu3  ;;  %v3835_v44 = vadd.f32 %v3834_v51, %v11081_v45  ;;  %v3968_v27 = vadd.f32 %v3967_v46, %v3905_v56  ;;  %v3910_v46 = vmul.f32 %v11100_v5, %v11100_v5 }
 0x600   :  { %v11269_v33 = vpop.f32.mrf.mxu0  ;;  %v2940_v61 = vpop.f32.mrf.mxu2 }
 0x601   :  { %v3025_v38 = vadd.f32 %v2940_v61, %v14084_v28  ;;  %v3836_v59 = vadd.f32 %v3835_v44, %v11085_v17  ;;  %v3969_v18 = vadd.f32 %v3968_v27, %v3906_v42  ;;  %v3909_v27 = vmul.f32 %v11097_v40, %v11097_v40  ;;  %v11298_v44 = vpop.f32.mrf.mxu1 }
 0x603   :  { %v3419_v63 = vadd.f32 %v3334_v55, %v3025_v38  ;;  %v3837_v43 = vadd.f32 %v3836_v59, %v11091_v57  ;;  %v3970_v56 = vadd.f32 %v3969_v18, %v3907_v49  ;;  %v3912_v18 = vmul.f32 %v11106_v24, %v11106_v24 }
 0x605   :  { %v3838_v38 = vadd.f32 %v3837_v43, %v11094_v3  ;;  %v3971_v51 = vadd.f32 %v3970_v56, %v3908_v6 }
 0x607   :  { %v11286_v28 = vpop.f32.mrf.mxu3  ;;  %v3972_v42 = vadd.f32 %v3971_v51, %v3909_v27 }
 0x608   :  { %v3728_v61 = vpop.f32.mrf.mxu0  ;;  %v11293_v55 = vpop.f32.mrf.mxu2 }
 0x609   :  { %v11291_v1 = vadd.f32 %v3728_v61, %v3419_v63  ;;  %v3839_v63 = vadd.f32 %v3838_v38, %v11097_v40  ;;  %v3911_v61 = vmul.f32 %v11103_v7, %v11103_v7  ;;  %v3973_v59 = vadd.f32 %v3972_v42, %v3910_v46  ;;  %v11318_v42 = vpop.f32.mrf.mxu1 }
 0x60a   :  { %v3913_v38 = vmul.f32 %v11109_v22, %v11109_v22  ;;  %v3914_v46 = vmul.f32 %v11112_v53, %v11112_v53 }
 0x60b   :  { %v3840_v49 = vadd.f32 %v3839_v63, %v11100_v5  ;;  %v3974_v56 = vadd.f32 %v3973_v59, %v3911_v61  ;;  %v3915_v61 = vmul.f32 %v11118_v37, %v11118_v37 }
 0x60d   :  { %v3841_v6 = vadd.f32 %v3840_v49, %v11103_v7  ;;  %v3975_v40 = vadd.f32 %v3974_v56, %v3912_v18 }
 0x60f   :  { %v3339_v57 = vpop.f32.mrf.mxu3  ;;  %v3842_v51 = vadd.f32 %v3841_v6, %v11106_v24  ;;  %v3976_v3 = vadd.f32 %v3975_v40, %v3913_v38  ;;  %v3917_v40 = vmul.f32 %v11124_v16, %v11124_v16 }
 0x610   :  { %v11309_v11 = vpop.f32.mrf.mxu0  ;;  %v2945_v43 = vpop.f32.mrf.mxu2 }
 0x611   :  { %v3027_v27 = vadd.f32 %v2945_v43, %v11005_v41  ;;  %v3843_v5 = vadd.f32 %v3842_v51, %v11109_v22  ;;  %v3977_v59 = vadd.f32 %v3976_v3, %v3914_v46  ;;  %v3916_v41 = vmul.f32 %v11121_v15, %v11121_v15 }
 0x612   :  { %v3918_v3 = vmul.f32 %v11127_v10, %v11127_v10 }
 0x613   :  { %v3421_v63 = vadd.f32 %v3339_v57, %v3027_v27  ;;  %v3844_v49 = vadd.f32 %v3843_v5, %v11112_v53  ;;  %v3978_v27 = vadd.f32 %v3977_v59, %v3915_v61  ;;  %v3920_v59 = vmul.f32 %v11133_v29, %v11133_v29 }
 0x615   :  { %v3845_v56 = vadd.f32 %v3844_v49, %v11118_v37  ;;  %v3979_v5 = vadd.f32 %v3978_v27, %v3916_v41 }
 0x617   :  { %v11326_v18 = vpop.f32.mrf.mxu3  ;;  %v3846_v38 = vadd.f32 %v3845_v56, %v11121_v15  ;;  %v3980_v46 = vadd.f32 %v3979_v5, %v3917_v40 }
 0x618   :  { %v3733_v43 = vpop.f32.mrf.mxu0  ;;  %v11330_v57 = vpop.f32.mrf.mxu2 }
 0x619   :  { %v11328_v6 = vadd.f32 %v3733_v43, %v3421_v63  ;;  %v3847_v51 = vadd.f32 %v3846_v38, %v11124_v16  ;;  %v3919_v63 = vmul.f32 %v11130_v35, %v11130_v35  ;;  %v11341_v43 = vpop.f32.mrf.mxu1  ;;  %v3981_v61 = vadd.f32 %v3980_v46, %v3918_v3 }
 0x61a   :  { %v3921_v38 = vmul.f32 %v11136_v0, %v11136_v0  ;;  %v3922_v3 = vmul.f32 %v11139_v58, %v11139_v58 }
 0x61b   :  { %v3848_v49 = vadd.f32 %v3847_v51, %v11127_v10  ;;  %v3982_v40 = vadd.f32 %v3981_v61, %v3919_v63  ;;  %v3923_v10 = vmul.f32 %v11145_v62, %v11145_v62  ;;  %v3924_v63 = vmul.f32 %v11148_v34, %v11148_v34 }
 0x61d   :  { %v3849_v27 = vadd.f32 %v3848_v49, %v11130_v35  ;;  %v3983_v16 = vadd.f32 %v3982_v40, %v3920_v59 }
 0x61f   :  { %v11348_v41 = vpop.f32.mrf.mxu3  ;;  %v3850_v5 = vadd.f32 %v3849_v27, %v11133_v29  ;;  %v3984_v46 = vadd.f32 %v3983_v16, %v3921_v38  ;;  %v3925_v38 = vmul.f32 %v11151_v30, %v11151_v30 }
 0x620   :  { %v11346_v37 = vpop.f32.mrf.mxu0  ;;  %v11350_v56 = vpop.f32.mrf.mxu2 }
 0x621   :  { %v3851_v51 = vadd.f32 %v3850_v5, %v11136_v0  ;;  %v3985_v53 = vadd.f32 %v3984_v46, %v3922_v3  ;;  %v11368_v59 = vpop.f32.mrf.mxu1  ;;  %v3927_v0 = vmul.f32 %v11157_v2, %v11157_v2 }
 0x623   :  { %v3852_v15 = vadd.f32 %v3851_v51, %v11139_v58  ;;  %v3986_v16 = vadd.f32 %v3985_v53, %v3923_v10  ;;  %v3926_v51 = vmul.f32 %v11154_v8, %v11154_v8  ;;  %v3928_v53 = vmul.f32 %v11160_v4, %v11160_v4 }
 0x625   :  { %v3853_v40 = vadd.f32 %v3852_v15, %v11145_v62  ;;  %v3987_v3 = vadd.f32 %v3986_v16, %v3924_v63 }
 0x627   :  { %v11366_v61 = vpop.f32.mrf.mxu3  ;;  %v3854_v5 = vadd.f32 %v3853_v40, %v11148_v34  ;;  %v3988_v58 = vadd.f32 %v3987_v3, %v3925_v38  ;;  %v3929_v38 = vmul.f32 %v11163_v23, %v11163_v23 }
 0x628   :  { %v11364_v49 = vpop.f32.mrf.mxu0  ;;  %v11370_v27 = vpop.f32.mrf.mxu2 }
 0x629   :  { %v3855_v46 = vadd.f32 %v3854_v5, %v11151_v30  ;;  %v3989_v35 = vadd.f32 %v3988_v58, %v3926_v51  ;;  %v11393_v5 = vpop.f32.mrf.mxu1  ;;  %v3930_v51 = vmul.f32 %v11166_v52, %v11166_v52 }
 0x62b   :  { %v3856_v29 = vadd.f32 %v3855_v46, %v11154_v8  ;;  %v3990_v16 = vadd.f32 %v3989_v35, %v3927_v0  ;;  %v14085_v46 = vld [vmem:[#allocation41_spill] sm:$0xff]  ;;  %v14086_v8 = vld [vmem:[#allocation40_spill] sm:$0xff]  ;;  %v3931_v35 = vmul.f32 %v11172_v20, %v11172_v20 }
 0x62c   :  { %v2621_v30 = vadd.f32 %v14086_v8, %v14085_v46  ;;  %v14088_v8 = vld [vmem:[#allocation18_spill] sm:$0xff] }
 0x62d   :  { %v3857_v40 = vadd.f32 %v3856_v29, %v11157_v2  ;;  %v3991_v58 = vadd.f32 %v3990_v16, %v3928_v53  ;;  %v3932_v53 = vmul.f32 %v11175_v48, %v11175_v48 }
 0x62e   :  { %v3016_v29 = vadd.f32 %v11191_v13, %v2621_v30  ;;  %v3933_v30 = vmul.f32 %v11178_v32, %v11178_v32 }
 0x62f   :  { %v11386_v10 = vpop.f32.mrf.mxu3  ;;  %v3858_v3 = vadd.f32 %v3857_v40, %v11160_v4  ;;  %v3992_v62 = vadd.f32 %v3991_v58, %v3929_v38  ;;  %v14087_v4 = vld [vmem:[#allocation42_spill] sm:$0xff] }
 0x630   :  { %v11384_v15 = vpop.f32.mrf.mxu0  ;;  %v11388_v63 = vpop.f32.mrf.mxu2  ;;  %v2623_v46 = vadd.f32 %v14088_v8, %v14087_v4  ;;  %v14090_v4 = vld [vmem:[#allocation20_spill] sm:$0xff] }
 0x631   :  { %v3859_v34 = vadd.f32 %v3858_v3, %v11163_v23  ;;  %v3993_v2 = vadd.f32 %v3992_v62, %v3930_v51  ;;  %v3410_v62 = vadd.f32 %v11187_v36, %v3016_v29  ;;  %v14089_v23 = vld [vmem:[#allocation43_spill] sm:$0xff]  ;;  %v11425_v22 = vpop.f32.mrf.mxu1 }
 0x632   :  { %v2625_v8 = vadd.f32 %v14090_v4, %v14089_v23  ;;  %v14092_v36 = vld [vmem:[#allocation83_spill] sm:$0xff]  ;;  %v14094_v4 = vld [vmem:[#allocation44_spill] sm:$0xff] }
 0x633   :  { %v3860_v0 = vadd.f32 %v3859_v34, %v11166_v52  ;;  %v3994_v58 = vadd.f32 %v3993_v2, %v3931_v35  ;;  %v3018_v34 = vadd.f32 %v11212_v19, %v2623_v46  ;;  %v3934_v52 = vmul.f32 %v11181_v47, %v11181_v47  ;;  %v14093_v19 = vld [vmem:[#allocation17_spill] sm:$0xff] }
 0x634   :  { %v11431_v29 = vadd.f32 %v14092_v36, %v3410_v62 }
 0x635   :  { %v3861_v38 = vadd.f32 %v3860_v0, %v11172_v20  ;;  %v3995_v51 = vadd.f32 %v3994_v58, %v3932_v53  ;;  %v14091_v0 = vld [vmem:[#allocation81_spill] sm:$0xff]  ;;  %v3412_v46 = vadd.f32 %v14093_v19, %v3018_v34  ;;  %v3020_v53 = vadd.f32 %v11224_v26, %v2625_v8 }
 0x636   :  { %v3935_v20 = vmul.f32 %v14091_v0, %v14091_v0  ;;  %v3937_v26 = vmul.f32 %v11431_v29, %v11431_v29  ;;  %v14097_v8 = vld [vmem:[#allocation85_spill] sm:$0xff] }
 0x637   :  { %v11409_v16 = vpop.f32.mrf.mxu3  ;;  %v3862_v13 = vadd.f32 %v3861_v38, %v11175_v48  ;;  %v3996_v35 = vadd.f32 %v3995_v51, %v3933_v30  ;;  %v14096_v51 = vld [vmem:[#allocation82_spill] sm:$0xff] }
 0x638   :  { %v11407_v40 = vpop.f32.mrf.mxu0  ;;  %v11413_v3 = vpop.f32.mrf.mxu2  ;;  %v3936_v24 = vmul.f32 %v14096_v51, %v14096_v51 }
 0x639   :  { %v3863_v2 = vadd.f32 %v3862_v13, %v11178_v32  ;;  %v3997_v58 = vadd.f32 %v3996_v35, %v3934_v52  ;;  %v14095_v13 = vld [vmem:[#allocation22_spill] sm:$0xff]  ;;  %v11450_v52 = vadd.f32 %v14097_v8, %v3412_v46  ;;  %v14101_v32 = vld [vmem:[#allocation24_spill] sm:$0xff] }
 0x63a   :  { %v2627_v30 = vadd.f32 %v14095_v13, %v14094_v4  ;;  %v14099_v13 = vld [vmem:[#allocation84_spill] sm:$0xff]  ;;  %v14102_v8 = vld [vmem:[#allocation46_spill] sm:$0xff] }
 0x63b   :  { %v3864_v38 = vadd.f32 %v3863_v2, %v11181_v47  ;;  %v3998_v34 = vadd.f32 %v3997_v58, %v3935_v20  ;;  %v14098_v2 = vld [vmem:[#allocation19_spill] sm:$0xff]  ;;  %v3938_v17 = vmul.f32 %v14099_v13, %v14099_v13  ;;  %v14100_v47 = vld [vmem:[#allocation45_spill] sm:$0xff]  ;;  %v11460_v58 = vpop.f32.mrf.mxu1  ;;  %v3939_v46 = vmul.f32 %v11450_v52, %v11450_v52 }
 0x63c   :  { %v3414_v35 = vadd.f32 %v14098_v2, %v3020_v53  ;;  %v3022_v36 = vadd.f32 %v11233_v39, %v2627_v30 }
 0x63d   :  { %v3865_v62 = vadd.f32 %v3864_v38, %v14091_v0  ;;  %v3999_v4 = vadd.f32 %v3998_v34, %v3936_v24  ;;  %v2629_v38 = vadd.f32 %v14101_v32, %v14100_v47  ;;  %v9578_v32 = vld [vmem:[%s13844_s4 + $0x40] sm:$0xff] }
 0x63e   :  { %v11465_v53 = vadd.f32 %v11226_v14, %v3414_v35  ;;  %v3416_v39 = vadd.f32 %v11229_v31, %v3022_v36  ;;  %v14103_v31 = vld [vmem:[#allocation26_spill] sm:$0xff]  ;;  %4701 = vmatpush.bf16.msra.mxu1 %v9578_v32  ;;  %v14106_v32 = vld [vmem:[#allocation27_spill] sm:$0xff] }
 0x63f   :  { %v11438_v23 = vpop.f32.mrf.mxu3  ;;  %v3866_v19 = vadd.f32 %v3865_v62, %v14096_v51  ;;  %v4000_v0 = vadd.f32 %v3999_v4, %v3937_v26  ;;  %v3024_v24 = vadd.f32 %v11255_v12, %v2629_v38  ;;  %v3940_v26 = vmul.f32 %v11222_v9, %v11222_v9 }
 0x640   :  { %v11436_v48 = vpop.f32.mrf.mxu0  ;;  %v11444_v7 = vpop.f32.mrf.mxu2  ;;  %v2631_v2 = vadd.f32 %v14103_v31, %v14102_v8  ;;  %v3941_v36 = vmul.f32 %v11465_v53, %v11465_v53  ;;  %v14107_v31 = vld [vmem:[#allocation28_spill] sm:$0xff] }
 0x641   :  { %v3867_v20 = vadd.f32 %v3866_v19, %v11431_v29  ;;  %v4001_v34 = vadd.f32 %v4000_v0, %v3938_v17  ;;  %v14104_v19 = vld [vmem:[#allocation86_spill] sm:$0xff]  ;;  %v3418_v17 = vadd.f32 %v11251_v21, %v3024_v24  ;;  %v2634_v21 = vadd.f32 %v11298_v44, %v14107_v31  ;;  %v14110_v31 = vld [vmem:[#allocation31_spill] sm:$0xff] }
 0x642   :  { %v11487_v4 = vadd.f32 %v14104_v19, %v3416_v39  ;;  %v3026_v0 = vadd.f32 %v11293_v55, %v2631_v2 }
 0x643   :  { %v3868_v47 = vadd.f32 %v3867_v20, %v14099_v13  ;;  %v4002_v35 = vadd.f32 %v4001_v34, %v3939_v46  ;;  %v14105_v13 = vld [vmem:[#allocation21_spill] sm:$0xff]  ;;  %v11502_v55 = vadd.f32 %v11269_v33, %v3418_v17  ;;  %v3944_v33 = vmul.f32 %v11253_v60, %v11253_v60 }
 0x644   :  { %v3942_v8 = vmul.f32 %v14105_v13, %v14105_v13  ;;  %v3943_v39 = vmul.f32 %v11487_v4, %v11487_v4  ;;  %v3420_v24 = vadd.f32 %v11286_v28, %v3026_v0  ;;  %v3029_v44 = vadd.f32 %v11350_v56, %v2634_v21  ;;  %v14109_v28 = vld [vmem:[#allocation30_spill] sm:$0xff] }
 0x645   :  { %v3869_v12 = vadd.f32 %v3868_v47, %v11450_v52  ;;  %v4003_v20 = vadd.f32 %v4002_v35, %v3940_v26  ;;  %v2633_v47 = vadd.f32 %v11271_v54, %v14106_v32  ;;  %v2572_v54 = vpop.f32.mrf.mxu1  ;;  %v3945_v32 = vmul.f32 %v11502_v55, %v11502_v55 }
 0x646   :  { %v3946_v56 = vmul.f32 %v11291_v1, %v11291_v1  ;;  %v2637_v21 = vadd.f32 %v11368_v59, %v14110_v31 }
 0x647   :  { %v11471_v62 = vpop.f32.mrf.mxu3  ;;  %v3870_v38 = vadd.f32 %v3869_v12, %v11222_v9  ;;  %v4004_v34 = vadd.f32 %v4003_v20, %v3941_v36  ;;  %v3028_v26 = vadd.f32 %v11330_v57, %v2633_v47  ;;  %v2636_v57 = vadd.f32 %v11341_v43, %v14109_v28 }
 0x648   :  { %v11469_v30 = vpop.f32.mrf.mxu0  ;;  %v11479_v14 = vpop.f32.mrf.mxu2  ;;  %v3423_v43 = vadd.f32 %v11348_v41, %v3029_v44  ;;  %v3032_v59 = vadd.f32 %v11413_v3, %v2637_v21  ;;  %v3948_v44 = vmul.f32 %v11328_v6, %v11328_v6 }
 0x649   :  { %v3871_v46 = vadd.f32 %v3870_v38, %v11465_v53  ;;  %v4005_v36 = vadd.f32 %v4004_v34, %v3942_v8  ;;  %v14108_v38 = vld [vmem:[#allocation29_spill] sm:$0xff]  ;;  %v11522_v8 = vadd.f32 %v11309_v11, %v3420_v24  ;;  %v3422_v47 = vadd.f32 %v11326_v18, %v3028_v26 }
 0x64a   :  { %v2635_v20 = vadd.f32 %v11318_v42, %v14108_v38  ;;  %v14111_v38 = vld [vmem:[#allocation32_spill] sm:$0xff]  ;;  %v11547_v28 = vadd.f32 %v11364_v49, %v3423_v43  ;;  %v9577_v49 = vld [vmem:[%s13844_s4 + $0x38] sm:$0xff] }
 0x64b   :  { %v3872_v35 = vadd.f32 %v3871_v46, %v14105_v13  ;;  %v4006_v0 = vadd.f32 %v4005_v36, %v3943_v39  ;;  %v3031_v39 = vadd.f32 %v11388_v63, %v2636_v57  ;;  %v3947_v18 = vmul.f32 %v11522_v8, %v11522_v8  ;;  %4911 = vmatpush.bf16.msrb.mxu2 %v9577_v49  ;;  %v14114_v43 = vld [vmem:[#allocation35_spill] sm:$0xff] }
 0x64c   :  { %v3030_v42 = vadd.f32 %v11370_v27, %v2635_v20  ;;  %v11537_v27 = vadd.f32 %v11346_v37, %v3422_v47  ;;  %v2638_v41 = vadd.f32 %v11393_v5, %v14111_v38 }
 0x64d   :  { %v3873_v17 = vadd.f32 %v3872_v35, %v11487_v4  ;;  %v4007_v34 = vadd.f32 %v4006_v0, %v3944_v33  ;;  %v3425_v37 = vadd.f32 %v11386_v10, %v3031_v39  ;;  %v14113_v10 = vld [vmem:[#allocation34_spill] sm:$0xff]  ;;  %v2641_v39 = vadd.f32 %v2572_v54, %v14114_v43 }
 0x64e   :  { %v3424_v26 = vadd.f32 %v11366_v61, %v3030_v42  ;;  %v14112_v61 = vld [vmem:[#allocation33_spill] sm:$0xff]  ;;  %v3033_v0 = vadd.f32 %v11444_v7, %v2638_v41  ;;  %v3949_v3 = vmul.f32 %v11537_v27, %v11537_v27  ;;  %v2640_v42 = vadd.f32 %v11460_v58, %v14113_v10 }
 0x64f   :  { %v11508_v12 = vpop.f32.mrf.mxu3  ;;  %v3874_v46 = vadd.f32 %v3873_v17, %v11253_v60  ;;  %v4008_v24 = vadd.f32 %v4007_v34, %v3945_v32  ;;  %v2639_v57 = vadd.f32 %v11425_v22, %v14112_v61  ;;  %v2575_v17 = vpop.f32.mrf.mxu1 }
 0x650   :  { %v11506_v2 = vpop.f32.mrf.mxu0  ;;  %v2965_v19 = vpop.f32.mrf.mxu2  ;;  %v11557_v47 = vadd.f32 %v11384_v15, %v3424_v26  ;;  %v11570_v15 = vadd.f32 %v11407_v40, %v3425_v37  ;;  %v3427_v58 = vadd.f32 %v11438_v23, %v3033_v0 }
 0x651   :  { %v3875_v11 = vadd.f32 %v3874_v46, %v11502_v55  ;;  %v4009_v33 = vadd.f32 %v4008_v24, %v3946_v56  ;;  %v3426_v46 = vadd.f32 %v11409_v16, %v3032_v59  ;;  %v3034_v7 = vadd.f32 %v11479_v14, %v2639_v57 }
 0x652   :  { %v3950_v56 = vmul.f32 %v11547_v28, %v11547_v28  ;;  %v3035_v21 = vadd.f32 %v2965_v19, %v2640_v42  ;;  %v3951_v14 = vmul.f32 %v11557_v47, %v11557_v47  ;;  %v3952_v23 = vmul.f32 %v11570_v15, %v11570_v15 }
 0x653   :  { %v3876_v63 = vadd.f32 %v3875_v11, %v11291_v1  ;;  %v4010_v32 = vadd.f32 %v4009_v33, %v3947_v18  ;;  %v14115_v11 = vld [vmem:[#allocation36_spill] sm:$0xff]  ;;  %v11580_v40 = vadd.f32 %v11436_v48, %v3426_v46  ;;  %v3428_v38 = vadd.f32 %v11471_v62, %v3034_v7 }
 0x654   :  { %v2642_v24 = vadd.f32 %v2575_v17, %v14115_v11  ;;  %v11587_v33 = vadd.f32 %v11469_v30, %v3427_v58 }
 0x655   :  { %v3877_v5 = vadd.f32 %v3876_v63, %v11522_v8  ;;  %v4011_v34 = vadd.f32 %v4010_v32, %v3948_v44  ;;  %v3429_v44 = vadd.f32 %v11508_v12, %v3035_v21  ;;  %v3953_v62 = vmul.f32 %v11580_v40, %v11580_v40 }
 0x656   :  { %v3954_v30 = vmul.f32 %v11587_v33, %v11587_v33 }
 0x657   :  { %v3361_v36 = vpop.f32.mrf.mxu3  ;;  %v3878_v22 = vadd.f32 %v3877_v5, %v11328_v6  ;;  %v4012_v16 = vadd.f32 %v4011_v34, %v3949_v3  ;;  %v2577_v48 = vpop.f32.mrf.mxu1  ;;  %v14116_v3 = vld [vmem:[#allocation37_spill] sm:$0xff]  ;;  %v9593_v34 = vld [vmem:[%s13844_s4 + $0xb8] sm:$0xff] }
 0x658   :  { %v3753_v35 = vpop.f32.mrf.mxu0  ;;  %v2967_v20 = vpop.f32.mrf.mxu2  ;;  %v2643_v49 = vadd.f32 %v2577_v48, %v14116_v3  ;;  %5241 = vmatpush.bf16.msrb.mxu3 %v9593_v34 }
 0x659   :  { %v3879_v31 = vadd.f32 %v3878_v22, %v11537_v27  ;;  %v3036_v54 = vadd.f32 %v2967_v20, %v2641_v39  ;;  %v4013_v63 = vadd.f32 %v4012_v16, %v3950_v56  ;;  %v11594_v20 = vadd.f32 %v11506_v2, %v3428_v38 }
 0x65a   :  { %v11599_v32 = vadd.f32 %v3753_v35, %v3429_v44 }
 0x65b   :  { %v3880_v26 = vadd.f32 %v3879_v31, %v11547_v28  ;;  %v4014_v61 = vadd.f32 %v4013_v63, %v3951_v14  ;;  %v3430_v17 = vadd.f32 %v3361_v36, %v3036_v54  ;;  %v3955_v2 = vmul.f32 %v11594_v20, %v11594_v20 }
 0x65c   :  { %v3956_v43 = vmul.f32 %v11599_v32, %v11599_v32 }
 0x65d   :  { %v3881_v59 = vadd.f32 %v3880_v26, %v11557_v47  ;;  %v4015_v5 = vadd.f32 %v4014_v61, %v3952_v23 }
 0x65f   :  { %v3364_v19 = vpop.f32.mrf.mxu3  ;;  %v3882_v57 = vadd.f32 %v3881_v59, %v11570_v15  ;;  %v4016_v42 = vadd.f32 %v4015_v5, %v3953_v62  ;;  %v9576_v62 = vld [vmem:[%s13844_s4 + $0x30] sm:$0xff] }
 0x660   :  { %v3755_v18 = vpop.f32.mrf.mxu0  ;;  %v2970_v41 = vpop.f32.mrf.mxu2  ;;  %4912 = vmatpush.bf16.msrb.mxu2 %v9576_v62  ;;  %v14119_v62 = vld [vmem:[#allocation47_spill] sm:$0xff] }
 0x661   :  { %v3037_v37 = vadd.f32 %v2970_v41, %v2642_v24  ;;  %v3883_v0 = vadd.f32 %v3882_v57, %v11580_v40  ;;  %v11605_v46 = vadd.f32 %v3755_v18, %v3430_v17  ;;  %v4017_v35 = vadd.f32 %v4016_v42, %v3954_v30 }
 0x663   :  { %v3431_v12 = vadd.f32 %v3364_v19, %v3037_v37  ;;  %v3884_v22 = vadd.f32 %v3883_v0, %v11587_v33  ;;  %v4018_v58 = vadd.f32 %v4017_v35, %v3955_v2  ;;  %v3957_v11 = vmul.f32 %v11605_v46, %v11605_v46 }
 0x665   :  { %v3885_v56 = vadd.f32 %v3884_v22, %v11594_v20  ;;  %v4019_v16 = vadd.f32 %v4018_v58, %v3956_v43  ;;  %v4034_v58 = vld [vmem:[#allocation4] sm:$0x1] }
 0x667   :  { %v3366_v31 = vpop.f32.mrf.mxu3  ;;  %v3886_v21 = vadd.f32 %v3885_v56, %v11599_v32  ;;  %v4020_v38 = vadd.f32 %v4019_v16, %v3957_v11  ;;  %v4047_v16 = vld [vmem:[#allocation7] sm:$0x1] }
 0x668   :  { %v3758_v10 = vpop.f32.mrf.mxu0  ;;  %v2972_v36 = vpop.f32.mrf.mxu2 }
 0x669   :  { %v3038_v7 = vadd.f32 %v2972_v36, %v2643_v49  ;;  %v11613_v39 = vadd.f32 %v3758_v10, %v3431_v12  ;;  %v3887_v14 = vadd.f32 %v3886_v21, %v11605_v46 }
 0x66b   :  { %v3432_v24 = vadd.f32 %v3366_v31, %v3038_v7  ;;  %v3958_v18 = vmul.f32 %v11613_v39, %v11613_v39  ;;  %v3888_v54 = vadd.f32 %v3887_v14, %v11613_v39 }
 0x66d   :  { %v4021_v63 = vadd.f32 %v4020_v38, %v3958_v18 }
 0x670   :  { %v3760_v26 = vpop.f32.mrf.mxu0 }
 0x671   :  { %v3826_v41 = vadd.f32 %v3760_v26, %v3432_v24 }
 0x673   :  { %v3889_v23 = vadd.f32 %v3888_v54, %v3826_v41  ;;  %v3959_v19 = vmul.f32 %v3826_v41, %v3826_v41 }
 0x675   :  { %v3890_v59 = vrot.slane %v3889_v23, 4  ;;  %v4022_v44 = vadd.f32 %v4021_v63, %v3959_v19  ;;  %v9592_v19 = vld [vmem:[%s13844_s4 + $0xb0] sm:$0xff] }
 0x676   :  { %5242 = vmatpush.bf16.msrb.mxu3 %v9592_v19 }
 0x677   :  { %v3891_v37 = vadd.f32 %v3890_v59, %v3889_v23  ;;  %v4023_v61 = vrot.slane %v4022_v44, 4  ;;  %v9575_v59 = vld [vmem:[%s13844_s4 + $0x28] sm:$0xff] }
 0x678   :  { %4913 = vmatpush.bf16.msrb.mxu2 %v9575_v59 }
 0x679   :  { %v3892_v48 = vrot.slane %v3891_v37, 2  ;;  %v4024_v57 = vadd.f32 %v4023_v61, %v4022_v44  ;;  %v14117_v44 = vld [vmem:[#allocation38_spill] sm:$0xff]  ;;  %v14118_v61 = vld [vmem:[#allocation39_spill] sm:$0xff] }
 0x67b   :  { %v3893_v17 = vadd.f32 %v3892_v48, %v3891_v37  ;;  %v4025_v5 = vrot.slane %v4024_v57, 2 }
 0x67d   :  { %v3894_v0 = vrot.slane %v3893_v17, 1  ;;  %v4026_v30 = vadd.f32 %v4025_v5, %v4024_v57  ;;  %v9574_v57 = vld [vmem:[%s13844_s4 + $0x20] sm:$0xff] }
 0x67e   :  { %v14120_v5 = vld [vmem:[#allocation48_spill] sm:$0xff]  ;;  %4914 = vmatpush.bf16.msrb.mxu2 %v9574_v57 }
 0x67f   :  { %v3895_v12 = vadd.f32 %v3894_v0, %v3893_v17  ;;  %v4027_v3 = vrot.slane %v4026_v30, 1 }
 0x681   :  { %v4028_v49 = vadd.f32 %v4027_v3, %v4026_v30  ;;  %v4029_v10 = vmul.f32 0.001953125, %v3895_v12  ;;  %v14121_v30 = vld [vmem:[#allocation49_spill] sm:$0xff]  ;;  %v14122_v3 = vld [vmem:[#allocation50_spill] sm:$0xff] }
 0x683   :  { %v4030_v42 = vmul.f32 0.001953125, %v4028_v49  ;;  %v4031_v22 = vmul.f32 %v4029_v10, %v4029_v10 }
 0x685   :  { %v4032_v2 = vsub.f32 %v4030_v42, %v4031_v22 }
 0x687   :  { %v4033_v36 = vmax.f32 %v4032_v2, 0.0 }
 0x689   :  { %v4035_v7 = vadd.f32 1e-05, %v4033_v36 }
 0x68b   :  { %9666 = vrsqrt.f32 %v4035_v7  ;;  %vm4042_vm3 = vweird.f32 %v4035_v7 }
 0x691   :  { %v9667_v34 = vpop.eup %9666 }
 0x692   :  { %v4037_v35 = vmul.f32 %v9667_v34, %v4035_v7  ;;  %vm4043_vm2 = vweird.f32 %v9667_v34  ;;  %v9590_v7 = vld [vmem:[%s13844_s4 + $0xa0] sm:$0xff] }
 0x693   :  { %vm4044_vm4 = vmor %vm4042_vm3, %vm4043_vm2 }
 0x694   :  { %v4038_v56 = vmul.f32 %v9667_v34, %v4037_v35 }
 0x696   :  { %v4039_v43 = vmul.f32 0.5, %v4038_v56  ;;  %v14125_v56 = vld [vmem:[#allocation80_spill] sm:$0xff] }
 0x698   :  { %v4040_v31 = vsub.f32 1.5, %v4039_v43  ;;  %v14126_v43 = vld [vmem:[#allocation81_spill] sm:$0xff] }
 0x69a   :  { %v4041_v21 = vmul.f32 %v9667_v34, %v4040_v31 }
 0x69c   :  { %v4045_v11 = vsel %vm4044_vm4, %v9667_v34, %v4041_v21  ;;  %v14124_v34 = vld [vmem:[#allocation79_spill] sm:$0xff] }
 0x69d   :  { %v4046_v24 = vmul.f32 %v4045_v11, %v4034_v58  ;;  %v14127_v58 = vld [vmem:[#allocation84_spill] sm:$0xff] }
 0x69f   :  { %v4048_v14 = vmul.f32 %v4046_v24, %v4029_v10  ;;  %v11625_v18 = vperm.slane %v4046_v24, 0  ;;  %v14123_v10 = vld [vmem:[#allocation51_spill] sm:$0xff] }
 0x6a1   :  { %v4049_v26 = vsub.f32 %v4047_v16, %v4048_v14  ;;  %v4116_v38 = vmul.f32 %v11625_v18, %v3826_v41  ;;  %v9591_v41 = vld [vmem:[%s13844_s4 + $0xa8] sm:$0xff]  ;;  %v4053_v37 = vmul.f32 %v11625_v18, %v14117_v44  ;;  %v4054_v48 = vmul.f32 %v11625_v18, %v14118_v61  ;;  %v9573_v16 = vld [vmem:[%s13844_s4 + $0x18] sm:$0xff] }
 0x6a2   :  { %5243 = vmatpush.bf16.msrb.mxu3 %v9591_v41  ;;  %v4055_v17 = vmul.f32 %v11625_v18, %v14119_v62  ;;  %v4056_v0 = vmul.f32 %v11625_v18, %v14120_v5  ;;  %v4057_v12 = vmul.f32 %v11625_v18, %v14121_v30  ;;  %v4058_v49 = vmul.f32 %v11625_v18, %v14122_v3  ;;  %v9571_v62 = vld [vmem:[%s13844_s4 + $0x8] sm:$0xff] }
 0x6a3   :  { %v11628_v54 = vperm.slane %v4049_v26, 0  ;;  %v4059_v42 = vmul.f32 %v11625_v18, %v14123_v10  ;;  %v11659_v22 = vmul.f32 %v11625_v18, %v11064_v50  ;;  %v11663_v2 = vmul.f32 %v11625_v18, %v11067_v25  ;;  %4915 = vmatpush.bf16.msrb.mxu2 %v9573_v16 }
 0x6a4   :  { %v11667_v36 = vmul.f32 %v11625_v18, %v11081_v45  ;;  %v4090_v35 = vmul.f32 %v11625_v18, %v14124_v34  ;;  %v4091_v50 = vmul.f32 %v11625_v18, %v14125_v56  ;;  %v4092_v31 = vmul.f32 %v11625_v18, %v14126_v43 }
 0x6a5   :  { %v4183_v63 = vadd.f32 %v11628_v54, %v4116_v38  ;;  %v4093_v25 = vmul.f32 %v11625_v18, %v14096_v51  ;;  %v4094_v45 = vmul.f32 %v11625_v18, %v11431_v29  ;;  %v4095_v21 = vmul.f32 %v11625_v18, %v14127_v58 }
 0x6a6   :  { %v4096_v11 = vmul.f32 %v11625_v18, %v11450_v52  ;;  %v4097_v24 = vmul.f32 %v11625_v18, %v11222_v9  ;;  %5244 = vmatpush.bf16.msrb.mxu3 %v9590_v7  ;;  %v4098_v51 = vmul.f32 %v11625_v18, %v11465_v53  ;;  %v4099_v29 = vmul.f32 %v11625_v18, %v14105_v13  ;;  %v9589_v13 = vld [vmem:[%s13844_s4 + $0x98] sm:$0xff] }
 0x6a7   :  { %v4247_v23 = vmax.f32 %v4183_v63, 0.0  ;;  %v4100_v14 = vmul.f32 %v11625_v18, %v11487_v4  ;;  %v4101_v52 = vmul.f32 %v11625_v18, %v11253_v60  ;;  %v4102_v9 = vmul.f32 %v11625_v18, %v11502_v55 }
 0x6a8   :  { %v4103_v26 = vmul.f32 %v11625_v18, %v11291_v1  ;;  %v4104_v38 = vmul.f32 %v11625_v18, %v11522_v8  ;;  %v4105_v53 = vmul.f32 %v11625_v18, %v11328_v6  ;;  %v4106_v60 = vmul.f32 %v11625_v18, %v11537_v27 }
 0x6a9   :  { %4420 = vst [vmem:[#allocation3 + $0x339] sm:$0xff] %v4247_v23  ;;  %v4107_v4 = vmul.f32 %v11625_v18, %v11547_v28  ;;  %v4108_v1 = vmul.f32 %v11625_v18, %v11557_v47  ;;  %v4109_v55 = vmul.f32 %v11625_v18, %v11570_v15  ;;  %v4110_v6 = vmul.f32 %v11625_v18, %v11580_v40  ;;  %v9572_v28 = vld [vmem:[%s13844_s4 + $0x10] sm:$0xff] }
 0x6aa   :  { %v4111_v8 = vmul.f32 %v11625_v18, %v11587_v33  ;;  %v4112_v63 = vmul.f32 %v11625_v18, %v11594_v20  ;;  %v4113_v27 = vmul.f32 %v11625_v18, %v11599_v32  ;;  %5245 = vmatpush.bf16.msrb.mxu3 %v9589_v13  ;;  %v4114_v47 = vmul.f32 %v11625_v18, %v11605_v46 }
 0x6ab   :  { %v4115_v15 = vmul.f32 %v11625_v18, %v11613_v39  ;;  %v11734_v40 = vadd.f32 %v11628_v54, %v4053_v37  ;;  %v11737_v33 = vadd.f32 %v11628_v54, %v4054_v48  ;;  %v11740_v20 = vadd.f32 %v11628_v54, %v4055_v17  ;;  %4916 = vmatpush.bf16.msrb.mxu2 %v9572_v28  ;;  %v9588_v39 = vld [vmem:[%s13844_s4 + $0x90] sm:$0xff]  ;;  %v14144_v28 = vld [vmem:[#allocation56_spill] sm:$0xff] }
 0x6ac   :  { %v11743_v32 = vadd.f32 %v11628_v54, %v4056_v0  ;;  %v11746_v23 = vadd.f32 %v11628_v54, %v4057_v12  ;;  %v11749_v46 = vadd.f32 %v11628_v54, %v4058_v49  ;;  %v11755_v19 = vadd.f32 %v11628_v54, %v4059_v42  ;;  %v9587_v42 = vld [vmem:[%s13844_s4 + $0x88] sm:$0xff] }
 0x6ad   :  { %v11758_v59 = vadd.f32 %v11628_v54, %v4090_v35  ;;  %v11761_v41 = vadd.f32 %v11628_v54, %v4091_v50  ;;  %v11764_v44 = vadd.f32 %v11628_v54, %v4092_v31  ;;  %v11767_v37 = vadd.f32 %v11628_v54, %v4093_v25 }
 0x6ae   :  { %14128 = vst [vmem:[#allocation23_spill] sm:$0xff] %v11746_v23  ;;  %v11770_v61 = vadd.f32 %v11628_v54, %v4094_v45  ;;  %v11773_v48 = vadd.f32 %v11628_v54, %v4095_v21  ;;  %v11776_v57 = vadd.f32 %v11628_v54, %v4096_v11  ;;  %5246 = vmatpush.bf16.msrb.mxu3 %v9588_v39  ;;  %v9570_v45 = vld [vmem:[%s13844_s4] sm:$0xff] }
 0x6af   :  { %14129 = vst [vmem:[#allocation25_spill] sm:$0xff] %v11749_v46  ;;  %v11782_v17 = vadd.f32 %v11628_v54, %v4097_v24  ;;  %v11785_v5 = vadd.f32 %v11628_v54, %v4098_v51  ;;  %v11788_v0 = vadd.f32 %v11628_v54, %v4099_v29  ;;  %v11791_v30 = vadd.f32 %v11628_v54, %v4100_v14 }
 0x6b0   :  { %v11794_v12 = vadd.f32 %v11628_v54, %v4101_v52  ;;  %v11797_v3 = vadd.f32 %v11628_v54, %v4102_v9  ;;  %v11800_v49 = vadd.f32 %v11628_v54, %v4103_v26  ;;  %v11803_v10 = vadd.f32 %v11628_v54, %v4104_v38  ;;  %4917 = vmatpush.bf16.msrb.mxu2 %v9571_v62  ;;  %v9586_v52 = vld [vmem:[%s13844_s4 + $0x80] sm:$0xff]  ;;  %v14145_v62 = vld [vmem:[#allocation57_spill] sm:$0xff] }
 0x6b1   :  { %v11809_v7 = vadd.f32 %v11628_v54, %v4105_v53  ;;  %v11812_v34 = vadd.f32 %v11628_v54, %v4106_v60  ;;  %v11815_v35 = vadd.f32 %v11628_v54, %v4107_v4  ;;  %v11818_v56 = vadd.f32 %v11628_v54, %v4108_v1  ;;  %v14140_v9 = vld [vmem:[#allocation52_spill] sm:$0xff]  ;;  %v14141_v53 = vld [vmem:[#allocation53_spill] sm:$0xff] }
 0x6b2   :  { %v11821_v50 = vadd.f32 %v11628_v54, %v4109_v55  ;;  %v11824_v43 = vadd.f32 %v11628_v54, %v4110_v6  ;;  %v11827_v31 = vadd.f32 %v11628_v54, %v4111_v8  ;;  %v11830_v25 = vadd.f32 %v11628_v54, %v4112_v63  ;;  %5247 = vmatpush.bf16.msrb.mxu3 %v9587_v42  ;;  %v14143_v8 = vld [vmem:[#allocation55_spill] sm:$0xff] }
 0x6b3   :  { %14130 = vst [vmem:[#allocation41_spill] sm:$0xff] %v11812_v34  ;;  %v11836_v58 = vadd.f32 %v11628_v54, %v4113_v27  ;;  %v11839_v21 = vadd.f32 %v11628_v54, %v4114_v47  ;;  %v11842_v11 = vadd.f32 %v11628_v54, %v4115_v15  ;;  %v13900_v24 = vmax.f32 %v11734_v40, 0.0 }
 0x6b4   :  { %14131 = vst [vmem:[#allocation40_spill] sm:$0xff] %v11815_v35  ;;  %v11847_v16 = vadd.f32 %v11628_v54, %v11659_v22  ;;  %v13899_v51 = vmax.f32 %v11737_v33, 0.0  ;;  %v13893_v29 = vmax.f32 %v11740_v20, 0.0  ;;  %v13892_v14 = vmax.f32 %v11743_v32, 0.0  ;;  %4918 = vmatpush.bf16.msrb.mxu2 %v9570_v45 }
 0x6b5   :  { %14132 = vst [vmem:[#allocation42_spill] sm:$0xff] %v11818_v56  ;;  %v4063_v26 = vmul.f32 %v11625_v18, %v14140_v9  ;;  %v11859_v38 = vadd.f32 %v11628_v54, %v11663_v2  ;;  %v13891_v22 = vmax.f32 %v11746_v23, 0.0  ;;  %v4064_v13 = vmul.f32 %v11625_v18, %v14141_v53  ;;  %v14142_v2 = vld [vmem:[#allocation54_spill] sm:$0xff] }
 0x6b6   :  { %14133 = vst [vmem:[#allocation18_spill] sm:$0xff] %v11821_v50  ;;  %v11868_v60 = vadd.f32 %v11628_v54, %v11667_v36  ;;  %v13890_v4 = vmax.f32 %v11749_v46, 0.0  ;;  %5248 = vmatpush.bf16.msrb.mxu3 %v9586_v52  ;;  %v4065_v1 = vmul.f32 %v11625_v18, %v14142_v2  ;;  %v13897_v6 = vmax.f32 %v11755_v19, 0.0  ;;  %v14146_v9 = vld [vmem:[#allocation58_spill] sm:$0xff]  ;;  %v14147_v2 = vld [vmem:[#allocation59_spill] sm:$0xff] }
 0x6b7   :  { %14134 = vst [vmem:[#allocation43_spill] sm:$0xff] %v11824_v43  ;;  %v11876_v55 = vadd.f32 %v11628_v54, %v4063_v26  ;;  %v4066_v36 = vmul.f32 %v11625_v18, %v14143_v8  ;;  %v11884_v63 = vadd.f32 %v11628_v54, %v4064_v13  ;;  %v13895_v27 = vmax.f32 %v11847_v16, 0.0  ;;  %v14180_v56 = vld [vmem:[#allocation78_spill] sm:$0xff] }
 0x6b8   :  { %14135 = vst [vmem:[#allocation20_spill] sm:$0xff] %v11827_v31  ;;  %v4067_v47 = vmul.f32 %v11625_v18, %v14144_v28  ;;  %v11892_v15 = vadd.f32 %v11628_v54, %v4065_v1  ;;  %v13894_v39 = vmax.f32 %v11859_v38, 0.0  ;;  %v4068_v42 = vmul.f32 %v11625_v18, %v14145_v62  ;;  %v9601_v28 = vld [vmem:[%s13844_s4 + $0xf8] sm:$0xff] }
 0x6b9   :  { %14136 = vst [vmem:[#allocation83_spill] sm:$0xff] %v11830_v25  ;;  %v11900_v45 = vadd.f32 %v11628_v54, %v4066_v36  ;;  %v13896_v52 = vmax.f32 %v11868_v60, 0.0  ;;  %v4069_v26 = vmul.f32 %v11625_v18, %v14146_v9  ;;  %v13898_v13 = vmax.f32 %v11876_v55, 0.0  ;;  %5635 = vmatpush.bf16.msrb.mxu0 %v9601_v28  ;;  %v5080_v28 = vld [vmem:[#allocation3 + $0x2] sm:$0xff] }
 0x6ba   :  { %14137 = vst [vmem:[#allocation17_spill] sm:$0xff] %v11836_v58  ;;  %v11908_v53 = vadd.f32 %v11628_v54, %v4067_v47  ;;  %v4070_v1 = vmul.f32 %v11625_v18, %v14147_v2  ;;  %v11916_v8 = vadd.f32 %v11628_v54, %v4068_v42  ;;  %v13901_v36 = vmax.f32 %v11884_v63, 0.0  ;;  %v14148_v47 = vld [vmem:[#allocation60_spill] sm:$0xff]  ;;  %v14149_v42 = vld [vmem:[#allocation61_spill] sm:$0xff] }
 0x6bb   :  { %14138 = vst [vmem:[#allocation44_spill] sm:$0xff] %v11839_v21  ;;  %v4071_v62 = vmul.f32 %v11625_v18, %v14148_v47  ;;  %v11927_v9 = vadd.f32 %v11628_v54, %v4069_v26  ;;  %v13903_v2 = vmax.f32 %v11892_v15, 0.0  ;;  %v14150_v47 = vld [vmem:[#allocation62_spill] sm:$0xff]  ;;  %v14177_v25 = vld [vmem:[#allocation77_spill] sm:$0xff] }
 0x6bc   :  { %14139 = vst [vmem:[#allocation22_spill] sm:$0xff] %v11842_v11  ;;  %v4073_v26 = vmul.f32 %v11625_v18, %v14150_v47  ;;  %v5081_v47 = vld [vmem:[#allocation3 + $0xa] sm:$0xff]  ;;  %v14156_v23 = vmax.f32 %v11908_v53, 0.0 }
 0x6bd   :  { %4357 = vst [vmem:[#allocation3 + $0x19] sm:$0xff] %v13900_v24  ;;  %v4534_v24 = vld [vmem:[#allocation3 + $0x9] sm:$0xff] }
 0x6be   :  { %4358 = vst [vmem:[#allocation3 + $0x21] sm:$0xff] %v13899_v51  ;;  %v11962_v51 = vadd.f32 %v11628_v54, %v4073_v26  ;;  %v14155_v26 = vmax.f32 %v11900_v45, 0.0 }
 0x6bf   :  { %4359 = vst [vmem:[#allocation3 + $0x31] sm:$0xff] %v13893_v29  ;;  %v11943_v29 = vadd.f32 %v11628_v54, %v4071_v62  ;;  %v9600_v62 = vld [vmem:[%s13844_s4 + $0xf0] sm:$0xff] }
 0x6c0   :  { %4360 = vst [vmem:[#allocation3 + $0x39] sm:$0xff] %v13892_v14  ;;  %5636 = vmatpush.bf16.msrb.mxu0 %v9600_v62 }
 0x6c1   :  { %4361 = vst [vmem:[#allocation3 + $0x49] sm:$0xff] %v13891_v22  ;;  %v11935_v22 = vadd.f32 %v11628_v54, %v4070_v1 }
 0x6c2   :  { %4362 = vst [vmem:[#allocation3 + $0x51] sm:$0xff] %v13890_v4  ;;  %v4072_v4 = vmul.f32 %v11625_v18, %v14149_v42  ;;  %v14151_v42 = vld [vmem:[#allocation63_spill] sm:$0xff] }
 0x6c3   :  { %4363 = vst [vmem:[#allocation3 + $0x61] sm:$0xff] %v13897_v6  ;;  %v4074_v1 = vmul.f32 %v11625_v18, %v14151_v42  ;;  %v14152_v6 = vld [vmem:[#allocation64_spill] sm:$0xff] }
 0x6c4   :  { %4364 = vst [vmem:[#allocation3 + $0x69] sm:$0xff] %v13895_v27  ;;  %v11951_v27 = vadd.f32 %v11628_v54, %v4072_v4  ;;  %v4533_v42 = vld [vmem:[#allocation3 + $0x1] sm:$0xff] }
 0x6c5   :  { %4365 = vst [vmem:[#allocation3 + $0x79] sm:$0xff] %v13894_v39  ;;  %v14154_v39 = vld [vmem:[#allocation66_spill] sm:$0xff]  ;;  %v11972_v46 = vadd.f32 %v11628_v54, %v4074_v1  ;;  %v14158_v1 = vld [vmem:[#allocation67_spill] sm:$0xff] }
 0x6c6   :  { %4366 = vst [vmem:[#allocation3 + $0x81] sm:$0xff] %v13896_v52  ;;  %v4077_v14 = vmul.f32 %v11625_v18, %v14154_v39  ;;  %v5144_v39 = vpack.c.bf16 %v5081_v47, %v5080_v28  ;;  %v4078_v21 = vmul.f32 %v11625_v18, %v14158_v1  ;;  %v14162_v1 = vld [vmem:[#allocation69_spill] sm:$0xff] }
 0x6c7   :  { %4367 = vst [vmem:[#allocation3 + $0x91] sm:$0xff] %v13898_v13  ;;  %v4075_v13 = vmul.f32 %v11625_v18, %v14152_v6  ;;  %v14171_v58 = vmax.f32 %v11972_v46, 0.0 }
 0x6c8   :  { %4368 = vst [vmem:[#allocation3 + $0x99] sm:$0xff] %v13901_v36  ;;  %v14153_v36 = vld [vmem:[#allocation65_spill] sm:$0xff]  ;;  %v11999_v28 = vadd.f32 %v11628_v54, %v4077_v14  ;;  %5249 = vmatmul.bf16.vlgmr.msrb.gmra.mxu3 %v5144_v39  ;;  %v14164_v14 = vld [vmem:[#allocation70_spill] sm:$0xff] }
 0x6c9   :  { %4369 = vst [vmem:[#allocation3 + $0xa9] sm:$0xff] %v13903_v2  ;;  %v4076_v52 = vmul.f32 %v11625_v18, %v14153_v36  ;;  %v11978_v4 = vadd.f32 %v11628_v54, %v4075_v13  ;;  %v9670_v36 = vld [vmem:[#allocation3] sm:$0xff]  ;;  %v14159_v13 = vmax.f32 %v11916_v8, 0.0  ;;  %v4081_v47 = vmul.f32 %v11625_v18, %v14164_v14  ;;  %v14170_v39 = vld [vmem:[#allocation73_spill] sm:$0xff] }
 0x6ca   :  { %4370 = vst [vmem:[#allocation3 + $0xb1] sm:$0xff] %v14155_v26  ;;  %v11983_v11 = vpack.c.bf16 %v9670_v36, %v9670_v36  ;;  %v4597_v26 = vpack.c.bf16 %v4534_v24, %v4533_v42  ;;  %v14160_v2 = vld [vmem:[#allocation68_spill] sm:$0xff]  ;;  %v4080_v24 = vmul.f32 %v11625_v18, %v14162_v1  ;;  %v12008_v42 = vadd.f32 %v11628_v54, %v4078_v21  ;;  %v14166_v21 = vld [vmem:[#allocation71_spill] sm:$0xff] }
 0x6cb   :  { %4371 = vst [vmem:[#allocation3 + $0xc1] sm:$0xff] %v14156_v23  ;;  %v11988_v6 = vadd.f32 %v11628_v54, %v4076_v52  ;;  %v9599_v23 = vld [vmem:[%s13844_s4 + $0xe8] sm:$0xff]  ;;  %v4079_v36 = vmul.f32 %v11625_v18, %v14160_v2  ;;  %v14161_v52 = vmax.f32 %v11927_v9, 0.0  ;;  %v14163_v2 = vmax.f32 %v11935_v22, 0.0 }
 0x6cc   :  { %14157 = vst [vmem:[#allocation82_spill] sm:$0xff] %v11983_v11  ;;  %4919 = vmatmul.bf16.vlgmr.msrb.gmra.mxu2 %v11983_v11  ;;  %4702 = vmatmul.bf16.vlgmr.msra.gmra.mxu1 %v4597_v26  ;;  %v14165_v1 = vmax.f32 %v11943_v29, 0.0  ;;  %v4082_v62 = vmul.f32 %v11625_v18, %v14166_v21  ;;  %v4084_v26 = vmul.f32 %v11625_v18, %v14170_v39  ;;  %v14174_v39 = vld [vmem:[#allocation75_spill] sm:$0xff]  ;;  %v14179_v50 = vmax.f32 %v12008_v42, 0.0 }
 0x6cd   :  { %4372 = vst [vmem:[#allocation3 + $0xc9] sm:$0xff] %v14159_v13  ;;  %5637 = vmatpush.bf16.msrb.mxu0 %v9599_v23  ;;  %v12024_v13 = vadd.f32 %v11628_v54, %v4080_v24  ;;  %v14167_v23 = vmax.f32 %v11951_v27, 0.0  ;;  %v14169_v24 = vmax.f32 %v11962_v51, 0.0 }
 0x6ce   :  { %4373 = vst [vmem:[#allocation3 + $0xd9] sm:$0xff] %v14161_v52  ;;  %v12016_v52 = vadd.f32 %v11628_v54, %v4079_v36  ;;  %v9598_v36 = vld [vmem:[%s13844_s4 + $0xe0] sm:$0xff]  ;;  %v4151_v31 = vadd.f32 %v11628_v54, %v4084_v26  ;;  %v14178_v26 = vmax.f32 %v11999_v28, 0.0 }
 0x6cf   :  { %4374 = vst [vmem:[#allocation3 + $0xe1] sm:$0xff] %v14163_v2  ;;  %v14168_v2 = vld [vmem:[#allocation72_spill] sm:$0xff] }
 0x6d0   :  { %4375 = vst [vmem:[#allocation3 + $0xf1] sm:$0xff] %v14165_v1  ;;  %v4083_v14 = vmul.f32 %v11625_v18, %v14168_v2  ;;  %v12035_v1 = vadd.f32 %v11628_v54, %v4081_v47  ;;  %v14172_v2 = vld [vmem:[#allocation74_spill] sm:$0xff] }
 0x6d1   :  { %4376 = vst [vmem:[#allocation3 + $0xf9] sm:$0xff] %v14167_v23  ;;  %v12043_v23 = vadd.f32 %v11628_v54, %v4082_v62  ;;  %5638 = vmatpush.bf16.msrb.mxu0 %v9598_v36  ;;  %v4085_v47 = vmul.f32 %v11625_v18, %v14172_v2  ;;  %v4086_v62 = vmul.f32 %v11625_v18, %v14174_v39  ;;  %v9597_v36 = vld [vmem:[%s13844_s4 + $0xd8] sm:$0xff] }
 0x6d2   :  { %4377 = vst [vmem:[#allocation3 + $0x109] sm:$0xff] %v14169_v24  ;;  %v4150_v21 = vadd.f32 %v11628_v54, %v4083_v14  ;;  %v14173_v24 = vmax.f32 %v11978_v4, 0.0  ;;  %v14176_v14 = vld [vmem:[#allocation76_spill] sm:$0xff]  ;;  %v4212_v39 = vmax.f32 %v12035_v1, 0.0  ;;  %v14181_v1 = vmax.f32 %v12016_v52, 0.0 }
 0x6d3   :  { %4378 = vst [vmem:[#allocation3 + $0x111] sm:$0xff] %v14171_v58  ;;  %v14175_v58 = vmax.f32 %v11988_v6, 0.0  ;;  %v4087_v2 = vmul.f32 %v11625_v18, %v14176_v14  ;;  %v4152_v43 = vadd.f32 %v11628_v54, %v4085_v47  ;;  %v4153_v11 = vadd.f32 %v11628_v54, %v4086_v62 }
 0x6d4   :  { %4379 = vst [vmem:[#allocation3 + $0x121] sm:$0xff] %v14173_v24  ;;  %v4088_v24 = vmul.f32 %v11625_v18, %v14177_v25  ;;  %v4089_v14 = vmul.f32 %v11625_v18, %v14180_v56  ;;  %v4214_v35 = vmax.f32 %v4150_v21, 0.0  ;;  %v14182_v62 = vmax.f32 %v12024_v13, 0.0 }
 0x6d5   :  { %4380 = vst [vmem:[#allocation3 + $0x129] sm:$0xff] %v14175_v58  ;;  %v4213_v58 = vmax.f32 %v12043_v23, 0.0  ;;  %5639 = vmatpush.bf16.msrb.mxu0 %v9597_v36  ;;  %v4154_v25 = vadd.f32 %v11628_v54, %v4087_v2  ;;  %v4216_v36 = vmax.f32 %v4152_v43, 0.0  ;;  %v4217_v18 = vmax.f32 %v4153_v11, 0.0  ;;  %v9595_v2 = vld [vmem:[%s13844_s4 + $0xc8] sm:$0xff] }
 0x6d6   :  { %4381 = vst [vmem:[#allocation3 + $0x139] sm:$0xff] %v14178_v26  ;;  %v4155_v47 = vadd.f32 %v11628_v54, %v4088_v24  ;;  %v4215_v26 = vmax.f32 %v4151_v31, 0.0  ;;  %v4156_v23 = vadd.f32 %v11628_v54, %v4089_v14  ;;  %v9609_v31 = vld [vmem:[%s13844_s4 + $0x138] sm:$0xff]  ;;  %v14183_v24 = vmax.f32 %v11734_v40, 0.0 }
 0x6d7   :  { %4382 = vst [vmem:[#allocation3 + $0x141] sm:$0xff] %v14179_v50  ;;  %v9596_v50 = vld [vmem:[%s13844_s4 + $0xd0] sm:$0xff]  ;;  %v4218_v56 = vmax.f32 %v4154_v25, 0.0  ;;  %v14184_v54 = vmax.f32 %v11737_v33, 0.0  ;;  %v14185_v11 = vmax.f32 %v11755_v19, 0.0  ;;  %v14186_v14 = vmax.f32 %v11847_v16, 0.0  ;;  %6029 = vmatpush.bf16.msrb.mxu1 %v9609_v31 }
 0x6d8   :  { %4383 = vst [vmem:[#allocation3 + $0x151] sm:$0xff] %v14181_v1  ;;  %v4219_v21 = vmax.f32 %v4155_v47, 0.0  ;;  %v4424_v47 = vld [vmem:[#allocation3 + $0x20] sm:$0xff]  ;;  %v14189_v40 = vmax.f32 %v11876_v55, 0.0  ;;  %v14190_v33 = vmax.f32 %v11884_v63, 0.0  ;;  %v14191_v19 = vmax.f32 %v11892_v15, 0.0 }
 0x6d9   :  { %4384 = vst [vmem:[#allocation3 + $0x159] sm:$0xff] %v14182_v62  ;;  %5640 = vmatpush.bf16.msrb.mxu0 %v9596_v50  ;;  %v4598_v43 = vpack.c.bf16 %v14184_v54, %v14183_v24  ;;  %v12101_v25 = vpack.c.bf16 %v14186_v14, %v14185_v11  ;;  %v5082_v1 = vld [vmem:[#allocation3 + $0x1a] sm:$0xff]  ;;  %v14187_v62 = vmax.f32 %v11859_v38, 0.0  ;;  %v14188_v50 = vmax.f32 %v11868_v60, 0.0  ;;  %v5083_v14 = vld [vmem:[#allocation3 + $0x22] sm:$0xff] }
 0x6da   :  { %4385 = vst [vmem:[#allocation3 + $0x169] sm:$0xff] %v4212_v39  ;;  %v12113_v24 = vpack.c.bf16 %v14190_v33, %v14189_v40  ;;  %v14192_v16 = vmax.f32 %v11900_v45, 0.0  ;;  %v14193_v54 = vmax.f32 %v11908_v53, 0.0  ;;  %v14194_v38 = vmax.f32 %v11916_v8, 0.0  ;;  %v14209_v40 = vld [vmem:[#allocation41_spill] sm:$0xff] }
 0x6db   :  { %4386 = vst [vmem:[#allocation3 + $0x171] sm:$0xff] %v4213_v58  ;;  %v12107_v34 = vpack.c.bf16 %v14188_v50, %v14187_v62  ;;  %v4220_v60 = vmax.f32 %v4156_v23, 0.0  ;;  %v14195_v63 = vmax.f32 %v11927_v9, 0.0  ;;  %v14196_v62 = vmax.f32 %v11935_v22, 0.0  ;;  %v9594_v23 = vld [vmem:[%s13844_s4 + $0xc0] sm:$0xff] }
 0x6dc   :  { %4387 = vst [vmem:[#allocation3 + $0x181] sm:$0xff] %v4214_v35  ;;  %v4423_v35 = vld [vmem:[#allocation3 + $0x18] sm:$0xff]  ;;  %v12125_v11 = vpack.c.bf16 %v14194_v38, %v14193_v54  ;;  %v14197_v45 = vmax.f32 %v11943_v29, 0.0  ;;  %v14198_v50 = vmax.f32 %v11951_v27, 0.0  ;;  %v4221_v8 = vmax.f32 %v11758_v59, 0.0  ;;  %4707 = vmatmul.bf16.gmra.mxu1 %v4598_v43 }
 0x6dd   :  { %4388 = vst [vmem:[#allocation3 + $0x189] sm:$0xff] %v4215_v26  ;;  %v12119_v26 = vpack.c.bf16 %v14192_v16, %v14191_v19  ;;  %v4486_v55 = vpack.c.bf16 %v4424_v47, %v4423_v35  ;;  %v12131_v15 = vpack.c.bf16 %v14196_v62, %v14195_v63  ;;  %5641 = vmatpush.bf16.msrb.mxu0 %v9595_v2  ;;  %v14199_v22 = vmax.f32 %v11962_v51, 0.0  ;;  %v14210_v19 = vld [vmem:[#allocation40_spill] sm:$0xff]  ;;  %v14213_v38 = vld [vmem:[#allocation43_spill] sm:$0xff]  ;;  %v14216_v62 = vld [vmem:[#allocation17_spill] sm:$0xff] }
 0x6de   :  { %4389 = vst [vmem:[#allocation3 + $0x1c9] sm:$0xff] %v4216_v36  ;;  %v12137_v53 = vpack.c.bf16 %v14198_v50, %v14197_v45  ;;  %v5145_v9 = vpack.c.bf16 %v5083_v14, %v5082_v1  ;;  %v14200_v36 = vmax.f32 %v11972_v46, 0.0  ;;  %v4222_v29 = vmax.f32 %v11761_v41, 0.0  ;;  %v14215_v14 = vld [vmem:[#allocation83_spill] sm:$0xff]  ;;  %v9608_v50 = vld [vmem:[%s13844_s4 + $0x130] sm:$0xff] }
 0x6df   :  { %4390 = vst [vmem:[#allocation3 + $0x1d1] sm:$0xff] %v4217_v18  ;;  %4924 = vmatmul.bf16.gmra.mxu2 %v4486_v55  ;;  %v14201_v59 = vmax.f32 %v11978_v4, 0.0  ;;  %v14202_v27 = vmax.f32 %v11988_v6, 0.0  ;;  %v14203_v2 = vmax.f32 %v11999_v28, 0.0  ;;  %v14204_v43 = vmax.f32 %v12008_v42, 0.0  ;;  %6030 = vmatpush.bf16.msrb.mxu1 %v9608_v50  ;;  %v4439_v50 = vld [vmem:[#allocation3 + $0xd8] sm:$0xff] }
 0x6e0   :  { %v12147_v31 = vpack.c.bf16 %v14200_v36, %v14199_v22  ;;  %4391 = vst [vmem:[#allocation3 + $0x1e1] sm:$0xff] %v4218_v56  ;;  %v4223_v46 = vmax.f32 %v11764_v44, 0.0  ;;  %5254 = vmatmul.bf16.gmra.mxu3 %v5145_v9  ;;  %v14205_v41 = vmax.f32 %v12016_v52, 0.0  ;;  %v14206_v51 = vmax.f32 %v12024_v13, 0.0  ;;  %v14218_v9 = vld [vmem:[#allocation22_spill] sm:$0xff]  ;;  %v4427_v36 = vld [vmem:[#allocation3 + $0x48] sm:$0xff] }
 0x6e1   :  { %v12154_v18 = vpack.c.bf16 %v14202_v27, %v14201_v59  ;;  %v12160_v35 = vpack.c.bf16 %v14204_v43, %v14203_v2  ;;  %4392 = vst [vmem:[#allocation3 + $0x1e9] sm:$0xff] %v4219_v21  ;;  %v4224_v4 = vmax.f32 %v11767_v37, 0.0  ;;  %v12170_v6 = vpack.c.bf16 %v4213_v58, %v4212_v39  ;;  %5642 = vmatpush.bf16.msrb.mxu0 %v9594_v23  ;;  %v4426_v58 = vld [vmem:[#allocation3 + $0x38] sm:$0xff]  ;;  %v5086_v59 = vld [vmem:[#allocation3 + $0x4a] sm:$0xff] }
 0x6e2   :  { %v12167_v56 = vpack.c.bf16 %v14206_v51, %v14205_v41  ;;  %4393 = vst [vmem:[#allocation3 + $0x1f9] sm:$0xff] %v4220_v60  ;;  %v4225_v28 = vmax.f32 %v11770_v61, 0.0  ;;  %v4226_v42 = vmax.f32 %v11773_v48, 0.0  ;;  %v4227_v44 = vmax.f32 %v11776_v57, 0.0  ;;  %v4425_v57 = vld [vmem:[#allocation3 + $0x30] sm:$0xff]  ;;  %v14214_v60 = vld [vmem:[#allocation20_spill] sm:$0xff] }
 0x6e3   :  { %4394 = vst [vmem:[#allocation3 + $0x201] sm:$0xff] %v4221_v8  ;;  %v4228_v52 = vmax.f32 %v11782_v17, 0.0  ;;  %v4229_v13 = vmax.f32 %v11785_v5, 0.0  ;;  %v4230_v37 = vmax.f32 %v11788_v0, 0.0  ;;  %v4231_v61 = vmax.f32 %v11791_v30, 0.0  ;;  %v5084_v21 = vld [vmem:[#allocation3 + $0x32] sm:$0xff] }
 0x6e4   :  { %4395 = vst [vmem:[#allocation3 + $0x211] sm:$0xff] %v4222_v29  ;;  %5643 = vmatmul.bf16.vlgmr.msrb.gmra.mxu0 %v4486_v55  ;;  %v4232_v39 = vmax.f32 %v11794_v12, 0.0  ;;  %v4233_v48 = vmax.f32 %v11797_v3, 0.0  ;;  %v4234_v17 = vmax.f32 %v11800_v49, 0.0  ;;  %v5085_v5 = vld [vmem:[#allocation3 + $0x3a] sm:$0xff]  ;;  %v4235_v47 = vmax.f32 %v11803_v10, 0.0 }
 0x6e5   :  { %4396 = vst [vmem:[#allocation3 + $0x219] sm:$0xff] %v4223_v46  ;;  %v14207_v0 = vmax.f32 %v11740_v20, 0.0  ;;  %v14208_v30 = vmax.f32 %v11743_v32, 0.0  ;;  %v4236_v12 = vmax.f32 %v11809_v7, 0.0  ;;  %v4487_v3 = vpack.c.bf16 %v4426_v58, %v4425_v57  ;;  %v14211_v10 = vld [vmem:[#allocation42_spill] sm:$0xff]  ;;  %v14217_v8 = vld [vmem:[#allocation44_spill] sm:$0xff] }
 0x6e6   :  { %4397 = vst [vmem:[#allocation3 + $0x229] sm:$0xff] %v4224_v4  ;;  %v4237_v33 = vmax.f32 %v14209_v40, 0.0  ;;  %v5146_v49 = vpack.c.bf16 %v5085_v5, %v5084_v21  ;;  %v4238_v16 = vmax.f32 %v14210_v19, 0.0  ;;  %v4239_v54 = vmax.f32 %v14211_v10, 0.0  ;;  %v14212_v20 = vld [vmem:[#allocation18_spill] sm:$0xff]  ;;  %v14219_v2 = vld [vmem:[#allocation23_spill] sm:$0xff] }
 0x6e7   :  { %4398 = vst [vmem:[#allocation3 + $0x231] sm:$0xff] %v4225_v28  ;;  %v4599_v1 = vpack.c.bf16 %v14208_v30, %v14207_v0  ;;  %v4240_v32 = vmax.f32 %v14212_v20, 0.0  ;;  %v4241_v7 = vmax.f32 %v14213_v38, 0.0  ;;  %v4242_v55 = vmax.f32 %v14214_v60, 0.0  ;;  %v4428_v29 = vld [vmem:[#allocation3 + $0x50] sm:$0xff]  ;;  %v14221_v46 = vld [vmem:[#allocation25_spill] sm:$0xff] }
 0x6e8   :  { %4399 = vst [vmem:[#allocation3 + $0x241] sm:$0xff] %v4226_v42  ;;  %v4243_v63 = vmax.f32 %v14215_v14, 0.0  ;;  %v4244_v45 = vmax.f32 %v14216_v62, 0.0  ;;  %v4245_v23 = vmax.f32 %v14217_v8, 0.0  ;;  %v4246_v22 = vmax.f32 %v14218_v9, 0.0  ;;  %v5087_v27 = vld [vmem:[#allocation3 + $0x52] sm:$0xff] }
 0x6e9   :  { %4400 = vst [vmem:[#allocation3 + $0x249] sm:$0xff] %v4227_v44  ;;  %v14220_v43 = vmax.f32 %v14219_v2, 0.0  ;;  %v14222_v41 = vmax.f32 %v14221_v46, 0.0  ;;  %v4488_v4 = vpack.c.bf16 %v4428_v29, %v4427_v36  ;;  %v5147_v28 = vpack.c.bf16 %v5087_v27, %v5086_v59  ;;  %v4429_v42 = vld [vmem:[#allocation3 + $0x60] sm:$0xff]  ;;  %v4430_v44 = vld [vmem:[#allocation3 + $0x68] sm:$0xff]  ;;  %v4433_v5 = vld [vmem:[#allocation3 + $0x90] sm:$0xff] }
 0x6ea   :  { %4401 = vst [vmem:[#allocation3 + $0x259] sm:$0xff] %v4228_v52  ;;  %v5088_v52 = vld [vmem:[#allocation3 + $0x62] sm:$0xff]  ;;  %v5090_v57 = vld [vmem:[#allocation3 + $0x7a] sm:$0xff]  ;;  %v5092_v0 = vld [vmem:[#allocation3 + $0x92] sm:$0xff] }
 0x6eb   :  { %4402 = vst [vmem:[#allocation3 + $0x261] sm:$0xff] %v4229_v13  ;;  %v4600_v51 = vpack.c.bf16 %v14222_v41, %v14220_v43  ;;  %v5089_v13 = vld [vmem:[#allocation3 + $0x6a] sm:$0xff]  ;;  %v5091_v58 = vld [vmem:[#allocation3 + $0x82] sm:$0xff]  ;;  %v5093_v30 = vld [vmem:[#allocation3 + $0x9a] sm:$0xff] }
 0x6ec   :  { %4403 = vst [vmem:[#allocation3 + $0x271] sm:$0xff] %v4230_v37  ;;  %4712 = vmatmul.bf16.gmra.mxu1 %v4599_v1  ;;  %v4489_v37 = vpack.c.bf16 %v4430_v44, %v4429_v42  ;;  %v5149_v21 = vpack.c.bf16 %v5091_v58, %v5090_v57  ;;  %v5150_v1 = vpack.c.bf16 %v5093_v30, %v5092_v0  ;;  %v5094_v40 = vld [vmem:[#allocation3 + $0xaa] sm:$0xff]  ;;  %v4440_v8 = vld [vmem:[#allocation3 + $0xe0] sm:$0xff]  ;;  %v4442_v44 = vld [vmem:[#allocation3 + $0xf8] sm:$0xff] }
 0x6ed   :  { %4404 = vst [vmem:[#allocation3 + $0x279] sm:$0xff] %v4231_v61  ;;  %v5148_v61 = vpack.c.bf16 %v5089_v13, %v5088_v52  ;;  %v5097_v20 = vld [vmem:[#allocation3 + $0xca] sm:$0xff]  ;;  %v5099_v36 = vld [vmem:[#allocation3 + $0xe2] sm:$0xff]  ;;  %v4494_v29 = vpack.c.bf16 %v4440_v8, %v4439_v50 }
 0x6ee   :  { %4405 = vst [vmem:[#allocation3 + $0x289] sm:$0xff] %v4232_v39  ;;  %v4431_v39 = vld [vmem:[#allocation3 + $0x78] sm:$0xff]  ;;  %v4441_v42 = vld [vmem:[#allocation3 + $0xf0] sm:$0xff]  ;;  %v4446_v50 = vld [vmem:[#allocation3 + $0x128] sm:$0xff] }
 0x6ef   :  { %4406 = vst [vmem:[#allocation3 + $0x291] sm:$0xff] %v4233_v48  ;;  %4929 = vmatmul.bf16.gmra.mxu2 %v4487_v3  ;;  %v4432_v48 = vld [vmem:[#allocation3 + $0x80] sm:$0xff]  ;;  %v4495_v57 = vpack.c.bf16 %v4442_v44, %v4441_v42 }
 0x6f0   :  { %4407 = vst [vmem:[#allocation3 + $0x2a1] sm:$0xff] %v4234_v17  ;;  %5259 = vmatmul.bf16.gmra.mxu3 %v5146_v49  ;;  %v4490_v17 = vpack.c.bf16 %v4432_v48, %v4431_v39  ;;  %v5101_v39 = vld [vmem:[#allocation3 + $0xfa] sm:$0xff] }
 0x6f1   :  { %4408 = vst [vmem:[#allocation3 + $0x2a9] sm:$0xff] %v4235_v47  ;;  %v4434_v47 = vld [vmem:[#allocation3 + $0x98] sm:$0xff] }
 0x6f2   :  { %4409 = vst [vmem:[#allocation3 + $0x2b9] sm:$0xff] %v4236_v12  ;;  %v4435_v12 = vld [vmem:[#allocation3 + $0xa8] sm:$0xff] }
 0x6f3   :  { %4410 = vst [vmem:[#allocation3 + $0x2c1] sm:$0xff] %v4237_v33  ;;  %v5095_v33 = vld [vmem:[#allocation3 + $0xb2] sm:$0xff] }
 0x6f4   :  { %4411 = vst [vmem:[#allocation3 + $0x2d1] sm:$0xff] %v4238_v16  ;;  %5648 = vmatmul.bf16.gmra.mxu0 %v4487_v3  ;;  %v4436_v3 = vld [vmem:[#allocation3 + $0xb0] sm:$0xff]  ;;  %v5151_v19 = vpack.c.bf16 %v5095_v33, %v5094_v40  ;;  %v4438_v16 = vld [vmem:[#allocation3 + $0xc8] sm:$0xff] }
 0x6f5   :  { %4412 = vst [vmem:[#allocation3 + $0x2d9] sm:$0xff] %v4239_v54  ;;  %v4492_v49 = vpack.c.bf16 %v4436_v3, %v4435_v12  ;;  %v5096_v54 = vld [vmem:[#allocation3 + $0xc2] sm:$0xff]  ;;  %v4444_v40 = vld [vmem:[#allocation3 + $0x110] sm:$0xff] }
 0x6f6   :  { %4413 = vst [vmem:[#allocation3 + $0x2e9] sm:$0xff] %v4240_v32  ;;  %v5152_v38 = vpack.c.bf16 %v5097_v20, %v5096_v54 }
 0x6f7   :  { %4414 = vst [vmem:[#allocation3 + $0x2f1] sm:$0xff] %v4241_v7 }
 0x6f8   :  { %4415 = vst [vmem:[#allocation3 + $0x301] sm:$0xff] %v4242_v55 }
 0x6f9   :  { %4416 = vst [vmem:[#allocation3 + $0x309] sm:$0xff] %v4243_v63 }
 0x6fa   :  { %4417 = vst [vmem:[#allocation3 + $0x319] sm:$0xff] %v4244_v45 }
 0x6fb   :  { %4418 = vst [vmem:[#allocation3 + $0x321] sm:$0xff] %v4245_v23 }
 0x6fc   :  { %4419 = vst [vmem:[#allocation3 + $0x331] sm:$0xff] %v4246_v22  ;;  %4717 = vmatmul.bf16.gmra.mxu1 %v4600_v51  ;;  %v5098_v22 = vld [vmem:[#allocation3 + $0xda] sm:$0xff] }
 0x6ff   :  { %4934 = vmatmul.bf16.gmra.mxu2 %v4488_v4 }
 0x700   :  { %5264 = vmatmul.bf16.gmra.mxu3 %v5147_v28 }
 0x704   :  { %5653 = vmatmul.bf16.gmra.mxu0 %v4488_v4 }
 0x70c   :  { %4722 = vmatmul.bf16.gmra.mxu1 %v12101_v25  ;;  %v4491_v25 = vpack.c.bf16 %v4434_v47, %v4433_v5 }
 0x70f   :  { %4939 = vmatmul.bf16.gmra.mxu2 %v4489_v37 }
 0x710   :  { %5269 = vmatmul.bf16.gmra.mxu3 %v5148_v61  ;;  %v5100_v61 = vld [vmem:[#allocation3 + $0xf2] sm:$0xff] }
 0x711   :  { %v5154_v58 = vpack.c.bf16 %v5101_v39, %v5100_v61 }
 0x714   :  { %5658 = vmatmul.bf16.gmra.mxu0 %v4489_v37 }
 0x71c   :  { %4727 = vmatmul.bf16.gmra.mxu1 %v12107_v34  ;;  %v9607_v34 = vld [vmem:[%s13844_s4 + $0x128] sm:$0xff] }
 0x71d   :  { %6031 = vmatpush.bf16.msrb.mxu1 %v9607_v34 }
 0x71f   :  { %4944 = vmatmul.bf16.gmra.mxu2 %v4490_v17 }
 0x720   :  { %5274 = vmatmul.bf16.gmra.mxu3 %v5149_v21 }
 0x724   :  { %5663 = vmatmul.bf16.gmra.mxu0 %v4490_v17 }
 0x72c   :  { %4732 = vmatmul.bf16.gmra.mxu1 %v12113_v24  ;;  %v4437_v24 = vld [vmem:[#allocation3 + $0xc0] sm:$0xff] }
 0x72d   :  { %v4493_v32 = vpack.c.bf16 %v4438_v16, %v4437_v24  ;;  %v5102_v24 = vld [vmem:[#allocation3 + $0x10a] sm:$0xff]  ;;  %v5103_v16 = vld [vmem:[#allocation3 + $0x112] sm:$0xff] }
 0x72e   :  { %v5155_v20 = vpack.c.bf16 %v5103_v16, %v5102_v24 }
 0x72f   :  { %4949 = vmatmul.bf16.gmra.mxu2 %v4491_v25 }
 0x730   :  { %5279 = vmatmul.bf16.gmra.mxu3 %v5150_v1  ;;  %v9606_v1 = vld [vmem:[%s13844_s4 + $0x120] sm:$0xff] }
 0x731   :  { %6032 = vmatpush.bf16.msrb.mxu1 %v9606_v1 }
 0x734   :  { %5668 = vmatmul.bf16.gmra.mxu0 %v4491_v25 }
 0x73c   :  { %4737 = vmatmul.bf16.gmra.mxu1 %v12119_v26 }
 0x73f   :  { %4954 = vmatmul.bf16.gmra.mxu2 %v4492_v49 }
 0x740   :  { %5284 = vmatmul.bf16.gmra.mxu3 %v5151_v19 }
 0x744   :  { %5673 = vmatmul.bf16.gmra.mxu0 %v4492_v49 }
 0x749   :  { %v4703_v10 = vpop.f32.mrf.mxu1 }
 0x74b   :  { %v5250_v60 = vpop.f32.mrf.mxu3 }
 0x74c   :  { %4742 = vmatmul.bf16.gmra.mxu1 %v12125_v11  ;;  %v5153_v11 = vpack.c.bf16 %v5099_v36, %v5098_v22  ;;  %v5104_v22 = vld [vmem:[#allocation3 + $0x122] sm:$0xff]  ;;  %v5105_v36 = vld [vmem:[#allocation3 + $0x12a] sm:$0xff] }
 0x74f   :  { %4959 = vmatmul.bf16.gmra.mxu2 %v4493_v32  ;;  %v4920_v7 = vpop.f32.mrf.mxu2 }
 0x750   :  { %5289 = vmatmul.bf16.gmra.mxu3 %v5152_v38  ;;  %v4921_v55 = vadd.f32 %v4920_v7, %v4703_v10 }
 0x751   :  { %v4705_v26 = vpop.f32.mrf.mxu1 }
 0x752   :  { %v5410_v14 = vadd.f32 %v5250_v60, %v4921_v55 }
 0x753   :  { %v5252_v62 = vpop.f32.mrf.mxu3 }
 0x754   :  { %5678 = vmatmul.bf16.gmra.mxu0 %v4493_v32 }
 0x757   :  { %v4922_v63 = vpop.f32.mrf.mxu2 }
 0x758   :  { %v4923_v45 = vadd.f32 %v4922_v63, %v4705_v26 }
 0x759   :  { %v4708_v9 = vpop.f32.mrf.mxu1 }
 0x75a   :  { %v5411_v23 = vadd.f32 %v5252_v62, %v4923_v45  ;;  %v4445_v45 = vld [vmem:[#allocation3 + $0x120] sm:$0xff] }
 0x75c   :  { %4747 = vmatmul.bf16.gmra.mxu1 %v12131_v15 }
 0x75f   :  { %4964 = vmatmul.bf16.gmra.mxu2 %v4494_v29 }
 0x760   :  { %5294 = vmatmul.bf16.gmra.mxu3 %v5153_v11  ;;  %v4497_v11 = vpack.c.bf16 %v4446_v50, %v4445_v45  ;;  %v9605_v50 = vld [vmem:[%s13844_s4 + $0x118] sm:$0xff] }
 0x761   :  { %v5644_v59 = vpop.f32.mrf.mxu0  ;;  %v4710_v41 = vpop.f32.mrf.mxu1  ;;  %6033 = vmatpush.bf16.msrb.mxu1 %v9605_v50 }
 0x762   :  { %v4925_v27 = vpop.f32.mrf.mxu2  ;;  %v12214_v2 = vadd.f32 %v5644_v59, %v5410_v14  ;;  %v5156_v59 = vpack.c.bf16 %v5105_v36, %v5104_v22 }
 0x763   :  { %v4926_v43 = vadd.f32 %v4925_v27, %v4708_v9  ;;  %v5255_v46 = vpop.f32.mrf.mxu3 }
 0x764   :  { %5683 = vmatmul.bf16.gmra.mxu0 %v4494_v29 }
 0x765   :  { %v5412_v51 = vadd.f32 %v5255_v46, %v4926_v43 }
 0x769   :  { %v5646_v4 = vpop.f32.mrf.mxu0  ;;  %v4713_v37 = vpop.f32.mrf.mxu1 }
 0x76a   :  { %v4927_v28 = vpop.f32.mrf.mxu2  ;;  %v12216_v52 = vadd.f32 %v5646_v4, %v5411_v23 }
 0x76b   :  { %v4928_v13 = vadd.f32 %v4927_v28, %v4710_v41  ;;  %v5257_v15 = vpop.f32.mrf.mxu3 }
 0x76c   :  { %4752 = vmatmul.bf16.gmra.mxu1 %v12137_v53  ;;  %v4443_v53 = vld [vmem:[#allocation3 + $0x108] sm:$0xff] }
 0x76d   :  { %v5413_v48 = vadd.f32 %v5257_v15, %v4928_v13  ;;  %v4496_v54 = vpack.c.bf16 %v4444_v40, %v4443_v53  ;;  %v4447_v13 = vld [vmem:[#allocation3 + $0x138] sm:$0xff]  ;;  %v4448_v15 = vld [vmem:[#allocation3 + $0x140] sm:$0xff] }
 0x76f   :  { %4969 = vmatmul.bf16.gmra.mxu2 %v4495_v57 }
 0x770   :  { %5299 = vmatmul.bf16.gmra.mxu3 %v5154_v58 }
 0x771   :  { %v5649_v17 = vpop.f32.mrf.mxu0  ;;  %v4715_v30 = vpop.f32.mrf.mxu1 }
 0x772   :  { %v4930_v21 = vpop.f32.mrf.mxu2  ;;  %v12219_v5 = vadd.f32 %v5649_v17, %v5412_v51  ;;  %v4498_v17 = vpack.c.bf16 %v4448_v15, %v4447_v13 }
 0x773   :  { %v4931_v47 = vadd.f32 %v4930_v21, %v4713_v37  ;;  %v5260_v0 = vpop.f32.mrf.mxu3 }
 0x774   :  { %5688 = vmatmul.bf16.gmra.mxu0 %v4495_v57  ;;  %v5107_v57 = vld [vmem:[#allocation3 + $0x142] sm:$0xff] }
 0x775   :  { %v5414_v25 = vadd.f32 %v5260_v0, %v4931_v47 }
 0x779   :  { %v5651_v12 = vpop.f32.mrf.mxu0  ;;  %v4718_v19 = vpop.f32.mrf.mxu1 }
 0x77a   :  { %v4932_v3 = vpop.f32.mrf.mxu2  ;;  %v12224_v33 = vadd.f32 %v5651_v12, %v5413_v48  ;;  %v5106_v48 = vld [vmem:[#allocation3 + $0x13a] sm:$0xff] }
 0x77b   :  { %v4933_v34 = vadd.f32 %v4932_v3, %v4715_v30  ;;  %v5262_v49 = vpop.f32.mrf.mxu3  ;;  %v5157_v21 = vpack.c.bf16 %v5107_v57, %v5106_v48  ;;  %v5112_v48 = vld [vmem:[#allocation3 + $0x1b2] sm:$0xff]  ;;  %v5113_v57 = vld [vmem:[#allocation3 + $0x1ba] sm:$0xff] }
 0x77c   :  { %4757 = vmatmul.bf16.gmra.mxu1 %v12147_v31 }
 0x77d   :  { %v5415_v10 = vadd.f32 %v5262_v49, %v4933_v34  ;;  %v4449_v34 = vld [vmem:[#allocation3 + $0x150] sm:$0xff]  ;;  %v4450_v49 = vld [vmem:[#allocation3 + $0x158] sm:$0xff] }
 0x77f   :  { %4974 = vmatmul.bf16.gmra.mxu2 %v4496_v54 }
 0x780   :  { %5304 = vmatmul.bf16.gmra.mxu3 %v5155_v20 }
 0x781   :  { %v5654_v32 = vpop.f32.mrf.mxu0  ;;  %v4720_v14 = vpop.f32.mrf.mxu1 }
 0x782   :  { %v4935_v38 = vpop.f32.mrf.mxu2  ;;  %v12227_v7 = vadd.f32 %v5654_v32, %v5414_v25  ;;  %v4499_v32 = vpack.c.bf16 %v4450_v49, %v4449_v34 }
 0x783   :  { %v4936_v60 = vadd.f32 %v4935_v38, %v4718_v19  ;;  %v5265_v55 = vpop.f32.mrf.mxu3 }
 0x784   :  { %5693 = vmatmul.bf16.gmra.mxu0 %v4496_v54  ;;  %v5109_v54 = vld [vmem:[#allocation3 + $0x15a] sm:$0xff] }
 0x785   :  { %v5416_v26 = vadd.f32 %v5265_v55, %v4936_v60 }
 0x789   :  { %v5656_v63 = vpop.f32.mrf.mxu0  ;;  %v4723_v9 = vpop.f32.mrf.mxu1 }
 0x78a   :  { %v4937_v62 = vpop.f32.mrf.mxu2  ;;  %v12229_v8 = vadd.f32 %v5656_v63, %v5415_v10  ;;  %v5108_v10 = vld [vmem:[#allocation3 + $0x152] sm:$0xff] }
 0x78b   :  { %v4938_v23 = vadd.f32 %v4937_v62, %v4720_v14  ;;  %v5267_v31 = vpop.f32.mrf.mxu3  ;;  %v5158_v38 = vpack.c.bf16 %v5109_v54, %v5108_v10 }
 0x78c   :  { %4762 = vmatmul.bf16.gmra.mxu1 %v12154_v18 }
 0x78d   :  { %v5417_v29 = vadd.f32 %v5267_v31, %v4938_v23 }
 0x78f   :  { %4979 = vmatmul.bf16.gmra.mxu2 %v4497_v11 }
 0x790   :  { %5309 = vmatmul.bf16.gmra.mxu3 %v5156_v59  ;;  %v5110_v59 = vld [vmem:[#allocation3 + $0x16a] sm:$0xff] }
 0x791   :  { %v5659_v27 = vpop.f32.mrf.mxu0  ;;  %v4725_v4 = vpop.f32.mrf.mxu1 }
 0x792   :  { %v4940_v43 = vpop.f32.mrf.mxu2  ;;  %v12232_v46 = vadd.f32 %v5659_v27, %v5416_v26  ;;  %v5111_v27 = vld [vmem:[#allocation3 + $0x172] sm:$0xff] }
 0x793   :  { %v4941_v41 = vadd.f32 %v4940_v43, %v4723_v9  ;;  %v5270_v51 = vpop.f32.mrf.mxu3  ;;  %v4452_v9 = vld [vmem:[#allocation3 + $0x170] sm:$0xff] }
 0x794   :  { %5698 = vmatmul.bf16.gmra.mxu0 %v4497_v11 }
 0x795   :  { %v5418_v28 = vadd.f32 %v5270_v51, %v4941_v41  ;;  %v5159_v51 = vpack.c.bf16 %v5111_v27, %v5110_v59 }
 0x799   :  { %v5661_v42 = vpop.f32.mrf.mxu0  ;;  %v4728_v39 = vpop.f32.mrf.mxu1 }
 0x79a   :  { %v4942_v44 = vpop.f32.mrf.mxu2  ;;  %v12234_v37 = vadd.f32 %v5661_v42, %v5417_v29 }
 0x79b   :  { %v4943_v61 = vadd.f32 %v4942_v44, %v4725_v4  ;;  %v5272_v18 = vpop.f32.mrf.mxu3 }
 0x79c   :  { %4767 = vmatmul.bf16.gmra.mxu1 %v12160_v35 }
 0x79d   :  { %v5419_v58 = vadd.f32 %v5272_v18, %v4943_v61  ;;  %v4565_v18 = vld [vmem:[#allocation3 + $0x1b1] sm:$0xff] }
 0x79f   :  { %4984 = vmatmul.bf16.gmra.mxu2 %v4498_v17 }
 0x7a0   :  { %5314 = vmatmul.bf16.gmra.mxu3 %v5157_v21 }
 0x7a1   :  { %v5664_v47 = vpop.f32.mrf.mxu0  ;;  %v4730_v12 = vpop.f32.mrf.mxu1 }
 0x7a2   :  { %v4945_v0 = vpop.f32.mrf.mxu2  ;;  %v12237_v30 = vadd.f32 %v5664_v47, %v5418_v28 }
 0x7a3   :  { %v4946_v25 = vadd.f32 %v4945_v0, %v4728_v39  ;;  %v5275_v1 = vpop.f32.mrf.mxu3  ;;  %v4566_v39 = vld [vmem:[#allocation3 + $0x1b9] sm:$0xff] }
 0x7a4   :  { %5703 = vmatmul.bf16.gmra.mxu0 %v4498_v17  ;;  %v4613_v21 = vpack.c.bf16 %v4566_v39, %v4565_v18  ;;  %v4457_v18 = vld [vmem:[#allocation3 + $0x1e0] sm:$0xff]  ;;  %v4458_v39 = vld [vmem:[#allocation3 + $0x1e8] sm:$0xff] }
 0x7a5   :  { %v5420_v3 = vadd.f32 %v5275_v1, %v4946_v25  ;;  %v5160_v1 = vpack.c.bf16 %v5113_v57, %v5112_v48 }
 0x7a9   :  { %v5666_v53 = vpop.f32.mrf.mxu0  ;;  %v4733_v16 = vpop.f32.mrf.mxu1 }
 0x7aa   :  { %v4947_v40 = vpop.f32.mrf.mxu2  ;;  %v12239_v19 = vadd.f32 %v5666_v53, %v5419_v58  ;;  %v5504_v53 = vld [vmem:[#allocation3 + $0x180] sm:$0xff] }
 0x7ab   :  { %v4948_v24 = vadd.f32 %v4947_v40, %v4730_v12  ;;  %v5277_v35 = vpop.f32.mrf.mxu3  ;;  %v5505_v40 = vld [vmem:[#allocation3 + $0x188] sm:$0xff] }
 0x7ac   :  { %4772 = vmatmul.bf16.gmra.mxu1 %v12167_v56  ;;  %v4451_v56 = vld [vmem:[#allocation3 + $0x168] sm:$0xff] }
 0x7ad   :  { %v5421_v20 = vadd.f32 %v5277_v35, %v4948_v24  ;;  %v4500_v41 = vpack.c.bf16 %v4452_v9, %v4451_v56  ;;  %v5553_v35 = vpack.c.bf16 %v5505_v40, %v5504_v53  ;;  %v5115_v56 = vld [vmem:[#allocation3 + $0x1d2] sm:$0xff] }
 0x7af   :  { %4989 = vmatmul.bf16.gmra.mxu2 %v4499_v32 }
 0x7b0   :  { %5319 = vmatmul.bf16.gmra.mxu3 %v5158_v38  ;;  %v4568_v38 = vld [vmem:[#allocation3 + $0x1d1] sm:$0xff] }
 0x7b1   :  { %v5669_v60 = vpop.f32.mrf.mxu0  ;;  %v4735_v62 = vpop.f32.mrf.mxu1 }
 0x7b2   :  { %v4950_v55 = vpop.f32.mrf.mxu2  ;;  %v12242_v14 = vadd.f32 %v5669_v60, %v5420_v3  ;;  %v14223_v3 = vld [vmem:[#allocation82_spill] sm:$0xff] }
 0x7b3   :  { %v4951_v26 = vadd.f32 %v4950_v55, %v4733_v16  ;;  %v5280_v63 = vpop.f32.mrf.mxu3 }
 0x7b4   :  { %5708 = vmatmul.bf16.gmra.mxu0 %v4499_v32  ;;  %v4567_v32 = vld [vmem:[#allocation3 + $0x1c9] sm:$0xff] }
 0x7b5   :  { %v5422_v45 = vadd.f32 %v5280_v63, %v4951_v26  ;;  %v4455_v26 = vld [vmem:[#allocation3 + $0x1c8] sm:$0xff]  ;;  %v4456_v63 = vld [vmem:[#allocation3 + $0x1d0] sm:$0xff]  ;;  %v4614_v9 = vpack.c.bf16 %v4568_v38, %v4567_v32 }
 0x7b9   :  { %v5671_v23 = vpop.f32.mrf.mxu0  ;;  %v4738_v11 = vpop.f32.mrf.mxu1 }
 0x7ba   :  { %v4952_v31 = vpop.f32.mrf.mxu2  ;;  %v12247_v22 = vadd.f32 %v5671_v23, %v5421_v20 }
 0x7bb   :  { %v4953_v36 = vadd.f32 %v4952_v31, %v4735_v62  ;;  %v5282_v29 = vpop.f32.mrf.mxu3  ;;  %v5114_v31 = vld [vmem:[#allocation3 + $0x1ca] sm:$0xff] }
 0x7bc   :  { %4777 = vmatmul.bf16.gmra.mxu1 %v12170_v6 }
 0x7bd   :  { %v5423_v43 = vadd.f32 %v5282_v29, %v4953_v36  ;;  %v4502_v29 = vpack.c.bf16 %v4456_v63, %v4455_v26 }
 0x7bf   :  { %4994 = vmatmul.bf16.gmra.mxu2 %v4500_v41 }
 0x7c0   :  { %5324 = vmatmul.bf16.gmra.mxu3 %v5159_v51 }
 0x7c1   :  { %v5674_v4 = vpop.f32.mrf.mxu0  ;;  %v4740_v15 = vpop.f32.mrf.mxu1 }
 0x7c2   :  { %v4955_v28 = vpop.f32.mrf.mxu2  ;;  %v12250_v42 = vadd.f32 %v5674_v4, %v5422_v45 }
 0x7c3   :  { %v4956_v44 = vadd.f32 %v4955_v28, %v4738_v11  ;;  %v5285_v13 = vpop.f32.mrf.mxu3  ;;  %v5161_v11 = vpack.c.bf16 %v5115_v56, %v5114_v31  ;;  %v5119_v31 = vld [vmem:[#allocation3 + $0x202] sm:$0xff] }
 0x7c4   :  { %5713 = vmatmul.bf16.gmra.mxu0 %v4500_v41 }
 0x7c5   :  { %v5424_v61 = vadd.f32 %v5285_v13, %v4956_v44  ;;  %v4569_v44 = vld [vmem:[#allocation3 + $0x1e1] sm:$0xff]  ;;  %v4570_v13 = vld [vmem:[#allocation3 + $0x1e9] sm:$0xff] }
 0x7c9   :  { %v5676_v58 = vpop.f32.mrf.mxu0  ;;  %v4743_v25 = vpop.f32.mrf.mxu1 }
 0x7ca   :  { %v4957_v17 = vpop.f32.mrf.mxu2  ;;  %v12252_v6 = vadd.f32 %v5676_v58, %v5423_v43 }
 0x7cb   :  { %v4958_v47 = vadd.f32 %v4957_v17, %v4740_v15  ;;  %v5287_v0 = vpop.f32.mrf.mxu3 }
 0x7cc   :  { %4782 = vmatmul.bf16.gmra.mxu1 %v4613_v21  ;;  %v5116_v21 = vld [vmem:[#allocation3 + $0x1e2] sm:$0xff] }
 0x7cd   :  { %v5425_v12 = vadd.f32 %v5287_v0, %v4958_v47  ;;  %v5117_v47 = vld [vmem:[#allocation3 + $0x1ea] sm:$0xff]  ;;  %v4615_v0 = vpack.c.bf16 %v4570_v13, %v4569_v44  ;;  %v4574_v13 = vld [vmem:[#allocation3 + $0x219] sm:$0xff] }
 0x7ce   :  { %v4573_v44 = vld [vmem:[#allocation3 + $0x211] sm:$0xff] }
 0x7cf   :  { %4999 = vmatmul.bf16.gmra.mxu2 %v14223_v3 }
 0x7d0   :  { %5329 = vmatmul.bf16.gmra.mxu3 %v5160_v1  ;;  %v4503_v1 = vpack.c.bf16 %v4458_v39, %v4457_v18  ;;  %v4461_v18 = vld [vmem:[#allocation3 + $0x210] sm:$0xff]  ;;  %v4462_v39 = vld [vmem:[#allocation3 + $0x218] sm:$0xff] }
 0x7d1   :  { %v5679_v34 = vpop.f32.mrf.mxu0  ;;  %v4745_v54 = vpop.f32.mrf.mxu1 }
 0x7d2   :  { %v4960_v49 = vpop.f32.mrf.mxu2  ;;  %v12255_v24 = vadd.f32 %v5679_v34, %v5424_v61 }
 0x7d3   :  { %v4961_v16 = vadd.f32 %v4960_v49, %v4743_v25  ;;  %v5290_v10 = vpop.f32.mrf.mxu3 }
 0x7d4   :  { %5718 = vmatmul.bf16.gmra.mxu0 %v5553_v35 }
 0x7d5   :  { %v5426_v20 = vadd.f32 %v5290_v10, %v4961_v16  ;;  %v9604_v10 = vld [vmem:[%s13844_s4 + $0x110] sm:$0xff] }
 0x7d6   :  { %6034 = vmatpush.bf16.msrb.mxu1 %v9604_v10 }
 0x7d9   :  { %v5681_v60 = vpop.f32.mrf.mxu0  ;;  %v4748_v23 = vpop.f32.mrf.mxu1 }
 0x7da   :  { %v4962_v55 = vpop.f32.mrf.mxu2  ;;  %v12257_v62 = vadd.f32 %v5681_v60, %v5425_v12  ;;  %v5162_v12 = vpack.c.bf16 %v5117_v47, %v5116_v21  ;;  %v4459_v60 = vld [vmem:[#allocation3 + $0x1f8] sm:$0xff] }
 0x7db   :  { %v4963_v45 = vadd.f32 %v4962_v55, %v4745_v54  ;;  %v5292_v50 = vpop.f32.mrf.mxu3  ;;  %v4571_v54 = vld [vmem:[#allocation3 + $0x1f9] sm:$0xff] }
 0x7dc   :  { %4787 = vmatmul.bf16.gmra.mxu1 %v4614_v9  ;;  %v4460_v55 = vld [vmem:[#allocation3 + $0x200] sm:$0xff]  ;;  %v5120_v47 = vld [vmem:[#allocation3 + $0x212] sm:$0xff] }
 0x7dd   :  { %v5427_v36 = vadd.f32 %v5292_v50, %v4963_v45 }
 0x7df   :  { %5004 = vmatmul.bf16.gmra.mxu2 %v4502_v29 }
 0x7e0   :  { %5334 = vmatmul.bf16.gmra.mxu3 %v5161_v11 }
 0x7e1   :  { %v5684_v59 = vpop.f32.mrf.mxu0  ;;  %v4750_v4 = vpop.f32.mrf.mxu1 }
 0x7e2   :  { %v4965_v27 = vpop.f32.mrf.mxu2  ;;  %v12259_v43 = vadd.f32 %v5684_v59, %v5426_v20  ;;  %v4572_v20 = vld [vmem:[#allocation3 + $0x201] sm:$0xff] }
 0x7e3   :  { %v4966_v41 = vadd.f32 %v4965_v27, %v4748_v23  ;;  %v5295_v51 = vpop.f32.mrf.mxu3  ;;  %v5118_v23 = vld [vmem:[#allocation3 + $0x1fa] sm:$0xff]  ;;  %v4616_v56 = vpack.c.bf16 %v4572_v20, %v4571_v54  ;;  %v4575_v20 = vld [vmem:[#allocation3 + $0x229] sm:$0xff] }
 0x7e4   :  { %5723 = vmatmul.bf16.gmra.mxu0 %v4502_v29  ;;  %v5163_v29 = vpack.c.bf16 %v5119_v31, %v5118_v23 }
 0x7e5   :  { %v5428_v28 = vadd.f32 %v5295_v51, %v4966_v41 }
 0x7e9   :  { %v5686_v15 = vpop.f32.mrf.mxu0  ;;  %v4753_v17 = vpop.f32.mrf.mxu1 }
 0x7ea   :  { %v4967_v61 = vpop.f32.mrf.mxu2  ;;  %v12261_v48 = vadd.f32 %v5686_v15, %v5427_v36  ;;  %v4504_v36 = vpack.c.bf16 %v4460_v55, %v4459_v60  ;;  %v4463_v55 = vld [vmem:[#allocation3 + $0x228] sm:$0xff] }
 0x7eb   :  { %v4968_v57 = vadd.f32 %v4967_v61, %v4750_v4  ;;  %v5297_v58 = vpop.f32.mrf.mxu3 }
 0x7ec   :  { %4792 = vmatmul.bf16.gmra.mxu1 %v4615_v0  ;;  %v5121_v0 = vld [vmem:[#allocation3 + $0x21a] sm:$0xff] }
 0x7ed   :  { %v5429_v25 = vadd.f32 %v5297_v58, %v4968_v57 }
 0x7ef   :  { %5009 = vmatmul.bf16.gmra.mxu2 %v4503_v1 }
 0x7f0   :  { %5339 = vmatmul.bf16.gmra.mxu3 %v5162_v12  ;;  %v4505_v12 = vpack.c.bf16 %v4462_v39, %v4461_v18  ;;  %v4578_v18 = vld [vmem:[#allocation3 + $0x249] sm:$0xff] }
 0x7f1   :  { %v5689_v3 = vpop.f32.mrf.mxu0  ;;  %v4755_v35 = vpop.f32.mrf.mxu1 }
 0x7f2   :  { %v4970_v53 = vpop.f32.mrf.mxu2  ;;  %v12263_v40 = vadd.f32 %v5689_v3, %v5428_v28  ;;  %v5164_v3 = vpack.c.bf16 %v5121_v0, %v5120_v47 }
 0x7f3   :  { %v4971_v34 = vadd.f32 %v4970_v53, %v4753_v17  ;;  %v5300_v49 = vpop.f32.mrf.mxu3 }
 0x7f4   :  { %5728 = vmatmul.bf16.gmra.mxu0 %v4503_v1 }
 0x7f5   :  { %v5430_v16 = vadd.f32 %v5300_v49, %v4971_v34 }
 0x7f9   :  { %v5691_v32 = vpop.f32.mrf.mxu0  ;;  %v4758_v50 = vpop.f32.mrf.mxu1 }
 0x7fa   :  { %v4972_v38 = vpop.f32.mrf.mxu2  ;;  %v12268_v26 = vadd.f32 %v5691_v32, %v5429_v25  ;;  %v4617_v25 = vpack.c.bf16 %v4574_v13, %v4573_v44  ;;  %v4576_v32 = vld [vmem:[#allocation3 + $0x231] sm:$0xff] }
 0x7fb   :  { %v4973_v63 = vadd.f32 %v4972_v38, %v4755_v35  ;;  %v5302_v45 = vpop.f32.mrf.mxu3 }
 0x7fc   :  { %4797 = vmatmul.bf16.gmra.mxu1 %v4616_v56  ;;  %v5122_v56 = vld [vmem:[#allocation3 + $0x22a] sm:$0xff] }
 0x7fd   :  { %v5431_v9 = vadd.f32 %v5302_v45, %v4973_v63  ;;  %v4464_v63 = vld [vmem:[#allocation3 + $0x230] sm:$0xff] }
 0x7ff   :  { %5014 = vmatmul.bf16.gmra.mxu2 %v4504_v36 }
 0x800   :  { %5344 = vmatmul.bf16.gmra.mxu3 %v5163_v29 }
 0x801   :  { %v5694_v11 = vpop.f32.mrf.mxu0  ;;  %v4760_v4 = vpop.f32.mrf.mxu1 }
 0x802   :  { %v4975_v59 = vpop.f32.mrf.mxu2  ;;  %v12270_v27 = vadd.f32 %v5694_v11, %v5430_v16  ;;  %v4506_v11 = vpack.c.bf16 %v4464_v63, %v4463_v55  ;;  %v9603_v63 = vld [vmem:[%s13844_s4 + $0x108] sm:$0xff] }
 0x803   :  { %v4976_v41 = vadd.f32 %v4975_v59, %v4758_v50  ;;  %v5305_v51 = vpop.f32.mrf.mxu3  ;;  %6035 = vmatpush.bf16.msrb.mxu1 %v9603_v63 }
 0x804   :  { %5733 = vmatmul.bf16.gmra.mxu0 %v4504_v36  ;;  %v4618_v36 = vpack.c.bf16 %v4576_v32, %v4575_v20 }
 0x805   :  { %v5432_v28 = vadd.f32 %v5305_v51, %v4976_v41 }
 0x809   :  { %v5696_v15 = vpop.f32.mrf.mxu0  ;;  %v4763_v21 = vpop.f32.mrf.mxu1 }
 0x80a   :  { %v4977_v61 = vpop.f32.mrf.mxu2  ;;  %v12272_v57 = vadd.f32 %v5696_v15, %v5431_v9  ;;  %v5123_v9 = vld [vmem:[#allocation3 + $0x232] sm:$0xff] }
 0x80b   :  { %v4978_v58 = vadd.f32 %v4977_v61, %v4760_v4  ;;  %v5307_v17 = vpop.f32.mrf.mxu3  ;;  %v5165_v59 = vpack.c.bf16 %v5123_v9, %v5122_v56  ;;  %v4577_v61 = vld [vmem:[#allocation3 + $0x241] sm:$0xff]  ;;  %v4467_v9 = vld [vmem:[#allocation3 + $0x258] sm:$0xff] }
 0x80c   :  { %4802 = vmatmul.bf16.gmra.mxu1 %v4617_v25 }
 0x80d   :  { %v5433_v1 = vadd.f32 %v5307_v17, %v4978_v58  ;;  %v4465_v17 = vld [vmem:[#allocation3 + $0x240] sm:$0xff] }
 0x80f   :  { %5019 = vmatmul.bf16.gmra.mxu2 %v4505_v12 }
 0x810   :  { %5349 = vmatmul.bf16.gmra.mxu3 %v5164_v3  ;;  %v5125_v3 = vld [vmem:[#allocation3 + $0x24a] sm:$0xff] }
 0x811   :  { %v5699_v53 = vpop.f32.mrf.mxu0  ;;  %v4765_v10 = vpop.f32.mrf.mxu1 }
 0x812   :  { %v4980_v34 = vpop.f32.mrf.mxu2  ;;  %v12274_v49 = vadd.f32 %v5699_v53, %v5432_v28  ;;  %v4619_v53 = vpack.c.bf16 %v4578_v18, %v4577_v61 }
 0x813   :  { %v4981_v35 = vadd.f32 %v4980_v34, %v4763_v21  ;;  %v5310_v16 = vpop.f32.mrf.mxu3  ;;  %v4466_v21 = vld [vmem:[#allocation3 + $0x248] sm:$0xff] }
 0x814   :  { %5738 = vmatmul.bf16.gmra.mxu0 %v4505_v12  ;;  %v5124_v12 = vld [vmem:[#allocation3 + $0x242] sm:$0xff] }
 0x815   :  { %v5434_v54 = vadd.f32 %v5310_v16, %v4981_v35  ;;  %v4507_v35 = vpack.c.bf16 %v4466_v21, %v4465_v17  ;;  %v5166_v16 = vpack.c.bf16 %v5125_v3, %v5124_v12  ;;  %v4582_v12 = vld [vmem:[#allocation3 + $0x279] sm:$0xff] }
 0x819   :  { %v5701_v38 = vpop.f32.mrf.mxu0  ;;  %v4768_v31 = vpop.f32.mrf.mxu1 }
 0x81a   :  { %v4982_v60 = vpop.f32.mrf.mxu2  ;;  %v12276_v45 = vadd.f32 %v5701_v38, %v5433_v1 }
 0x81b   :  { %v4983_v50 = vadd.f32 %v4982_v60, %v4765_v10  ;;  %v5312_v23 = vpop.f32.mrf.mxu3 }
 0x81c   :  { %4807 = vmatmul.bf16.gmra.mxu1 %v4618_v36  ;;  %v4468_v36 = vld [vmem:[#allocation3 + $0x260] sm:$0xff] }
 0x81d   :  { %v5435_v29 = vadd.f32 %v5312_v23, %v4983_v50  ;;  %v4579_v50 = vld [vmem:[#allocation3 + $0x259] sm:$0xff]  ;;  %v4580_v23 = vld [vmem:[#allocation3 + $0x261] sm:$0xff] }
 0x81f   :  { %5024 = vmatmul.bf16.gmra.mxu2 %v4506_v11 }
 0x820   :  { %5354 = vmatmul.bf16.gmra.mxu3 %v5165_v59 }
 0x821   :  { %v5704_v41 = vpop.f32.mrf.mxu0  ;;  %v4770_v13 = vpop.f32.mrf.mxu1 }
 0x822   :  { %v4985_v51 = vpop.f32.mrf.mxu2  ;;  %v12278_v4 = vadd.f32 %v5704_v41, %v5434_v54 }
 0x823   :  { %v4986_v28 = vadd.f32 %v4985_v51, %v4768_v31  ;;  %v5315_v44 = vpop.f32.mrf.mxu3  ;;  %v5126_v51 = vld [vmem:[#allocation3 + $0x25a] sm:$0xff] }
 0x824   :  { %5743 = vmatmul.bf16.gmra.mxu0 %v4506_v11 }
 0x825   :  { %v5436_v15 = vadd.f32 %v5315_v44, %v4986_v28  ;;  %v5127_v28 = vld [vmem:[#allocation3 + $0x262] sm:$0xff]  ;;  %v4620_v44 = vpack.c.bf16 %v4580_v23, %v4579_v50 }
 0x826   :  { %v5167_v61 = vpack.c.bf16 %v5127_v28, %v5126_v51  ;;  %v4583_v51 = vld [vmem:[#allocation3 + $0x289] sm:$0xff]  ;;  %v4584_v28 = vld [vmem:[#allocation3 + $0x291] sm:$0xff] }
 0x829   :  { %v5706_v39 = vpop.f32.mrf.mxu0  ;;  %v4773_v1 = vpop.f32.mrf.mxu1 }
 0x82a   :  { %v4987_v58 = vpop.f32.mrf.mxu2  ;;  %v12280_v47 = vadd.f32 %v5706_v39, %v5435_v29 }
 0x82b   :  { %v4988_v0 = vadd.f32 %v4987_v58, %v4770_v13  ;;  %v5317_v25 = vpop.f32.mrf.mxu3 }
 0x82c   :  { %4812 = vmatmul.bf16.gmra.mxu1 %v4619_v53 }
 0x82d   :  { %v5437_v34 = vadd.f32 %v5317_v25, %v4988_v0 }
 0x82f   :  { %5029 = vmatmul.bf16.gmra.mxu2 %v4507_v35 }
 0x830   :  { %5359 = vmatmul.bf16.gmra.mxu3 %v5166_v16 }
 0x831   :  { %v5709_v10 = vpop.f32.mrf.mxu0  ;;  %v4775_v60 = vpop.f32.mrf.mxu1 }
 0x832   :  { %v4990_v54 = vpop.f32.mrf.mxu2  ;;  %v12282_v20 = vadd.f32 %v5709_v10, %v5436_v15  ;;  %v4508_v15 = vpack.c.bf16 %v4468_v36, %v4467_v9 }
 0x833   :  { %v4991_v32 = vadd.f32 %v4990_v54, %v4773_v1  ;;  %v5320_v38 = vpop.f32.mrf.mxu3  ;;  %v4581_v1 = vld [vmem:[#allocation3 + $0x271] sm:$0xff] }
 0x834   :  { %5748 = vmatmul.bf16.gmra.mxu0 %v4507_v35  ;;  %v4470_v35 = vld [vmem:[#allocation3 + $0x278] sm:$0xff] }
 0x835   :  { %v5438_v55 = vadd.f32 %v5320_v38, %v4991_v32  ;;  %v5128_v38 = vld [vmem:[#allocation3 + $0x272] sm:$0xff] }
 0x839   :  { %v5711_v31 = vpop.f32.mrf.mxu0  ;;  %v4778_v41 = vpop.f32.mrf.mxu1 }
 0x83a   :  { %v4992_v56 = vpop.f32.mrf.mxu2  ;;  %v12287_v29 = vadd.f32 %v5711_v31, %v5437_v34  ;;  %v4469_v34 = vld [vmem:[#allocation3 + $0x270] sm:$0xff] }
 0x83b   :  { %v4993_v11 = vadd.f32 %v4992_v56, %v4775_v60  ;;  %v5322_v59 = vpop.f32.mrf.mxu3  ;;  %v5129_v60 = vld [vmem:[#allocation3 + $0x27a] sm:$0xff]  ;;  %v4509_v50 = vpack.c.bf16 %v4470_v35, %v4469_v34 }
 0x83c   :  { %4817 = vmatmul.bf16.gmra.mxu1 %v4620_v44  ;;  %v5168_v23 = vpack.c.bf16 %v5129_v60, %v5128_v38 }
 0x83d   :  { %v5439_v13 = vadd.f32 %v5322_v59, %v4993_v11 }
 0x83f   :  { %5034 = vmatmul.bf16.gmra.mxu2 %v4508_v15 }
 0x840   :  { %5364 = vmatmul.bf16.gmra.mxu3 %v5167_v61  ;;  %v4472_v61 = vld [vmem:[#allocation3 + $0x290] sm:$0xff] }
 0x841   :  { %v5714_v18 = vpop.f32.mrf.mxu0  ;;  %v4780_v0 = vpop.f32.mrf.mxu1 }
 0x842   :  { %v4995_v39 = vpop.f32.mrf.mxu2  ;;  %v12289_v58 = vadd.f32 %v5714_v18, %v5438_v55  ;;  %v4621_v55 = vpack.c.bf16 %v4582_v12, %v4581_v1  ;;  %v5131_v1 = vld [vmem:[#allocation3 + $0x292] sm:$0xff] }
 0x843   :  { %v4996_v17 = vadd.f32 %v4995_v39, %v4778_v41  ;;  %v5325_v21 = vpop.f32.mrf.mxu3 }
 0x844   :  { %5753 = vmatmul.bf16.gmra.mxu0 %v4508_v15  ;;  %v4471_v15 = vld [vmem:[#allocation3 + $0x288] sm:$0xff] }
 0x845   :  { %v5440_v25 = vadd.f32 %v5325_v21, %v4996_v17 }
 0x849   :  { %v5716_v3 = vpop.f32.mrf.mxu0  ;;  %v4783_v32 = vpop.f32.mrf.mxu1 }
 0x84a   :  { %v4997_v53 = vpop.f32.mrf.mxu2  ;;  %v12291_v16 = vadd.f32 %v5716_v3, %v5439_v13  ;;  %v4510_v3 = vpack.c.bf16 %v4472_v61, %v4471_v15 }
 0x84b   :  { %v4998_v10 = vadd.f32 %v4997_v53, %v4780_v0  ;;  %v5327_v54 = vpop.f32.mrf.mxu3  ;;  %v5130_v0 = vld [vmem:[#allocation3 + $0x28a] sm:$0xff] }
 0x84c   :  { %4822 = vmatmul.bf16.gmra.mxu1 %v4621_v55  ;;  %v5169_v53 = vpack.c.bf16 %v5131_v1, %v5130_v0  ;;  %v4585_v55 = vld [vmem:[#allocation3 + $0x2a1] sm:$0xff] }
 0x84d   :  { %v5441_v63 = vadd.f32 %v5327_v54, %v4998_v10 }
 0x84f   :  { %5039 = vmatmul.bf16.gmra.mxu2 %v4509_v50 }
 0x850   :  { %5369 = vmatmul.bf16.gmra.mxu3 %v5168_v23 }
 0x851   :  { %v5719_v31 = vpop.f32.mrf.mxu0  ;;  %v4785_v59 = vpop.f32.mrf.mxu1 }
 0x852   :  { %v5000_v56 = vpop.f32.mrf.mxu2  ;;  %v12293_v9 = vadd.f32 %v5719_v31, %v5440_v25  ;;  %v4622_v25 = vpack.c.bf16 %v4584_v28, %v4583_v51  ;;  %v4473_v31 = vld [vmem:[#allocation3 + $0x2a0] sm:$0xff] }
 0x853   :  { %v5001_v36 = vadd.f32 %v5000_v56, %v4783_v32  ;;  %v5330_v11 = vpop.f32.mrf.mxu3  ;;  %v4474_v56 = vld [vmem:[#allocation3 + $0x2a8] sm:$0xff] }
 0x854   :  { %5758 = vmatmul.bf16.gmra.mxu0 %v4509_v50  ;;  %v5132_v28 = vld [vmem:[#allocation3 + $0x2a2] sm:$0xff]  ;;  %v4511_v15 = vpack.c.bf16 %v4474_v56, %v4473_v31 }
 0x855   :  { %v5442_v41 = vadd.f32 %v5330_v11, %v5001_v36  ;;  %v5135_v31 = vld [vmem:[#allocation3 + $0x2c2] sm:$0xff] }
 0x859   :  { %v5721_v44 = vpop.f32.mrf.mxu0  ;;  %v4788_v21 = vpop.f32.mrf.mxu1 }
 0x85a   :  { %v5002_v13 = vpop.f32.mrf.mxu2  ;;  %v12295_v18 = vadd.f32 %v5721_v44, %v5441_v63  ;;  %v4586_v63 = vld [vmem:[#allocation3 + $0x2a9] sm:$0xff] }
 0x85b   :  { %v5003_v39 = vadd.f32 %v5002_v13, %v4785_v59  ;;  %v5332_v17 = vpop.f32.mrf.mxu3  ;;  %v5133_v44 = vld [vmem:[#allocation3 + $0x2aa] sm:$0xff] }
 0x85c   :  { %4827 = vmatmul.bf16.gmra.mxu1 %v4622_v25  ;;  %v5170_v61 = vpack.c.bf16 %v5133_v44, %v5132_v28 }
 0x85d   :  { %v5443_v12 = vadd.f32 %v5332_v17, %v5003_v39 }
 0x85f   :  { %5044 = vmatmul.bf16.gmra.mxu2 %v4510_v3 }
 0x860   :  { %5374 = vmatmul.bf16.gmra.mxu3 %v5169_v53  ;;  %v4587_v53 = vld [vmem:[#allocation3 + $0x2b9] sm:$0xff] }
 0x861   :  { %v5724_v34 = vpop.f32.mrf.mxu0  ;;  %v4790_v38 = vpop.f32.mrf.mxu1 }
 0x862   :  { %v5005_v35 = vpop.f32.mrf.mxu2  ;;  %v12297_v10 = vadd.f32 %v5724_v34, %v5442_v41  ;;  %v4623_v41 = vpack.c.bf16 %v4586_v63, %v4585_v55  ;;  %v4588_v34 = vld [vmem:[#allocation3 + $0x2c1] sm:$0xff] }
 0x863   :  { %v5006_v54 = vadd.f32 %v5005_v35, %v4788_v21  ;;  %v5335_v32 = vpop.f32.mrf.mxu3  ;;  %v4624_v56 = vpack.c.bf16 %v4588_v34, %v4587_v53  ;;  %v4478_v53 = vld [vmem:[#allocation3 + $0x2d8] sm:$0xff] }
 0x864   :  { %5763 = vmatmul.bf16.gmra.mxu0 %v4510_v3  ;;  %v9602_v3 = vld [vmem:[%s13844_s4 + $0x100] sm:$0xff] }
 0x865   :  { %v5444_v60 = vadd.f32 %v5335_v32, %v5006_v54  ;;  %6036 = vmatpush.bf16.msrb.mxu1 %v9602_v3  ;;  %v4475_v32 = vld [vmem:[#allocation3 + $0x2b8] sm:$0xff]  ;;  %v4477_v3 = vld [vmem:[#allocation3 + $0x2d0] sm:$0xff] }
 0x869   :  { %v5726_v50 = vpop.f32.mrf.mxu0  ;;  %v4793_v51 = vpop.f32.mrf.mxu1 }
 0x86a   :  { %v5007_v23 = vpop.f32.mrf.mxu2  ;;  %v12299_v36 = vadd.f32 %v5726_v50, %v5443_v12 }
 0x86b   :  { %v5008_v11 = vadd.f32 %v5007_v23, %v4790_v38  ;;  %v5337_v59 = vpop.f32.mrf.mxu3  ;;  %v4476_v38 = vld [vmem:[#allocation3 + $0x2c0] sm:$0xff] }
 0x86c   :  { %4832 = vmatmul.bf16.gmra.mxu1 %v4623_v41  ;;  %v5134_v23 = vld [vmem:[#allocation3 + $0x2ba] sm:$0xff] }
 0x86d   :  { %v5445_v13 = vadd.f32 %v5337_v59, %v5008_v11  ;;  %v4512_v59 = vpack.c.bf16 %v4476_v38, %v4475_v32  ;;  %v5136_v38 = vld [vmem:[#allocation3 + $0x2d2] sm:$0xff] }
 0x86f   :  { %5049 = vmatmul.bf16.gmra.mxu2 %v4511_v15 }
 0x870   :  { %5379 = vmatmul.bf16.gmra.mxu3 %v5170_v61 }
 0x871   :  { %v5729_v39 = vpop.f32.mrf.mxu0  ;;  %v4795_v25 = vpop.f32.mrf.mxu1 }
 0x872   :  { %v5010_v17 = vpop.f32.mrf.mxu2  ;;  %v12301_v21 = vadd.f32 %v5729_v39, %v5444_v60 }
 0x873   :  { %v5011_v0 = vadd.f32 %v5010_v17, %v4793_v51  ;;  %v5340_v1 = vpop.f32.mrf.mxu3  ;;  %v5171_v51 = vpack.c.bf16 %v5135_v31, %v5134_v23  ;;  %v4589_v17 = vld [vmem:[#allocation3 + $0x2d1] sm:$0xff] }
 0x874   :  { %5768 = vmatmul.bf16.gmra.mxu0 %v4511_v15 }
 0x875   :  { %v5446_v12 = vadd.f32 %v5340_v1, %v5011_v0  ;;  %v4590_v0 = vld [vmem:[#allocation3 + $0x2d9] sm:$0xff] }
 0x879   :  { %v5731_v35 = vpop.f32.mrf.mxu0  ;;  %v4798_v50 = vpop.f32.mrf.mxu1 }
 0x87a   :  { %v5012_v54 = vpop.f32.mrf.mxu2  ;;  %v12306_v55 = vadd.f32 %v5731_v35, %v5445_v13 }
 0x87b   :  { %v5013_v60 = vadd.f32 %v5012_v54, %v4795_v25  ;;  %v5342_v63 = vpop.f32.mrf.mxu3 }
 0x87c   :  { %4837 = vmatmul.bf16.gmra.mxu1 %v4624_v56 }
 0x87d   :  { %v5447_v11 = vadd.f32 %v5342_v63, %v5013_v60  ;;  %v5137_v60 = vld [vmem:[#allocation3 + $0x2da] sm:$0xff] }
 0x87e   :  { %v5172_v23 = vpack.c.bf16 %v5137_v60, %v5136_v38  ;;  %v5139_v38 = vld [vmem:[#allocation3 + $0x2f2] sm:$0xff] }
 0x87f   :  { %5054 = vmatmul.bf16.gmra.mxu2 %v4512_v59  ;;  %v9616_v60 = vld [vmem:[%s13844_s4 + $0x170] sm:$0xff] }
 0x880   :  { %5384 = vmatmul.bf16.gmra.mxu3 %v5171_v51 }
 0x881   :  { %v5734_v28 = vpop.f32.mrf.mxu0  ;;  %v4800_v13 = vpop.f32.mrf.mxu1 }
 0x882   :  { %v5015_v44 = vpop.f32.mrf.mxu2  ;;  %v12308_v41 = vadd.f32 %v5734_v28, %v5446_v12  ;;  %v4625_v12 = vpack.c.bf16 %v4590_v0, %v4589_v17  ;;  %v4592_v17 = vld [vmem:[#allocation3 + $0x2f1] sm:$0xff] }
 0x883   :  { %v5016_v15 = vadd.f32 %v5015_v44, %v4798_v50  ;;  %v5345_v61 = vpop.f32.mrf.mxu3  ;;  %v4513_v50 = vpack.c.bf16 %v4478_v53, %v4477_v3  ;;  %v5138_v3 = vld [vmem:[#allocation3 + $0x2ea] sm:$0xff] }
 0x884   :  { %5773 = vmatmul.bf16.gmra.mxu0 %v4512_v59 }
 0x885   :  { %v5448_v39 = vadd.f32 %v5345_v61, %v5016_v15  ;;  %v9617_v15 = vld [vmem:[%s13844_s4 + $0x178] sm:$0xff] }
 0x886   :  { %v9625_v61 = vld [vmem:[%s13844_s4 + $0x1b8] sm:$0xff]  ;;  %6423 = vmatpush.bf16.msra.mxu2 %v9617_v15 }
 0x887   :  { %6818 = vmatpush.bf16.msra.mxu3 %v9625_v61 }
 0x889   :  { %v5736_v1 = vpop.f32.mrf.mxu0  ;;  %v4803_v32 = vpop.f32.mrf.mxu1 }
 0x88a   :  { %v5017_v25 = vpop.f32.mrf.mxu2  ;;  %v12310_v34 = vadd.f32 %v5736_v1, %v5447_v11  ;;  %v4479_v1 = vld [vmem:[#allocation3 + $0x2e8] sm:$0xff]  ;;  %6424 = vmatpush.bf16.msra.mxu2 %v9616_v60 }
 0x88b   :  { %v5018_v35 = vadd.f32 %v5017_v25, %v4800_v13  ;;  %v5347_v54 = vpop.f32.mrf.mxu3  ;;  %v4591_v13 = vld [vmem:[#allocation3 + $0x2e9] sm:$0xff] }
 0x88c   :  { %4842 = vmatmul.bf16.gmra.mxu1 %v4625_v12  ;;  %v4480_v25 = vld [vmem:[#allocation3 + $0x2f0] sm:$0xff] }
 0x88d   :  { %v5449_v63 = vadd.f32 %v5347_v54, %v5018_v35  ;;  %v9624_v12 = vld [vmem:[%s13844_s4 + $0x1b0] sm:$0xff] }
 0x88e   :  { %6819 = vmatpush.bf16.msra.mxu3 %v9624_v12  ;;  %v4482_v12 = vld [vmem:[#allocation3 + $0x308] sm:$0xff] }
 0x88f   :  { %5059 = vmatmul.bf16.gmra.mxu2 %v4513_v50 }
 0x890   :  { %5389 = vmatmul.bf16.gmra.mxu3 %v5172_v23 }
 0x891   :  { %v5739_v31 = vpop.f32.mrf.mxu0  ;;  %v4805_v11 = vpop.f32.mrf.mxu1 }
 0x892   :  { %v5020_v56 = vpop.f32.mrf.mxu2  ;;  %v12312_v59 = vadd.f32 %v5739_v31, %v5448_v39  ;;  %v4514_v31 = vpack.c.bf16 %v4480_v25, %v4479_v1  ;;  %v9613_v25 = vld [vmem:[%s13844_s4 + $0x158] sm:$0xff] }
 0x893   :  { %v5021_v51 = vadd.f32 %v5020_v56, %v4803_v32  ;;  %v5350_v28 = vpop.f32.mrf.mxu3  ;;  %v9623_v56 = vld [vmem:[%s13844_s4 + $0x1a8] sm:$0xff] }
 0x894   :  { %5778 = vmatmul.bf16.gmra.mxu0 %v4513_v50  ;;  %v4626_v50 = vpack.c.bf16 %v4592_v17, %v4591_v13  ;;  %6820 = vmatpush.bf16.msra.mxu3 %v9623_v56 }
 0x895   :  { %v5450_v44 = vadd.f32 %v5350_v28, %v5021_v51  ;;  %v5173_v51 = vpack.c.bf16 %v5139_v38, %v5138_v3  ;;  %v9621_v3 = vld [vmem:[%s13844_s4 + $0x198] sm:$0xff] }
 0x899   :  { %v5741_v0 = vpop.f32.mrf.mxu0  ;;  %v4808_v32 = vpop.f32.mrf.mxu1 }
 0x89a   :  { %v5022_v39 = vpop.f32.mrf.mxu2  ;;  %v12320_v53 = vadd.f32 %v5741_v0, %v5449_v63  ;;  %v9615_v63 = vld [vmem:[%s13844_s4 + $0x168] sm:$0xff]  ;;  %v9614_v0 = vld [vmem:[%s13844_s4 + $0x160] sm:$0xff] }
 0x89b   :  { %v5023_v35 = vadd.f32 %v5022_v39, %v4805_v11  ;;  %v5352_v54 = vpop.f32.mrf.mxu3  ;;  %6425 = vmatpush.bf16.msra.mxu2 %v9615_v63  ;;  %v9622_v39 = vld [vmem:[%s13844_s4 + $0x1a0] sm:$0xff] }
 0x89c   :  { %14224 = vst [vmem:[#allocation85_spill] sm:$0xff] %v12320_v53  ;;  %4847 = vmatmul.bf16.gmra.mxu1 %v4626_v50  ;;  %6821 = vmatpush.bf16.msra.mxu3 %v9622_v39  ;;  %v5140_v50 = vld [vmem:[#allocation3 + $0x302] sm:$0xff]  ;;  %v5870_v53 = vld [vmem:[#allocation3 + $0x31] sm:$0xff] }
 0x89d   :  { %v5451_v23 = vadd.f32 %v5352_v54, %v5023_v35  ;;  %v4593_v35 = vld [vmem:[#allocation3 + $0x301] sm:$0xff]  ;;  %v4594_v54 = vld [vmem:[#allocation3 + $0x309] sm:$0xff] }
 0x89f   :  { %5064 = vmatmul.bf16.gmra.mxu2 %v4514_v31 }
 0x8a0   :  { %5394 = vmatmul.bf16.gmra.mxu3 %v5173_v51  ;;  %6426 = vmatpush.bf16.msra.mxu2 %v9614_v0  ;;  %v4627_v0 = vpack.c.bf16 %v4594_v54, %v4593_v35 }
 0x8a1   :  { %v5744_v28 = vpop.f32.mrf.mxu0  ;;  %v4810_v17 = vpop.f32.mrf.mxu1  ;;  %6822 = vmatpush.bf16.msra.mxu3 %v9621_v3  ;;  %v9619_v3 = vld [vmem:[%s13844_s4 + $0x188] sm:$0xff] }
 0x8a2   :  { %v5025_v11 = vpop.f32.mrf.mxu2  ;;  %v12334_v15 = vadd.f32 %v5744_v28, %v5450_v44  ;;  %v9633_v44 = vld [vmem:[%s13844_s4 + $0x1f8] sm:$0xff] }
 0x8a3   :  { %v5026_v61 = vadd.f32 %v5025_v11, %v4808_v32  ;;  %v5355_v13 = vpop.f32.mrf.mxu3  ;;  %7212 = vmatpush.bf16.msra.mxu0 %v9633_v44  ;;  %v4481_v32 = vld [vmem:[#allocation3 + $0x300] sm:$0xff]  ;;  %v9612_v11 = vld [vmem:[%s13844_s4 + $0x150] sm:$0xff] }
 0x8a4   :  { %14225 = vst [vmem:[#allocation19_spill] sm:$0xff] %v12334_v15  ;;  %5783 = vmatmul.bf16.gmra.mxu0 %v4514_v31  ;;  %6427 = vmatpush.bf16.msra.mxu2 %v9613_v25  ;;  %v5141_v31 = vld [vmem:[#allocation3 + $0x30a] sm:$0xff]  ;;  %v4515_v25 = vpack.c.bf16 %v4482_v12, %v4481_v32 }
 0x8a5   :  { %v5452_v1 = vadd.f32 %v5355_v13, %v5026_v61  ;;  %v9620_v61 = vld [vmem:[%s13844_s4 + $0x190] sm:$0xff]  ;;  %v5174_v44 = vpack.c.bf16 %v5141_v31, %v5140_v50  ;;  %v9610_v50 = vld [vmem:[%s13844_s4 + $0x140] sm:$0xff] }
 0x8a6   :  { %v9632_v13 = vld [vmem:[%s13844_s4 + $0x1f0] sm:$0xff]  ;;  %6823 = vmatpush.bf16.msra.mxu3 %v9620_v61  ;;  %v9618_v31 = vld [vmem:[%s13844_s4 + $0x180] sm:$0xff] }
 0x8a7   :  { %7213 = vmatpush.bf16.msra.mxu0 %v9632_v13  ;;  %v4596_v61 = vld [vmem:[#allocation3 + $0x321] sm:$0xff] }
 0x8a8   :  { %6428 = vmatpush.bf16.msra.mxu2 %v9612_v11  ;;  %v4595_v11 = vld [vmem:[#allocation3 + $0x319] sm:$0xff] }
 0x8a9   :  { %v5746_v38 = vpop.f32.mrf.mxu0  ;;  %v4813_v28 = vpop.f32.mrf.mxu1 }
 0x8aa   :  { %v5027_v60 = vpop.f32.mrf.mxu2  ;;  %v12351_v63 = vadd.f32 %v5746_v38, %v5451_v23  ;;  %v9611_v23 = vld [vmem:[%s13844_s4 + $0x148] sm:$0xff]  ;;  %6824 = vmatpush.bf16.msra.mxu3 %v9619_v3 }
 0x8ab   :  { %v5028_v56 = vadd.f32 %v5027_v60, %v4810_v17  ;;  %v5357_v51 = vpop.f32.mrf.mxu3  ;;  %v9631_v17 = vld [vmem:[%s13844_s4 + $0x1e8] sm:$0xff] }
 0x8ac   :  { %14226 = vst [vmem:[#allocation45_spill] sm:$0xff] %v12351_v63  ;;  %4852 = vmatmul.bf16.gmra.mxu1 %v4627_v0  ;;  %6429 = vmatpush.bf16.msra.mxu2 %v9611_v23  ;;  %v4483_v23 = vld [vmem:[#allocation3 + $0x318] sm:$0xff] }
 0x8ad   :  { %v5453_v39 = vadd.f32 %v5357_v51, %v5028_v56  ;;  %7214 = vmatpush.bf16.msra.mxu0 %v9631_v17  ;;  %v9630_v56 = vld [vmem:[%s13844_s4 + $0x1e0] sm:$0xff] }
 0x8ae   :  { %6825 = vmatpush.bf16.msra.mxu3 %v9618_v31  ;;  %v4484_v17 = vld [vmem:[#allocation3 + $0x320] sm:$0xff] }
 0x8af   :  { %5069 = vmatmul.bf16.gmra.mxu2 %v4515_v25 }
 0x8b0   :  { %5399 = vmatmul.bf16.gmra.mxu3 %v5174_v44  ;;  %6430 = vmatpush.bf16.msra.mxu2 %v9610_v50  ;;  %v4628_v50 = vpack.c.bf16 %v4596_v61, %v4595_v11  ;;  %v9626_v11 = vld [vmem:[%s13844_s4 + $0x1c0] sm:$0xff] }
 0x8b1   :  { %v5749_v35 = vpop.f32.mrf.mxu0  ;;  %v4815_v12 = vpop.f32.mrf.mxu1  ;;  %7215 = vmatpush.bf16.msra.mxu0 %v9630_v56  ;;  %v4516_v56 = vpack.c.bf16 %v4484_v17, %v4483_v23  ;;  %v5868_v23 = vld [vmem:[#allocation3 + $0x19] sm:$0xff]  ;;  %v5869_v17 = vld [vmem:[#allocation3 + $0x21] sm:$0xff] }
 0x8b2   :  { %v5030_v54 = vpop.f32.mrf.mxu2  ;;  %v12371_v32 = vadd.f32 %v5749_v35, %v5452_v1  ;;  %v9641_v1 = vld [vmem:[%s13844_s4 + $0x238] sm:$0xff] }
 0x8b3   :  { %v5031_v38 = vadd.f32 %v5030_v54, %v4813_v28  ;;  %v5360_v60 = vpop.f32.mrf.mxu3  ;;  %v9629_v28 = vld [vmem:[%s13844_s4 + $0x1d8] sm:$0xff]  ;;  %7606 = vmatpush.bf16.msra.mxu1 %v9641_v1 }
 0x8b4   :  { %14227 = vst [vmem:[#allocation24_spill] sm:$0xff] %v12371_v32  ;;  %5788 = vmatmul.bf16.gmra.mxu0 %v4515_v25  ;;  %v5142_v54 = vld [vmem:[#allocation3 + $0x31a] sm:$0xff] }
 0x8b5   :  { %v5454_v51 = vadd.f32 %v5360_v60, %v5031_v38  ;;  %7216 = vmatpush.bf16.msra.mxu0 %v9629_v28  ;;  %v5143_v38 = vld [vmem:[#allocation3 + $0x322] sm:$0xff]  ;;  %v9628_v60 = vld [vmem:[%s13844_s4 + $0x1d0] sm:$0xff] }
 0x8b6   :  { %v5175_v1 = vpack.c.bf16 %v5143_v38, %v5142_v54  ;;  %v6262_v54 = vld [vmem:[#allocation3 + $0x1a] sm:$0xff]  ;;  %v6263_v38 = vld [vmem:[#allocation3 + $0x22] sm:$0xff] }
 0x8b9   :  { %v5751_v13 = vpop.f32.mrf.mxu0  ;;  %v4818_v35 = vpop.f32.mrf.mxu1  ;;  %7217 = vmatpush.bf16.msra.mxu0 %v9628_v60 }
 0x8ba   :  { %v5032_v0 = vpop.f32.mrf.mxu2  ;;  %v12388_v25 = vadd.f32 %v5751_v13, %v5453_v39  ;;  %v9627_v39 = vld [vmem:[%s13844_s4 + $0x1c8] sm:$0xff] }
 0x8bb   :  { %v5033_v44 = vadd.f32 %v5032_v0, %v4815_v12  ;;  %v5362_v3 = vpop.f32.mrf.mxu3 }
 0x8bc   :  { %14228 = vst [vmem:[#allocation46_spill] sm:$0xff] %v12388_v25  ;;  %4857 = vmatmul.bf16.gmra.mxu1 %v4628_v50 }
 0x8bd   :  { %v5455_v31 = vadd.f32 %v5362_v3, %v5033_v44  ;;  %7218 = vmatpush.bf16.msra.mxu0 %v9627_v39  ;;  %v6658_v39 = vld [vmem:[#allocation3 + $0x38] sm:$0xff] }
 0x8bf   :  { %5074 = vmatmul.bf16.gmra.mxu2 %v4516_v56 }
 0x8c0   :  { %5404 = vmatmul.bf16.gmra.mxu3 %v5175_v1  ;;  %v6657_v1 = vld [vmem:[#allocation3 + $0x30] sm:$0xff] }
 0x8c1   :  { %v5754_v12 = vpop.f32.mrf.mxu0  ;;  %v4820_v32 = vpop.f32.mrf.mxu1  ;;  %7219 = vmatpush.bf16.msra.mxu0 %v9626_v11 }
 0x8c2   :  { %v5035_v28 = vpop.f32.mrf.mxu2  ;;  %v12396_v13 = vadd.f32 %v5754_v12, %v5454_v51  ;;  %v5932_v12 = vpack.c.bf16 %v5869_v17, %v5868_v23  ;;  %v5871_v23 = vld [vmem:[#allocation3 + $0x39] sm:$0xff] }
 0x8c3   :  { %v5036_v0 = vadd.f32 %v5035_v28, %v4818_v35  ;;  %v5365_v25 = vpop.f32.mrf.mxu3 }
 0x8c4   :  { %14229 = vst [vmem:[#allocation26_spill] sm:$0xff] %v12396_v13  ;;  %5793 = vmatmul.bf16.gmra.mxu0 %v4516_v56  ;;  %v6326_v13 = vpack.c.bf16 %v6263_v38, %v6262_v54  ;;  %v6721_v56 = vpack.c.bf16 %v6658_v39, %v6657_v1  ;;  %v6264_v38 = vld [vmem:[#allocation3 + $0x32] sm:$0xff] }
 0x8c5   :  { %v5456_v61 = vadd.f32 %v5365_v25, %v5036_v0  ;;  %v5536_v25 = vld [vmem:[#allocation3 + $0x330] sm:$0xff]  ;;  %v5537_v0 = vld [vmem:[#allocation3 + $0x338] sm:$0xff] }
 0x8c9   :  { %v5756_v44 = vpop.f32.mrf.mxu0  ;;  %v4823_v35 = vpop.f32.mrf.mxu1 }
 0x8ca   :  { %v5037_v3 = vpop.f32.mrf.mxu2  ;;  %v12401_v60 = vadd.f32 %v5756_v44, %v5455_v31  ;;  %v5569_v31 = vpack.c.bf16 %v5537_v0, %v5536_v25 }
 0x8cb   :  { %v5038_v51 = vadd.f32 %v5037_v3, %v4820_v32  ;;  %v5367_v50 = vpop.f32.mrf.mxu3 }
 0x8cc   :  { %14230 = vst [vmem:[#allocation86_spill] sm:$0xff] %v12401_v60  ;;  %6037 = vmatmul.bf16.vlgmr.msrb.gmra.mxu1 %v5932_v12  ;;  %v6659_v12 = vld [vmem:[#allocation3 + $0x48] sm:$0xff] }
 0x8cd   :  { %v5457_v28 = vadd.f32 %v5367_v50, %v5038_v51  ;;  %v6265_v51 = vld [vmem:[#allocation3 + $0x3a] sm:$0xff] }
 0x8cf   :  { %6431 = vmatmul.bf16.vlgmr.msra.gmra.mxu2 %v6326_v13 }
 0x8d0   :  { %6826 = vmatmul.bf16.vlgmr.msra.gmra.mxu3 %v6721_v56  ;;  %v5933_v56 = vpack.c.bf16 %v5871_v23, %v5870_v53  ;;  %v6266_v53 = vld [vmem:[#allocation3 + $0x4a] sm:$0xff]  ;;  %v6267_v23 = vld [vmem:[#allocation3 + $0x52] sm:$0xff] }
 0x8d1   :  { %v5759_v11 = vpop.f32.mrf.mxu0  ;;  %v4825_v3 = vpop.f32.mrf.mxu1 }
 0x8d2   :  { %v5040_v63 = vpop.f32.mrf.mxu2  ;;  %v12403_v15 = vadd.f32 %v5759_v11, %v5456_v61  ;;  %v6660_v61 = vld [vmem:[#allocation3 + $0x50] sm:$0xff] }
 0x8d3   :  { %v5041_v44 = vadd.f32 %v5040_v63, %v4823_v35  ;;  %v5370_v32 = vpop.f32.mrf.mxu3  ;;  %v6327_v63 = vpack.c.bf16 %v6265_v51, %v6264_v38  ;;  %v6722_v35 = vpack.c.bf16 %v6660_v61, %v6659_v12  ;;  %v6661_v12 = vld [vmem:[#allocation3 + $0x60] sm:$0xff]  ;;  %v6662_v61 = vld [vmem:[#allocation3 + $0x68] sm:$0xff] }
 0x8d4   :  { %14231 = vst [vmem:[#allocation21_spill] sm:$0xff] %v12403_v15  ;;  %5798 = vmatmul.bf16.gmra.mxu0 %v5569_v31 }
 0x8d5   :  { %v5458_v60 = vadd.f32 %v5370_v32, %v5041_v44 }
 0x8d9   :  { %v5761_v17 = vpop.f32.mrf.mxu0  ;;  %v4828_v39 = vpop.f32.mrf.mxu1 }
 0x8da   :  { %v5042_v54 = vpop.f32.mrf.mxu2  ;;  %v12405_v13 = vadd.f32 %v5761_v17, %v5457_v28  ;;  %v5872_v17 = vld [vmem:[#allocation3 + $0x49] sm:$0xff] }
 0x8db   :  { %v5043_v50 = vadd.f32 %v5042_v54, %v4825_v3  ;;  %v5372_v1 = vpop.f32.mrf.mxu3  ;;  %v5873_v54 = vld [vmem:[#allocation3 + $0x51] sm:$0xff] }
 0x8dc   :  { %14232 = vst [vmem:[#allocation27_spill] sm:$0xff] %v12405_v13  ;;  %6042 = vmatmul.bf16.gmra.mxu1 %v5933_v56 }
 0x8dd   :  { %v5459_v25 = vadd.f32 %v5372_v1, %v5043_v50 }
 0x8df   :  { %6436 = vmatmul.bf16.gmra.mxu2 %v6327_v63 }
 0x8e0   :  { %6831 = vmatmul.bf16.gmra.mxu3 %v6722_v35  ;;  %v6723_v35 = vpack.c.bf16 %v6662_v61, %v6661_v12  ;;  %v6663_v61 = vld [vmem:[#allocation3 + $0x78] sm:$0xff] }
 0x8e1   :  { %v5764_v0 = vpop.f32.mrf.mxu0  ;;  %v4830_v28 = vpop.f32.mrf.mxu1 }
 0x8e2   :  { %v5045_v11 = vpop.f32.mrf.mxu2  ;;  %v12407_v31 = vadd.f32 %v5764_v0, %v5458_v60  ;;  %v5934_v60 = vpack.c.bf16 %v5873_v54, %v5872_v17  ;;  %v5875_v17 = vld [vmem:[#allocation3 + $0x69] sm:$0xff] }
 0x8e3   :  { %v5046_v44 = vadd.f32 %v5045_v11, %v4828_v39  ;;  %v5375_v32 = vpop.f32.mrf.mxu3  ;;  %v6328_v39 = vpack.c.bf16 %v6267_v23, %v6266_v53  ;;  %v6268_v23 = vld [vmem:[#allocation3 + $0x62] sm:$0xff] }
 0x8e4   :  { %14233 = vst [vmem:[#allocation28_spill] sm:$0xff] %v12407_v31  ;;  %7220 = vmatmul.bf16.vlgmr.msra.gmra.mxu0 %v5933_v56 }
 0x8e5   :  { %v5460_v3 = vadd.f32 %v5375_v32, %v5046_v44 }
 0x8e9   :  { %v5766_v13 = vpop.f32.mrf.mxu0  ;;  %v4833_v1 = vpop.f32.mrf.mxu1 }
 0x8ea   :  { %v5047_v15 = vpop.f32.mrf.mxu2  ;;  %v12409_v38 = vadd.f32 %v5766_v13, %v5459_v25  ;;  %v9640_v25 = vld [vmem:[%s13844_s4 + $0x230] sm:$0xff] }
 0x8eb   :  { %v5048_v51 = vadd.f32 %v5047_v15, %v4830_v28  ;;  %v5377_v50 = vpop.f32.mrf.mxu3  ;;  %7607 = vmatpush.bf16.msra.mxu1 %v9640_v25  ;;  %v5874_v28 = vld [vmem:[#allocation3 + $0x61] sm:$0xff] }
 0x8ec   :  { %14234 = vst [vmem:[#allocation29_spill] sm:$0xff] %v12409_v38  ;;  %6047 = vmatmul.bf16.gmra.mxu1 %v5934_v60 }
 0x8ed   :  { %v5461_v63 = vadd.f32 %v5377_v50, %v5048_v51  ;;  %v6269_v51 = vld [vmem:[#allocation3 + $0x6a] sm:$0xff] }
 0x8ef   :  { %6441 = vmatmul.bf16.gmra.mxu2 %v6328_v39  ;;  %v6664_v39 = vld [vmem:[#allocation3 + $0x80] sm:$0xff] }
 0x8f0   :  { %6836 = vmatmul.bf16.gmra.mxu3 %v6723_v35 }
 0x8f1   :  { %v5769_v56 = vpop.f32.mrf.mxu0  ;;  %v4835_v13 = vpop.f32.mrf.mxu1 }
 0x8f2   :  { %v5050_v0 = vpop.f32.mrf.mxu2  ;;  %v12411_v11 = vadd.f32 %v5769_v56, %v5460_v3  ;;  %v6329_v56 = vpack.c.bf16 %v6269_v51, %v6268_v23 }
 0x8f3   :  { %v5051_v44 = vadd.f32 %v5050_v0, %v4833_v1  ;;  %v5380_v32 = vpop.f32.mrf.mxu3  ;;  %v6724_v0 = vpack.c.bf16 %v6664_v39, %v6663_v61  ;;  %v6665_v61 = vld [vmem:[#allocation3 + $0x90] sm:$0xff]  ;;  %v6666_v39 = vld [vmem:[#allocation3 + $0x98] sm:$0xff] }
 0x8f4   :  { %14235 = vst [vmem:[#allocation30_spill] sm:$0xff] %v12411_v11  ;;  %7225 = vmatmul.bf16.gmra.mxu0 %v5934_v60  ;;  %v5935_v60 = vpack.c.bf16 %v5875_v17, %v5874_v28  ;;  %v6270_v28 = vld [vmem:[#allocation3 + $0x7a] sm:$0xff]  ;;  %v6271_v17 = vld [vmem:[#allocation3 + $0x82] sm:$0xff] }
 0x8f5   :  { %v5462_v15 = vadd.f32 %v5380_v32, %v5051_v44 }
 0x8f9   :  { %v5771_v54 = vpop.f32.mrf.mxu0  ;;  %v4838_v1 = vpop.f32.mrf.mxu1 }
 0x8fa   :  { %v5052_v53 = vpop.f32.mrf.mxu2  ;;  %v12416_v50 = vadd.f32 %v5771_v54, %v5461_v63  ;;  %v5876_v54 = vld [vmem:[#allocation3 + $0x79] sm:$0xff] }
 0x8fb   :  { %v5053_v3 = vadd.f32 %v5052_v53, %v4835_v13  ;;  %v5382_v12 = vpop.f32.mrf.mxu3  ;;  %v5877_v53 = vld [vmem:[#allocation3 + $0x81] sm:$0xff] }
 0x8fc   :  { %14236 = vst [vmem:[#allocation31_spill] sm:$0xff] %v12416_v50  ;;  %6052 = vmatmul.bf16.gmra.mxu1 %v5935_v60 }
 0x8fd   :  { %v5463_v35 = vadd.f32 %v5382_v12, %v5053_v3 }
 0x8ff   :  { %6446 = vmatmul.bf16.gmra.mxu2 %v6329_v56 }
 0x900   :  { %6841 = vmatmul.bf16.gmra.mxu3 %v6724_v0  ;;  %v6725_v0 = vpack.c.bf16 %v6666_v39, %v6665_v61  ;;  %v6667_v61 = vld [vmem:[#allocation3 + $0xa8] sm:$0xff]  ;;  %v6668_v39 = vld [vmem:[#allocation3 + $0xb0] sm:$0xff] }
 0x901   :  { %v5774_v44 = vpop.f32.mrf.mxu0  ;;  %v4840_v63 = vpop.f32.mrf.mxu1 }
 0x902   :  { %v5055_v32 = vpop.f32.mrf.mxu2  ;;  %v12418_v25 = vadd.f32 %v5774_v44, %v5462_v15  ;;  %v5936_v15 = vpack.c.bf16 %v5877_v53, %v5876_v54  ;;  %v6272_v54 = vld [vmem:[#allocation3 + $0x92] sm:$0xff]  ;;  %v6273_v53 = vld [vmem:[#allocation3 + $0x9a] sm:$0xff] }
 0x903   :  { %v5056_v11 = vadd.f32 %v5055_v32, %v4838_v1  ;;  %v5385_v38 = vpop.f32.mrf.mxu3  ;;  %v6330_v1 = vpack.c.bf16 %v6271_v17, %v6270_v28 }
 0x904   :  { %14237 = vst [vmem:[#allocation32_spill] sm:$0xff] %v12418_v25  ;;  %7230 = vmatmul.bf16.gmra.mxu0 %v5935_v60 }
 0x905   :  { %v5464_v13 = vadd.f32 %v5385_v38, %v5056_v11 }
 0x909   :  { %v5776_v50 = vpop.f32.mrf.mxu0  ;;  %v4843_v12 = vpop.f32.mrf.mxu1 }
 0x90a   :  { %v5057_v31 = vpop.f32.mrf.mxu2  ;;  %v12420_v23 = vadd.f32 %v5776_v50, %v5463_v35  ;;  %v5878_v35 = vld [vmem:[#allocation3 + $0x91] sm:$0xff] }
 0x90b   :  { %v5058_v51 = vadd.f32 %v5057_v31, %v4840_v63  ;;  %v5387_v3 = vpop.f32.mrf.mxu3  ;;  %v5879_v63 = vld [vmem:[#allocation3 + $0x99] sm:$0xff] }
 0x90c   :  { %14238 = vst [vmem:[#allocation33_spill] sm:$0xff] %v12420_v23  ;;  %6057 = vmatmul.bf16.gmra.mxu1 %v5936_v15 }
 0x90d   :  { %v5465_v56 = vadd.f32 %v5387_v3, %v5058_v51 }
 0x90f   :  { %6451 = vmatmul.bf16.gmra.mxu2 %v6330_v1 }
 0x910   :  { %6846 = vmatmul.bf16.gmra.mxu3 %v6725_v0  ;;  %v6726_v0 = vpack.c.bf16 %v6668_v39, %v6667_v61  ;;  %v6669_v61 = vld [vmem:[#allocation3 + $0xc0] sm:$0xff]  ;;  %v6670_v39 = vld [vmem:[#allocation3 + $0xc8] sm:$0xff] }
 0x911   :  { %v5779_v38 = vpop.f32.mrf.mxu0  ;;  %v4845_v50 = vpop.f32.mrf.mxu1 }
 0x912   :  { %v5060_v11 = vpop.f32.mrf.mxu2  ;;  %v12422_v60 = vadd.f32 %v5779_v38, %v5464_v13  ;;  %v5937_v13 = vpack.c.bf16 %v5879_v63, %v5878_v35  ;;  %v6274_v35 = vld [vmem:[#allocation3 + $0xaa] sm:$0xff]  ;;  %v6275_v63 = vld [vmem:[#allocation3 + $0xb2] sm:$0xff] }
 0x913   :  { %v5061_v44 = vadd.f32 %v5060_v11, %v4843_v12  ;;  %v5390_v32 = vpop.f32.mrf.mxu3  ;;  %v6331_v12 = vpack.c.bf16 %v6273_v53, %v6272_v54 }
 0x914   :  { %14239 = vst [vmem:[#allocation34_spill] sm:$0xff] %v12422_v60  ;;  %7235 = vmatmul.bf16.gmra.mxu0 %v5936_v15 }
 0x915   :  { %v5466_v31 = vadd.f32 %v5390_v32, %v5061_v44 }
 0x919   :  { %v5781_v23 = vpop.f32.mrf.mxu0  ;;  %v4848_v3 = vpop.f32.mrf.mxu1 }
 0x91a   :  { %v5062_v25 = vpop.f32.mrf.mxu2  ;;  %v12424_v28 = vadd.f32 %v5781_v23, %v5465_v56  ;;  %v5880_v56 = vld [vmem:[#allocation3 + $0xa9] sm:$0xff] }
 0x91b   :  { %v5063_v17 = vadd.f32 %v5062_v25, %v4845_v50  ;;  %v5392_v51 = vpop.f32.mrf.mxu3  ;;  %v5881_v50 = vld [vmem:[#allocation3 + $0xb1] sm:$0xff] }
 0x91c   :  { %14240 = vst [vmem:[#allocation35_spill] sm:$0xff] %v12424_v28  ;;  %6062 = vmatmul.bf16.gmra.mxu1 %v5937_v13 }
 0x91d   :  { %v5467_v1 = vadd.f32 %v5392_v51, %v5063_v17 }
 0x91f   :  { %6456 = vmatmul.bf16.gmra.mxu2 %v6331_v12 }
 0x920   :  { %6851 = vmatmul.bf16.gmra.mxu3 %v6726_v0  ;;  %v6727_v0 = vpack.c.bf16 %v6670_v39, %v6669_v61  ;;  %v6671_v39 = vld [vmem:[#allocation3 + $0xd8] sm:$0xff] }
 0x921   :  { %v5784_v15 = vpop.f32.mrf.mxu0  ;;  %v4850_v23 = vpop.f32.mrf.mxu1 }
 0x922   :  { %v5065_v38 = vpop.f32.mrf.mxu2  ;;  %v12426_v11 = vadd.f32 %v5784_v15, %v5466_v31  ;;  %v5938_v31 = vpack.c.bf16 %v5881_v50, %v5880_v56  ;;  %v5883_v56 = vld [vmem:[#allocation3 + $0xc9] sm:$0xff] }
 0x923   :  { %v5066_v44 = vadd.f32 %v5065_v38, %v4848_v3  ;;  %v5395_v32 = vpop.f32.mrf.mxu3  ;;  %v6332_v3 = vpack.c.bf16 %v6275_v63, %v6274_v35  ;;  %v6276_v63 = vld [vmem:[#allocation3 + $0xc2] sm:$0xff] }
 0x924   :  { %14241 = vst [vmem:[#allocation36_spill] sm:$0xff] %v12426_v11  ;;  %7240 = vmatmul.bf16.gmra.mxu0 %v5937_v13 }
 0x925   :  { %v5468_v25 = vadd.f32 %v5395_v32, %v5066_v44 }
 0x929   :  { %v5786_v28 = vpop.f32.mrf.mxu0  ;;  %v4853_v51 = vpop.f32.mrf.mxu1 }
 0x92a   :  { %v5067_v60 = vpop.f32.mrf.mxu2  ;;  %v12428_v54 = vadd.f32 %v5786_v28, %v5467_v1  ;;  %v9639_v1 = vld [vmem:[%s13844_s4 + $0x228] sm:$0xff] }
 0x92b   :  { %v5068_v53 = vadd.f32 %v5067_v60, %v4850_v23  ;;  %v5397_v17 = vpop.f32.mrf.mxu3  ;;  %7608 = vmatpush.bf16.msra.mxu1 %v9639_v1  ;;  %v5882_v23 = vld [vmem:[#allocation3 + $0xc1] sm:$0xff] }
 0x92c   :  { %14242 = vst [vmem:[#allocation37_spill] sm:$0xff] %v12428_v54  ;;  %6067 = vmatmul.bf16.gmra.mxu1 %v5938_v31 }
 0x92d   :  { %v5469_v12 = vadd.f32 %v5397_v17, %v5068_v53  ;;  %v6277_v53 = vld [vmem:[#allocation3 + $0xca] sm:$0xff] }
 0x92f   :  { %6461 = vmatmul.bf16.gmra.mxu2 %v6332_v3  ;;  %v6672_v3 = vld [vmem:[#allocation3 + $0xe0] sm:$0xff] }
 0x930   :  { %6856 = vmatmul.bf16.gmra.mxu3 %v6727_v0 }
 0x931   :  { %v5789_v13 = vpop.f32.mrf.mxu0  ;;  %v4855_v28 = vpop.f32.mrf.mxu1 }
 0x932   :  { %v5070_v15 = vpop.f32.mrf.mxu2  ;;  %v12430_v38 = vadd.f32 %v5789_v13, %v5468_v25  ;;  %v6333_v13 = vpack.c.bf16 %v6277_v53, %v6276_v63 }
 0x933   :  { %v5071_v44 = vadd.f32 %v5070_v15, %v4853_v51  ;;  %v5400_v32 = vpop.f32.mrf.mxu3  ;;  %v6728_v15 = vpack.c.bf16 %v6672_v3, %v6671_v39  ;;  %v6673_v39 = vld [vmem:[#allocation3 + $0xf0] sm:$0xff]  ;;  %v6674_v3 = vld [vmem:[#allocation3 + $0xf8] sm:$0xff] }
 0x934   :  { %14243 = vst [vmem:[#allocation38_spill] sm:$0xff] %v12430_v38  ;;  %7245 = vmatmul.bf16.gmra.mxu0 %v5938_v31  ;;  %v5939_v31 = vpack.c.bf16 %v5883_v56, %v5882_v23  ;;  %v6278_v23 = vld [vmem:[#allocation3 + $0xda] sm:$0xff]  ;;  %v6279_v56 = vld [vmem:[#allocation3 + $0xe2] sm:$0xff] }
 0x935   :  { %v5470_v60 = vadd.f32 %v5400_v32, %v5071_v44 }
 0x939   :  { %v5791_v50 = vpop.f32.mrf.mxu0  ;;  %v4858_v51 = vpop.f32.mrf.mxu1 }
 0x93a   :  { %v5072_v35 = vpop.f32.mrf.mxu2  ;;  %v12435_v17 = vadd.f32 %v5791_v50, %v5469_v12  ;;  %v5884_v50 = vld [vmem:[#allocation3 + $0xd9] sm:$0xff] }
 0x93b   :  { %v5073_v25 = vadd.f32 %v5072_v35, %v4855_v28  ;;  %v5402_v61 = vpop.f32.mrf.mxu3  ;;  %v5885_v35 = vld [vmem:[#allocation3 + $0xe1] sm:$0xff] }
 0x93c   :  { %14244 = vst [vmem:[#allocation39_spill] sm:$0xff] %v12435_v17  ;;  %6072 = vmatmul.bf16.gmra.mxu1 %v5939_v31 }
 0x93d   :  { %v5471_v0 = vadd.f32 %v5402_v61, %v5073_v25 }
 0x93f   :  { %6466 = vmatmul.bf16.gmra.mxu2 %v6333_v13 }
 0x940   :  { %6861 = vmatmul.bf16.gmra.mxu3 %v6728_v15  ;;  %v6334_v15 = vpack.c.bf16 %v6279_v56, %v6278_v23  ;;  %v6280_v23 = vld [vmem:[#allocation3 + $0xf2] sm:$0xff]  ;;  %v6281_v56 = vld [vmem:[#allocation3 + $0xfa] sm:$0xff] }
 0x941   :  { %v5794_v44 = vpop.f32.mrf.mxu0  ;;  %v4860_v12 = vpop.f32.mrf.mxu1 }
 0x942   :  { %v5075_v32 = vpop.f32.mrf.mxu2  ;;  %v12437_v1 = vadd.f32 %v5794_v44, %v5470_v60 }
 0x943   :  { %v5076_v38 = vadd.f32 %v5075_v32, %v4858_v51  ;;  %v5405_v54 = vpop.f32.mrf.mxu3  ;;  %v5940_v51 = vpack.c.bf16 %v5885_v35, %v5884_v50 }
 0x944   :  { %7250 = vmatmul.bf16.gmra.mxu0 %v5939_v31 }
 0x945   :  { %v5472_v28 = vadd.f32 %v5405_v54, %v5076_v38  ;;  %v6729_v54 = vpack.c.bf16 %v6674_v3, %v6673_v39  ;;  %v6676_v3 = vld [vmem:[#allocation3 + $0x110] sm:$0xff] }
 0x949   :  { %v5796_v17 = vpop.f32.mrf.mxu0  ;;  %v6038_v61 = vpop.f32.mrf.mxu1 }
 0x94a   :  { %v5077_v11 = vpop.f32.mrf.mxu2  ;;  %v12439_v63 = vadd.f32 %v5796_v17, %v5471_v0  ;;  %v6198_v60 = vadd.f32 %v6038_v61, %v12214_v2  ;;  %v5887_v2 = vld [vmem:[#allocation3 + $0xf9] sm:$0xff] }
 0x94b   :  { %v5078_v53 = vadd.f32 %v5077_v11, %v4860_v12  ;;  %v5407_v25 = vpop.f32.mrf.mxu3 }
 0x94c   :  { %14245 = vst [vmem:[#allocation47_spill] sm:$0xff] %v12439_v63  ;;  %6077 = vmatmul.bf16.gmra.mxu1 %v5940_v51  ;;  %v5886_v63 = vld [vmem:[#allocation3 + $0xf1] sm:$0xff] }
 0x94d   :  { %v5473_v13 = vadd.f32 %v5407_v25, %v5078_v53 }
 0x94f   :  { %6471 = vmatmul.bf16.gmra.mxu2 %v6334_v15  ;;  %v5941_v15 = vpack.c.bf16 %v5887_v2, %v5886_v63 }
 0x950   :  { %6866 = vmatmul.bf16.gmra.mxu3 %v6729_v54 }
 0x951   :  { %v5799_v38 = vpop.f32.mrf.mxu0  ;;  %v6040_v11 = vpop.f32.mrf.mxu1 }
 0x952   :  { %v6432_v31 = vpop.f32.mrf.mxu2  ;;  %v12442_v44 = vadd.f32 %v5799_v38, %v5472_v28  ;;  %v6199_v32 = vadd.f32 %v6040_v11, %v12216_v52  ;;  %v6675_v28 = vld [vmem:[#allocation3 + $0x108] sm:$0xff]  ;;  %v6335_v52 = vpack.c.bf16 %v6281_v56, %v6280_v23  ;;  %v6283_v56 = vld [vmem:[#allocation3 + $0x112] sm:$0xff] }
 0x953   :  { %v6592_v17 = vadd.f32 %v6432_v31, %v6198_v60  ;;  %v6827_v0 = vpop.f32.mrf.mxu3  ;;  %v6282_v23 = vld [vmem:[#allocation3 + $0x10a] sm:$0xff] }
 0x954   :  { %7255 = vmatmul.bf16.gmra.mxu0 %v5940_v51  ;;  %v6730_v51 = vpack.c.bf16 %v6676_v3, %v6675_v28  ;;  %v6678_v3 = vld [vmem:[#allocation3 + $0x128] sm:$0xff] }
 0x955   :  { %v6987_v12 = vadd.f32 %v6827_v0, %v6592_v17 }
 0x959   :  { %v5801_v50 = vpop.f32.mrf.mxu0  ;;  %v6043_v39 = vpop.f32.mrf.mxu1 }
 0x95a   :  { %v6434_v35 = vpop.f32.mrf.mxu2  ;;  %v12445_v53 = vadd.f32 %v5801_v50, %v5473_v13  ;;  %v6200_v60 = vadd.f32 %v6043_v39, %v12219_v5  ;;  %v5889_v5 = vld [vmem:[#allocation3 + $0x111] sm:$0xff] }
 0x95b   :  { %v6593_v25 = vadd.f32 %v6434_v35, %v6199_v32  ;;  %v6829_v61 = vpop.f32.mrf.mxu3  ;;  %v5888_v35 = vld [vmem:[#allocation3 + $0x109] sm:$0xff] }
 0x95c   :  { %6082 = vmatmul.bf16.gmra.mxu1 %v5941_v15 }
 0x95d   :  { %v6988_v54 = vadd.f32 %v6829_v61, %v6593_v25 }
 0x95f   :  { %6476 = vmatmul.bf16.gmra.mxu2 %v6335_v52  ;;  %v5942_v52 = vpack.c.bf16 %v5889_v5, %v5888_v35  ;;  %v5890_v35 = vld [vmem:[#allocation3 + $0x121] sm:$0xff]  ;;  %v5891_v5 = vld [vmem:[#allocation3 + $0x129] sm:$0xff] }
 0x960   :  { %6871 = vmatmul.bf16.gmra.mxu3 %v6730_v51 }
 0x961   :  { %v7221_v38 = vpop.f32.mrf.mxu0  ;;  %v6045_v11 = vpop.f32.mrf.mxu1 }
 0x962   :  { %v6437_v31 = vpop.f32.mrf.mxu2  ;;  %v12448_v17 = vadd.f32 %v7221_v38, %v6987_v12  ;;  %v6201_v32 = vadd.f32 %v6045_v11, %v12224_v33  ;;  %v6677_v12 = vld [vmem:[#allocation3 + $0x120] sm:$0xff]  ;;  %v6336_v33 = vpack.c.bf16 %v6283_v56, %v6282_v23 }
 0x963   :  { %v6594_v13 = vadd.f32 %v6437_v31, %v6200_v60  ;;  %v6832_v0 = vpop.f32.mrf.mxu3  ;;  %v6284_v56 = vld [vmem:[#allocation3 + $0x122] sm:$0xff] }
 0x964   :  { %7260 = vmatmul.bf16.gmra.mxu0 %v5941_v15  ;;  %v6731_v15 = vpack.c.bf16 %v6678_v3, %v6677_v12  ;;  %v6679_v3 = vld [vmem:[#allocation3 + $0x138] sm:$0xff] }
 0x965   :  { %v6989_v50 = vadd.f32 %v6832_v0, %v6594_v13 }
 0x969   :  { %v7223_v63 = vpop.f32.mrf.mxu0  ;;  %v6048_v28 = vpop.f32.mrf.mxu1 }
 0x96a   :  { %v6439_v2 = vpop.f32.mrf.mxu2  ;;  %v12451_v25 = vadd.f32 %v7223_v63, %v6988_v54  ;;  %v6202_v60 = vadd.f32 %v6048_v28, %v12227_v7  ;;  %v9638_v7 = vld [vmem:[%s13844_s4 + $0x220] sm:$0xff] }
 0x96b   :  { %v6595_v61 = vadd.f32 %v6439_v2, %v6201_v32  ;;  %v6834_v39 = vpop.f32.mrf.mxu3  ;;  %7609 = vmatpush.bf16.msra.mxu1 %v9638_v7 }
 0x96c   :  { %6087 = vmatmul.bf16.gmra.mxu1 %v5942_v52 }
 0x96d   :  { %v6990_v51 = vadd.f32 %v6834_v39, %v6595_v61  ;;  %v6285_v61 = vld [vmem:[#allocation3 + $0x12a] sm:$0xff] }
 0x96f   :  { %6481 = vmatmul.bf16.gmra.mxu2 %v6336_v33 }
 0x970   :  { %6876 = vmatmul.bf16.gmra.mxu3 %v6731_v15  ;;  %v6337_v15 = vpack.c.bf16 %v6285_v61, %v6284_v56  ;;  %v6286_v56 = vld [vmem:[#allocation3 + $0x13a] sm:$0xff]  ;;  %v6287_v61 = vld [vmem:[#allocation3 + $0x142] sm:$0xff] }
 0x971   :  { %v7226_v38 = vpop.f32.mrf.mxu0  ;;  %v6050_v11 = vpop.f32.mrf.mxu1 }
 0x972   :  { %v6442_v31 = vpop.f32.mrf.mxu2  ;;  %v12454_v13 = vadd.f32 %v7226_v38, %v6989_v50  ;;  %v6203_v32 = vadd.f32 %v6050_v11, %v12229_v8  ;;  %v6680_v8 = vld [vmem:[#allocation3 + $0x140] sm:$0xff] }
 0x973   :  { %v6596_v54 = vadd.f32 %v6442_v31, %v6202_v60  ;;  %v6837_v0 = vpop.f32.mrf.mxu3  ;;  %v6732_v38 = vpack.c.bf16 %v6680_v8, %v6679_v3  ;;  %v6682_v8 = vld [vmem:[#allocation3 + $0x158] sm:$0xff] }
 0x974   :  { %7265 = vmatmul.bf16.gmra.mxu0 %v5942_v52  ;;  %v5943_v52 = vpack.c.bf16 %v5891_v5, %v5890_v35 }
 0x975   :  { %v6991_v63 = vadd.f32 %v6837_v0, %v6596_v54 }
 0x979   :  { %v7228_v2 = vpop.f32.mrf.mxu0  ;;  %v6053_v12 = vpop.f32.mrf.mxu1 }
 0x97a   :  { %v6444_v23 = vpop.f32.mrf.mxu2  ;;  %v12460_v50 = vadd.f32 %v7228_v2, %v6990_v51  ;;  %v6204_v60 = vadd.f32 %v6053_v12, %v12232_v46  ;;  %v5893_v46 = vld [vmem:[#allocation3 + $0x141] sm:$0xff] }
 0x97b   :  { %v6597_v39 = vadd.f32 %v6444_v23, %v6203_v32  ;;  %v6839_v28 = vpop.f32.mrf.mxu3  ;;  %v5892_v23 = vld [vmem:[#allocation3 + $0x139] sm:$0xff] }
 0x97c   :  { %6092 = vmatmul.bf16.gmra.mxu1 %v5943_v52 }
 0x97d   :  { %v6992_v33 = vadd.f32 %v6839_v28, %v6597_v39 }
 0x97f   :  { %6486 = vmatmul.bf16.gmra.mxu2 %v6337_v15  ;;  %v5944_v15 = vpack.c.bf16 %v5893_v46, %v5892_v23 }
 0x980   :  { %6881 = vmatmul.bf16.gmra.mxu3 %v6732_v38 }
 0x981   :  { %v7231_v31 = vpop.f32.mrf.mxu0  ;;  %v6055_v32 = vpop.f32.mrf.mxu1 }
 0x982   :  { %v6447_v54 = vpop.f32.mrf.mxu2  ;;  %v12463_v0 = vadd.f32 %v7231_v31, %v6991_v63  ;;  %v6205_v7 = vadd.f32 %v6055_v32, %v12234_v37  ;;  %v6681_v63 = vld [vmem:[#allocation3 + $0x150] sm:$0xff]  ;;  %v6338_v37 = vpack.c.bf16 %v6287_v61, %v6286_v56  ;;  %v6289_v61 = vld [vmem:[#allocation3 + $0x15a] sm:$0xff] }
 0x983   :  { %v6598_v51 = vadd.f32 %v6447_v54, %v6204_v60  ;;  %v6842_v11 = vpop.f32.mrf.mxu3  ;;  %v6288_v56 = vld [vmem:[#allocation3 + $0x152] sm:$0xff] }
 0x984   :  { %7270 = vmatmul.bf16.gmra.mxu0 %v5943_v52  ;;  %v6733_v52 = vpack.c.bf16 %v6682_v8, %v6681_v63  ;;  %v6684_v8 = vld [vmem:[#allocation3 + $0x170] sm:$0xff] }
 0x985   :  { %v6993_v2 = vadd.f32 %v6842_v11, %v6598_v51 }
 0x989   :  { %v7233_v35 = vpop.f32.mrf.mxu0  ;;  %v6058_v3 = vpop.f32.mrf.mxu1 }
 0x98a   :  { %v6449_v5 = vpop.f32.mrf.mxu2  ;;  %v12466_v39 = vadd.f32 %v7233_v35, %v6992_v33  ;;  %v6206_v60 = vadd.f32 %v6058_v3, %v12237_v30  ;;  %v5895_v30 = vld [vmem:[#allocation3 + $0x159] sm:$0xff] }
 0x98b   :  { %v6599_v28 = vadd.f32 %v6449_v5, %v6205_v7  ;;  %v6844_v12 = vpop.f32.mrf.mxu3  ;;  %v5894_v5 = vld [vmem:[#allocation3 + $0x151] sm:$0xff] }
 0x98c   :  { %6097 = vmatmul.bf16.gmra.mxu1 %v5944_v15 }
 0x98d   :  { %v6994_v38 = vadd.f32 %v6844_v12, %v6599_v28 }
 0x98f   :  { %6491 = vmatmul.bf16.gmra.mxu2 %v6338_v37  ;;  %v5945_v37 = vpack.c.bf16 %v5895_v30, %v5894_v5 }
 0x990   :  { %6886 = vmatmul.bf16.gmra.mxu3 %v6733_v52 }
 0x991   :  { %v7236_v31 = vpop.f32.mrf.mxu0  ;;  %v6060_v32 = vpop.f32.mrf.mxu1 }
 0x992   :  { %v6452_v54 = vpop.f32.mrf.mxu2  ;;  %v12469_v51 = vadd.f32 %v7236_v31, %v6993_v2  ;;  %v6207_v7 = vadd.f32 %v6060_v32, %v12239_v19  ;;  %v6683_v2 = vld [vmem:[#allocation3 + $0x168] sm:$0xff]  ;;  %v6339_v19 = vpack.c.bf16 %v6289_v61, %v6288_v56  ;;  %v6291_v61 = vld [vmem:[#allocation3 + $0x172] sm:$0xff] }
 0x993   :  { %v6600_v33 = vadd.f32 %v6452_v54, %v6206_v60  ;;  %v6847_v11 = vpop.f32.mrf.mxu3  ;;  %v6290_v56 = vld [vmem:[#allocation3 + $0x16a] sm:$0xff] }
 0x994   :  { %7275 = vmatmul.bf16.gmra.mxu0 %v5944_v15  ;;  %v6734_v15 = vpack.c.bf16 %v6684_v8, %v6683_v2  ;;  %v6686_v8 = vld [vmem:[#allocation3 + $0x188] sm:$0xff] }
 0x995   :  { %v6995_v35 = vadd.f32 %v6847_v11, %v6600_v33 }
 0x999   :  { %v7238_v23 = vpop.f32.mrf.mxu0  ;;  %v6063_v63 = vpop.f32.mrf.mxu1 }
 0x99a   :  { %v6454_v46 = vpop.f32.mrf.mxu2  ;;  %v12472_v28 = vadd.f32 %v7238_v23, %v6994_v38  ;;  %v6208_v60 = vadd.f32 %v6063_v63, %v12242_v14  ;;  %v5897_v14 = vld [vmem:[#allocation3 + $0x171] sm:$0xff] }
 0x99b   :  { %v6601_v12 = vadd.f32 %v6454_v46, %v6207_v7  ;;  %v6849_v3 = vpop.f32.mrf.mxu3  ;;  %v5896_v46 = vld [vmem:[#allocation3 + $0x169] sm:$0xff] }
 0x99c   :  { %6102 = vmatmul.bf16.gmra.mxu1 %v5945_v37 }
 0x99d   :  { %v6996_v52 = vadd.f32 %v6849_v3, %v6601_v12 }
 0x99f   :  { %6496 = vmatmul.bf16.gmra.mxu2 %v6339_v19  ;;  %v5946_v19 = vpack.c.bf16 %v5897_v14, %v5896_v46  ;;  %v5898_v46 = vld [vmem:[#allocation3 + $0x181] sm:$0xff]  ;;  %v5899_v14 = vld [vmem:[#allocation3 + $0x189] sm:$0xff] }
 0x9a0   :  { %6891 = vmatmul.bf16.gmra.mxu3 %v6734_v15 }
 0x9a1   :  { %v7241_v31 = vpop.f32.mrf.mxu0  ;;  %v6065_v32 = vpop.f32.mrf.mxu1 }
 0x9a2   :  { %v6457_v54 = vpop.f32.mrf.mxu2  ;;  %v12475_v33 = vadd.f32 %v7241_v31, %v6995_v35  ;;  %v6209_v7 = vadd.f32 %v6065_v32, %v12247_v22  ;;  %v6685_v35 = vld [vmem:[#allocation3 + $0x180] sm:$0xff]  ;;  %v6340_v22 = vpack.c.bf16 %v6291_v61, %v6290_v56 }
 0x9a3   :  { %v6602_v38 = vadd.f32 %v6457_v54, %v6208_v60  ;;  %v6852_v11 = vpop.f32.mrf.mxu3  ;;  %v6292_v61 = vld [vmem:[#allocation3 + $0x182] sm:$0xff] }
 0x9a4   :  { %7280 = vmatmul.bf16.gmra.mxu0 %v5945_v37  ;;  %v6735_v37 = vpack.c.bf16 %v6686_v8, %v6685_v35  ;;  %v5947_v8 = vpack.c.bf16 %v5899_v14, %v5898_v46  ;;  %v5901_v46 = vld [vmem:[#allocation3 + $0x1d1] sm:$0xff] }
 0x9a5   :  { %v6997_v23 = vadd.f32 %v6852_v11, %v6602_v38 }
 0x9a9   :  { %v7243_v5 = vpop.f32.mrf.mxu0  ;;  %v6068_v2 = vpop.f32.mrf.mxu1 }
 0x9aa   :  { %v6459_v30 = vpop.f32.mrf.mxu2  ;;  %v12478_v12 = vadd.f32 %v7243_v5, %v6996_v52  ;;  %v6210_v60 = vadd.f32 %v6068_v2, %v12250_v42  ;;  %v9637_v42 = vld [vmem:[%s13844_s4 + $0x218] sm:$0xff] }
 0x9ab   :  { %v6603_v3 = vadd.f32 %v6459_v30, %v6209_v7  ;;  %v6854_v63 = vpop.f32.mrf.mxu3  ;;  %7610 = vmatpush.bf16.msra.mxu1 %v9637_v42  ;;  %v5900_v42 = vld [vmem:[#allocation3 + $0x1c9] sm:$0xff] }
 0x9ac   :  { %6107 = vmatmul.bf16.gmra.mxu1 %v5946_v19 }
 0x9ad   :  { %v6998_v15 = vadd.f32 %v6854_v63, %v6603_v3  ;;  %v6293_v3 = vld [vmem:[#allocation3 + $0x18a] sm:$0xff] }
 0x9af   :  { %6501 = vmatmul.bf16.gmra.mxu2 %v6340_v22 }
 0x9b0   :  { %6896 = vmatmul.bf16.gmra.mxu3 %v6735_v37  ;;  %v6341_v37 = vpack.c.bf16 %v6293_v3, %v6292_v61  ;;  %v6295_v61 = vld [vmem:[#allocation3 + $0x1d2] sm:$0xff] }
 0x9b1   :  { %v7246_v31 = vpop.f32.mrf.mxu0  ;;  %v6070_v32 = vpop.f32.mrf.mxu1 }
 0x9b2   :  { %v6462_v54 = vpop.f32.mrf.mxu2  ;;  %v12481_v38 = vadd.f32 %v7246_v31, %v6997_v23  ;;  %v6211_v7 = vadd.f32 %v6070_v32, %v12252_v6 }
 0x9b3   :  { %v6604_v52 = vadd.f32 %v6462_v54, %v6210_v60  ;;  %v6857_v11 = vpop.f32.mrf.mxu3  ;;  %v9671_v60 = vld [vmem:[#allocation3] sm:$0xff] }
 0x9b4   :  { %7285 = vmatmul.bf16.gmra.mxu0 %v5946_v19  ;;  %v12490_v19 = vpack.c.bf16 %v9671_v60, %v9671_v60  ;;  %v6690_v60 = vld [vmem:[#allocation3 + $0x1e8] sm:$0xff] }
 0x9b5   :  { %v6999_v5 = vadd.f32 %v6857_v11, %v6604_v52 }
 0x9b9   :  { %v7248_v30 = vpop.f32.mrf.mxu0  ;;  %v6073_v35 = vpop.f32.mrf.mxu1 }
 0x9ba   :  { %v6464_v56 = vpop.f32.mrf.mxu2  ;;  %v12487_v23 = vadd.f32 %v7248_v30, %v6998_v15  ;;  %v6212_v6 = vadd.f32 %v6073_v35, %v12255_v24 }
 0x9bb   :  { %v6605_v63 = vadd.f32 %v6464_v56, %v6211_v7  ;;  %v6859_v2 = vpop.f32.mrf.mxu3  ;;  %v6294_v56 = vld [vmem:[#allocation3 + $0x1ca] sm:$0xff] }
 0x9bc   :  { %6112 = vmatmul.bf16.gmra.mxu1 %v5947_v8 }
 0x9bd   :  { %v7000_v22 = vadd.f32 %v6859_v2, %v6605_v63 }
 0x9bf   :  { %6506 = vmatmul.bf16.gmra.mxu2 %v6341_v37  ;;  %v5948_v37 = vpack.c.bf16 %v5901_v46, %v5900_v42  ;;  %v5902_v42 = vld [vmem:[#allocation3 + $0x1e1] sm:$0xff]  ;;  %v5903_v46 = vld [vmem:[#allocation3 + $0x1e9] sm:$0xff] }
 0x9c0   :  { %6901 = vmatmul.bf16.gmra.mxu3 %v12490_v19 }
 0x9c1   :  { %v7251_v31 = vpop.f32.mrf.mxu0  ;;  %v6075_v32 = vpop.f32.mrf.mxu1 }
 0x9c2   :  { %v6467_v54 = vpop.f32.mrf.mxu2  ;;  %v12493_v52 = vadd.f32 %v7251_v31, %v6999_v5  ;;  %v6213_v7 = vadd.f32 %v6075_v32, %v12257_v62  ;;  %v6689_v5 = vld [vmem:[#allocation3 + $0x1e0] sm:$0xff]  ;;  %v6342_v62 = vpack.c.bf16 %v6295_v61, %v6294_v56 }
 0x9c3   :  { %v6606_v15 = vadd.f32 %v6467_v54, %v6212_v6  ;;  %v6862_v11 = vpop.f32.mrf.mxu3  ;;  %v7081_v54 = vld [vmem:[#allocation3 + $0x199] sm:$0xff] }
 0x9c4   :  { %14246 = vst [vmem:[#allocation48_spill] sm:$0xff] %v12493_v52  ;;  %7290 = vmatmul.bf16.gmra.mxu0 %v5947_v8  ;;  %v6737_v8 = vpack.c.bf16 %v6690_v60, %v6689_v5 }
 0x9c5   :  { %v7001_v24 = vadd.f32 %v6862_v11, %v6606_v15  ;;  %v7082_v15 = vld [vmem:[#allocation3 + $0x1a1] sm:$0xff] }
 0x9c6   :  { %v7130_v11 = vpack.c.bf16 %v7082_v15, %v7081_v54 }
 0x9c9   :  { %v7253_v14 = vpop.f32.mrf.mxu0  ;;  %v6078_v35 = vpop.f32.mrf.mxu1 }
 0x9ca   :  { %v6469_v30 = vpop.f32.mrf.mxu2  ;;  %v12496_v3 = vadd.f32 %v7253_v14, %v7000_v22  ;;  %v6214_v6 = vadd.f32 %v6078_v35, %v12259_v43 }
 0x9cb   :  { %v6607_v63 = vadd.f32 %v6469_v30, %v6213_v7  ;;  %v6864_v2 = vpop.f32.mrf.mxu3 }
 0x9cc   :  { %14247 = vst [vmem:[#allocation49_spill] sm:$0xff] %v12496_v3  ;;  %6117 = vmatmul.bf16.gmra.mxu1 %v5948_v37 }
 0x9cd   :  { %v7002_v31 = vadd.f32 %v6864_v2, %v6607_v63  ;;  %v6296_v63 = vld [vmem:[#allocation3 + $0x1e2] sm:$0xff]  ;;  %v6297_v2 = vld [vmem:[#allocation3 + $0x1ea] sm:$0xff] }
 0x9cf   :  { %6511 = vmatmul.bf16.gmra.mxu2 %v6342_v62  ;;  %v6692_v62 = vld [vmem:[#allocation3 + $0x200] sm:$0xff] }
 0x9d0   :  { %6906 = vmatmul.bf16.gmra.mxu3 %v6737_v8  ;;  %v5949_v8 = vpack.c.bf16 %v5903_v46, %v5902_v42 }
 0x9d1   :  { %v7256_v32 = vpop.f32.mrf.mxu0  ;;  %v6080_v3 = vpop.f32.mrf.mxu1 }
 0x9d2   :  { %v6472_v22 = vpop.f32.mrf.mxu2  ;;  %v12499_v14 = vadd.f32 %v7256_v32, %v7001_v24  ;;  %v6215_v52 = vadd.f32 %v6080_v3, %v12261_v48  ;;  %v6691_v24 = vld [vmem:[#allocation3 + $0x1f8] sm:$0xff]  ;;  %v6343_v48 = vpack.c.bf16 %v6297_v2, %v6296_v63  ;;  %v6299_v63 = vld [vmem:[#allocation3 + $0x202] sm:$0xff] }
 0x9d3   :  { %v6608_v7 = vadd.f32 %v6472_v22, %v6214_v6  ;;  %v6867_v30 = vpop.f32.mrf.mxu3  ;;  %v6738_v3 = vpack.c.bf16 %v6692_v62, %v6691_v24  ;;  %v6694_v24 = vld [vmem:[#allocation3 + $0x218] sm:$0xff] }
 0x9d4   :  { %7295 = vmatmul.bf16.gmra.mxu0 %v7130_v11 }
 0x9d5   :  { %v7003_v43 = vadd.f32 %v6867_v30, %v6608_v7 }
 0x9d9   :  { %v7258_v56 = vpop.f32.mrf.mxu0  ;;  %v6083_v37 = vpop.f32.mrf.mxu1 }
 0x9da   :  { %v6474_v61 = vpop.f32.mrf.mxu2  ;;  %v12502_v35 = vadd.f32 %v7258_v56, %v7002_v31  ;;  %v6216_v6 = vadd.f32 %v6083_v37, %v12263_v40  ;;  %v5904_v56 = vld [vmem:[#allocation3 + $0x1f9] sm:$0xff]  ;;  %v5905_v40 = vld [vmem:[#allocation3 + $0x201] sm:$0xff] }
 0x9db   :  { %v6609_v5 = vadd.f32 %v6474_v61, %v6215_v52  ;;  %v6869_v60 = vpop.f32.mrf.mxu3  ;;  %v6298_v61 = vld [vmem:[#allocation3 + $0x1fa] sm:$0xff] }
 0x9dc   :  { %6122 = vmatmul.bf16.gmra.mxu1 %v5949_v8 }
 0x9dd   :  { %v7004_v54 = vadd.f32 %v6869_v60, %v6609_v5 }
 0x9df   :  { %6516 = vmatmul.bf16.gmra.mxu2 %v6343_v48 }
 0x9e0   :  { %6911 = vmatmul.bf16.gmra.mxu3 %v6738_v3 }
 0x9e1   :  { %v7261_v15 = vpop.f32.mrf.mxu0  ;;  %v6085_v52 = vpop.f32.mrf.mxu1 }
 0x9e2   :  { %v6477_v11 = vpop.f32.mrf.mxu2  ;;  %v12505_v32 = vadd.f32 %v7261_v15, %v7003_v43  ;;  %v6217_v7 = vadd.f32 %v6085_v52, %v12268_v26  ;;  %v6693_v43 = vld [vmem:[#allocation3 + $0x210] sm:$0xff]  ;;  %v6344_v26 = vpack.c.bf16 %v6299_v63, %v6298_v61  ;;  %v6301_v63 = vld [vmem:[#allocation3 + $0x21a] sm:$0xff] }
 0x9e3   :  { %v6610_v31 = vadd.f32 %v6477_v11, %v6216_v6  ;;  %v6872_v22 = vpop.f32.mrf.mxu3  ;;  %v5950_v6 = vpack.c.bf16 %v5905_v40, %v5904_v56  ;;  %v5906_v56 = vld [vmem:[#allocation3 + $0x211] sm:$0xff]  ;;  %v5907_v40 = vld [vmem:[#allocation3 + $0x219] sm:$0xff] }
 0x9e4   :  { %7300 = vmatmul.bf16.gmra.mxu0 %v5949_v8  ;;  %v6739_v8 = vpack.c.bf16 %v6694_v24, %v6693_v43  ;;  %v6300_v61 = vld [vmem:[#allocation3 + $0x212] sm:$0xff]  ;;  %v6695_v43 = vld [vmem:[#allocation3 + $0x228] sm:$0xff] }
 0x9e5   :  { %v7005_v30 = vadd.f32 %v6872_v22, %v6610_v31 }
 0x9e9   :  { %v7263_v42 = vpop.f32.mrf.mxu0  ;;  %v6088_v37 = vpop.f32.mrf.mxu1 }
 0x9ea   :  { %v6479_v46 = vpop.f32.mrf.mxu2  ;;  %v12508_v2 = vadd.f32 %v7263_v42, %v7004_v54  ;;  %v6218_v62 = vadd.f32 %v6088_v37, %v12270_v27  ;;  %v9636_v27 = vld [vmem:[%s13844_s4 + $0x210] sm:$0xff] }
 0x9eb   :  { %v6611_v5 = vadd.f32 %v6479_v46, %v6217_v7  ;;  %v6874_v60 = vpop.f32.mrf.mxu3  ;;  %7611 = vmatpush.bf16.msra.mxu1 %v9636_v27 }
 0x9ec   :  { %6127 = vmatmul.bf16.gmra.mxu1 %v5950_v6 }
 0x9ed   :  { %v7006_v48 = vadd.f32 %v6874_v60, %v6611_v5 }
 0x9ef   :  { %6521 = vmatmul.bf16.gmra.mxu2 %v6344_v26  ;;  %v6345_v26 = vpack.c.bf16 %v6301_v63, %v6300_v61  ;;  %v6303_v61 = vld [vmem:[#allocation3 + $0x232] sm:$0xff] }
 0x9f0   :  { %6916 = vmatmul.bf16.gmra.mxu3 %v6739_v8 }
 0x9f1   :  { %v7266_v3 = vpop.f32.mrf.mxu0  ;;  %v6090_v22 = vpop.f32.mrf.mxu1 }
 0x9f2   :  { %v6482_v15 = vpop.f32.mrf.mxu2  ;;  %v12511_v11 = vadd.f32 %v7266_v3, %v7005_v30  ;;  %v6219_v52 = vadd.f32 %v6090_v22, %v12272_v57  ;;  %v6696_v57 = vld [vmem:[#allocation3 + $0x230] sm:$0xff] }
 0x9f3   :  { %v6612_v54 = vadd.f32 %v6482_v15, %v6218_v62  ;;  %v6877_v31 = vpop.f32.mrf.mxu3  ;;  %v5951_v62 = vpack.c.bf16 %v5907_v40, %v5906_v56  ;;  %v6740_v8 = vpack.c.bf16 %v6696_v57, %v6695_v43  ;;  %v6698_v43 = vld [vmem:[#allocation3 + $0x248] sm:$0xff] }
 0x9f4   :  { %7305 = vmatmul.bf16.gmra.mxu0 %v5950_v6 }
 0x9f5   :  { %v7007_v7 = vadd.f32 %v6877_v31, %v6612_v54 }
 0x9f9   :  { %v7268_v42 = vpop.f32.mrf.mxu0  ;;  %v6093_v37 = vpop.f32.mrf.mxu1 }
 0x9fa   :  { %v6484_v46 = vpop.f32.mrf.mxu2  ;;  %v12517_v30 = vadd.f32 %v7268_v42, %v7006_v48  ;;  %v6220_v24 = vadd.f32 %v6093_v37, %v12274_v49  ;;  %v5908_v42 = vld [vmem:[#allocation3 + $0x229] sm:$0xff]  ;;  %v5909_v49 = vld [vmem:[#allocation3 + $0x231] sm:$0xff] }
 0x9fb   :  { %v6613_v5 = vadd.f32 %v6484_v46, %v6219_v52  ;;  %v6879_v60 = vpop.f32.mrf.mxu3  ;;  %v6302_v46 = vld [vmem:[#allocation3 + $0x22a] sm:$0xff] }
 0x9fc   :  { %6132 = vmatmul.bf16.gmra.mxu1 %v5951_v62 }
 0x9fd   :  { %v7008_v6 = vadd.f32 %v6879_v60, %v6613_v5 }
 0x9ff   :  { %6526 = vmatmul.bf16.gmra.mxu2 %v6345_v26 }
 0xa00   :  { %6921 = vmatmul.bf16.gmra.mxu3 %v6740_v8 }
 0xa01   :  { %v7271_v3 = vpop.f32.mrf.mxu0  ;;  %v6095_v22 = vpop.f32.mrf.mxu1 }
 0xa02   :  { %v6487_v15 = vpop.f32.mrf.mxu2  ;;  %v12520_v54 = vadd.f32 %v7271_v3, %v7007_v7  ;;  %v6221_v52 = vadd.f32 %v6095_v22, %v12276_v45  ;;  %v6697_v7 = vld [vmem:[#allocation3 + $0x240] sm:$0xff]  ;;  %v6346_v45 = vpack.c.bf16 %v6303_v61, %v6302_v46  ;;  %v6305_v46 = vld [vmem:[#allocation3 + $0x24a] sm:$0xff] }
 0xa03   :  { %v6614_v48 = vadd.f32 %v6487_v15, %v6220_v24  ;;  %v6882_v31 = vpop.f32.mrf.mxu3  ;;  %v5952_v24 = vpack.c.bf16 %v5909_v49, %v5908_v42 }
 0xa04   :  { %7310 = vmatmul.bf16.gmra.mxu0 %v5951_v62  ;;  %v6741_v62 = vpack.c.bf16 %v6698_v43, %v6697_v7  ;;  %v6700_v7 = vld [vmem:[#allocation3 + $0x260] sm:$0xff] }
 0xa05   :  { %v7009_v27 = vadd.f32 %v6882_v31, %v6614_v48 }
 0xa09   :  { %v7273_v56 = vpop.f32.mrf.mxu0  ;;  %v6098_v37 = vpop.f32.mrf.mxu1 }
 0xa0a   :  { %v6489_v40 = vpop.f32.mrf.mxu2  ;;  %v12523_v63 = vadd.f32 %v7273_v56, %v7008_v6  ;;  %v6222_v57 = vadd.f32 %v6098_v37, %v12278_v4  ;;  %v5910_v56 = vld [vmem:[#allocation3 + $0x241] sm:$0xff]  ;;  %v5911_v4 = vld [vmem:[#allocation3 + $0x249] sm:$0xff] }
 0xa0b   :  { %v6615_v5 = vadd.f32 %v6489_v40, %v6221_v52  ;;  %v6884_v60 = vpop.f32.mrf.mxu3  ;;  %v6304_v40 = vld [vmem:[#allocation3 + $0x242] sm:$0xff] }
 0xa0c   :  { %6137 = vmatmul.bf16.gmra.mxu1 %v5952_v24 }
 0xa0d   :  { %v7010_v26 = vadd.f32 %v6884_v60, %v6615_v5 }
 0xa0f   :  { %6531 = vmatmul.bf16.gmra.mxu2 %v6346_v45 }
 0xa10   :  { %6926 = vmatmul.bf16.gmra.mxu3 %v6741_v62 }
 0xa11   :  { %v7276_v8 = vpop.f32.mrf.mxu0  ;;  %v6100_v31 = vpop.f32.mrf.mxu1 }
 0xa12   :  { %v6492_v3 = vpop.f32.mrf.mxu2  ;;  %v12526_v15 = vadd.f32 %v7276_v8, %v7009_v27  ;;  %v6223_v22 = vadd.f32 %v6100_v31, %v12280_v47  ;;  %v6699_v27 = vld [vmem:[#allocation3 + $0x258] sm:$0xff]  ;;  %v6347_v47 = vpack.c.bf16 %v6305_v46, %v6304_v40  ;;  %v6307_v40 = vld [vmem:[#allocation3 + $0x262] sm:$0xff] }
 0xa13   :  { %v6616_v6 = vadd.f32 %v6492_v3, %v6222_v57  ;;  %v6887_v48 = vpop.f32.mrf.mxu3  ;;  %v5953_v57 = vpack.c.bf16 %v5911_v4, %v5910_v56 }
 0xa14   :  { %7315 = vmatmul.bf16.gmra.mxu0 %v5952_v24  ;;  %v6742_v24 = vpack.c.bf16 %v6700_v7, %v6699_v27  ;;  %v6702_v27 = vld [vmem:[#allocation3 + $0x278] sm:$0xff] }
 0xa15   :  { %v7011_v52 = vadd.f32 %v6887_v48, %v6616_v6 }
 0xa19   :  { %v7278_v42 = vpop.f32.mrf.mxu0  ;;  %v6103_v37 = vpop.f32.mrf.mxu1 }
 0xa1a   :  { %v6494_v49 = vpop.f32.mrf.mxu2  ;;  %v12529_v61 = vadd.f32 %v7278_v42, %v7010_v26  ;;  %v6224_v43 = vadd.f32 %v6103_v37, %v12282_v20  ;;  %v5912_v42 = vld [vmem:[#allocation3 + $0x259] sm:$0xff]  ;;  %v5913_v20 = vld [vmem:[#allocation3 + $0x261] sm:$0xff] }
 0xa1b   :  { %v6617_v5 = vadd.f32 %v6494_v49, %v6223_v22  ;;  %v6889_v60 = vpop.f32.mrf.mxu3  ;;  %v6306_v49 = vld [vmem:[#allocation3 + $0x25a] sm:$0xff] }
 0xa1c   :  { %6142 = vmatmul.bf16.gmra.mxu1 %v5953_v57 }
 0xa1d   :  { %v7012_v45 = vadd.f32 %v6889_v60, %v6617_v5 }
 0xa1f   :  { %6536 = vmatmul.bf16.gmra.mxu2 %v6347_v47 }
 0xa20   :  { %6931 = vmatmul.bf16.gmra.mxu3 %v6742_v24 }
 0xa21   :  { %v7281_v62 = vpop.f32.mrf.mxu0  ;;  %v6105_v48 = vpop.f32.mrf.mxu1 }
 0xa22   :  { %v6497_v8 = vpop.f32.mrf.mxu2  ;;  %v12532_v3 = vadd.f32 %v7281_v62, %v7011_v52  ;;  %v6225_v31 = vadd.f32 %v6105_v48, %v12287_v29  ;;  %v6701_v52 = vld [vmem:[#allocation3 + $0x270] sm:$0xff]  ;;  %v6348_v29 = vpack.c.bf16 %v6307_v40, %v6306_v49  ;;  %v6309_v40 = vld [vmem:[#allocation3 + $0x27a] sm:$0xff] }
 0xa23   :  { %v6618_v26 = vadd.f32 %v6497_v8, %v6224_v43  ;;  %v6892_v6 = vpop.f32.mrf.mxu3  ;;  %v5954_v43 = vpack.c.bf16 %v5913_v20, %v5912_v42  ;;  %v5914_v42 = vld [vmem:[#allocation3 + $0x271] sm:$0xff]  ;;  %v5915_v20 = vld [vmem:[#allocation3 + $0x279] sm:$0xff] }
 0xa24   :  { %7320 = vmatmul.bf16.gmra.mxu0 %v5953_v57  ;;  %v6743_v57 = vpack.c.bf16 %v6702_v27, %v6701_v52  ;;  %v6308_v49 = vld [vmem:[#allocation3 + $0x272] sm:$0xff]  ;;  %v6703_v52 = vld [vmem:[#allocation3 + $0x288] sm:$0xff] }
 0xa25   :  { %v7013_v22 = vadd.f32 %v6892_v6, %v6618_v26 }
 0xa29   :  { %v7283_v56 = vpop.f32.mrf.mxu0  ;;  %v6108_v37 = vpop.f32.mrf.mxu1 }
 0xa2a   :  { %v6499_v4 = vpop.f32.mrf.mxu2  ;;  %v12535_v46 = vadd.f32 %v7283_v56, %v7012_v45  ;;  %v6226_v7 = vadd.f32 %v6108_v37, %v12289_v58  ;;  %v9635_v58 = vld [vmem:[%s13844_s4 + $0x208] sm:$0xff] }
 0xa2b   :  { %v6619_v5 = vadd.f32 %v6499_v4, %v6225_v31  ;;  %v6894_v60 = vpop.f32.mrf.mxu3  ;;  %7612 = vmatpush.bf16.msra.mxu1 %v9635_v58 }
 0xa2c   :  { %6147 = vmatmul.bf16.gmra.mxu1 %v5954_v43 }
 0xa2d   :  { %v7014_v47 = vadd.f32 %v6894_v60, %v6619_v5 }
 0xa2f   :  { %6541 = vmatmul.bf16.gmra.mxu2 %v6348_v29  ;;  %v6349_v29 = vpack.c.bf16 %v6309_v40, %v6308_v49  ;;  %v6311_v49 = vld [vmem:[#allocation3 + $0x292] sm:$0xff] }
 0xa30   :  { %6936 = vmatmul.bf16.gmra.mxu3 %v6743_v57 }
 0xa31   :  { %v7286_v24 = vpop.f32.mrf.mxu0  ;;  %v6110_v6 = vpop.f32.mrf.mxu1 }
 0xa32   :  { %v6502_v62 = vpop.f32.mrf.mxu2  ;;  %v12538_v8 = vadd.f32 %v7286_v24, %v7013_v22  ;;  %v6227_v48 = vadd.f32 %v6110_v6, %v12291_v16  ;;  %v6704_v16 = vld [vmem:[#allocation3 + $0x290] sm:$0xff] }
 0xa33   :  { %v6620_v45 = vadd.f32 %v6502_v62, %v6226_v7  ;;  %v6897_v26 = vpop.f32.mrf.mxu3  ;;  %v5955_v7 = vpack.c.bf16 %v5915_v20, %v5914_v42  ;;  %v6744_v57 = vpack.c.bf16 %v6704_v16, %v6703_v52  ;;  %v6706_v52 = vld [vmem:[#allocation3 + $0x2a8] sm:$0xff] }
 0xa34   :  { %7325 = vmatmul.bf16.gmra.mxu0 %v5954_v43 }
 0xa35   :  { %v7015_v31 = vadd.f32 %v6897_v26, %v6620_v45 }
 0xa39   :  { %v7288_v56 = vpop.f32.mrf.mxu0  ;;  %v6113_v37 = vpop.f32.mrf.mxu1 }
 0xa3a   :  { %v6504_v4 = vpop.f32.mrf.mxu2  ;;  %v12544_v22 = vadd.f32 %v7288_v56, %v7014_v47  ;;  %v6228_v27 = vadd.f32 %v6113_v37, %v12293_v9  ;;  %v5916_v56 = vld [vmem:[#allocation3 + $0x289] sm:$0xff]  ;;  %v5917_v9 = vld [vmem:[#allocation3 + $0x291] sm:$0xff] }
 0xa3b   :  { %v6621_v5 = vadd.f32 %v6504_v4, %v6227_v48  ;;  %v6899_v60 = vpop.f32.mrf.mxu3  ;;  %v6310_v4 = vld [vmem:[#allocation3 + $0x28a] sm:$0xff] }
 0xa3c   :  { %6152 = vmatmul.bf16.gmra.mxu1 %v5955_v7 }
 0xa3d   :  { %v7016_v43 = vadd.f32 %v6899_v60, %v6621_v5 }
 0xa3f   :  { %6546 = vmatmul.bf16.gmra.mxu2 %v6349_v29 }
 0xa40   :  { %6941 = vmatmul.bf16.gmra.mxu3 %v6744_v57 }
 0xa41   :  { %v7291_v24 = vpop.f32.mrf.mxu0  ;;  %v6115_v6 = vpop.f32.mrf.mxu1 }
 0xa42   :  { %v6507_v62 = vpop.f32.mrf.mxu2  ;;  %v12547_v45 = vadd.f32 %v7291_v24, %v7015_v31  ;;  %v6229_v48 = vadd.f32 %v6115_v6, %v12295_v18  ;;  %v6705_v31 = vld [vmem:[#allocation3 + $0x2a0] sm:$0xff]  ;;  %v6350_v18 = vpack.c.bf16 %v6311_v49, %v6310_v4  ;;  %v6313_v4 = vld [vmem:[#allocation3 + $0x2aa] sm:$0xff] }
 0xa43   :  { %v6622_v47 = vadd.f32 %v6507_v62, %v6228_v27  ;;  %v6902_v26 = vpop.f32.mrf.mxu3  ;;  %v5956_v27 = vpack.c.bf16 %v5917_v9, %v5916_v56 }
 0xa44   :  { %7330 = vmatmul.bf16.gmra.mxu0 %v5955_v7  ;;  %v6745_v7 = vpack.c.bf16 %v6706_v52, %v6705_v31  ;;  %v6708_v31 = vld [vmem:[#allocation3 + $0x2c0] sm:$0xff] }
 0xa45   :  { %v7017_v58 = vadd.f32 %v6902_v26, %v6622_v47 }
 0xa49   :  { %v7293_v42 = vpop.f32.mrf.mxu0  ;;  %v6118_v37 = vpop.f32.mrf.mxu1 }
 0xa4a   :  { %v6509_v20 = vpop.f32.mrf.mxu2  ;;  %v12550_v40 = vadd.f32 %v7293_v42, %v7016_v43  ;;  %v6230_v16 = vadd.f32 %v6118_v37, %v12297_v10  ;;  %v5918_v42 = vld [vmem:[#allocation3 + $0x2a1] sm:$0xff]  ;;  %v5919_v10 = vld [vmem:[#allocation3 + $0x2a9] sm:$0xff] }
 0xa4b   :  { %v6623_v5 = vadd.f32 %v6509_v20, %v6229_v48  ;;  %v6904_v60 = vpop.f32.mrf.mxu3  ;;  %v6312_v20 = vld [vmem:[#allocation3 + $0x2a2] sm:$0xff] }
 0xa4c   :  { %6157 = vmatmul.bf16.gmra.mxu1 %v5956_v27 }
 0xa4d   :  { %v7018_v29 = vadd.f32 %v6904_v60, %v6623_v5 }
 0xa4f   :  { %6551 = vmatmul.bf16.gmra.mxu2 %v6350_v18 }
 0xa50   :  { %6946 = vmatmul.bf16.gmra.mxu3 %v6745_v7 }
 0xa51   :  { %v7296_v57 = vpop.f32.mrf.mxu0  ;;  %v6120_v26 = vpop.f32.mrf.mxu1 }
 0xa52   :  { %v6512_v24 = vpop.f32.mrf.mxu2  ;;  %v12553_v62 = vadd.f32 %v7296_v57, %v7017_v58  ;;  %v6231_v6 = vadd.f32 %v6120_v26, %v12299_v36  ;;  %v6707_v58 = vld [vmem:[#allocation3 + $0x2b8] sm:$0xff]  ;;  %v6351_v36 = vpack.c.bf16 %v6313_v4, %v6312_v20  ;;  %v6315_v20 = vld [vmem:[#allocation3 + $0x2c2] sm:$0xff] }
 0xa53   :  { %v6624_v43 = vadd.f32 %v6512_v24, %v6230_v16  ;;  %v6907_v47 = vpop.f32.mrf.mxu3  ;;  %v5957_v16 = vpack.c.bf16 %v5919_v10, %v5918_v42 }
 0xa54   :  { %7335 = vmatmul.bf16.gmra.mxu0 %v5956_v27  ;;  %v6746_v27 = vpack.c.bf16 %v6708_v31, %v6707_v58  ;;  %v6710_v58 = vld [vmem:[#allocation3 + $0x2d8] sm:$0xff] }
 0xa55   :  { %v7019_v48 = vadd.f32 %v6907_v47, %v6624_v43 }
 0xa59   :  { %v7298_v56 = vpop.f32.mrf.mxu0  ;;  %v6123_v37 = vpop.f32.mrf.mxu1 }
 0xa5a   :  { %v6514_v9 = vpop.f32.mrf.mxu2  ;;  %v12556_v49 = vadd.f32 %v7298_v56, %v7018_v29  ;;  %v6232_v52 = vadd.f32 %v6123_v37, %v12301_v21  ;;  %v5920_v56 = vld [vmem:[#allocation3 + $0x2b9] sm:$0xff]  ;;  %v5921_v21 = vld [vmem:[#allocation3 + $0x2c1] sm:$0xff] }
 0xa5b   :  { %v6625_v5 = vadd.f32 %v6514_v9, %v6231_v6  ;;  %v6909_v60 = vpop.f32.mrf.mxu3  ;;  %v6314_v9 = vld [vmem:[#allocation3 + $0x2ba] sm:$0xff] }
 0xa5c   :  { %6162 = vmatmul.bf16.gmra.mxu1 %v5957_v16 }
 0xa5d   :  { %v7020_v18 = vadd.f32 %v6909_v60, %v6625_v5 }
 0xa5f   :  { %6556 = vmatmul.bf16.gmra.mxu2 %v6351_v36 }
 0xa60   :  { %6951 = vmatmul.bf16.gmra.mxu3 %v6746_v27 }
 0xa61   :  { %v7301_v7 = vpop.f32.mrf.mxu0  ;;  %v6125_v47 = vpop.f32.mrf.mxu1 }
 0xa62   :  { %v6517_v57 = vpop.f32.mrf.mxu2  ;;  %v12559_v24 = vadd.f32 %v7301_v7, %v7019_v48  ;;  %v6233_v26 = vadd.f32 %v6125_v47, %v12306_v55  ;;  %v6709_v48 = vld [vmem:[#allocation3 + $0x2d0] sm:$0xff]  ;;  %v6352_v55 = vpack.c.bf16 %v6315_v20, %v6314_v9  ;;  %v6317_v20 = vld [vmem:[#allocation3 + $0x2da] sm:$0xff] }
 0xa63   :  { %v6626_v29 = vadd.f32 %v6517_v57, %v6232_v52  ;;  %v6912_v43 = vpop.f32.mrf.mxu3  ;;  %v5958_v52 = vpack.c.bf16 %v5921_v21, %v5920_v56  ;;  %v5922_v56 = vld [vmem:[#allocation3 + $0x2d1] sm:$0xff]  ;;  %v5923_v21 = vld [vmem:[#allocation3 + $0x2d9] sm:$0xff] }
 0xa64   :  { %7340 = vmatmul.bf16.gmra.mxu0 %v5957_v16  ;;  %v6747_v16 = vpack.c.bf16 %v6710_v58, %v6709_v48  ;;  %v6316_v9 = vld [vmem:[#allocation3 + $0x2d2] sm:$0xff]  ;;  %v6711_v48 = vld [vmem:[#allocation3 + $0x2e8] sm:$0xff] }
 0xa65   :  { %v7021_v6 = vadd.f32 %v6912_v43, %v6626_v29 }
 0xa69   :  { %v7303_v42 = vpop.f32.mrf.mxu0  ;;  %v6128_v37 = vpop.f32.mrf.mxu1 }
 0xa6a   :  { %v6519_v10 = vpop.f32.mrf.mxu2  ;;  %v12562_v4 = vadd.f32 %v7303_v42, %v7020_v18  ;;  %v6234_v31 = vadd.f32 %v6128_v37, %v12308_v41  ;;  %v9634_v41 = vld [vmem:[%s13844_s4 + $0x200] sm:$0xff] }
 0xa6b   :  { %v6627_v5 = vadd.f32 %v6519_v10, %v6233_v26  ;;  %v6914_v60 = vpop.f32.mrf.mxu3  ;;  %7613 = vmatpush.bf16.msra.mxu1 %v9634_v41 }
 0xa6c   :  { %6167 = vmatmul.bf16.gmra.mxu1 %v5958_v52 }
 0xa6d   :  { %v7022_v36 = vadd.f32 %v6914_v60, %v6627_v5 }
 0xa6f   :  { %6561 = vmatmul.bf16.gmra.mxu2 %v6352_v55  ;;  %v6353_v55 = vpack.c.bf16 %v6317_v20, %v6316_v9  ;;  %v6318_v9 = vld [vmem:[#allocation3 + $0x2ea] sm:$0xff]  ;;  %v6319_v20 = vld [vmem:[#allocation3 + $0x2f2] sm:$0xff] }
 0xa70   :  { %6956 = vmatmul.bf16.gmra.mxu3 %v6747_v16 }
 0xa71   :  { %v7306_v27 = vpop.f32.mrf.mxu0  ;;  %v6130_v43 = vpop.f32.mrf.mxu1 }
 0xa72   :  { %v6522_v7 = vpop.f32.mrf.mxu2  ;;  %v12565_v57 = vadd.f32 %v7306_v27, %v7021_v6  ;;  %v6235_v47 = vadd.f32 %v6130_v43, %v12310_v34  ;;  %v6712_v34 = vld [vmem:[#allocation3 + $0x2f0] sm:$0xff] }
 0xa73   :  { %v6628_v18 = vadd.f32 %v6522_v7, %v6234_v31  ;;  %v6917_v29 = vpop.f32.mrf.mxu3  ;;  %v5959_v31 = vpack.c.bf16 %v5923_v21, %v5922_v56  ;;  %v6748_v16 = vpack.c.bf16 %v6712_v34, %v6711_v48  ;;  %v6714_v34 = vld [vmem:[#allocation3 + $0x308] sm:$0xff] }
 0xa74   :  { %7345 = vmatmul.bf16.gmra.mxu0 %v5958_v52 }
 0xa75   :  { %v7023_v26 = vadd.f32 %v6917_v29, %v6628_v18 }
 0xa79   :  { %v7308_v42 = vpop.f32.mrf.mxu0  ;;  %v6133_v37 = vpop.f32.mrf.mxu1 }
 0xa7a   :  { %v6524_v10 = vpop.f32.mrf.mxu2  ;;  %v12571_v6 = vadd.f32 %v7308_v42, %v7022_v36  ;;  %v6236_v58 = vadd.f32 %v6133_v37, %v12312_v59  ;;  %v5925_v59 = vld [vmem:[#allocation3 + $0x2f1] sm:$0xff] }
 0xa7b   :  { %v6629_v5 = vadd.f32 %v6524_v10, %v6235_v47  ;;  %v6919_v60 = vpop.f32.mrf.mxu3  ;;  %v14249_v47 = vld [vmem:[#allocation85_spill] sm:$0xff] }
 0xa7c   :  { %6172 = vmatmul.bf16.gmra.mxu1 %v5959_v31  ;;  %v5924_v10 = vld [vmem:[#allocation3 + $0x2e9] sm:$0xff] }
 0xa7d   :  { %v7024_v52 = vadd.f32 %v6919_v60, %v6629_v5 }
 0xa7f   :  { %6566 = vmatmul.bf16.gmra.mxu2 %v6353_v55 }
 0xa80   :  { %6961 = vmatmul.bf16.gmra.mxu3 %v6748_v16  ;;  %v5960_v16 = vpack.c.bf16 %v5925_v59, %v5924_v10 }
 0xa81   :  { %v7311_v27 = vpop.f32.mrf.mxu0  ;;  %v6135_v43 = vpop.f32.mrf.mxu1 }
 0xa82   :  { %v6527_v7 = vpop.f32.mrf.mxu2  ;;  %v12574_v18 = vadd.f32 %v7311_v27, %v7023_v26  ;;  %v6237_v41 = vadd.f32 %v6135_v43, %v14249_v47  ;;  %v6713_v26 = vld [vmem:[#allocation3 + $0x300] sm:$0xff] }
 0xa83   :  { %v6630_v36 = vadd.f32 %v6527_v7, %v6236_v58  ;;  %v6922_v29 = vpop.f32.mrf.mxu3  ;;  %v14251_v58 = vld [vmem:[#allocation19_spill] sm:$0xff]  ;;  %v6354_v7 = vpack.c.bf16 %v6319_v20, %v6318_v9  ;;  %v6320_v9 = vld [vmem:[#allocation3 + $0x302] sm:$0xff]  ;;  %v6321_v20 = vld [vmem:[#allocation3 + $0x30a] sm:$0xff] }
 0xa84   :  { %14248 = vst [vmem:[#allocation50_spill] sm:$0xff] %v12574_v18  ;;  %7350 = vmatmul.bf16.gmra.mxu0 %v5959_v31  ;;  %v6749_v31 = vpack.c.bf16 %v6714_v34, %v6713_v26  ;;  %v5926_v18 = vld [vmem:[#allocation3 + $0x301] sm:$0xff] }
 0xa85   :  { %v7025_v42 = vadd.f32 %v6922_v29, %v6630_v36 }
 0xa89   :  { %v7313_v56 = vpop.f32.mrf.mxu0  ;;  %v6138_v48 = vpop.f32.mrf.mxu1 }
 0xa8a   :  { %v6529_v21 = vpop.f32.mrf.mxu2  ;;  %v12577_v5 = vadd.f32 %v7313_v56, %v7024_v52  ;;  %v6238_v55 = vadd.f32 %v6138_v48, %v14251_v58  ;;  %v14253_v56 = vld [vmem:[#allocation45_spill] sm:$0xff]  ;;  %v6716_v58 = vld [vmem:[#allocation3 + $0x320] sm:$0xff] }
 0xa8b   :  { %v6631_v60 = vadd.f32 %v6529_v21, %v6237_v41  ;;  %v6924_v37 = vpop.f32.mrf.mxu3  ;;  %v5927_v48 = vld [vmem:[#allocation3 + $0x309] sm:$0xff] }
 0xa8c   :  { %14250 = vst [vmem:[#allocation51_spill] sm:$0xff] %v12577_v5  ;;  %6177 = vmatmul.bf16.gmra.mxu1 %v5960_v16 }
 0xa8d   :  { %v7026_v27 = vadd.f32 %v6924_v37, %v6631_v60 }
 0xa8f   :  { %6571 = vmatmul.bf16.gmra.mxu2 %v6354_v7 }
 0xa90   :  { %6966 = vmatmul.bf16.gmra.mxu3 %v6749_v31  ;;  %v5961_v31 = vpack.c.bf16 %v5927_v48, %v5926_v18 }
 0xa91   :  { %v7316_v36 = vpop.f32.mrf.mxu0  ;;  %v6140_v41 = vpop.f32.mrf.mxu1 }
 0xa92   :  { %v6532_v29 = vpop.f32.mrf.mxu2  ;;  %v12580_v43 = vadd.f32 %v7316_v36, %v7025_v42  ;;  %v6239_v21 = vadd.f32 %v6140_v41, %v14253_v56  ;;  %v6715_v42 = vld [vmem:[#allocation3 + $0x318] sm:$0xff] }
 0xa93   :  { %v6632_v52 = vadd.f32 %v6532_v29, %v6238_v55  ;;  %v6927_v47 = vpop.f32.mrf.mxu3  ;;  %v14255_v55 = vld [vmem:[#allocation24_spill] sm:$0xff]  ;;  %v6355_v29 = vpack.c.bf16 %v6321_v20, %v6320_v9 }
 0xa94   :  { %14252 = vst [vmem:[#allocation79_spill] sm:$0xff] %v12580_v43  ;;  %7355 = vmatmul.bf16.gmra.mxu0 %v5960_v16  ;;  %v6750_v16 = vpack.c.bf16 %v6716_v58, %v6715_v42  ;;  %v5928_v43 = vld [vmem:[#allocation3 + $0x319] sm:$0xff]  ;;  %v6323_v20 = vld [vmem:[#allocation3 + $0x322] sm:$0xff] }
 0xa95   :  { %v7027_v5 = vadd.f32 %v6927_v47, %v6632_v52  ;;  %v6322_v9 = vld [vmem:[#allocation3 + $0x31a] sm:$0xff] }
 0xa99   :  { %v7318_v10 = vpop.f32.mrf.mxu0  ;;  %v6143_v34 = vpop.f32.mrf.mxu1 }
 0xa9a   :  { %v6534_v59 = vpop.f32.mrf.mxu2  ;;  %v12583_v60 = vadd.f32 %v7318_v10, %v7026_v27  ;;  %v6240_v7 = vadd.f32 %v6143_v34, %v14255_v55  ;;  %v14257_v10 = vld [vmem:[#allocation46_spill] sm:$0xff]  ;;  %v5929_v34 = vld [vmem:[#allocation3 + $0x321] sm:$0xff]  ;;  %v6718_v55 = vld [vmem:[#allocation3 + $0x338] sm:$0xff] }
 0xa9b   :  { %v6633_v37 = vadd.f32 %v6534_v59, %v6239_v21  ;;  %v6929_v26 = vpop.f32.mrf.mxu3 }
 0xa9c   :  { %14254 = vst [vmem:[#allocation80_spill] sm:$0xff] %v12583_v60  ;;  %6182 = vmatmul.bf16.gmra.mxu1 %v5961_v31 }
 0xa9d   :  { %v7028_v36 = vadd.f32 %v6929_v26, %v6633_v37 }
 0xa9f   :  { %6576 = vmatmul.bf16.gmra.mxu2 %v6355_v29 }
 0xaa0   :  { %6971 = vmatmul.bf16.gmra.mxu3 %v6750_v16  ;;  %v5962_v16 = vpack.c.bf16 %v5929_v34, %v5928_v43 }
 0xaa1   :  { %v7321_v52 = vpop.f32.mrf.mxu0  ;;  %v6145_v21 = vpop.f32.mrf.mxu1 }
 0xaa2   :  { %v6537_v47 = vpop.f32.mrf.mxu2  ;;  %v12586_v41 = vadd.f32 %v7321_v52, %v7027_v5  ;;  %v6241_v59 = vadd.f32 %v6145_v21, %v14257_v10  ;;  %v6717_v5 = vld [vmem:[#allocation3 + $0x330] sm:$0xff] }
 0xaa3   :  { %v6634_v27 = vadd.f32 %v6537_v47, %v6240_v7  ;;  %v6932_v56 = vpop.f32.mrf.mxu3  ;;  %v14259_v7 = vld [vmem:[#allocation26_spill] sm:$0xff]  ;;  %v6356_v47 = vpack.c.bf16 %v6323_v20, %v6322_v9  ;;  %v6325_v20 = vld [vmem:[#allocation3 + $0x33a] sm:$0xff] }
 0xaa4   :  { %14256 = vst [vmem:[#allocation81_spill] sm:$0xff] %v12586_v41  ;;  %7360 = vmatmul.bf16.gmra.mxu0 %v5961_v31  ;;  %v6751_v31 = vpack.c.bf16 %v6718_v55, %v6717_v5  ;;  %v5930_v41 = vld [vmem:[#allocation3 + $0x331] sm:$0xff] }
 0xaa5   :  { %v7029_v60 = vadd.f32 %v6932_v56, %v6634_v27  ;;  %v6324_v9 = vld [vmem:[#allocation3 + $0x332] sm:$0xff] }
 0xaa9   :  { %v7323_v18 = vpop.f32.mrf.mxu0  ;;  %v6148_v58 = vpop.f32.mrf.mxu1 }
 0xaaa   :  { %v6539_v48 = vpop.f32.mrf.mxu2  ;;  %v12589_v37 = vadd.f32 %v7323_v18, %v7028_v36  ;;  %v6242_v29 = vadd.f32 %v6148_v58, %v14259_v7  ;;  %v14260_v18 = vld [vmem:[#allocation86_spill] sm:$0xff]  ;;  %v5931_v58 = vld [vmem:[#allocation3 + $0x339] sm:$0xff] }
 0xaab   :  { %v6635_v26 = vadd.f32 %v6539_v48, %v6241_v59  ;;  %v6934_v42 = vpop.f32.mrf.mxu3 }
 0xaac   :  { %14258 = vst [vmem:[#allocation84_spill] sm:$0xff] %v12589_v37  ;;  %6187 = vmatmul.bf16.gmra.mxu1 %v5962_v16 }
 0xaad   :  { %v7030_v52 = vadd.f32 %v6934_v42, %v6635_v26 }
 0xaaf   :  { %6581 = vmatmul.bf16.gmra.mxu2 %v6356_v47 }
 0xab0   :  { %6976 = vmatmul.bf16.gmra.mxu3 %v6751_v31  ;;  %v6357_v31 = vpack.c.bf16 %v6325_v20, %v6324_v9 }
 0xab1   :  { %v7326_v27 = vpop.f32.mrf.mxu0  ;;  %v6150_v59 = vpop.f32.mrf.mxu1 }
 0xab2   :  { %v6542_v56 = vpop.f32.mrf.mxu2  ;;  %v12592_v21 = vadd.f32 %v7326_v27, %v7029_v60  ;;  %v6243_v48 = vadd.f32 %v6150_v59, %v14260_v18  ;;  %v14261_v60 = vld [vmem:[#allocation21_spill] sm:$0xff]  ;;  %v14262_v59 = vld [vmem:[#allocation27_spill] sm:$0xff] }
 0xab3   :  { %v6636_v36 = vadd.f32 %v6542_v56, %v6242_v29  ;;  %v6937_v10 = vpop.f32.mrf.mxu3  ;;  %v5963_v29 = vpack.c.bf16 %v5931_v58, %v5930_v41 }
 0xab4   :  { %7365 = vmatmul.bf16.gmra.mxu0 %v5962_v16 }
 0xab5   :  { %v7031_v37 = vadd.f32 %v6937_v10, %v6636_v36 }
 0xab9   :  { %v7328_v43 = vpop.f32.mrf.mxu0  ;;  %v6153_v55 = vpop.f32.mrf.mxu1 }
 0xaba   :  { %v6544_v34 = vpop.f32.mrf.mxu2  ;;  %v12595_v26 = vadd.f32 %v7328_v43, %v7030_v52  ;;  %v6244_v7 = vadd.f32 %v6153_v55, %v14261_v60  ;;  %v7445_v43 = vld [vmem:[#allocation3 + $0x32] sm:$0xff] }
 0xabb   :  { %v6637_v42 = vadd.f32 %v6544_v34, %v6243_v48  ;;  %v6939_v5 = vpop.f32.mrf.mxu3  ;;  %v7446_v34 = vld [vmem:[#allocation3 + $0x3a] sm:$0xff] }
 0xabc   :  { %6192 = vmatmul.bf16.gmra.mxu1 %v5963_v29 }
 0xabd   :  { %v7032_v47 = vadd.f32 %v6939_v5, %v6637_v42  ;;  %v14264_v5 = vld [vmem:[#allocation28_spill] sm:$0xff] }
 0xabf   :  { %6586 = vmatmul.bf16.gmra.mxu2 %v6357_v31  ;;  %v7114_v31 = vld [vmem:[#allocation3 + $0x351] sm:$0xff] }
 0xac0   :  { %6981 = vmatmul.bf16.gmra.mxu3 %v12490_v19 }
 0xac1   :  { %v7331_v16 = vpop.f32.mrf.mxu0  ;;  %v6155_v52 = vpop.f32.mrf.mxu1 }
 0xac2   :  { %v6547_v27 = vpop.f32.mrf.mxu2  ;;  %v12599_v56 = vadd.f32 %v7331_v16, %v7031_v37  ;;  %v6245_v18 = vadd.f32 %v6155_v52, %v14262_v59  ;;  %v7509_v37 = vpack.c.bf16 %v7446_v34, %v7445_v43 }
 0xac3   :  { %v6638_v36 = vadd.f32 %v6547_v27, %v6244_v7  ;;  %v6942_v10 = vpop.f32.mrf.mxu3  ;;  %v7113_v7 = vld [vmem:[#allocation3 + $0x349] sm:$0xff] }
 0xac4   :  { %7370 = vmatmul.bf16.gmra.mxu0 %v5963_v29  ;;  %v7146_v16 = vpack.c.bf16 %v7114_v31, %v7113_v7 }
 0xac5   :  { %v7033_v48 = vadd.f32 %v6942_v10, %v6638_v36 }
 0xac9   :  { %v7333_v41 = vpop.f32.mrf.mxu0  ;;  %v6158_v19 = vpop.f32.mrf.mxu1 }
 0xaca   :  { %v6549_v58 = vpop.f32.mrf.mxu2  ;;  %v12602_v9 = vadd.f32 %v7333_v41, %v7032_v47  ;;  %v6246_v55 = vadd.f32 %v6158_v19, %v14264_v5  ;;  %v14266_v47 = vld [vmem:[#allocation29_spill] sm:$0xff] }
 0xacb   :  { %v6639_v20 = vadd.f32 %v6549_v58, %v6245_v18  ;;  %v6944_v42 = vpop.f32.mrf.mxu3  ;;  %v7447_v58 = vld [vmem:[#allocation3 + $0x4a] sm:$0xff] }
 0xacc   :  { %14263 = vst [vmem:[#allocation52_spill] sm:$0xff] %v12602_v9  ;;  %7614 = vmatmul.bf16.vlgmr.msra.gmra.mxu1 %v7509_v37  ;;  %v7448_v9 = vld [vmem:[#allocation3 + $0x52] sm:$0xff] }
 0xacd   :  { %v7034_v60 = vadd.f32 %v6944_v42, %v6639_v20  ;;  %v14268_v37 = vld [vmem:[#allocation30_spill] sm:$0xff] }
 0xad1   :  { %v7336_v27 = vpop.f32.mrf.mxu0  ;;  %v6160_v59 = vpop.f32.mrf.mxu1 }
 0xad2   :  { %v6552_v29 = vpop.f32.mrf.mxu2  ;;  %v12605_v36 = vadd.f32 %v7336_v27, %v7033_v48  ;;  %v6247_v41 = vadd.f32 %v6160_v59, %v14266_v47  ;;  %v7510_v48 = vpack.c.bf16 %v7448_v9, %v7447_v58  ;;  %v14269_v59 = vld [vmem:[#allocation31_spill] sm:$0xff] }
 0xad3   :  { %v6640_v10 = vadd.f32 %v6552_v29, %v6246_v55  ;;  %v6947_v52 = vpop.f32.mrf.mxu3 }
 0xad4   :  { %14265 = vst [vmem:[#allocation53_spill] sm:$0xff] %v12605_v36  ;;  %7375 = vmatmul.bf16.gmra.mxu0 %v7146_v16 }
 0xad5   :  { %v7035_v18 = vadd.f32 %v6947_v52, %v6640_v10 }
 0xad9   :  { %v7338_v19 = vpop.f32.mrf.mxu0  ;;  %v6163_v5 = vpop.f32.mrf.mxu1 }
 0xada   :  { %v6554_v43 = vpop.f32.mrf.mxu2  ;;  %v12608_v34 = vadd.f32 %v7338_v19, %v7034_v60  ;;  %v6248_v7 = vadd.f32 %v6163_v5, %v14268_v37  ;;  %v7449_v60 = vld [vmem:[#allocation3 + $0x62] sm:$0xff]  ;;  %v7450_v19 = vld [vmem:[#allocation3 + $0x6a] sm:$0xff] }
 0xadb   :  { %v6641_v20 = vadd.f32 %v6554_v43, %v6247_v41  ;;  %v6949_v42 = vpop.f32.mrf.mxu3  ;;  %v7511_v37 = vpack.c.bf16 %v7450_v19, %v7449_v60  ;;  %v14274_v60 = vld [vmem:[#allocation34_spill] sm:$0xff] }
 0xadc   :  { %14267 = vst [vmem:[#allocation54_spill] sm:$0xff] %v12608_v34  ;;  %7619 = vmatmul.bf16.gmra.mxu1 %v7510_v48 }
 0xadd   :  { %v7036_v31 = vadd.f32 %v6949_v42, %v6641_v20  ;;  %v14271_v20 = vld [vmem:[#allocation32_spill] sm:$0xff] }
 0xae1   :  { %v7341_v55 = vpop.f32.mrf.mxu0  ;;  %v6165_v52 = vpop.f32.mrf.mxu1 }
 0xae2   :  { %v6557_v27 = vpop.f32.mrf.mxu2  ;;  %v12611_v29 = vadd.f32 %v7341_v55, %v7035_v18  ;;  %v6249_v47 = vadd.f32 %v6165_v52, %v14269_v59  ;;  %v14272_v52 = vld [vmem:[#allocation33_spill] sm:$0xff] }
 0xae3   :  { %v6642_v16 = vadd.f32 %v6557_v27, %v6248_v7  ;;  %v6952_v10 = vpop.f32.mrf.mxu3 }
 0xae5   :  { %v7037_v36 = vadd.f32 %v6952_v10, %v6642_v16 }
 0xae9   :  { %v7343_v41 = vpop.f32.mrf.mxu0  ;;  %v6168_v58 = vpop.f32.mrf.mxu1 }
 0xaea   :  { %v6559_v43 = vpop.f32.mrf.mxu2  ;;  %v12614_v34 = vadd.f32 %v7343_v41, %v7036_v31  ;;  %v6250_v42 = vadd.f32 %v6168_v58, %v14271_v20  ;;  %v7451_v41 = vld [vmem:[#allocation3 + $0x7a] sm:$0xff] }
 0xaeb   :  { %v6643_v5 = vadd.f32 %v6559_v43, %v6249_v47  ;;  %v6954_v9 = vpop.f32.mrf.mxu3  ;;  %v7452_v47 = vld [vmem:[#allocation3 + $0x82] sm:$0xff] }
 0xaec   :  { %14270 = vst [vmem:[#allocation55_spill] sm:$0xff] %v12614_v34  ;;  %7624 = vmatmul.bf16.gmra.mxu1 %v7511_v37 }
 0xaed   :  { %v7038_v18 = vadd.f32 %v6954_v9, %v6643_v5  ;;  %v7512_v5 = vpack.c.bf16 %v7452_v47, %v7451_v41  ;;  %v7455_v41 = vld [vmem:[#allocation3 + $0xaa] sm:$0xff]  ;;  %v7456_v47 = vld [vmem:[#allocation3 + $0xb2] sm:$0xff] }
 0xaf1   :  { %v7346_v7 = vpop.f32.mrf.mxu0  ;;  %v6170_v16 = vpop.f32.mrf.mxu1 }
 0xaf2   :  { %v6562_v48 = vpop.f32.mrf.mxu2  ;;  %v12617_v55 = vadd.f32 %v7346_v7, %v7037_v36  ;;  %v12620_v59 = vadd.f32 %v6170_v16, %v14272_v52  ;;  %v7453_v7 = vld [vmem:[#allocation3 + $0x92] sm:$0xff]  ;;  %v14278_v16 = vld [vmem:[#allocation36_spill] sm:$0xff] }
 0xaf3   :  { %v6644_v27 = vadd.f32 %v6562_v48, %v6250_v42  ;;  %v6957_v10 = vpop.f32.mrf.mxu3  ;;  %v14276_v42 = vld [vmem:[#allocation35_spill] sm:$0xff] }
 0xaf4   :  { %14273 = vst [vmem:[#allocation56_spill] sm:$0xff] %v12620_v59  ;;  %v7454_v48 = vld [vmem:[#allocation3 + $0x9a] sm:$0xff] }
 0xaf5   :  { %v7039_v31 = vadd.f32 %v6957_v10, %v6644_v27 }
 0xaf9   :  { %v7348_v43 = vpop.f32.mrf.mxu0  ;;  %v6173_v58 = vpop.f32.mrf.mxu1 }
 0xafa   :  { %v12622_v34 = vadd.f32 %v7348_v43, %v7038_v18  ;;  %v12625_v19 = vadd.f32 %v6173_v58, %v14274_v60  ;;  %v7513_v18 = vpack.c.bf16 %v7454_v48, %v7453_v7  ;;  %v14280_v43 = vld [vmem:[#allocation37_spill] sm:$0xff]  ;;  %v14282_v60 = vld [vmem:[#allocation38_spill] sm:$0xff] }
 0xafc   :  { %14275 = vst [vmem:[#allocation57_spill] sm:$0xff] %v12625_v19  ;;  %7629 = vmatmul.bf16.gmra.mxu1 %v7512_v5 }
 0xb01   :  { %v7351_v36 = vpop.f32.mrf.mxu0  ;;  %v6175_v20 = vpop.f32.mrf.mxu1 }
 0xb02   :  { %v12627_v9 = vadd.f32 %v7351_v36, %v7039_v31  ;;  %v12630_v37 = vadd.f32 %v6175_v20, %v14276_v42  ;;  %v7514_v36 = vpack.c.bf16 %v7456_v47, %v7455_v41  ;;  %v14284_v42 = vld [vmem:[#allocation39_spill] sm:$0xff] }
 0xb04   :  { %14277 = vst [vmem:[#allocation58_spill] sm:$0xff] %v12630_v37 }
 0xb09   :  { %v6178_v27 = vpop.f32.mrf.mxu1 }
 0xb0a   :  { %v12633_v10 = vadd.f32 %v6178_v27, %v14278_v16  ;;  %v7457_v27 = vld [vmem:[#allocation3 + $0xc2] sm:$0xff]  ;;  %v7458_v16 = vld [vmem:[#allocation3 + $0xca] sm:$0xff] }
 0xb0c   :  { %14279 = vst [vmem:[#allocation59_spill] sm:$0xff] %v12633_v10  ;;  %7634 = vmatmul.bf16.gmra.mxu1 %v7513_v18  ;;  %v7515_v18 = vpack.c.bf16 %v7458_v16, %v7457_v27  ;;  %v14330_v10 = vld [vmem:[#allocation84_spill] sm:$0xff] }
 0xb11   :  { %v6180_v52 = vpop.f32.mrf.mxu1 }
 0xb12   :  { %v12636_v58 = vadd.f32 %v6180_v52, %v14280_v43  ;;  %v14287_v43 = vld [vmem:[#allocation47_spill] sm:$0xff] }
 0xb14   :  { %14281 = vst [vmem:[#allocation60_spill] sm:$0xff] %v12636_v58 }
 0xb19   :  { %v6183_v31 = vpop.f32.mrf.mxu1 }
 0xb1a   :  { %v12639_v5 = vadd.f32 %v6183_v31, %v14282_v60  ;;  %v7459_v31 = vld [vmem:[#allocation3 + $0xda] sm:$0xff]  ;;  %v7460_v60 = vld [vmem:[#allocation3 + $0xe2] sm:$0xff] }
 0xb1c   :  { %14283 = vst [vmem:[#allocation61_spill] sm:$0xff] %v12639_v5  ;;  %7639 = vmatmul.bf16.gmra.mxu1 %v7514_v36  ;;  %v7516_v36 = vpack.c.bf16 %v7460_v60, %v7459_v31 }
 0xb21   :  { %v6185_v20 = vpop.f32.mrf.mxu1 }
 0xb22   :  { %v12642_v37 = vadd.f32 %v6185_v20, %v14284_v42 }
 0xb24   :  { %14285 = vst [vmem:[#allocation62_spill] sm:$0xff] %v12642_v37  ;;  %v14327_v37 = vld [vmem:[#allocation80_spill] sm:$0xff] }
 0xb29   :  { %v6188_v7 = vpop.f32.mrf.mxu1 }
 0xb2a   :  { %v12645_v48 = vadd.f32 %v6188_v7, %v12437_v1  ;;  %v7461_v1 = vld [vmem:[#allocation3 + $0xf2] sm:$0xff]  ;;  %v7462_v7 = vld [vmem:[#allocation3 + $0xfa] sm:$0xff] }
 0xb2c   :  { %14286 = vst [vmem:[#allocation63_spill] sm:$0xff] %v12645_v48  ;;  %7644 = vmatmul.bf16.gmra.mxu1 %v7515_v18  ;;  %v7517_v18 = vpack.c.bf16 %v7462_v7, %v7461_v1 }
 0xb31   :  { %v6190_v52 = vpop.f32.mrf.mxu1 }
 0xb32   :  { %v12648_v58 = vadd.f32 %v6190_v52, %v14287_v43 }
 0xb34   :  { %14288 = vst [vmem:[#allocation64_spill] sm:$0xff] %v12648_v58  ;;  %v14325_v58 = vld [vmem:[#allocation51_spill] sm:$0xff] }
 0xb39   :  { %v6193_v41 = vpop.f32.mrf.mxu1 }
 0xb3a   :  { %v12651_v47 = vadd.f32 %v6193_v41, %v12442_v44  ;;  %v7463_v44 = vld [vmem:[#allocation3 + $0x10a] sm:$0xff]  ;;  %v7464_v41 = vld [vmem:[#allocation3 + $0x112] sm:$0xff] }
 0xb3c   :  { %14289 = vst [vmem:[#allocation65_spill] sm:$0xff] %v12651_v47  ;;  %7649 = vmatmul.bf16.gmra.mxu1 %v7516_v36 }
 0xb41   :  { %v6195_v20 = vpop.f32.mrf.mxu1 }
 0xb42   :  { %v12654_v42 = vadd.f32 %v6195_v20, %v12445_v53  ;;  %v7518_v53 = vpack.c.bf16 %v7464_v41, %v7463_v44 }
 0xb44   :  { %14290 = vst [vmem:[#allocation66_spill] sm:$0xff] %v12654_v42  ;;  %v14300_v42 = vld [vmem:[#allocation49_spill] sm:$0xff] }
 0xb49   :  { %v7615_v27 = vpop.f32.mrf.mxu1 }
 0xb4a   :  { %v12657_v16 = vadd.f32 %v7615_v27, %v12448_v17  ;;  %v7465_v17 = vld [vmem:[#allocation3 + $0x122] sm:$0xff]  ;;  %v7466_v27 = vld [vmem:[#allocation3 + $0x12a] sm:$0xff] }
 0xb4c   :  { %7654 = vmatmul.bf16.gmra.mxu1 %v7517_v18 }
 0xb51   :  { %v7617_v52 = vpop.f32.mrf.mxu1 }
 0xb52   :  { %v12660_v43 = vadd.f32 %v7617_v52, %v12451_v25  ;;  %v7519_v25 = vpack.c.bf16 %v7466_v27, %v7465_v17 }
 0xb59   :  { %v7620_v31 = vpop.f32.mrf.mxu1 }
 0xb5a   :  { %v12663_v60 = vadd.f32 %v7620_v31, %v12454_v13  ;;  %v7467_v13 = vld [vmem:[#allocation3 + $0x13a] sm:$0xff]  ;;  %v7468_v31 = vld [vmem:[#allocation3 + $0x142] sm:$0xff] }
 0xb5c   :  { %14291 = vst [vmem:[#allocation67_spill] sm:$0xff] %v12663_v60  ;;  %7659 = vmatmul.bf16.gmra.mxu1 %v7518_v53 }
 0xb61   :  { %v7622_v36 = vpop.f32.mrf.mxu1 }
 0xb62   :  { %v12666_v20 = vadd.f32 %v7622_v36, %v12460_v50  ;;  %v7520_v50 = vpack.c.bf16 %v7468_v31, %v7467_v13 }
 0xb69   :  { %v7625_v1 = vpop.f32.mrf.mxu1 }
 0xb6a   :  { %v12669_v7 = vadd.f32 %v7625_v1, %v12463_v0  ;;  %v7469_v0 = vld [vmem:[#allocation3 + $0x152] sm:$0xff]  ;;  %v7470_v1 = vld [vmem:[#allocation3 + $0x15a] sm:$0xff] }
 0xb6c   :  { %7664 = vmatmul.bf16.gmra.mxu1 %v7519_v25 }
 0xb71   :  { %v7627_v18 = vpop.f32.mrf.mxu1 }
 0xb72   :  { %v12672_v52 = vadd.f32 %v7627_v18, %v12466_v39  ;;  %v7521_v39 = vpack.c.bf16 %v7470_v1, %v7469_v0  ;;  %v14298_v1 = vld [vmem:[#allocation48_spill] sm:$0xff] }
 0xb74   :  { %14292 = vst [vmem:[#allocation68_spill] sm:$0xff] %v12672_v52 }
 0xb79   :  { %v7630_v44 = vpop.f32.mrf.mxu1 }
 0xb7a   :  { %v12675_v41 = vadd.f32 %v7630_v44, %v12469_v51  ;;  %v7471_v51 = vld [vmem:[#allocation3 + $0x16a] sm:$0xff]  ;;  %v7472_v44 = vld [vmem:[#allocation3 + $0x172] sm:$0xff] }
 0xb7c   :  { %14293 = vst [vmem:[#allocation69_spill] sm:$0xff] %v12675_v41  ;;  %7669 = vmatmul.bf16.gmra.mxu1 %v7520_v50 }
 0xb81   :  { %v7632_v53 = vpop.f32.mrf.mxu1 }
 0xb82   :  { %v12678_v36 = vadd.f32 %v7632_v53, %v12472_v28  ;;  %v7522_v28 = vpack.c.bf16 %v7472_v44, %v7471_v51 }
 0xb89   :  { %v7635_v17 = vpop.f32.mrf.mxu1 }
 0xb8a   :  { %v12681_v27 = vadd.f32 %v7635_v17, %v12475_v33  ;;  %v7473_v33 = vld [vmem:[#allocation3 + $0x182] sm:$0xff]  ;;  %v7474_v17 = vld [vmem:[#allocation3 + $0x18a] sm:$0xff] }
 0xb8c   :  { %14294 = vst [vmem:[#allocation70_spill] sm:$0xff] %v12681_v27  ;;  %7674 = vmatmul.bf16.gmra.mxu1 %v7521_v39 }
 0xb91   :  { %v7637_v25 = vpop.f32.mrf.mxu1 }
 0xb92   :  { %v12684_v18 = vadd.f32 %v7637_v25, %v12478_v12  ;;  %v7523_v12 = vpack.c.bf16 %v7474_v17, %v7473_v33 }
 0xb94   :  { %14295 = vst [vmem:[#allocation71_spill] sm:$0xff] %v12684_v18 }
 0xb99   :  { %v7640_v13 = vpop.f32.mrf.mxu1 }
 0xb9a   :  { %v12687_v31 = vadd.f32 %v7640_v13, %v12481_v38  ;;  %v7475_v38 = vld [vmem:[#allocation3 + $0x19a] sm:$0xff]  ;;  %v7476_v13 = vld [vmem:[#allocation3 + $0x1a2] sm:$0xff] }
 0xb9b   :  { %v7524_v51 = vpack.c.bf16 %v7476_v13, %v7475_v38  ;;  %v7479_v38 = vld [vmem:[#allocation3 + $0x1fa] sm:$0xff] }
 0xb9c   :  { %14296 = vst [vmem:[#allocation72_spill] sm:$0xff] %v12687_v31  ;;  %7679 = vmatmul.bf16.gmra.mxu1 %v7522_v28 }
 0xba1   :  { %v7642_v50 = vpop.f32.mrf.mxu1 }
 0xba2   :  { %v12690_v53 = vadd.f32 %v7642_v50, %v12487_v23 }
 0xba4   :  { %14297 = vst [vmem:[#allocation73_spill] sm:$0xff] %v12690_v53 }
 0xba9   :  { %v7645_v0 = vpop.f32.mrf.mxu1 }
 0xbaa   :  { %v12693_v39 = vadd.f32 %v7645_v0, %v14298_v1  ;;  %v7477_v0 = vld [vmem:[#allocation3 + $0x1e2] sm:$0xff]  ;;  %v7478_v1 = vld [vmem:[#allocation3 + $0x1ea] sm:$0xff] }
 0xbac   :  { %14299 = vst [vmem:[#allocation74_spill] sm:$0xff] %v12693_v39  ;;  %7684 = vmatmul.bf16.gmra.mxu1 %v7523_v12 }
 0xbb1   :  { %v7647_v25 = vpop.f32.mrf.mxu1 }
 0xbb2   :  { %v12696_v47 = vadd.f32 %v7647_v25, %v14300_v42  ;;  %v7525_v42 = vpack.c.bf16 %v7478_v1, %v7477_v0 }
 0xbb4   :  { %14301 = vst [vmem:[#allocation75_spill] sm:$0xff] %v12696_v47 }
 0xbb9   :  { %v7650_v44 = vpop.f32.mrf.mxu1 }
 0xbba   :  { %v12699_v28 = vadd.f32 %v7650_v44, %v12499_v14  ;;  %v7480_v14 = vld [vmem:[#allocation3 + $0x202] sm:$0xff] }
 0xbbc   :  { %14302 = vst [vmem:[#allocation76_spill] sm:$0xff] %v12699_v28  ;;  %7689 = vmatmul.bf16.gmra.mxu1 %v7524_v51 }
 0xbc1   :  { %v7652_v23 = vpop.f32.mrf.mxu1 }
 0xbc2   :  { %v12702_v50 = vadd.f32 %v7652_v23, %v12502_v35  ;;  %v7526_v35 = vpack.c.bf16 %v7480_v14, %v7479_v38 }
 0xbc4   :  { %14303 = vst [vmem:[#allocation77_spill] sm:$0xff] %v12702_v50 }
 0xbc9   :  { %v7655_v33 = vpop.f32.mrf.mxu1 }
 0xbca   :  { %v12705_v17 = vadd.f32 %v7655_v33, %v12505_v32  ;;  %v7481_v32 = vld [vmem:[#allocation3 + $0x212] sm:$0xff]  ;;  %v7482_v33 = vld [vmem:[#allocation3 + $0x21a] sm:$0xff] }
 0xbcc   :  { %14304 = vst [vmem:[#allocation78_spill] sm:$0xff] %v12705_v17  ;;  %7694 = vmatmul.bf16.gmra.mxu1 %v7525_v42 }
 0xbd1   :  { %v7657_v12 = vpop.f32.mrf.mxu1 }
 0xbd2   :  { %v12708_v25 = vadd.f32 %v7657_v12, %v12508_v2  ;;  %v7527_v2 = vpack.c.bf16 %v7482_v33, %v7481_v32 }
 0xbd4   :  { %14305 = vst [vmem:[#allocation41_spill] sm:$0xff] %v12708_v25 }
 0xbd9   :  { %v7660_v13 = vpop.f32.mrf.mxu1 }
 0xbda   :  { %v12711_v51 = vadd.f32 %v7660_v13, %v12511_v11  ;;  %v7483_v11 = vld [vmem:[#allocation3 + $0x22a] sm:$0xff]  ;;  %v7484_v13 = vld [vmem:[#allocation3 + $0x232] sm:$0xff] }
 0xbdc   :  { %14306 = vst [vmem:[#allocation40_spill] sm:$0xff] %v12711_v51  ;;  %7699 = vmatmul.bf16.gmra.mxu1 %v7526_v35 }
 0xbe1   :  { %v7662_v44 = vpop.f32.mrf.mxu1 }
 0xbe2   :  { %v12714_v23 = vadd.f32 %v7662_v44, %v12517_v30  ;;  %v7528_v30 = vpack.c.bf16 %v7484_v13, %v7483_v11 }
 0xbe4   :  { %14307 = vst [vmem:[#allocation42_spill] sm:$0xff] %v12714_v23 }
 0xbe9   :  { %v7665_v0 = vpop.f32.mrf.mxu1 }
 0xbea   :  { %v12717_v1 = vadd.f32 %v7665_v0, %v12520_v54  ;;  %v7485_v54 = vld [vmem:[#allocation3 + $0x242] sm:$0xff]  ;;  %v7486_v0 = vld [vmem:[#allocation3 + $0x24a] sm:$0xff] }
 0xbec   :  { %14308 = vst [vmem:[#allocation18_spill] sm:$0xff] %v12717_v1  ;;  %7704 = vmatmul.bf16.gmra.mxu1 %v7527_v2 }
 0xbf1   :  { %v7667_v42 = vpop.f32.mrf.mxu1 }
 0xbf2   :  { %v12720_v12 = vadd.f32 %v7667_v42, %v12523_v63  ;;  %v7529_v63 = vpack.c.bf16 %v7486_v0, %v7485_v54 }
 0xbf4   :  { %14309 = vst [vmem:[#allocation43_spill] sm:$0xff] %v12720_v12 }
 0xbf9   :  { %v7670_v38 = vpop.f32.mrf.mxu1 }
 0xbfa   :  { %v12723_v14 = vadd.f32 %v7670_v38, %v12526_v15  ;;  %v7487_v15 = vld [vmem:[#allocation3 + $0x25a] sm:$0xff]  ;;  %v7488_v38 = vld [vmem:[#allocation3 + $0x262] sm:$0xff] }
 0xbfc   :  { %14310 = vst [vmem:[#allocation20_spill] sm:$0xff] %v12723_v14  ;;  %7709 = vmatmul.bf16.gmra.mxu1 %v7528_v30 }
 0xc01   :  { %v7672_v35 = vpop.f32.mrf.mxu1 }
 0xc02   :  { %v12726_v44 = vadd.f32 %v7672_v35, %v12529_v61  ;;  %v7530_v61 = vpack.c.bf16 %v7488_v38, %v7487_v15 }
 0xc04   :  { %14311 = vst [vmem:[#allocation83_spill] sm:$0xff] %v12726_v44 }
 0xc09   :  { %v7675_v32 = vpop.f32.mrf.mxu1 }
 0xc0a   :  { %v12729_v33 = vadd.f32 %v7675_v32, %v12532_v3  ;;  %v7489_v3 = vld [vmem:[#allocation3 + $0x272] sm:$0xff]  ;;  %v7490_v32 = vld [vmem:[#allocation3 + $0x27a] sm:$0xff] }
 0xc0c   :  { %14312 = vst [vmem:[#allocation17_spill] sm:$0xff] %v12729_v33  ;;  %7714 = vmatmul.bf16.gmra.mxu1 %v7529_v63 }
 0xc11   :  { %v7677_v2 = vpop.f32.mrf.mxu1 }
 0xc12   :  { %v12732_v42 = vadd.f32 %v7677_v2, %v12535_v46  ;;  %v7531_v46 = vpack.c.bf16 %v7490_v32, %v7489_v3 }
 0xc14   :  { %14313 = vst [vmem:[#allocation44_spill] sm:$0xff] %v12732_v42 }
 0xc19   :  { %v7680_v11 = vpop.f32.mrf.mxu1 }
 0xc1a   :  { %v12735_v13 = vadd.f32 %v7680_v11, %v12538_v8  ;;  %v7491_v8 = vld [vmem:[#allocation3 + $0x28a] sm:$0xff]  ;;  %v7492_v11 = vld [vmem:[#allocation3 + $0x292] sm:$0xff] }
 0xc1c   :  { %14314 = vst [vmem:[#allocation22_spill] sm:$0xff] %v12735_v13  ;;  %7719 = vmatmul.bf16.gmra.mxu1 %v7530_v61 }
 0xc21   :  { %v7682_v30 = vpop.f32.mrf.mxu1 }
 0xc22   :  { %v12738_v35 = vadd.f32 %v7682_v30, %v12544_v22  ;;  %v7532_v22 = vpack.c.bf16 %v7492_v11, %v7491_v8 }
 0xc24   :  { %14315 = vst [vmem:[#allocation23_spill] sm:$0xff] %v12738_v35 }
 0xc29   :  { %v7685_v54 = vpop.f32.mrf.mxu1 }
 0xc2a   :  { %v12741_v0 = vadd.f32 %v7685_v54, %v12547_v45  ;;  %v7493_v45 = vld [vmem:[#allocation3 + $0x2a2] sm:$0xff]  ;;  %v7494_v54 = vld [vmem:[#allocation3 + $0x2aa] sm:$0xff] }
 0xc2c   :  { %14316 = vst [vmem:[#allocation25_spill] sm:$0xff] %v12741_v0  ;;  %7724 = vmatmul.bf16.gmra.mxu1 %v7531_v46 }
 0xc31   :  { %v7687_v63 = vpop.f32.mrf.mxu1 }
 0xc32   :  { %v12744_v2 = vadd.f32 %v7687_v63, %v12550_v40  ;;  %v7533_v40 = vpack.c.bf16 %v7494_v54, %v7493_v45  ;;  %v14324_v54 = vld [vmem:[#allocation50_spill] sm:$0xff] }
 0xc34   :  { %14317 = vst [vmem:[#allocation82_spill] sm:$0xff] %v12744_v2 }
 0xc39   :  { %v7690_v15 = vpop.f32.mrf.mxu1 }
 0xc3a   :  { %v12747_v38 = vadd.f32 %v7690_v15, %v12553_v62  ;;  %v7495_v62 = vld [vmem:[#allocation3 + $0x2ba] sm:$0xff]  ;;  %v7496_v15 = vld [vmem:[#allocation3 + $0x2c2] sm:$0xff] }
 0xc3c   :  { %14318 = vst [vmem:[#allocation85_spill] sm:$0xff] %v12747_v38  ;;  %7729 = vmatmul.bf16.gmra.mxu1 %v7532_v22 }
 0xc41   :  { %v7692_v61 = vpop.f32.mrf.mxu1 }
 0xc42   :  { %v12750_v30 = vadd.f32 %v7692_v61, %v12556_v49  ;;  %v7534_v49 = vpack.c.bf16 %v7496_v15, %v7495_v62  ;;  %v14326_v15 = vld [vmem:[#allocation79_spill] sm:$0xff] }
 0xc44   :  { %14319 = vst [vmem:[#allocation19_spill] sm:$0xff] %v12750_v30 }
 0xc49   :  { %v7695_v3 = vpop.f32.mrf.mxu1 }
 0xc4a   :  { %v12753_v32 = vadd.f32 %v7695_v3, %v12559_v24  ;;  %v7497_v24 = vld [vmem:[#allocation3 + $0x2d2] sm:$0xff]  ;;  %v7498_v3 = vld [vmem:[#allocation3 + $0x2da] sm:$0xff] }
 0xc4c   :  { %14320 = vst [vmem:[#allocation45_spill] sm:$0xff] %v12753_v32  ;;  %7734 = vmatmul.bf16.gmra.mxu1 %v7533_v40 }
 0xc51   :  { %v7697_v46 = vpop.f32.mrf.mxu1 }
 0xc52   :  { %v12756_v63 = vadd.f32 %v7697_v46, %v12562_v4  ;;  %v7535_v4 = vpack.c.bf16 %v7498_v3, %v7497_v24  ;;  %v14328_v3 = vld [vmem:[#allocation81_spill] sm:$0xff] }
 0xc54   :  { %14321 = vst [vmem:[#allocation24_spill] sm:$0xff] %v12756_v63 }
 0xc59   :  { %v7700_v8 = vpop.f32.mrf.mxu1 }
 0xc5a   :  { %v12759_v11 = vadd.f32 %v7700_v8, %v12565_v57  ;;  %v7499_v57 = vld [vmem:[#allocation3 + $0x2ea] sm:$0xff]  ;;  %v7500_v8 = vld [vmem:[#allocation3 + $0x2f2] sm:$0xff] }
 0xc5c   :  { %14322 = vst [vmem:[#allocation46_spill] sm:$0xff] %v12759_v11  ;;  %7739 = vmatmul.bf16.gmra.mxu1 %v7534_v49 }
 0xc61   :  { %v7702_v22 = vpop.f32.mrf.mxu1 }
 0xc62   :  { %v12762_v61 = vadd.f32 %v7702_v22, %v12571_v6  ;;  %v7536_v6 = vpack.c.bf16 %v7500_v8, %v7499_v57 }
 0xc64   :  { %14323 = vst [vmem:[#allocation26_spill] sm:$0xff] %v12762_v61 }
 0xc69   :  { %v7705_v45 = vpop.f32.mrf.mxu1 }
 0xc6a   :  { %v12765_v40 = vadd.f32 %v7705_v45, %v14324_v54  ;;  %v7501_v45 = vld [vmem:[#allocation3 + $0x302] sm:$0xff]  ;;  %v7502_v54 = vld [vmem:[#allocation3 + $0x30a] sm:$0xff] }
 0xc6c   :  { %7744 = vmatmul.bf16.gmra.mxu1 %v7535_v4 }
 0xc71   :  { %v7707_v46 = vpop.f32.mrf.mxu1 }
 0xc72   :  { %v12768_v48 = vadd.f32 %v7707_v46, %v14325_v58  ;;  %v7537_v58 = vpack.c.bf16 %v7502_v54, %v7501_v45 }
 0xc79   :  { %v7710_v62 = vpop.f32.mrf.mxu1 }
 0xc7a   :  { %v12771_v49 = vadd.f32 %v7710_v62, %v14326_v15  ;;  %v7503_v62 = vld [vmem:[#allocation3 + $0x31a] sm:$0xff]  ;;  %v7504_v15 = vld [vmem:[#allocation3 + $0x322] sm:$0xff] }
 0xc7c   :  { %7749 = vmatmul.bf16.gmra.mxu1 %v7536_v6 }
 0xc81   :  { %v7712_v22 = vpop.f32.mrf.mxu1 }
 0xc82   :  { %v12774_v5 = vadd.f32 %v7712_v22, %v14327_v37  ;;  %v7538_v37 = vpack.c.bf16 %v7504_v15, %v7503_v62 }
 0xc89   :  { %v7715_v24 = vpop.f32.mrf.mxu1 }
 0xc8a   :  { %v12777_v4 = vadd.f32 %v7715_v24, %v14328_v3  ;;  %v7505_v24 = vld [vmem:[#allocation3 + $0x332] sm:$0xff]  ;;  %v7506_v3 = vld [vmem:[#allocation3 + $0x33a] sm:$0xff] }
 0xc8c   :  { %14329 = vst [vmem:[#allocation86_spill] sm:$0xff] %v12777_v4  ;;  %7754 = vmatmul.bf16.gmra.mxu1 %v7537_v58 }
 0xc91   :  { %v7717_v46 = vpop.f32.mrf.mxu1 }
 0xc92   :  { %v12780_v19 = vadd.f32 %v7717_v46, %v14330_v10  ;;  %v7539_v10 = vpack.c.bf16 %v7506_v3, %v7505_v24  ;;  %v14335_v46 = vld [vmem:[#allocation52_spill] sm:$0xff]  ;;  %v7908_v24 = vmul.f32 %v12657_v16, %v12657_v16  ;;  %v7839_v3 = vadd.f32 %v12660_v43, %v12657_v16 }
 0xc94   :  { %14331 = vst [vmem:[#allocation21_spill] sm:$0xff] %v12780_v19 }
 0xc99   :  { %v7720_v57 = vpop.f32.mrf.mxu1 }
 0xc9a   :  { %v12783_v8 = vadd.f32 %v7720_v57, %v12592_v21  ;;  %v7507_v21 = vld [vmem:[#allocation3 + $0x34a] sm:$0xff]  ;;  %v7508_v57 = vld [vmem:[#allocation3 + $0x352] sm:$0xff] }
 0xc9b   :  { %v7540_v62 = vpack.c.bf16 %v7508_v57, %v7507_v21  ;;  %v7911_v21 = vmul.f32 %v12666_v20, %v12666_v20 }
 0xc9c   :  { %14332 = vst [vmem:[#allocation27_spill] sm:$0xff] %v12783_v8  ;;  %7759 = vmatmul.bf16.gmra.mxu1 %v7538_v37  ;;  %v14337_v37 = vld [vmem:[#allocation53_spill] sm:$0xff] }
 0xca1   :  { %v7722_v6 = vpop.f32.mrf.mxu1 }
 0xca2   :  { %v12786_v22 = vadd.f32 %v7722_v6, %v12595_v26  ;;  %v14338_v6 = vld [vmem:[#allocation54_spill] sm:$0xff] }
 0xca4   :  { %14333 = vst [vmem:[#allocation28_spill] sm:$0xff] %v12786_v22 }
 0xca9   :  { %v7725_v45 = vpop.f32.mrf.mxu1 }
 0xcaa   :  { %v12789_v54 = vadd.f32 %v7725_v45, %v12599_v56  ;;  %v7909_v56 = vmul.f32 %v12660_v43, %v12660_v43  ;;  %v7910_v45 = vmul.f32 %v12663_v60, %v12663_v60 }
 0xcac   :  { %14334 = vst [vmem:[#allocation29_spill] sm:$0xff] %v12789_v54  ;;  %7764 = vmatmul.bf16.gmra.mxu1 %v7539_v10 }
 0xcb1   :  { %v7727_v58 = vpop.f32.mrf.mxu1 }
 0xcb2   :  { %v12792_v59 = vadd.f32 %v7727_v58, %v14335_v46  ;;  %v7972_v58 = vadd.f32 %v7909_v56, %v7908_v24  ;;  %v7840_v46 = vadd.f32 %v7839_v3, %v12663_v60  ;;  %v7913_v56 = vmul.f32 %v12672_v52, %v12672_v52 }
 0xcb3   :  { %v7914_v60 = vmul.f32 %v12675_v41, %v12675_v41 }
 0xcb4   :  { %14336 = vst [vmem:[#allocation30_spill] sm:$0xff] %v12792_v59 }
 0xcb9   :  { %v7730_v15 = vpop.f32.mrf.mxu1 }
 0xcba   :  { %v12795_v8 = vadd.f32 %v7730_v15, %v14337_v37  ;;  %v7841_v15 = vadd.f32 %v7840_v46, %v12666_v20  ;;  %v7912_v37 = vmul.f32 %v12669_v7, %v12669_v7  ;;  %v7915_v46 = vmul.f32 %v12678_v36, %v12678_v36 }
 0xcbc   :  { %7769 = vmatmul.bf16.gmra.mxu1 %v7540_v62  ;;  %v7973_v62 = vadd.f32 %v7972_v58, %v7910_v45 }
 0xcc1   :  { %v7732_v26 = vpop.f32.mrf.mxu1 }
 0xcc2   :  { %v12798_v22 = vadd.f32 %v7732_v26, %v14338_v6  ;;  %v7974_v26 = vadd.f32 %v7973_v62, %v7911_v21  ;;  %v7842_v6 = vadd.f32 %v7841_v15, %v12669_v7  ;;  %v14340_v21 = vld [vmem:[#allocation55_spill] sm:$0xff] }
 0xcc4   :  { %14339 = vst [vmem:[#allocation31_spill] sm:$0xff] %v12798_v22  ;;  %v7975_v24 = vadd.f32 %v7974_v26, %v7912_v37  ;;  %v7843_v3 = vadd.f32 %v7842_v6, %v12672_v52  ;;  %v7916_v26 = vmul.f32 %v12681_v27, %v12681_v27 }
 0xcc6   :  { %v7976_v45 = vadd.f32 %v7975_v24, %v7913_v56  ;;  %v7844_v58 = vadd.f32 %v7843_v3, %v12675_v41  ;;  %v7917_v56 = vmul.f32 %v12684_v18, %v12684_v18  ;;  %v12837_v24 = vpop.f32.mrf.mxu3 }
 0xcc8   :  { %v7977_v15 = vadd.f32 %v7976_v45, %v7914_v60  ;;  %v7845_v37 = vadd.f32 %v7844_v58, %v12678_v36  ;;  %v12842_v60 = vpop.f32.mrf.mxu0 }
 0xcc9   :  { %v7735_v10 = vpop.f32.mrf.mxu1 }
 0xcca   :  { %v12812_v57 = vadd.f32 %v7735_v10, %v12611_v29  ;;  %v12823_v10 = vpop.f32.mrf.mxu2  ;;  %v7978_v6 = vadd.f32 %v7977_v15, %v7915_v46  ;;  %v7846_v52 = vadd.f32 %v7845_v37, %v12681_v27  ;;  %v7919_v46 = vmul.f32 %v12690_v53, %v12690_v53 }
 0xccc   :  { %v7979_v3 = vadd.f32 %v7978_v6, %v7916_v26  ;;  %v7847_v41 = vadd.f32 %v7846_v52, %v12684_v18  ;;  %v7920_v6 = vmul.f32 %v12693_v39, %v12693_v39 }
 0xcce   :  { %v7980_v58 = vadd.f32 %v7979_v3, %v7917_v56 }
 0xcd1   :  { %v7737_v29 = vpop.f32.mrf.mxu1 }
 0xcd2   :  { %v12829_v62 = vadd.f32 %v7737_v29, %v14340_v21  ;;  %v7918_v29 = vmul.f32 %v12687_v31, %v12687_v31  ;;  %v7848_v21 = vadd.f32 %v7847_v41, %v12687_v31  ;;  %v12850_v37 = vpop.f32.mrf.mxu2  ;;  %v7921_v41 = vmul.f32 %v12696_v47, %v12696_v47  ;;  %v12861_v31 = vpop.f32.mrf.mxu3 }
 0xcd4   :  { %v7981_v26 = vadd.f32 %v7980_v58, %v7918_v29  ;;  %v7849_v52 = vadd.f32 %v7848_v21, %v12690_v53  ;;  %v7923_v21 = vmul.f32 %v12702_v50, %v12702_v50  ;;  %v7953_v53 = vmul.f32 %v12792_v59, %v12792_v59 }
 0xcd6   :  { %v7982_v18 = vadd.f32 %v7981_v26, %v7919_v46  ;;  %v7850_v27 = vadd.f32 %v7849_v52, %v12693_v39  ;;  %v12869_v26 = vpop.f32.mrf.mxu0  ;;  %v7924_v52 = vmul.f32 %v12705_v17, %v12705_v17  ;;  %v7952_v39 = vmul.f32 %v12789_v54, %v12789_v54 }
 0xcd8   :  { %v7983_v56 = vadd.f32 %v7982_v18, %v7920_v6  ;;  %v7851_v3 = vadd.f32 %v7850_v27, %v12696_v47 }
 0xcd9   :  { %v7740_v45 = vpop.f32.mrf.mxu1 }
 0xcda   :  { %v12848_v15 = vadd.f32 %v7740_v45, %v12617_v55  ;;  %v7922_v55 = vmul.f32 %v12699_v28, %v12699_v28  ;;  %v7984_v29 = vadd.f32 %v7983_v56, %v7921_v41  ;;  %v7852_v58 = vadd.f32 %v7851_v3, %v12699_v28  ;;  %v12874_v6 = vpop.f32.mrf.mxu2  ;;  %v14342_v28 = vld [vmem:[#allocation28_spill] sm:$0xff] }
 0xcdb   :  { %v7925_v56 = vmul.f32 %v12708_v25, %v12708_v25 }
 0xcdc   :  { %v7985_v18 = vadd.f32 %v7984_v29, %v7922_v55  ;;  %v7853_v27 = vadd.f32 %v7852_v58, %v12702_v50  ;;  %v7927_v50 = vmul.f32 %v12714_v23, %v12714_v23 }
 0xcde   :  { %v7986_v47 = vadd.f32 %v7985_v18, %v7923_v21  ;;  %v7854_v41 = vadd.f32 %v7853_v27, %v12705_v17  ;;  %v12888_v18 = vpop.f32.mrf.mxu3 }
 0xce0   :  { %v7987_v3 = vadd.f32 %v7986_v47, %v7924_v52  ;;  %v7928_v52 = vmul.f32 %v12717_v1, %v12717_v1 }
 0xce1   :  { %v7742_v45 = vpop.f32.mrf.mxu1 }
 0xce2   :  { %v12867_v46 = vadd.f32 %v7742_v45, %v12622_v34  ;;  %v7855_v34 = vadd.f32 %v7854_v41, %v12708_v25  ;;  %v7926_v45 = vmul.f32 %v12711_v51, %v12711_v51  ;;  %v7988_v29 = vadd.f32 %v7987_v3, %v7925_v56  ;;  %v12893_v41 = vpop.f32.mrf.mxu0 }
 0xce3   :  { %v7929_v3 = vmul.f32 %v12720_v12, %v12720_v12 }
 0xce4   :  { %v7856_v58 = vadd.f32 %v7855_v34, %v12711_v51  ;;  %v7989_v27 = vadd.f32 %v7988_v29, %v7926_v45  ;;  %v12898_v34 = vpop.f32.mrf.mxu2  ;;  %v7930_v45 = vmul.f32 %v12723_v14, %v12723_v14  ;;  %v14341_v51 = vld [vmem:[#allocation27_spill] sm:$0xff] }
 0xce6   :  { %v7857_v47 = vadd.f32 %v7856_v58, %v12714_v23  ;;  %v7990_v25 = vadd.f32 %v7989_v27, %v7927_v50  ;;  %v7931_v50 = vmul.f32 %v12726_v44, %v12726_v44 }
 0xce8   :  { %v7858_v56 = vadd.f32 %v7857_v47, %v12717_v1  ;;  %v7932_v1 = vmul.f32 %v12729_v33, %v12729_v33 }
 0xce9   :  { %v7745_v55 = vpop.f32.mrf.mxu1 }
 0xcea   :  { %v12886_v21 = vadd.f32 %v7745_v55, %v12627_v9  ;;  %v7991_v9 = vadd.f32 %v7990_v25, %v7928_v52  ;;  %v7859_v55 = vadd.f32 %v7858_v56, %v12720_v12  ;;  %v12911_v25 = vpop.f32.mrf.mxu3  ;;  %v7933_v12 = vmul.f32 %v12732_v42, %v12732_v42 }
 0xcec   :  { %v7992_v58 = vadd.f32 %v7991_v9, %v7929_v3  ;;  %v7860_v23 = vadd.f32 %v7859_v55, %v12723_v14  ;;  %v12916_v3 = vpop.f32.mrf.mxu0 }
 0xcee   :  { %v7993_v27 = vadd.f32 %v7992_v58, %v7930_v45  ;;  %v7861_v47 = vadd.f32 %v7860_v23, %v12726_v44  ;;  %v7934_v45 = vmul.f32 %v12735_v13, %v12735_v13  ;;  %v12923_v58 = vpop.f32.mrf.mxu2 }
 0xcf0   :  { %v7994_v52 = vadd.f32 %v7993_v27, %v7931_v50  ;;  %v7862_v56 = vadd.f32 %v7861_v47, %v12729_v33  ;;  %v7935_v27 = vmul.f32 %v12738_v35, %v12738_v35 }
 0xcf1   :  { %v12903_v29 = vpop.f32.mrf.mxu1 }
 0xcf2   :  { %v7995_v9 = vadd.f32 %v7994_v52, %v7932_v1  ;;  %v7863_v55 = vadd.f32 %v7862_v56, %v12732_v42  ;;  %v7936_v1 = vmul.f32 %v12741_v0, %v12741_v0  ;;  %v7937_v42 = vmul.f32 %v12744_v2, %v12744_v2  ;;  %v12934_v14 = vpop.f32.mrf.mxu3 }
 0xcf4   :  { %v7996_v44 = vadd.f32 %v7995_v9, %v7933_v12  ;;  %v7864_v50 = vadd.f32 %v7863_v55, %v12735_v13  ;;  %v7938_v55 = vmul.f32 %v12747_v38, %v12747_v38 }
 0xcf6   :  { %v7997_v47 = vadd.f32 %v7996_v44, %v7934_v45  ;;  %v7865_v33 = vadd.f32 %v7864_v50, %v12738_v35  ;;  %v12939_v44 = vpop.f32.mrf.mxu0  ;;  %v7941_v35 = vmul.f32 %v12756_v63, %v12756_v63 }
 0xcf8   :  { %v7998_v52 = vadd.f32 %v7997_v47, %v7935_v27  ;;  %v7866_v56 = vadd.f32 %v7865_v33, %v12741_v0  ;;  %v7939_v33 = vmul.f32 %v12750_v30, %v12750_v30  ;;  %v12946_v47 = vpop.f32.mrf.mxu2 }
 0xcf9   :  { %v12921_v23 = vpop.f32.mrf.mxu1 }
 0xcfa   :  { %v7999_v12 = vadd.f32 %v7998_v52, %v7936_v1  ;;  %v7867_v9 = vadd.f32 %v7866_v56, %v12744_v2  ;;  %v7940_v52 = vmul.f32 %v12753_v32, %v12753_v32 }
 0xcfc   :  { %v8000_v50 = vadd.f32 %v7999_v12, %v7937_v42  ;;  %v7868_v27 = vadd.f32 %v7867_v9, %v12747_v38  ;;  %v7942_v9 = vmul.f32 %v12759_v11, %v12759_v11 }
 0xcfe   :  { %v8001_v0 = vadd.f32 %v8000_v50, %v7938_v55  ;;  %v7869_v1 = vadd.f32 %v7868_v27, %v12750_v30  ;;  %v12959_v55 = vpop.f32.mrf.mxu3 }
 0xd00   :  { %v8002_v56 = vadd.f32 %v8001_v0, %v7939_v33  ;;  %v7870_v2 = vadd.f32 %v7869_v1, %v12753_v32  ;;  %v7943_v0 = vmul.f32 %v12762_v61, %v12762_v61  ;;  %v12964_v33 = vpop.f32.mrf.mxu0 }
 0xd01   :  { %v12941_v45 = vpop.f32.mrf.mxu1 }
 0xd02   :  { %v8003_v42 = vadd.f32 %v8002_v56, %v7940_v52  ;;  %v7871_v12 = vadd.f32 %v7870_v2, %v12756_v63  ;;  %v7944_v2 = vmul.f32 %v12765_v40, %v12765_v40  ;;  %v12969_v56 = vpop.f32.mrf.mxu2 }
 0xd04   :  { %v8004_v50 = vadd.f32 %v8003_v42, %v7941_v35  ;;  %v7872_v27 = vadd.f32 %v7871_v12, %v12759_v11  ;;  %v7945_v35 = vmul.f32 %v12768_v48, %v12768_v48  ;;  %v7946_v11 = vmul.f32 %v12771_v49, %v12771_v49 }
 0xd06   :  { %v8005_v1 = vadd.f32 %v8004_v50, %v7942_v9  ;;  %v7873_v52 = vadd.f32 %v7872_v27, %v12762_v61  ;;  %v7947_v61 = vmul.f32 %v12774_v5, %v12774_v5 }
 0xd08   :  { %v8006_v63 = vadd.f32 %v8005_v1, %v7943_v0  ;;  %v7874_v32 = vadd.f32 %v7873_v52, %v12765_v40  ;;  %v12982_v0 = vpop.f32.mrf.mxu3 }
 0xd09   :  { %v12957_v38 = vpop.f32.mrf.mxu1 }
 0xd0a   :  { %v8007_v42 = vadd.f32 %v8006_v63, %v7944_v2  ;;  %v7875_v12 = vadd.f32 %v7874_v32, %v12768_v48  ;;  %v7948_v63 = vmul.f32 %v12777_v4, %v12777_v4  ;;  %v12987_v32 = vpop.f32.mrf.mxu0 }
 0xd0c   :  { %v8008_v50 = vadd.f32 %v8007_v42, %v7945_v35  ;;  %v7876_v27 = vadd.f32 %v7875_v12, %v12771_v49  ;;  %v7949_v35 = vmul.f32 %v12780_v19, %v12780_v19  ;;  %v12992_v42 = vpop.f32.mrf.mxu2 }
 0xd0e   :  { %v8009_v1 = vadd.f32 %v8008_v50, %v7946_v11  ;;  %v7877_v52 = vadd.f32 %v7876_v27, %v12774_v5  ;;  %v7950_v11 = vmul.f32 %v14341_v51, %v14341_v51 }
 0xd10   :  { %v8010_v2 = vadd.f32 %v8009_v1, %v7947_v61  ;;  %v7878_v30 = vadd.f32 %v7877_v52, %v12777_v4  ;;  %v7951_v61 = vmul.f32 %v14342_v28, %v14342_v28 }
 0xd11   :  { %v12977_v9 = vpop.f32.mrf.mxu1 }
 0xd12   :  { %v8011_v12 = vadd.f32 %v8010_v2, %v7948_v63  ;;  %v7879_v13 = vadd.f32 %v7878_v30, %v12780_v19  ;;  %v13005_v63 = vpop.f32.mrf.mxu3  ;;  %v14345_v19 = vld [vmem:[#allocation58_spill] sm:$0xff] }
 0xd13   :  { %v6647_v4 = vadd.f32 %v12874_v6, %v14345_v19  ;;  %v7958_v19 = vmul.f32 %v12848_v15, %v12848_v15  ;;  %v14347_v6 = vld [vmem:[#allocation60_spill] sm:$0xff] }
 0xd14   :  { %v8012_v27 = vadd.f32 %v8011_v12, %v7949_v35  ;;  %v7880_v17 = vadd.f32 %v7879_v13, %v14341_v51  ;;  %v13010_v35 = vpop.f32.mrf.mxu0  ;;  %v6584_v51 = vpop.f32.mrf.mxu2 }
 0xd16   :  { %v8013_v1 = vadd.f32 %v8012_v27, %v7950_v11  ;;  %v7881_v52 = vadd.f32 %v7880_v17, %v14342_v28  ;;  %v7954_v11 = vmul.f32 %v12795_v8, %v12795_v8  ;;  %v14343_v27 = vld [vmem:[#allocation56_spill] sm:$0xff] }
 0xd17   :  { %v6645_v28 = vadd.f32 %v12823_v10, %v14343_v27 }
 0xd18   :  { %v8014_v30 = vadd.f32 %v8013_v1, %v7951_v61  ;;  %v7882_v2 = vadd.f32 %v7881_v52, %v12789_v54  ;;  %v7955_v52 = vmul.f32 %v12798_v22, %v12798_v22  ;;  %v14344_v54 = vld [vmem:[#allocation57_spill] sm:$0xff] }
 0xd19   :  { %v12997_v50 = vpop.f32.mrf.mxu1  ;;  %v7040_v10 = vadd.f32 %v12837_v24, %v6645_v28  ;;  %v7042_v28 = vadd.f32 %v12888_v18, %v6647_v4  ;;  %v14348_v18 = vld [vmem:[#allocation61_spill] sm:$0xff] }
 0xd1a   :  { %v8015_v13 = vadd.f32 %v8014_v30, %v7952_v39  ;;  %v7883_v12 = vadd.f32 %v7882_v2, %v12792_v59  ;;  %v6646_v39 = vadd.f32 %v12850_v37, %v14344_v54  ;;  %v7956_v59 = vmul.f32 %v12812_v57, %v12812_v57  ;;  %v14346_v54 = vld [vmem:[#allocation59_spill] sm:$0xff] }
 0xd1b   :  { %v6648_v37 = vadd.f32 %v12898_v34, %v14346_v54  ;;  %v7436_v4 = vadd.f32 %v12893_v41, %v7042_v28 }
 0xd1c   :  { %v8016_v61 = vadd.f32 %v8015_v13, %v7953_v53  ;;  %v7884_v1 = vadd.f32 %v7883_v12, %v12795_v8  ;;  %v7957_v12 = vmul.f32 %v12829_v62, %v12829_v62  ;;  %v7041_v27 = vadd.f32 %v12861_v31, %v6646_v39  ;;  %v7373_v31 = vpop.f32.mrf.mxu0 }
 0xd1e   :  { %v8017_v30 = vadd.f32 %v8016_v61, %v7954_v11  ;;  %v7885_v2 = vadd.f32 %v7884_v1, %v12798_v22  ;;  %v7434_v11 = vadd.f32 %v12842_v60, %v7040_v10  ;;  %v6979_v61 = vpop.f32.mrf.mxu3  ;;  %v7435_v24 = vadd.f32 %v12869_v26, %v7041_v27  ;;  %v6587_v10 = vpop.f32.mrf.mxu2 }
 0xd1f   :  { %v6650_v26 = vadd.f32 %v12946_v47, %v14348_v18 }
 0xd20   :  { %v8018_v53 = vadd.f32 %v8017_v30, %v7955_v52  ;;  %v7886_v13 = vadd.f32 %v7885_v2, %v12812_v57  ;;  %v6649_v52 = vadd.f32 %v12923_v58, %v14347_v6  ;;  %v13048_v60 = vadd.f32 %v12903_v29, %v7434_v11  ;;  %v14351_v6 = vld [vmem:[#allocation64_spill] sm:$0xff] }
 0xd21   :  { %v13015_v17 = vpop.f32.mrf.mxu1  ;;  %v7043_v2 = vadd.f32 %v12911_v25, %v6648_v37  ;;  %v14349_v25 = vld [vmem:[#allocation62_spill] sm:$0xff]  ;;  %v13068_v37 = vadd.f32 %v12941_v45, %v7436_v4  ;;  %v7045_v11 = vadd.f32 %v12959_v55, %v6650_v26  ;;  %v6653_v55 = vadd.f32 %v6584_v51, %v14351_v6 }
 0xd22   :  { %v8019_v1 = vadd.f32 %v8018_v53, %v7956_v59  ;;  %v7887_v22 = vadd.f32 %v7886_v13, %v12829_v62  ;;  %v7959_v59 = vmul.f32 %v12867_v46, %v12867_v46  ;;  %v13058_v13 = vadd.f32 %v12921_v23, %v7435_v24 }
 0xd23   :  { %v7044_v29 = vadd.f32 %v12934_v14, %v6649_v52  ;;  %v6651_v41 = vadd.f32 %v12969_v56, %v14349_v25  ;;  %v7961_v54 = vmul.f32 %v13048_v60, %v13048_v60  ;;  %v7439_v45 = vadd.f32 %v12964_v33, %v7045_v11 }
 0xd24   :  { %v8020_v30 = vadd.f32 %v8019_v1, %v7957_v12  ;;  %v7888_v34 = vadd.f32 %v7887_v22, %v12848_v15  ;;  %v7960_v22 = vmul.f32 %v12886_v21, %v12886_v21  ;;  %v7437_v12 = vadd.f32 %v12916_v3, %v7043_v2  ;;  %v14350_v1 = vld [vmem:[#allocation63_spill] sm:$0xff]  ;;  %v7376_v33 = vpop.f32.mrf.mxu0 }
 0xd25   :  { %v7438_v23 = vadd.f32 %v12939_v44, %v7044_v29  ;;  %v6652_v14 = vadd.f32 %v12992_v42, %v14350_v1  ;;  %v7962_v56 = vmul.f32 %v13058_v13, %v13058_v13  ;;  %v7046_v24 = vadd.f32 %v12982_v0, %v6651_v41  ;;  %v14352_v0 = vld [vmem:[#allocation65_spill] sm:$0xff] }
 0xd26   :  { %v8021_v58 = vadd.f32 %v8020_v30, %v7958_v19  ;;  %v7889_v53 = vadd.f32 %v7888_v34, %v12867_v46  ;;  %v13078_v28 = vadd.f32 %v12957_v38, %v7437_v12  ;;  %v6982_v52 = vpop.f32.mrf.mxu3  ;;  %v7963_v34 = vmul.f32 %v13068_v37, %v13068_v37 }
 0xd27   :  { %v7047_v38 = vadd.f32 %v13005_v63, %v6652_v14  ;;  %v7440_v2 = vadd.f32 %v12987_v32, %v7046_v24  ;;  %v6654_v4 = vadd.f32 %v6587_v10, %v14352_v0 }
 0xd28   :  { %v8022_v27 = vadd.f32 %v8021_v58, %v7959_v59  ;;  %v7890_v47 = vadd.f32 %v7889_v53, %v12886_v21  ;;  %v13087_v59 = vadd.f32 %v12977_v9, %v7438_v23  ;;  %v7964_v26 = vmul.f32 %v13078_v28, %v13078_v28 }
 0xd29   :  { %v7765_v39 = vpop.f32.mrf.mxu1  ;;  %v13096_v58 = vadd.f32 %v12997_v50, %v7439_v45  ;;  %v7048_v53 = vadd.f32 %v6979_v61, %v6653_v55  ;;  %v7441_v9 = vadd.f32 %v13010_v35, %v7047_v38  ;;  %v13103_v10 = vadd.f32 %v13015_v17, %v7440_v2  ;;  %v14353_v35 = vld [vmem:[#allocation66_spill] sm:$0xff] }
 0xd2a   :  { %v8023_v3 = vadd.f32 %v8022_v27, %v7960_v22  ;;  %v7891_v19 = vadd.f32 %v7890_v47, %v13048_v60  ;;  %v6589_v22 = vpop.f32.mrf.mxu2  ;;  %v7965_v32 = vmul.f32 %v13087_v59, %v13087_v59  ;;  %v7049_v12 = vadd.f32 %v6982_v52, %v6654_v4 }
 0xd2b   :  { %v7442_v25 = vadd.f32 %v7373_v31, %v7048_v53  ;;  %v7966_v50 = vmul.f32 %v13096_v58, %v13096_v58  ;;  %v13108_v61 = vadd.f32 %v7765_v39, %v7441_v9  ;;  %v6655_v47 = vadd.f32 %v6589_v22, %v14353_v35 }
 0xd2c   :  { %v8024_v30 = vadd.f32 %v8023_v3, %v7961_v54  ;;  %v7892_v42 = vadd.f32 %v7891_v19, %v13058_v13  ;;  %v7443_v54 = vadd.f32 %v7376_v33, %v7049_v12  ;;  %v7967_v17 = vmul.f32 %v13103_v10, %v13103_v10  ;;  %v7378_v24 = vpop.f32.mrf.mxu0 }
 0xd2d   :  { %v7968_v39 = vmul.f32 %v13108_v61, %v13108_v61 }
 0xd2e   :  { %v8025_v18 = vadd.f32 %v8024_v30, %v7962_v56  ;;  %v7893_v51 = vadd.f32 %v7892_v42, %v13068_v37  ;;  %v6984_v31 = vpop.f32.mrf.mxu3 }
 0xd2f   :  { %v7050_v45 = vadd.f32 %v6984_v31, %v6655_v47 }
 0xd30   :  { %v8026_v29 = vadd.f32 %v8025_v18, %v7963_v34  ;;  %v7894_v63 = vadd.f32 %v7893_v51, %v13078_v28 }
 0xd31   :  { %v7767_v44 = vpop.f32.mrf.mxu1  ;;  %v7444_v30 = vadd.f32 %v7378_v24, %v7050_v45  ;;  %v8046_v45 = vld [vmem:[#allocation9] sm:$0x1] }
 0xd32   :  { %v8027_v41 = vadd.f32 %v8026_v29, %v7964_v26  ;;  %v7895_v27 = vadd.f32 %v7894_v63, %v13087_v59  ;;  %v13114_v14 = vadd.f32 %v7767_v44, %v7442_v25 }
 0xd34   :  { %v8028_v23 = vadd.f32 %v8027_v41, %v7965_v32  ;;  %v7896_v1 = vadd.f32 %v7895_v27, %v13096_v58  ;;  %v7969_v52 = vmul.f32 %v13114_v14, %v13114_v14 }
 0xd36   :  { %v8029_v3 = vadd.f32 %v8028_v23, %v7966_v50  ;;  %v7897_v19 = vadd.f32 %v7896_v1, %v13103_v10 }
 0xd38   :  { %v8030_v6 = vadd.f32 %v8029_v3, %v7967_v17  ;;  %v7898_v55 = vadd.f32 %v7897_v19, %v13108_v61 }
 0xd39   :  { %v7770_v11 = vpop.f32.mrf.mxu1 }
 0xd3a   :  { %v13119_v56 = vadd.f32 %v7770_v11, %v7443_v54  ;;  %v8031_v44 = vadd.f32 %v8030_v6, %v7968_v39  ;;  %v7899_v42 = vadd.f32 %v7898_v55, %v13114_v14 }
 0xd3c   :  { %v7970_v34 = vmul.f32 %v13119_v56, %v13119_v56  ;;  %v8032_v2 = vadd.f32 %v8031_v44, %v7969_v52  ;;  %v7900_v0 = vadd.f32 %v7899_v42, %v13119_v56 }
 0xd3e   :  { %v8033_v33 = vadd.f32 %v8032_v2, %v7970_v34 }
 0xd41   :  { %v7772_v38 = vpop.f32.mrf.mxu1 }
 0xd42   :  { %v7838_v4 = vadd.f32 %v7772_v38, %v7444_v30  ;;  %v8059_v30 = vld [vmem:[#allocation10] sm:$0x1] }
 0xd44   :  { %v7901_v18 = vadd.f32 %v7900_v0, %v7838_v4  ;;  %v7971_v51 = vmul.f32 %v7838_v4, %v7838_v4  ;;  %v9497_v0 = vld [vmem:[%s13840_s0 + $0x339] sm:$0xff] }
 0xd46   :  { %v7902_v26 = vrot.slane %v7901_v18, 4  ;;  %v8034_v53 = vadd.f32 %v8033_v33, %v7971_v51 }
 0xd48   :  { %v7903_v9 = vadd.f32 %v7902_v26, %v7901_v18  ;;  %v8035_v22 = vrot.slane %v8034_v53, 4 }
 0xd4a   :  { %v7904_v29 = vrot.slane %v7903_v9, 2  ;;  %v8036_v63 = vadd.f32 %v8035_v22, %v8034_v53 }
 0xd4c   :  { %v7905_v32 = vadd.f32 %v7904_v29, %v7903_v9  ;;  %v8037_v12 = vrot.slane %v8036_v63, 2  ;;  %v14354_v9 = vld [vmem:[#allocation67_spill] sm:$0xff] }
 0xd4e   :  { %v7906_v25 = vrot.slane %v7905_v32, 1  ;;  %v8038_v41 = vadd.f32 %v8037_v12, %v8036_v63 }
 0xd50   :  { %v7907_v27 = vadd.f32 %v7906_v25, %v7905_v32  ;;  %v8039_v50 = vrot.slane %v8038_v41, 1  ;;  %v14355_v32 = vld [vmem:[#allocation68_spill] sm:$0xff]  ;;  %v14356_v25 = vld [vmem:[#allocation69_spill] sm:$0xff] }
 0xd52   :  { %v8040_v35 = vadd.f32 %v8039_v50, %v8038_v41  ;;  %v8041_v47 = vmul.f32 0.001953125, %v7907_v27 }
 0xd54   :  { %v8042_v54 = vmul.f32 0.001953125, %v8040_v35  ;;  %v8043_v11 = vmul.f32 %v8041_v47, %v8041_v47 }
 0xd56   :  { %v8044_v23 = vsub.f32 %v8042_v54, %v8043_v11  ;;  %v14359_v54 = vld [vmem:[#allocation21_spill] sm:$0xff] }
 0xd58   :  { %v8045_v1 = vmax.f32 %v8044_v23, 0.0  ;;  %v14360_v23 = vld [vmem:[#allocation27_spill] sm:$0xff] }
 0xd5a   :  { %v8047_v17 = vadd.f32 1e-05, %v8045_v1 }
 0xd5c   :  { %9668 = vrsqrt.f32 %v8047_v17  ;;  %vm8054_vm6 = vweird.f32 %v8047_v17 }
 0xd62   :  { %v9669_v31 = vpop.eup %9668 }
 0xd63   :  { %v8049_v3 = vmul.f32 %v9669_v31, %v8047_v17  ;;  %vm8055_vm5 = vweird.f32 %v9669_v31  ;;  %v14361_v17 = vld [vmem:[#allocation28_spill] sm:$0xff] }
 0xd64   :  { %vm8056_vm7 = vmor %vm8054_vm6, %vm8055_vm5 }
 0xd65   :  { %v8050_v19 = vmul.f32 %v9669_v31, %v8049_v3  ;;  %v14363_v3 = vld [vmem:[#allocation30_spill] sm:$0xff] }
 0xd67   :  { %v8051_v39 = vmul.f32 0.5, %v8050_v19  ;;  %v14364_v19 = vld [vmem:[#allocation31_spill] sm:$0xff] }
 0xd69   :  { %v8052_v24 = vsub.f32 1.5, %v8051_v39 }
 0xd6b   :  { %v8053_v6 = vmul.f32 %v9669_v31, %v8052_v24 }
 0xd6d   :  { %v8057_v55 = vsel %vm8056_vm7, %v9669_v31, %v8053_v6  ;;  %v14362_v31 = vld [vmem:[#allocation29_spill] sm:$0xff] }
 0xd6e   :  { %v8058_v52 = vmul.f32 %v8057_v55, %v8046_v45 }
 0xd70   :  { %v8060_v44 = vmul.f32 %v8058_v52, %v8041_v47  ;;  %v13128_v42 = vperm.slane %v8058_v52, 0  ;;  %v14358_v47 = vld [vmem:[#allocation86_spill] sm:$0xff] }
 0xd72   :  { %v8061_v34 = vsub.f32 %v8059_v30, %v8060_v44  ;;  %v8128_v38 = vmul.f32 %v13128_v42, %v7838_v4  ;;  %v8065_v53 = vmul.f32 %v13128_v42, %v12657_v16  ;;  %v8066_v4 = vmul.f32 %v13128_v42, %v12660_v43  ;;  %v14357_v43 = vld [vmem:[#allocation70_spill] sm:$0xff] }
 0xd73   :  { %v8067_v22 = vmul.f32 %v13128_v42, %v14354_v9  ;;  %v8068_v29 = vmul.f32 %v13128_v42, %v12666_v20  ;;  %v8069_v63 = vmul.f32 %v13128_v42, %v12669_v7  ;;  %v8070_v12 = vmul.f32 %v13128_v42, %v14355_v32 }
 0xd74   :  { %v13131_v2 = vperm.slane %v8061_v34, 0  ;;  %v8071_v41 = vmul.f32 %v13128_v42, %v14356_v25  ;;  %v13154_v16 = vmul.f32 %v13128_v42, %v12678_v36  ;;  %v13158_v27 = vmul.f32 %v13128_v42, %v14357_v43 }
 0xd75   :  { %v8101_v20 = vmul.f32 %v13128_v42, %v12765_v40  ;;  %v8102_v7 = vmul.f32 %v13128_v42, %v12768_v48  ;;  %v8103_v50 = vmul.f32 %v13128_v42, %v12771_v49  ;;  %v8104_v35 = vmul.f32 %v13128_v42, %v12774_v5 }
 0xd76   :  { %v8195_v33 = vadd.f32 %v13131_v2, %v8128_v38  ;;  %v8105_v36 = vmul.f32 %v13128_v42, %v14358_v47  ;;  %v8106_v11 = vmul.f32 %v13128_v42, %v14359_v54  ;;  %v8107_v1 = vmul.f32 %v13128_v42, %v14360_v23 }
 0xd77   :  { %v8108_v40 = vmul.f32 %v13128_v42, %v14361_v17  ;;  %v8109_v48 = vmul.f32 %v13128_v42, %v14362_v31  ;;  %v8110_v49 = vmul.f32 %v13128_v42, %v14363_v3  ;;  %v8111_v5 = vmul.f32 %v13128_v42, %v12795_v8 }
 0xd78   :  { %v8259_v18 = vmax.f32 %v8195_v33, 0.0  ;;  %v8452_v51 = vadd.f32 %v9497_v0, %v8195_v33  ;;  %v8112_v39 = vmul.f32 %v13128_v42, %v14364_v19  ;;  %v8113_v24 = vmul.f32 %v13128_v42, %v12812_v57 }
 0xd79   :  { %v8114_v45 = vmul.f32 %v13128_v42, %v12829_v62  ;;  %v8115_v6 = vmul.f32 %v13128_v42, %v12848_v15  ;;  %v8116_v55 = vmul.f32 %v13128_v42, %v12867_v46  ;;  %v8117_v52 = vmul.f32 %v13128_v42, %v12886_v21 }
 0xd7a   :  { %8323 = vst [vmem:[#allocation12 + $0x1f8] sm:$0xff] %v8259_v18  ;;  %v8516_v26 = vmax.f32 %v8452_v51, 0.0  ;;  %v8118_v8 = vmul.f32 %v13128_v42, %v13048_v60  ;;  %v8119_v30 = vmul.f32 %v13128_v42, %v13058_v13  ;;  %v8120_v57 = vmul.f32 %v13128_v42, %v13068_v37 }
 0xd7b   :  { %v8121_v62 = vmul.f32 %v13128_v42, %v13078_v28  ;;  %v8122_v15 = vmul.f32 %v13128_v42, %v13087_v59  ;;  %v8123_v46 = vmul.f32 %v13128_v42, %v13096_v58  ;;  %v8124_v21 = vmul.f32 %v13128_v42, %v13103_v10 }
 0xd7c   :  { %8580 = vst.msk [vmem:[#allocation12 + $0x1f8] sm:$0xff] %vm298_vm0, %v8516_v26  ;;  %v8125_v60 = vmul.f32 %v13128_v42, %v13108_v61  ;;  %v8126_v13 = vmul.f32 %v13128_v42, %v13114_v14  ;;  %v8127_v37 = vmul.f32 %v13128_v42, %v13119_v56  ;;  %v13215_v28 = vadd.f32 %v13131_v2, %v8065_v53 }
 0xd7d   :  { %v13218_v59 = vadd.f32 %v13131_v2, %v8066_v4  ;;  %v13221_v58 = vadd.f32 %v13131_v2, %v8067_v22  ;;  %v13224_v10 = vadd.f32 %v13131_v2, %v8068_v29  ;;  %v13227_v61 = vadd.f32 %v13131_v2, %v8069_v63 }
 0xd7e   :  { %v13230_v14 = vadd.f32 %v13131_v2, %v8070_v12  ;;  %v13233_v56 = vadd.f32 %v13131_v2, %v8071_v41  ;;  %v13236_v44 = vadd.f32 %v13131_v2, %v8101_v20  ;;  %v13239_v34 = vadd.f32 %v13131_v2, %v8102_v7 }
 0xd7f   :  { %v13242_v38 = vadd.f32 %v13131_v2, %v8103_v50  ;;  %v13245_v0 = vadd.f32 %v13131_v2, %v8104_v35  ;;  %v13248_v33 = vadd.f32 %v13131_v2, %v8105_v36  ;;  %v13251_v18 = vadd.f32 %v13131_v2, %v8106_v11 }
 0xd80   :  { %v13254_v51 = vadd.f32 %v13131_v2, %v8107_v1  ;;  %v13257_v26 = vadd.f32 %v13131_v2, %v8108_v40  ;;  %v13260_v53 = vadd.f32 %v13131_v2, %v8109_v48  ;;  %v13263_v4 = vadd.f32 %v13131_v2, %v8110_v49  ;;  %v14368_v40 = vld [vmem:[#allocation71_spill] sm:$0xff]  ;;  %v14369_v49 = vld [vmem:[#allocation72_spill] sm:$0xff] }
 0xd81   :  { %v13266_v9 = vadd.f32 %v13131_v2, %v8111_v5  ;;  %v13269_v22 = vadd.f32 %v13131_v2, %v8112_v39  ;;  %v13272_v29 = vadd.f32 %v13131_v2, %v8113_v24  ;;  %v13275_v63 = vadd.f32 %v13131_v2, %v8114_v45  ;;  %v14370_v24 = vld [vmem:[#allocation73_spill] sm:$0xff] }
 0xd82   :  { %v13278_v32 = vadd.f32 %v13131_v2, %v8115_v6  ;;  %v13281_v12 = vadd.f32 %v13131_v2, %v8116_v55  ;;  %v13284_v25 = vadd.f32 %v13131_v2, %v8117_v52  ;;  %v13287_v41 = vadd.f32 %v13131_v2, %v8118_v8  ;;  %v14371_v55 = vld [vmem:[#allocation74_spill] sm:$0xff] }
 0xd83   :  { %v13290_v43 = vadd.f32 %v13131_v2, %v8119_v30  ;;  %v13293_v20 = vadd.f32 %v13131_v2, %v8120_v57  ;;  %v13296_v7 = vadd.f32 %v13131_v2, %v8121_v62  ;;  %v13299_v50 = vadd.f32 %v13131_v2, %v8122_v15  ;;  %v14372_v30 = vld [vmem:[#allocation75_spill] sm:$0xff] }
 0xd84   :  { %v13302_v35 = vadd.f32 %v13131_v2, %v8123_v46  ;;  %v13305_v47 = vadd.f32 %v13131_v2, %v8124_v21  ;;  %v13308_v36 = vadd.f32 %v13131_v2, %v8125_v60  ;;  %v13311_v54 = vadd.f32 %v13131_v2, %v8126_v13  ;;  %v14373_v46 = vld [vmem:[#allocation76_spill] sm:$0xff] }
 0xd85   :  { %14365 = vst [vmem:[#allocation32_spill] sm:$0xff] %v13299_v50  ;;  %v13314_v11 = vadd.f32 %v13131_v2, %v8127_v37  ;;  %v8196_v23 = vmax.f32 %v13215_v28, 0.0  ;;  %v8197_v1 = vmax.f32 %v13218_v59, 0.0  ;;  %v8198_v17 = vmax.f32 %v13221_v58, 0.0  ;;  %v14374_v37 = vld [vmem:[#allocation77_spill] sm:$0xff] }
 0xd86   :  { %14366 = vst [vmem:[#allocation33_spill] sm:$0xff] %v13302_v35  ;;  %v8074_v31 = vmul.f32 %v13128_v42, %v14368_v40  ;;  %v13323_v48 = vadd.f32 %v13131_v2, %v13154_v16  ;;  %v8199_v3 = vmax.f32 %v13224_v10, 0.0  ;;  %v8075_v5 = vmul.f32 %v13128_v42, %v14369_v49  ;;  %v14375_v40 = vld [vmem:[#allocation78_spill] sm:$0xff] }
 0xd87   :  { %14367 = vst [vmem:[#allocation34_spill] sm:$0xff] %v13311_v54  ;;  %v13330_v19 = vadd.f32 %v13131_v2, %v13158_v27  ;;  %v8200_v39 = vmax.f32 %v13227_v61, 0.0  ;;  %v8076_v45 = vmul.f32 %v13128_v42, %v14370_v24  ;;  %v8201_v16 = vmax.f32 %v13230_v14, 0.0 }
 0xd88   :  { %8260 = vst [vmem:[#allocation12] sm:$0xff] %v8196_v23  ;;  %v13336_v6 = vadd.f32 %v13131_v2, %v8074_v31  ;;  %v8077_v52 = vmul.f32 %v13128_v42, %v14371_v55  ;;  %v13342_v8 = vadd.f32 %v13131_v2, %v8075_v5  ;;  %v8202_v27 = vmax.f32 %v13233_v56, 0.0  ;;  %v14376_v5 = vld [vmem:[#allocation41_spill] sm:$0xff]  ;;  %v14378_v55 = vld [vmem:[#allocation40_spill] sm:$0xff] }
 0xd89   :  { %8261 = vst [vmem:[#allocation12 + $0x8] sm:$0xff] %v8197_v1  ;;  %v8078_v57 = vmul.f32 %v13128_v42, %v14372_v30  ;;  %v13348_v62 = vadd.f32 %v13131_v2, %v8076_v45  ;;  %v8203_v15 = vmax.f32 %v13323_v48, 0.0  ;;  %v8079_v21 = vmul.f32 %v13128_v42, %v14373_v46 }
 0xd8a   :  { %8262 = vst [vmem:[#allocation12 + $0x10] sm:$0xff] %v8198_v17  ;;  %v13354_v60 = vadd.f32 %v13131_v2, %v8077_v52  ;;  %v8204_v13 = vmax.f32 %v13330_v19, 0.0  ;;  %v8080_v23 = vmul.f32 %v13128_v42, %v14374_v37  ;;  %v8205_v17 = vmax.f32 %v13336_v6, 0.0  ;;  %v14382_v37 = vld [vmem:[#allocation18_spill] sm:$0xff] }
 0xd8b   :  { %8263 = vst [vmem:[#allocation12 + $0x18] sm:$0xff] %v8199_v3  ;;  %v13360_v1 = vadd.f32 %v13131_v2, %v8078_v57  ;;  %v8081_v31 = vmul.f32 %v13128_v42, %v14375_v40  ;;  %v13366_v3 = vadd.f32 %v13131_v2, %v8079_v21  ;;  %v8206_v49 = vmax.f32 %v13342_v8, 0.0  ;;  %v14380_v57 = vld [vmem:[#allocation42_spill] sm:$0xff] }
 0xd8c   :  { %8264 = vst [vmem:[#allocation12 + $0x20] sm:$0xff] %v8200_v39  ;;  %v8082_v39 = vmul.f32 %v13128_v42, %v14376_v5  ;;  %v13372_v24 = vadd.f32 %v13131_v2, %v8080_v23  ;;  %v8207_v45 = vmax.f32 %v13348_v62, 0.0  ;;  %v8208_v30 = vmax.f32 %v13354_v60, 0.0 }
 0xd8d   :  { %8265 = vst [vmem:[#allocation12 + $0x28] sm:$0xff] %v8201_v16  ;;  %v8083_v16 = vmul.f32 %v13128_v42, %v14378_v55  ;;  %v13378_v52 = vadd.f32 %v13131_v2, %v8081_v31  ;;  %v8209_v21 = vmax.f32 %v13360_v1, 0.0  ;;  %v8210_v40 = vmax.f32 %v13366_v3, 0.0  ;;  %v14384_v31 = vld [vmem:[#allocation43_spill] sm:$0xff]  ;;  %v14386_v55 = vld [vmem:[#allocation20_spill] sm:$0xff] }
 0xd8e   :  { %8266 = vst [vmem:[#allocation12 + $0x30] sm:$0xff] %v8202_v27  ;;  %v8084_v27 = vmul.f32 %v13128_v42, %v14380_v57  ;;  %v13384_v46 = vadd.f32 %v13131_v2, %v8082_v39  ;;  %v8211_v39 = vmax.f32 %v13372_v24, 0.0 }
 0xd8f   :  { %14377 = vst [vmem:[#allocation35_spill] sm:$0xff] %v13372_v24  ;;  %v13390_v23 = vadd.f32 %v13131_v2, %v8083_v16  ;;  %v8212_v16 = vmax.f32 %v13378_v52, 0.0  ;;  %v14390_v24 = vld [vmem:[#allocation17_spill] sm:$0xff] }
 0xd90   :  { %8267 = vst [vmem:[#allocation12 + $0x38] sm:$0xff] %v8203_v15  ;;  %v8085_v15 = vmul.f32 %v13128_v42, %v14382_v37  ;;  %v13396_v5 = vadd.f32 %v13131_v2, %v8084_v27  ;;  %v14388_v37 = vld [vmem:[#allocation83_spill] sm:$0xff]  ;;  %v8213_v27 = vmax.f32 %v13384_v46, 0.0 }
 0xd91   :  { %14379 = vst [vmem:[#allocation36_spill] sm:$0xff] %v13378_v52  ;;  %v14392_v52 = vld [vmem:[#allocation44_spill] sm:$0xff] }
 0xd92   :  { %8268 = vst [vmem:[#allocation12 + $0x40] sm:$0xff] %v8204_v13  ;;  %v8086_v13 = vmul.f32 %v13128_v42, %v14384_v31  ;;  %v13402_v57 = vadd.f32 %v13131_v2, %v8085_v15  ;;  %v8214_v15 = vmax.f32 %v13390_v23, 0.0 }
 0xd93   :  { %14381 = vst [vmem:[#allocation37_spill] sm:$0xff] %v13384_v46  ;;  %v14394_v46 = vld [vmem:[#allocation22_spill] sm:$0xff] }
 0xd94   :  { %8269 = vst [vmem:[#allocation12 + $0x48] sm:$0xff] %v8205_v17  ;;  %v8087_v17 = vmul.f32 %v13128_v42, %v14386_v55  ;;  %v13408_v31 = vadd.f32 %v13131_v2, %v8086_v13  ;;  %v8215_v13 = vmax.f32 %v13396_v5, 0.0 }
 0xd95   :  { %14383 = vst [vmem:[#allocation38_spill] sm:$0xff] %v13390_v23  ;;  %v14396_v23 = vld [vmem:[#allocation23_spill] sm:$0xff] }
 0xd96   :  { %8270 = vst [vmem:[#allocation12 + $0x50] sm:$0xff] %v8206_v49  ;;  %v8088_v49 = vmul.f32 %v13128_v42, %v14388_v37  ;;  %v13414_v55 = vadd.f32 %v13131_v2, %v8087_v17  ;;  %v8216_v17 = vmax.f32 %v13402_v57, 0.0 }
 0xd97   :  { %14385 = vst [vmem:[#allocation39_spill] sm:$0xff] %v13396_v5  ;;  %v14398_v5 = vld [vmem:[#allocation25_spill] sm:$0xff] }
 0xd98   :  { %8271 = vst [vmem:[#allocation12 + $0x58] sm:$0xff] %v8207_v45  ;;  %v8089_v45 = vmul.f32 %v13128_v42, %v14390_v24  ;;  %v13420_v37 = vadd.f32 %v13131_v2, %v8088_v49  ;;  %v8217_v49 = vmax.f32 %v13408_v31, 0.0 }
 0xd99   :  { %14387 = vst [vmem:[#allocation47_spill] sm:$0xff] %v13402_v57  ;;  %v14400_v57 = vld [vmem:[#allocation82_spill] sm:$0xff] }
 0xd9a   :  { %8272 = vst [vmem:[#allocation12 + $0x60] sm:$0xff] %v8208_v30  ;;  %v8090_v30 = vmul.f32 %v13128_v42, %v14392_v52  ;;  %v13426_v24 = vadd.f32 %v13131_v2, %v8089_v45  ;;  %v8218_v45 = vmax.f32 %v13414_v55, 0.0 }
 0xd9b   :  { %14389 = vst [vmem:[#allocation48_spill] sm:$0xff] %v13408_v31  ;;  %v14401_v31 = vld [vmem:[#allocation85_spill] sm:$0xff] }
 0xd9c   :  { %8273 = vst [vmem:[#allocation12 + $0x68] sm:$0xff] %v8209_v21  ;;  %v8091_v21 = vmul.f32 %v13128_v42, %v14394_v46  ;;  %v13432_v52 = vadd.f32 %v13131_v2, %v8090_v30  ;;  %v8219_v30 = vmax.f32 %v13420_v37, 0.0 }
 0xd9d   :  { %14391 = vst [vmem:[#allocation49_spill] sm:$0xff] %v13414_v55  ;;  %v14402_v55 = vld [vmem:[#allocation19_spill] sm:$0xff] }
 0xd9e   :  { %8274 = vst [vmem:[#allocation12 + $0x70] sm:$0xff] %v8210_v40  ;;  %v8092_v40 = vmul.f32 %v13128_v42, %v14396_v23  ;;  %v13438_v46 = vadd.f32 %v13131_v2, %v8091_v21  ;;  %v8220_v21 = vmax.f32 %v13426_v24, 0.0 }
 0xd9f   :  { %14393 = vst [vmem:[#allocation50_spill] sm:$0xff] %v13420_v37  ;;  %v14403_v37 = vld [vmem:[#allocation45_spill] sm:$0xff] }
 0xda0   :  { %8275 = vst [vmem:[#allocation12 + $0x78] sm:$0xff] %v8211_v39  ;;  %v8093_v39 = vmul.f32 %v13128_v42, %v14398_v5  ;;  %v13444_v23 = vadd.f32 %v13131_v2, %v8092_v40  ;;  %v8221_v40 = vmax.f32 %v13432_v52, 0.0 }
 0xda1   :  { %14395 = vst [vmem:[#allocation51_spill] sm:$0xff] %v13426_v24  ;;  %v14404_v24 = vld [vmem:[#allocation24_spill] sm:$0xff] }
 0xda2   :  { %8276 = vst [vmem:[#allocation12 + $0x80] sm:$0xff] %v8212_v16  ;;  %v8094_v16 = vmul.f32 %v13128_v42, %v14400_v57  ;;  %v13450_v5 = vadd.f32 %v13131_v2, %v8093_v39  ;;  %v8222_v39 = vmax.f32 %v13438_v46, 0.0 }
 0xda3   :  { %14397 = vst [vmem:[#allocation79_spill] sm:$0xff] %v13432_v52  ;;  %v14405_v52 = vld [vmem:[#allocation46_spill] sm:$0xff] }
 0xda4   :  { %8277 = vst [vmem:[#allocation12 + $0x88] sm:$0xff] %v8213_v27  ;;  %v8095_v27 = vmul.f32 %v13128_v42, %v14401_v31  ;;  %v13456_v57 = vadd.f32 %v13131_v2, %v8094_v16  ;;  %v8223_v16 = vmax.f32 %v13444_v23, 0.0 }
 0xda5   :  { %14399 = vst [vmem:[#allocation80_spill] sm:$0xff] %v13438_v46  ;;  %v14406_v46 = vld [vmem:[#allocation26_spill] sm:$0xff] }
 0xda6   :  { %8278 = vst [vmem:[#allocation12 + $0x90] sm:$0xff] %v8214_v15  ;;  %v8096_v15 = vmul.f32 %v13128_v42, %v14402_v55  ;;  %v13462_v31 = vadd.f32 %v13131_v2, %v8095_v27  ;;  %v8224_v27 = vmax.f32 %v13450_v5, 0.0 }
 0xda7   :  { %8279 = vst [vmem:[#allocation12 + $0x98] sm:$0xff] %v8215_v13  ;;  %v8097_v13 = vmul.f32 %v13128_v42, %v14403_v37 }
 0xda8   :  { %8280 = vst [vmem:[#allocation12 + $0xa0] sm:$0xff] %v8216_v17  ;;  %v8098_v17 = vmul.f32 %v13128_v42, %v14404_v24  ;;  %v13468_v55 = vadd.f32 %v13131_v2, %v8096_v15  ;;  %v8225_v15 = vmax.f32 %v13456_v57, 0.0 }
 0xda9   :  { %8281 = vst [vmem:[#allocation12 + $0xa8] sm:$0xff] %v8217_v49  ;;  %v8099_v49 = vmul.f32 %v13128_v42, %v14405_v52  ;;  %v13474_v37 = vadd.f32 %v13131_v2, %v8097_v13  ;;  %v8226_v52 = vmax.f32 %v13462_v31, 0.0 }
 0xdaa   :  { %8282 = vst [vmem:[#allocation12 + $0xb0] sm:$0xff] %v8218_v45  ;;  %v8100_v45 = vmul.f32 %v13128_v42, %v14406_v46  ;;  %v13480_v24 = vadd.f32 %v13131_v2, %v8098_v17 }
 0xdab   :  { %8283 = vst [vmem:[#allocation12 + $0xb8] sm:$0xff] %v8219_v30  ;;  %v13484_v30 = vadd.f32 %v13131_v2, %v8099_v49  ;;  %v8228_v42 = vmax.f32 %v13474_v37, 0.0  ;;  %v8235_v49 = vmax.f32 %v13245_v0, 0.0 }
 0xdac   :  { %8284 = vst [vmem:[#allocation12 + $0xc0] sm:$0xff] %v8220_v21  ;;  %v13488_v13 = vadd.f32 %v13131_v2, %v8100_v45  ;;  %v8227_v21 = vmax.f32 %v13468_v55, 0.0  ;;  %v8229_v46 = vmax.f32 %v13480_v24, 0.0  ;;  %v8233_v2 = vmax.f32 %v13239_v34, 0.0 }
 0xdad   :  { %8285 = vst [vmem:[#allocation12 + $0xc8] sm:$0xff] %v8221_v40  ;;  %v8230_v40 = vmax.f32 %v13484_v30, 0.0  ;;  %v8237_v45 = vmax.f32 %v13251_v18, 0.0 }
 0xdae   :  { %8286 = vst [vmem:[#allocation12 + $0xd0] sm:$0xff] %v8222_v39  ;;  %v8231_v17 = vmax.f32 %v13488_v13, 0.0  ;;  %v8232_v39 = vmax.f32 %v13236_v44, 0.0 }
 0xdaf   :  { %8287 = vst [vmem:[#allocation12 + $0xd8] sm:$0xff] %v8223_v16  ;;  %v8234_v16 = vmax.f32 %v13242_v38, 0.0 }
 0xdb0   :  { %8288 = vst [vmem:[#allocation12 + $0xe0] sm:$0xff] %v8224_v27  ;;  %v8236_v27 = vmax.f32 %v13248_v33, 0.0 }
 0xdb1   :  { %8289 = vst [vmem:[#allocation12 + $0xe8] sm:$0xff] %v8225_v15  ;;  %v8238_v15 = vmax.f32 %v13254_v51, 0.0 }
 0xdb2   :  { %8290 = vst [vmem:[#allocation12 + $0xf0] sm:$0xff] %v8226_v52  ;;  %v8239_v52 = vmax.f32 %v13257_v26, 0.0 }
 0xdb3   :  { %8291 = vst [vmem:[#allocation12 + $0xf8] sm:$0xff] %v8227_v21  ;;  %v8240_v21 = vmax.f32 %v13260_v53, 0.0 }
 0xdb4   :  { %8292 = vst [vmem:[#allocation12 + $0x100] sm:$0xff] %v8228_v42  ;;  %v8241_v42 = vmax.f32 %v13263_v4, 0.0 }
 0xdb5   :  { %8293 = vst [vmem:[#allocation12 + $0x108] sm:$0xff] %v8229_v46  ;;  %v8242_v46 = vmax.f32 %v13266_v9, 0.0 }
 0xdb6   :  { %8294 = vst [vmem:[#allocation12 + $0x110] sm:$0xff] %v8230_v40  ;;  %v8243_v40 = vmax.f32 %v13269_v22, 0.0 }
 0xdb7   :  { %8295 = vst [vmem:[#allocation12 + $0x118] sm:$0xff] %v8231_v17  ;;  %v8244_v17 = vmax.f32 %v13272_v29, 0.0 }
 0xdb8   :  { %8296 = vst [vmem:[#allocation12 + $0x120] sm:$0xff] %v8232_v39  ;;  %v8245_v39 = vmax.f32 %v13275_v63, 0.0 }
 0xdb9   :  { %8297 = vst [vmem:[#allocation12 + $0x128] sm:$0xff] %v8233_v2  ;;  %v8246_v2 = vmax.f32 %v13278_v32, 0.0 }
 0xdba   :  { %8298 = vst [vmem:[#allocation12 + $0x130] sm:$0xff] %v8234_v16  ;;  %v8247_v16 = vmax.f32 %v13281_v12, 0.0 }
 0xdbb   :  { %8299 = vst [vmem:[#allocation12 + $0x138] sm:$0xff] %v8235_v49  ;;  %v8248_v49 = vmax.f32 %v13284_v25, 0.0 }
 0xdbc   :  { %8300 = vst [vmem:[#allocation12 + $0x140] sm:$0xff] %v8236_v27  ;;  %v8249_v27 = vmax.f32 %v13287_v41, 0.0 }
 0xdbd   :  { %8301 = vst [vmem:[#allocation12 + $0x148] sm:$0xff] %v8237_v45  ;;  %v8250_v45 = vmax.f32 %v13290_v43, 0.0 }
 0xdbe   :  { %8302 = vst [vmem:[#allocation12 + $0x150] sm:$0xff] %v8238_v15  ;;  %v8251_v15 = vmax.f32 %v13293_v20, 0.0 }
 0xdbf   :  { %8303 = vst [vmem:[#allocation12 + $0x158] sm:$0xff] %v8239_v52  ;;  %v9434_v52 = vld [vmem:[%s13840_s0 + $0x19] sm:$0xff] }
 0xdc0   :  { %8304 = vst [vmem:[#allocation12 + $0x160] sm:$0xff] %v8240_v21  ;;  %v8252_v21 = vmax.f32 %v13296_v7, 0.0 }
 0xdc1   :  { %8305 = vst [vmem:[#allocation12 + $0x168] sm:$0xff] %v8241_v42  ;;  %v9435_v42 = vld [vmem:[%s13840_s0 + $0x21] sm:$0xff] }
 0xdc2   :  { %8306 = vst [vmem:[#allocation12 + $0x170] sm:$0xff] %v8242_v46  ;;  %v8253_v46 = vmax.f32 %v13299_v50, 0.0  ;;  %v8390_v50 = vadd.f32 %v9435_v42, %v13218_v59  ;;  %v9441_v59 = vld [vmem:[%s13840_s0 + $0x69] sm:$0xff] }
 0xdc3   :  { %8307 = vst [vmem:[#allocation12 + $0x178] sm:$0xff] %v8243_v40  ;;  %v9436_v40 = vld [vmem:[%s13840_s0 + $0x31] sm:$0xff] }
 0xdc4   :  { %8308 = vst [vmem:[#allocation12 + $0x180] sm:$0xff] %v8244_v17  ;;  %v8254_v17 = vmax.f32 %v13302_v35, 0.0  ;;  %v8257_v35 = vmax.f32 %v13311_v54, 0.0 }
 0xdc5   :  { %8309 = vst [vmem:[#allocation12 + $0x188] sm:$0xff] %v8245_v39  ;;  %v9437_v39 = vld [vmem:[%s13840_s0 + $0x39] sm:$0xff] }
 0xdc6   :  { %8310 = vst [vmem:[#allocation12 + $0x190] sm:$0xff] %v8246_v2  ;;  %v8255_v2 = vmax.f32 %v13305_v47, 0.0 }
 0xdc7   :  { %8311 = vst [vmem:[#allocation12 + $0x198] sm:$0xff] %v8247_v16  ;;  %v8389_v16 = vadd.f32 %v9434_v52, %v13215_v28  ;;  %v9440_v28 = vld [vmem:[%s13840_s0 + $0x61] sm:$0xff]  ;;  %v8258_v52 = vmax.f32 %v13314_v11, 0.0 }
 0xdc8   :  { %8312 = vst [vmem:[#allocation12 + $0x1a0] sm:$0xff] %v8248_v49  ;;  %v9438_v49 = vld [vmem:[%s13840_s0 + $0x49] sm:$0xff] }
 0xdc9   :  { %8313 = vst [vmem:[#allocation12 + $0x1a8] sm:$0xff] %v8249_v27  ;;  %v8256_v27 = vmax.f32 %v13308_v36, 0.0  ;;  %v8393_v42 = vadd.f32 %v9438_v49, %v13227_v61  ;;  %v8453_v54 = vmax.f32 %v8389_v16, 0.0  ;;  %v9444_v61 = vld [vmem:[%s13840_s0 + $0x91] sm:$0xff] }
 0xdca   :  { %8314 = vst [vmem:[#allocation12 + $0x1b0] sm:$0xff] %v8250_v45  ;;  %v9439_v45 = vld [vmem:[%s13840_s0 + $0x51] sm:$0xff] }
 0xdcb   :  { %8315 = vst [vmem:[#allocation12 + $0x1b8] sm:$0xff] %v8251_v15  ;;  %v8391_v15 = vadd.f32 %v9436_v40, %v13221_v58  ;;  %v9442_v58 = vld [vmem:[%s13840_s0 + $0x79] sm:$0xff]  ;;  %v8454_v40 = vmax.f32 %v8390_v50, 0.0  ;;  %v8457_v49 = vmax.f32 %v8393_v42, 0.0 }
 0xdcc   :  { %8316 = vst [vmem:[#allocation12 + $0x1c0] sm:$0xff] %v8252_v21  ;;  %v8392_v21 = vadd.f32 %v9437_v39, %v13224_v10  ;;  %v9443_v10 = vld [vmem:[%s13840_s0 + $0x81] sm:$0xff]  ;;  %v8397_v50 = vadd.f32 %v9442_v58, %v13330_v19 }
 0xdcd   :  { %8317 = vst [vmem:[#allocation12 + $0x1c8] sm:$0xff] %v8253_v46  ;;  %v8394_v46 = vadd.f32 %v9439_v45, %v13230_v14  ;;  %v8455_v39 = vmax.f32 %v8391_v15, 0.0  ;;  %v9445_v14 = vld [vmem:[%s13840_s0 + $0x99] sm:$0xff]  ;;  %v8399_v45 = vadd.f32 %v9444_v61, %v13342_v8 }
 0xdce   :  { %8318 = vst [vmem:[#allocation12 + $0x1d0] sm:$0xff] %v8254_v17  ;;  %v8395_v17 = vadd.f32 %v9440_v28, %v13233_v56  ;;  %v8456_v16 = vmax.f32 %v8392_v21, 0.0  ;;  %v9446_v56 = vld [vmem:[%s13840_s0 + $0xa9] sm:$0xff]  ;;  %v8400_v19 = vadd.f32 %v9445_v14, %v13348_v62  ;;  %v8461_v21 = vmax.f32 %v8397_v50, 0.0  ;;  %v9450_v8 = vld [vmem:[%s13840_s0 + $0xd9] sm:$0xff]  ;;  %v9451_v62 = vld [vmem:[%s13840_s0 + $0xe1] sm:$0xff] }
 0xdcf   :  { %8319 = vst [vmem:[#allocation12 + $0x1d8] sm:$0xff] %v8255_v2  ;;  %v8396_v2 = vadd.f32 %v9441_v59, %v13323_v48  ;;  %v9447_v48 = vld [vmem:[%s13840_s0 + $0xb1] sm:$0xff] }
 0xdd0   :  { %8320 = vst [vmem:[#allocation12 + $0x1e0] sm:$0xff] %v8256_v27  ;;  %v8458_v27 = vmax.f32 %v8394_v46, 0.0  ;;  %v8459_v15 = vmax.f32 %v8395_v17, 0.0  ;;  %v8402_v59 = vadd.f32 %v9447_v48, %v13360_v1  ;;  %v8463_v46 = vmax.f32 %v8399_v45, 0.0  ;;  %v9453_v1 = vld [vmem:[%s13840_s0 + $0xf9] sm:$0xff]  ;;  %v9456_v48 = vld [vmem:[%s13840_s0 + $0x121] sm:$0xff] }
 0xdd1   :  { %8321 = vst [vmem:[#allocation12 + $0x1e8] sm:$0xff] %v8257_v35  ;;  %v8398_v35 = vadd.f32 %v9443_v10, %v13336_v6  ;;  %v8460_v28 = vmax.f32 %v8396_v2, 0.0  ;;  %v9449_v6 = vld [vmem:[%s13840_s0 + $0xc9] sm:$0xff]  ;;  %v8464_v17 = vmax.f32 %v8400_v19, 0.0  ;;  %v14411_v45 = vld [vmem:[#allocation39_spill] sm:$0xff] }
 0xdd2   :  { %8322 = vst [vmem:[#allocation12 + $0x1f0] sm:$0xff] %v8258_v52  ;;  %v8401_v52 = vadd.f32 %v9446_v56, %v13354_v60  ;;  %v9452_v60 = vld [vmem:[%s13840_s0 + $0xf1] sm:$0xff]  ;;  %v8466_v50 = vmax.f32 %v8402_v59, 0.0  ;;  %v9457_v19 = vld [vmem:[%s13840_s0 + $0x129] sm:$0xff] }
 0xdd3   :  { %8517 = vst.msk [vmem:[#allocation12] sm:$0xff] %vm298_vm0, %v8453_v54  ;;  %v9448_v54 = vld [vmem:[%s13840_s0 + $0xc1] sm:$0xff]  ;;  %v8462_v42 = vmax.f32 %v8398_v35, 0.0  ;;  %v14410_v56 = vld [vmem:[#allocation38_spill] sm:$0xff] }
 0xdd4   :  { %8518 = vst.msk [vmem:[#allocation12 + $0x8] sm:$0xff] %vm298_vm0, %v8454_v40  ;;  %v8403_v58 = vadd.f32 %v9448_v54, %v13366_v3  ;;  %v14407_v40 = vld [vmem:[#allocation35_spill] sm:$0xff]  ;;  %v8465_v2 = vmax.f32 %v8401_v52, 0.0  ;;  %v9454_v3 = vld [vmem:[%s13840_s0 + $0x109] sm:$0xff]  ;;  %v8407_v35 = vadd.f32 %v9452_v60, %v14410_v56 }
 0xdd5   :  { %8519 = vst.msk [vmem:[#allocation12 + $0x10] sm:$0xff] %vm298_vm0, %v8455_v39  ;;  %v8404_v10 = vadd.f32 %v9449_v6, %v14407_v40  ;;  %v14408_v39 = vld [vmem:[#allocation36_spill] sm:$0xff]  ;;  %v9460_v40 = vld [vmem:[%s13840_s0 + $0x151] sm:$0xff] }
 0xdd6   :  { %8520 = vst.msk [vmem:[#allocation12 + $0x18] sm:$0xff] %vm298_vm0, %v8456_v16  ;;  %v8405_v61 = vadd.f32 %v9450_v8, %v14408_v39  ;;  %v14409_v16 = vld [vmem:[#allocation37_spill] sm:$0xff]  ;;  %v14413_v8 = vld [vmem:[#allocation48_spill] sm:$0xff]  ;;  %v8471_v60 = vmax.f32 %v8407_v35, 0.0  ;;  %v9463_v56 = vld [vmem:[%s13840_s0 + $0x171] sm:$0xff] }
 0xdd7   :  { %8521 = vst.msk [vmem:[#allocation12 + $0x20] sm:$0xff] %vm298_vm0, %v8457_v49  ;;  %v8406_v14 = vadd.f32 %v9451_v62, %v14409_v16  ;;  %v9455_v49 = vld [vmem:[%s13840_s0 + $0x111] sm:$0xff]  ;;  %v8468_v54 = vmax.f32 %v8404_v10, 0.0  ;;  %v9459_v62 = vld [vmem:[%s13840_s0 + $0x141] sm:$0xff]  ;;  %v9461_v39 = vld [vmem:[%s13840_s0 + $0x159] sm:$0xff] }
 0xdd8   :  { %8522 = vst.msk [vmem:[#allocation12 + $0x28] sm:$0xff] %vm298_vm0, %v8458_v27  ;;  %v8467_v27 = vmax.f32 %v8403_v58, 0.0  ;;  %v8469_v52 = vmax.f32 %v8405_v61, 0.0  ;;  %v8410_v59 = vadd.f32 %v9455_v49, %v14413_v8  ;;  %v14414_v58 = vld [vmem:[#allocation49_spill] sm:$0xff]  ;;  %v14415_v10 = vld [vmem:[#allocation50_spill] sm:$0xff]  ;;  %v14416_v61 = vld [vmem:[#allocation51_spill] sm:$0xff] }
 0xdd9   :  { %8523 = vst.msk [vmem:[#allocation12 + $0x30] sm:$0xff] %vm298_vm0, %v8459_v15  ;;  %v8408_v15 = vadd.f32 %v9453_v1, %v14411_v45  ;;  %v9462_v16 = vld [vmem:[%s13840_s0 + $0x169] sm:$0xff]  ;;  %v14418_v35 = vld [vmem:[#allocation80_spill] sm:$0xff] }
 0xdda   :  { %8524 = vst.msk [vmem:[#allocation12 + $0x38] sm:$0xff] %vm298_vm0, %v8460_v28  ;;  %v14412_v28 = vld [vmem:[#allocation47_spill] sm:$0xff]  ;;  %v8474_v49 = vmax.f32 %v8410_v59, 0.0  ;;  %v9464_v45 = vld [vmem:[%s13840_s0 + $0x181] sm:$0xff] }
 0xddb   :  { %8525 = vst.msk [vmem:[#allocation12 + $0x40] sm:$0xff] %vm298_vm0, %v8461_v21  ;;  %v8409_v6 = vadd.f32 %v9454_v3, %v14412_v28  ;;  %v9458_v21 = vld [vmem:[%s13840_s0 + $0x139] sm:$0xff]  ;;  %v8472_v1 = vmax.f32 %v8408_v15, 0.0  ;;  %v8416_v15 = vadd.f32 %v9461_v39, %v13444_v23  ;;  %v8417_v28 = vadd.f32 %v9462_v16, %v13450_v5  ;;  %v9467_v23 = vld [vmem:[%s13840_s0 + $0x1d1] sm:$0xff]  ;;  %v9468_v5 = vld [vmem:[%s13840_s0 + $0x1e1] sm:$0xff] }
 0xddc   :  { %8526 = vst.msk [vmem:[#allocation12 + $0x48] sm:$0xff] %vm298_vm0, %v8462_v42  ;;  %v8470_v42 = vmax.f32 %v8406_v14, 0.0  ;;  %v14417_v14 = vld [vmem:[#allocation79_spill] sm:$0xff]  ;;  %v8419_v59 = vadd.f32 %v9464_v45, %v13462_v31 }
 0xddd   :  { %8527 = vst.msk [vmem:[#allocation12 + $0x50] sm:$0xff] %vm298_vm0, %v8463_v46  ;;  %v8411_v46 = vadd.f32 %v9456_v48, %v14414_v58  ;;  %v8473_v3 = vmax.f32 %v8409_v6, 0.0  ;;  %v8480_v58 = vmax.f32 %v8416_v15, 0.0  ;;  %v9470_v31 = vld [vmem:[%s13840_s0 + $0x1f9] sm:$0xff] }
 0xdde   :  { %8528 = vst.msk [vmem:[#allocation12 + $0x58] sm:$0xff] %vm298_vm0, %v8464_v17  ;;  %v8412_v17 = vadd.f32 %v9457_v19, %v14415_v10  ;;  %v9465_v19 = vld [vmem:[%s13840_s0 + $0x189] sm:$0xff] }
 0xddf   :  { %8529 = vst.msk [vmem:[#allocation12 + $0x60] sm:$0xff] %vm298_vm0, %v8465_v2  ;;  %v8413_v2 = vadd.f32 %v9458_v21, %v14416_v61  ;;  %v8475_v48 = vmax.f32 %v8411_v46, 0.0  ;;  %v8418_v21 = vadd.f32 %v9463_v56, %v13456_v57  ;;  %v9469_v57 = vld [vmem:[%s13840_s0 + $0x1e9] sm:$0xff] }
 0xde0   :  { %8530 = vst.msk [vmem:[#allocation12 + $0x68] sm:$0xff] %vm298_vm0, %v8466_v50  ;;  %v8414_v50 = vadd.f32 %v9459_v62, %v14417_v14  ;;  %v8420_v62 = vadd.f32 %v9465_v19, %v13468_v55  ;;  %v9471_v55 = vld [vmem:[%s13840_s0 + $0x201] sm:$0xff]  ;;  %v8424_v39 = vadd.f32 %v9469_v57, %v13488_v13  ;;  %v9475_v13 = vld [vmem:[%s13840_s0 + $0x231] sm:$0xff] }
 0xde1   :  { %8531 = vst.msk [vmem:[#allocation12 + $0x70] sm:$0xff] %vm298_vm0, %v8467_v27  ;;  %v8415_v27 = vadd.f32 %v9460_v40, %v14418_v35  ;;  %v8477_v6 = vmax.f32 %v8413_v2, 0.0  ;;  %v8422_v40 = vadd.f32 %v9467_v23, %v13480_v24  ;;  %v8482_v10 = vmax.f32 %v8418_v21, 0.0  ;;  %v9473_v24 = vld [vmem:[%s13840_s0 + $0x219] sm:$0xff] }
 0xde2   :  { %8532 = vst.msk [vmem:[#allocation12 + $0x78] sm:$0xff] %vm298_vm0, %v8468_v54  ;;  %v8476_v54 = vmax.f32 %v8412_v17, 0.0  ;;  %v8478_v8 = vmax.f32 %v8414_v50, 0.0  ;;  %v8423_v17 = vadd.f32 %v9468_v5, %v13484_v30  ;;  %v8484_v61 = vmax.f32 %v8420_v62, 0.0  ;;  %v9474_v30 = vld [vmem:[%s13840_s0 + $0x229] sm:$0xff] }
 0xde3   :  { %8533 = vst.msk [vmem:[#allocation12 + $0x80] sm:$0xff] %vm298_vm0, %v8469_v52  ;;  %v9466_v52 = vld [vmem:[%s13840_s0 + $0x1c9] sm:$0xff]  ;;  %v8425_v2 = vadd.f32 %v9470_v31, %v13236_v44  ;;  %v8426_v16 = vadd.f32 %v9471_v55, %v13239_v34  ;;  %v8486_v14 = vmax.f32 %v8422_v40, 0.0  ;;  %v9476_v44 = vld [vmem:[%s13840_s0 + $0x241] sm:$0xff]  ;;  %v8428_v56 = vadd.f32 %v9473_v24, %v13245_v0 }
 0xde4   :  { %8534 = vst.msk [vmem:[#allocation12 + $0x88] sm:$0xff] %vm298_vm0, %v8470_v42  ;;  %v8479_v42 = vmax.f32 %v8415_v27, 0.0  ;;  %v8421_v46 = vadd.f32 %v9466_v52, %v13474_v37  ;;  %v9472_v37 = vld [vmem:[%s13840_s0 + $0x211] sm:$0xff]  ;;  %v8488_v35 = vmax.f32 %v8424_v39, 0.0  ;;  %v9477_v34 = vld [vmem:[%s13840_s0 + $0x249] sm:$0xff]  ;;  %v8429_v27 = vadd.f32 %v9474_v30, %v13248_v33  ;;  %v9479_v0 = vld [vmem:[%s13840_s0 + $0x261] sm:$0xff] }
 0xde5   :  { %8535 = vst.msk [vmem:[#allocation12 + $0x90] sm:$0xff] %vm298_vm0, %v8471_v60  ;;  %v8481_v60 = vmax.f32 %v8417_v28, 0.0  ;;  %v8427_v50 = vadd.f32 %v9472_v37, %v13242_v38  ;;  %v9478_v38 = vld [vmem:[%s13840_s0 + $0x259] sm:$0xff]  ;;  %v8430_v45 = vadd.f32 %v9475_v13, %v13251_v18  ;;  %v8490_v15 = vmax.f32 %v8426_v16, 0.0  ;;  %v9480_v33 = vld [vmem:[%s13840_s0 + $0x271] sm:$0xff] }
 0xde6   :  { %8536 = vst.msk [vmem:[#allocation12 + $0x98] sm:$0xff] %vm298_vm0, %v8472_v1  ;;  %v8483_v1 = vmax.f32 %v8419_v59, 0.0  ;;  %v8432_v28 = vadd.f32 %v9477_v34, %v13257_v26  ;;  %v9481_v18 = vld [vmem:[%s13840_s0 + $0x279] sm:$0xff]  ;;  %v8433_v52 = vadd.f32 %v9478_v38, %v13260_v53  ;;  %v8493_v21 = vmax.f32 %v8429_v27, 0.0  ;;  %v9483_v26 = vld [vmem:[%s13840_s0 + $0x291] sm:$0xff]  ;;  %v9484_v53 = vld [vmem:[%s13840_s0 + $0x2a1] sm:$0xff] }
 0xde7   :  { %8537 = vst.msk [vmem:[#allocation12 + $0xa0] sm:$0xff] %vm298_vm0, %v8473_v3  ;;  %v8485_v3 = vmax.f32 %v8421_v46, 0.0  ;;  %v8491_v19 = vmax.f32 %v8427_v50, 0.0  ;;  %v8494_v23 = vmax.f32 %v8430_v45, 0.0  ;;  %v8435_v59 = vadd.f32 %v9480_v33, %v13266_v9  ;;  %v9486_v9 = vld [vmem:[%s13840_s0 + $0x2b9] sm:$0xff]  ;;  %v14421_v38 = vld [vmem:[#allocation34_spill] sm:$0xff] }
 0xde8   :  { %8538 = vst.msk [vmem:[#allocation12 + $0xa8] sm:$0xff] %vm298_vm0, %v8474_v49  ;;  %v8487_v49 = vmax.f32 %v8423_v17, 0.0  ;;  %v8436_v5 = vadd.f32 %v9481_v18, %v13269_v22  ;;  %v8496_v62 = vmax.f32 %v8432_v28, 0.0  ;;  %v8497_v57 = vmax.f32 %v8433_v52, 0.0  ;;  %v9487_v22 = vld [vmem:[%s13840_s0 + $0x2c1] sm:$0xff] }
 0xde9   :  { %8539 = vst.msk [vmem:[#allocation12 + $0xb0] sm:$0xff] %vm298_vm0, %v8475_v48  ;;  %v8489_v48 = vmax.f32 %v8425_v2, 0.0  ;;  %v8438_v46 = vadd.f32 %v9483_v26, %v13275_v63  ;;  %v8439_v31 = vadd.f32 %v9484_v53, %v13278_v32  ;;  %v8499_v40 = vmax.f32 %v8435_v59, 0.0  ;;  %v9489_v63 = vld [vmem:[%s13840_s0 + $0x2d9] sm:$0xff]  ;;  %v9490_v32 = vld [vmem:[%s13840_s0 + $0x2e9] sm:$0xff] }
 0xdea   :  { %8540 = vst.msk [vmem:[#allocation12 + $0xb8] sm:$0xff] %vm298_vm0, %v8476_v54  ;;  %v8431_v54 = vadd.f32 %v9476_v44, %v13254_v51  ;;  %v9482_v51 = vld [vmem:[%s13840_s0 + $0x289] sm:$0xff]  ;;  %v8500_v55 = vmax.f32 %v8436_v5, 0.0  ;;  %v8441_v17 = vadd.f32 %v9486_v9, %v13284_v25  ;;  %v8442_v37 = vadd.f32 %v9487_v22, %v13287_v41  ;;  %v9492_v25 = vld [vmem:[%s13840_s0 + $0x301] sm:$0xff] }
 0xdeb   :  { %8541 = vst.msk [vmem:[#allocation12 + $0xc0] sm:$0xff] %vm298_vm0, %v8477_v6  ;;  %v8492_v6 = vmax.f32 %v8428_v56, 0.0  ;;  %v8502_v39 = vmax.f32 %v8438_v46, 0.0  ;;  %v8503_v24 = vmax.f32 %v8439_v31, 0.0  ;;  %v8444_v2 = vadd.f32 %v9489_v63, %v13293_v20  ;;  %v9493_v41 = vld [vmem:[%s13840_s0 + $0x309] sm:$0xff]  ;;  %v9495_v20 = vld [vmem:[%s13840_s0 + $0x321] sm:$0xff] }
 0xdec   :  { %8542 = vst.msk [vmem:[#allocation12 + $0xc8] sm:$0xff] %vm298_vm0, %v8478_v8  ;;  %v8434_v8 = vadd.f32 %v9479_v0, %v13263_v4  ;;  %v9485_v4 = vld [vmem:[%s13840_s0 + $0x2a9] sm:$0xff]  ;;  %v8445_v30 = vadd.f32 %v9490_v32, %v13296_v7  ;;  %v8505_v16 = vmax.f32 %v8441_v17, 0.0  ;;  %v8506_v50 = vmax.f32 %v8442_v37, 0.0  ;;  %v9496_v7 = vld [vmem:[%s13840_s0 + $0x331] sm:$0xff] }
 0xded   :  { %8543 = vst.msk [vmem:[#allocation12 + $0xd0] sm:$0xff] %vm298_vm0, %v8479_v42  ;;  %v8495_v42 = vmax.f32 %v8431_v54, 0.0  ;;  %v8508_v34 = vmax.f32 %v8444_v2, 0.0  ;;  %v8450_v45 = vadd.f32 %v9495_v20, %v14421_v38  ;;  %v8451_v0 = vadd.f32 %v9496_v7, %v13314_v11 }
 0xdee   :  { %8544 = vst.msk [vmem:[#allocation12 + $0xd8] sm:$0xff] %vm298_vm0, %v8480_v58  ;;  %v8437_v58 = vadd.f32 %v9482_v51, %v13272_v29  ;;  %v9488_v29 = vld [vmem:[%s13840_s0 + $0x2d1] sm:$0xff] }
 0xdef   :  { %8545 = vst.msk [vmem:[#allocation12 + $0xe0] sm:$0xff] %vm298_vm0, %v8481_v60  ;;  %v8498_v60 = vmax.f32 %v8434_v8, 0.0  ;;  %v8515_v33 = vmax.f32 %v8451_v0, 0.0 }
 0xdf0   :  { %8546 = vst.msk [vmem:[#allocation12 + $0xe8] sm:$0xff] %vm298_vm0, %v8482_v10  ;;  %v8440_v10 = vadd.f32 %v9485_v4, %v13281_v12  ;;  %v9491_v12 = vld [vmem:[%s13840_s0 + $0x2f1] sm:$0xff] }
 0xdf1   :  { %8547 = vst.msk [vmem:[#allocation12 + $0xf0] sm:$0xff] %vm298_vm0, %v8483_v1  ;;  %v8501_v1 = vmax.f32 %v8437_v58, 0.0 }
 0xdf2   :  { %8548 = vst.msk [vmem:[#allocation12 + $0xf8] sm:$0xff] %vm298_vm0, %v8484_v61  ;;  %v8443_v61 = vadd.f32 %v9488_v29, %v13290_v43  ;;  %v9494_v43 = vld [vmem:[%s13840_s0 + $0x319] sm:$0xff]  ;;  %s9805_s0 = smov [#allocation12]  }
 0xdf3   :  { %8549 = vst.msk [vmem:[#allocation12 + $0x100] sm:$0xff] %vm298_vm0, %v8485_v3  ;;  %v8504_v3 = vmax.f32 %v8440_v10, 0.0  ;;  %v8449_v27 = vadd.f32 %v9494_v43, %v13308_v36  ;;  %s8585_s15 = sshll.u32 %s9805_s0, 4  ;;  %v8514_v36 = vmax.f32 %v8450_v45, 0.0  ;;  %s8586_s15 = int_to_ptr.vmem [resolvable:$true] %s8585_s15 }
 0xdf4   :  { %8550 = vst.msk [vmem:[#allocation12 + $0x108] sm:$0xff] %vm298_vm0, %v8486_v14  ;;  %v14419_v14 = vld [vmem:[#allocation32_spill] sm:$0xff]  ;;  %v8507_v56 = vmax.f32 %v8443_v61, 0.0 }
 0xdf5   :  { %8551 = vst.msk [vmem:[#allocation12 + $0x110] sm:$0xff] %vm298_vm0, %v8487_v49  ;;  %v8446_v13 = vadd.f32 %v9491_v12, %v14419_v14  ;;  %v14420_v49 = vld [vmem:[#allocation33_spill] sm:$0xff] }
 0xdf6   :  { %8552 = vst.msk [vmem:[#allocation12 + $0x118] sm:$0xff] %vm298_vm0, %v8488_v35  ;;  %v8447_v44 = vadd.f32 %v9492_v25, %v14420_v49  ;;  %v8448_v35 = vadd.f32 %v9493_v41, %v13305_v47  ;;  %v8513_v47 = vmax.f32 %v8449_v27, 0.0 }
 0xdf7   :  { %8553 = vst.msk [vmem:[#allocation12 + $0x120] sm:$0xff] %vm298_vm0, %v8489_v48  ;;  %v8509_v48 = vmax.f32 %v8445_v30, 0.0 }
 0xdf8   :  { %8554 = vst.msk [vmem:[#allocation12 + $0x128] sm:$0xff] %vm298_vm0, %v8490_v15  ;;  %v8510_v15 = vmax.f32 %v8446_v13, 0.0  ;;  %v8511_v54 = vmax.f32 %v8447_v44, 0.0 }
 0xdf9   :  { %8555 = vst.msk [vmem:[#allocation12 + $0x130] sm:$0xff] %vm298_vm0, %v8491_v19  ;;  %v8512_v19 = vmax.f32 %v8448_v35, 0.0 }
 0xdfa   :  { %8556 = vst.msk [vmem:[#allocation12 + $0x138] sm:$0xff] %vm298_vm0, %v8492_v6 }
 0xdfb   :  { %8557 = vst.msk [vmem:[#allocation12 + $0x140] sm:$0xff] %vm298_vm0, %v8493_v21 }
 0xdfc   :  { %8558 = vst.msk [vmem:[#allocation12 + $0x148] sm:$0xff] %vm298_vm0, %v8494_v23 }
 0xdfd   :  { %8559 = vst.msk [vmem:[#allocation12 + $0x150] sm:$0xff] %vm298_vm0, %v8495_v42 }
 0xdfe   :  { %8560 = vst.msk [vmem:[#allocation12 + $0x158] sm:$0xff] %vm298_vm0, %v8496_v62 }
 0xdff   :  { %8561 = vst.msk [vmem:[#allocation12 + $0x160] sm:$0xff] %vm298_vm0, %v8497_v57 }
 0xe00   :  { %8562 = vst.msk [vmem:[#allocation12 + $0x168] sm:$0xff] %vm298_vm0, %v8498_v60 }
 0xe01   :  { %8563 = vst.msk [vmem:[#allocation12 + $0x170] sm:$0xff] %vm298_vm0, %v8499_v40 }
 0xe02   :  { %8564 = vst.msk [vmem:[#allocation12 + $0x178] sm:$0xff] %vm298_vm0, %v8500_v55 }
 0xe03   :  { %8565 = vst.msk [vmem:[#allocation12 + $0x180] sm:$0xff] %vm298_vm0, %v8501_v1 }
 0xe04   :  { %8566 = vst.msk [vmem:[#allocation12 + $0x188] sm:$0xff] %vm298_vm0, %v8502_v39 }
 0xe05   :  { %8567 = vst.msk [vmem:[#allocation12 + $0x190] sm:$0xff] %vm298_vm0, %v8503_v24 }
 0xe06   :  { %8568 = vst.msk [vmem:[#allocation12 + $0x198] sm:$0xff] %vm298_vm0, %v8504_v3 }
 0xe07   :  { %8569 = vst.msk [vmem:[#allocation12 + $0x1a0] sm:$0xff] %vm298_vm0, %v8505_v16 }
 0xe08   :  { %8570 = vst.msk [vmem:[#allocation12 + $0x1a8] sm:$0xff] %vm298_vm0, %v8506_v50 }
 0xe09   :  { %8571 = vst.msk [vmem:[#allocation12 + $0x1b0] sm:$0xff] %vm298_vm0, %v8507_v56 }
 0xe0a   :  { %8572 = vst.msk [vmem:[#allocation12 + $0x1b8] sm:$0xff] %vm298_vm0, %v8508_v34 }
 0xe0b   :  { %8573 = vst.msk [vmem:[#allocation12 + $0x1c0] sm:$0xff] %vm298_vm0, %v8509_v48 }
 0xe0c   :  { %8574 = vst.msk [vmem:[#allocation12 + $0x1c8] sm:$0xff] %vm298_vm0, %v8510_v15 }
 0xe0d   :  { %8575 = vst.msk [vmem:[#allocation12 + $0x1d0] sm:$0xff] %vm298_vm0, %v8511_v54 }
 0xe0e   :  { %8576 = vst.msk [vmem:[#allocation12 + $0x1d8] sm:$0xff] %vm298_vm0, %v8512_v19 }
 0xe0f   :  { %8577 = vst.msk [vmem:[#allocation12 + $0x1e0] sm:$0xff] %vm298_vm0, %v8513_v47 }
 0xe10   :  { %8578 = vst.msk [vmem:[#allocation12 + $0x1e8] sm:$0xff] %vm298_vm0, %v8514_v36 }
 0xe11   :  { %8579 = vst.msk [vmem:[#allocation12 + $0x1f0] sm:$0xff] %vm298_vm0, %v8515_v33 }
 0xe12   :  { %8593 = dma.vmem_to_hbm [thread:$0]  %s8586_s15, 8192, %s8588_s2, [#allocation6], %s9806_s18, %s9806_s18, %s9807_s5  }
 0xe13   :  { %9798 = dma.done.wait [#allocation6], 8192  }
 0xe14   :  { %9799 = vsyncadd [#allocation6], 4294959104 }
 0xe15   :  { %8598 = vsyncpa [#allocation5], 1 }
 0xe16   :  { %8599 = vsyncpa [#allocation8], 1 }
 0xe17   :  { %8600 = vsyncpa [#allocation11], 1 }
 0xe18   :  { %8601 = vsyncpa [#allocation6], 1 }

</bundles_post_ra>
